<compile_context>
chip_gen: v6e
topology: v6e:2x2x1
jax: 0.10.0
libtpu: 0.0.40
codegen_flags: <defaults>
</compile_context>

<pallas_src>
import functools

import numpy as np
import jax
import jax.numpy as jnp
from jax.experimental import pallas as pl
from jax.experimental.pallas import tpu as pltpu


# ---------------------------------------------------------------------------
# Pallas kernel: fused key/selection 3x3 conv (MXU) + shrinkage conv + epilogues
# ---------------------------------------------------------------------------

def _key_proj_kernel(x_ref, w_ref, b_ref, wd_ref, bd_ref, o_ref, s_ref,
                     *, kh, kw, th, keydim, tco):
    """x_ref : (1, hp, wp, cin)   bf16 padded image (resident per batch element)
       w_ref : (kh, kw, cin, tco) bf16 packed [key | selection] weights
       b_ref : (1, tco)           f32 packed bias
       wd_ref: (kw, cin, kh)      bf16 shrinkage weights, wd[j][c, i] = dw[i, j, c]
       bd_ref: (1, 1)             f32 shrinkage bias
       o_ref : (1, th, wo, tco)   f32 packed key/selection row tile
       s_ref : (1, th, wo, 1)     f32 shrinkage row tile"""
    wo = o_ref.shape[2]
    cin = x_ref.shape[3]
    h0 = pl.multiple_of(pl.program_id(1) * th, th)   # element offset of the row tile
    c0 = pl.program_id(2) * tco                      # global output-channel offset

    # Rows for this output tile plus the (kh-1)-row halo.  H is a leading
    # (untiled) dim of the resident image block, so this slice is free.
    xs = x_ref[0, pl.ds(h0, th + kh - 1), :, :]      # (th+kh-1, wp, cin) bf16

    acc = b_ref[...]                                 # (1, tco) f32; broadcasts below
    d3 = jnp.zeros((th, wo, kh), jnp.float32)        # shrinkage taps, lane dim = kh
    tap = jax.lax.broadcasted_iota(jnp.int32, (1, 1, kh), 2)

    for j in range(kw):
        # One sublane retile per W shift (hoisted out of the kh tap loop; with
        # th == H this happens only once per image).
        xw = xs[:, j:j + wo, :]                      # (th+kh-1, wo, cin)
        # Shrinkage: one narrow (N = kh) matmul per shift covers all kh taps.
        mj = jnp.dot(xw.reshape((th + kh - 1) * wo, cin), wd_ref[j],
                     preferred_element_type=jnp.float32)
        mj = mj.reshape(th + kh - 1, wo, kh)
        for i in range(kh):                          # H shift: free leading-dim slice
            patch = xw[i:i + th].reshape(th * wo, cin)
            acc = acc + jnp.dot(patch, w_ref[i, j],
                                preferred_element_type=jnp.float32)
            # tap (i, j) contributes mj[i:i+th, :, i]; keep layout fixed and
            # select the lane with a one-hot mask (reduced once at the end).
            d3 = d3 + jnp.where(tap == i, mj[i:i + th], 0.0)

    # key / selection epilogue: sigmoid only on the selection lanes, chosen by a
    # cheap (1, tco) lane mask (no full-shape iota).
    lane = c0 + jax.lax.broadcasted_iota(jnp.int32, (1, tco), 1)
    sel = (lane >= keydim) & (lane < 2 * keydim)
    out = jnp.where(sel, jax.nn.sigmoid(acc), acc)
    o_ref[...] = out.reshape(1, th, wo, tco).astype(o_ref.dtype)

    # shrinkage epilogue: reduce the kh tap lanes, add bias, square + 1.
    d = jnp.sum(d3, axis=-1, keepdims=True) + bd_ref[...]   # (th, wo, 1) f32
    s_ref[...] = (d * d + 1.0).reshape(1, th, wo, 1).astype(s_ref.dtype)


def _round_up(x, m):
    return ((x + m - 1) // m) * m


def _pick_th(h, w, tco):
    # Largest row tile dividing h with M = th*w <= 512 and an f32 accumulator
    # (M, tco) no larger than ~half the vreg file (128 KiB).
    for cand in range(h, 0, -1):
        if h % cand:
            continue
        m = cand * w
        if m <= 512 and m * tco * 4 <= 128 * 1024:
            return cand
    return 1


def key_projection_forward(params, x, need_s=True, need_e=True):
    """x: (N, in_dim, H, W) f32 (NCHW, PyTorch layout).
    Returns (key, shrinkage_or_None, selection_or_None) in NCHW, matching the
    PyTorch module.  All projections are computed in one fused kernel; need_s /
    need_e only gate which outputs are returned."""
    n, cin, h, w = x.shape
    keydim = params["key"]["w"].shape[-1]
    kh = kw = 3
    pad = 1

    # Pack only [key | selection] into one lane-dense slab (no shrinkage channel
    # -> no zero-padding waste when 2*keydim is a multiple of 128).
    cout_p = _round_up(2 * keydim, 128)
    w_packed = jnp.zeros((kh, kw, cin, cout_p), jnp.float32)
    w_packed = w_packed.at[..., :keydim].set(params["key"]["w"])
    w_packed = w_packed.at[..., keydim:2 * keydim].set(params["e"]["w"])
    b_packed = jnp.zeros((1, cout_p), jnp.float32)
    b_packed = b_packed.at[0, :keydim].set(params["key"]["b"])
    b_packed = b_packed.at[0, keydim:2 * keydim].set(params["e"]["b"])

    # Shrinkage (d) weights: (kh, kw, cin, 1) -> (kw, cin, kh) so wd[j][c, i] = dw[i, j, c].
    wd = jnp.transpose(params["d"]["w"][..., 0], (1, 2, 0)).astype(jnp.bfloat16)
    bd = params["d"]["b"].reshape(1, 1).astype(jnp.float32)

    # NCHW -> NHWC (required by the PyTorch layout), cast to bf16 for the MXU,
    # then zero-pad spatially.
    # TODO(synk): if the surrounding model can supply NHWC activations, drop this
    # transpose and fold the 1-px pad into the kernel to cut wrapper HBM traffic.
    xn = jnp.transpose(x, (0, 2, 3, 1)).astype(jnp.bfloat16)
    xp = jnp.pad(xn, ((0, 0), (pad, pad), (pad, pad), (0, 0)))
    wb = w_packed.astype(jnp.bfloat16)
    hp, wp = h + 2 * pad, w + 2 * pad

    # Output-channel tile: 128 for keydim<=64 packings (also what v5e prefers);
    # 256 only when the packed slab is a clean multiple of 256.
    tco = 256 if cout_p % 256 == 0 else 128
    th = _pick_th(h, w, tco)
    # v7x shards the parallel grid axes across 2 TensorCores: expose >= 2 steps.
    if n * (h // th) < 2:
        for cand in range(th - 1, 0, -1):
            if h % cand == 0:
                th = cand
                break

    grid = (n, h // th, cout_p // tco)
    kernel = functools.partial(_key_proj_kernel, kh=kh, kw=kw, th=th,
                               keydim=keydim, tco=tco)
    out, s_out = pl.pallas_call(
        kernel,
        out_shape=(jax.ShapeDtypeStruct((n, h, w, cout_p), jnp.float32),
                   jax.ShapeDtypeStruct((n, h, w, 1), jnp.float32)),
        grid=grid,
        in_specs=[
            # Full padded image per batch element (block index ignores the row /
            # cout axes -> fetched once per batch element, resident across steps).
            # TODO(synk): for very large H*W*cin (v7x has 64 MiB VMEM/TC), tile x
            # along H with a manual halo DMA (pl.ANY + pltpu.make_async_copy).
            pl.BlockSpec((1, hp, wp, cin), lambda b, r, c: (b, 0, 0, 0)),
            pl.BlockSpec((kh, kw, cin, tco), lambda b, r, c: (0, 0, 0, c)),
            pl.BlockSpec((1, tco), lambda b, r, c: (0, c)),
            pl.BlockSpec((kw, cin, kh), lambda b, r, c: (0, 0, 0)),
            pl.BlockSpec((1, 1), lambda b, r, c: (0, 0)),
        ],
        out_specs=(
            pl.BlockSpec((1, th, w, tco), lambda b, r, c: (b, r, 0, c)),
            pl.BlockSpec((1, th, w, 1), lambda b, r, c: (b, r, 0, 0)),
        ),
        compiler_params=pltpu.CompilerParams(
            dimension_semantics=("parallel", "parallel", "arbitrary"),
            vmem_limit_bytes=48 * 1024 * 1024),   # v7x-safe (64 MiB/TC physical)
    )(xp, wb, b_packed, wd, bd)

    key_out = jnp.transpose(out[..., :keydim], (0, 3, 1, 2))
    selection = (jnp.transpose(out[..., keydim:2 * keydim], (0, 3, 1, 2))
                 if need_e else None)
    shrinkage = jnp.transpose(s_out, (0, 3, 1, 2)) if need_s else None
    return key_out, shrinkage, selection


# ---------------------------------------------------------------------------
# Deterministic synthetic parameter init (mirrors the PyTorch module init)
# ---------------------------------------------------------------------------

def init_key_projection_params(key, in_dim, keydim):
    k1, k2, k3, k4, k5 = jax.random.split(key, 5)
    # key_proj: orthogonal weight (nn.init.orthogonal_), zero bias.
    a = jax.random.normal(k1, (3 * 3 * in_dim, keydim), jnp.float32)
    q, _ = jnp.linalg.qr(a)                       # orthonormal columns
    key_w = q.reshape(3, 3, in_dim, keydim)       # HWIO
    key_b = jnp.zeros((keydim,), jnp.float32)
    scale = 1.0 / float(np.sqrt(3 * 3 * in_dim))
    d_w = scale * jax.random.normal(k2, (3, 3, in_dim, 1), jnp.float32)
    d_b = scale * jax.random.normal(k3, (1,), jnp.float32)
    e_w = scale * jax.random.normal(k4, (3, 3, in_dim, keydim), jnp.float32)
    e_b = scale * jax.random.normal(k5, (keydim,), jnp.float32)
    return {"key": {"w": key_w, "b": key_b},
            "d": {"w": d_w, "b": d_b},
            "e": {"w": e_w, "b": e_b}}


# ---------------------------------------------------------------------------
# Driver
# ---------------------------------------------------------------------------

if __name__ == "__main__":
    root = jax.random.PRNGKey(0)
    B, in_dim, keydim, H, W = 2, 256, 64, 16, 16

    pk, xk = jax.random.split(root)
    params = init_key_projection_params(pk, in_dim, keydim)
    x = jax.random.normal(xk, (B, in_dim, H, W), jnp.float32)

    fwd = jax.jit(key_projection_forward, static_argnums=(2, 3))
    key_out, shrinkage, selection = fwd(params, x, True, True)
    jax.block_until_ready((key_out, shrinkage, selection))

    assert key_out.shape == (B, keydim, H, W), key_out.shape
    assert shrinkage.shape == (B, 1, H, W), shrinkage.shape
    assert selection.shape == (B, keydim, H, W), selection.shape
    assert bool(jnp.all(jnp.isfinite(key_out)))
    assert bool(jnp.all(jnp.isfinite(shrinkage)))
    assert bool(jnp.all(jnp.isfinite(selection)))

    # Pure-JAX reference (f32, highest precision) for a sanity check.
    def conv_ref(xn_, wf, bf):
        y = jax.lax.conv_general_dilated(
            xn_, wf, window_strides=(1, 1), padding=((1, 1), (1, 1)),
            dimension_numbers=("NHWC", "HWIO", "NHWC"),
            precision=jax.lax.Precision.HIGHEST)
        return y + bf.reshape(1, 1, 1, -1)

    xn = jnp.transpose(x, (0, 2, 3, 1))
    key_ref = jnp.transpose(conv_ref(xn, params["key"]["w"], params["key"]["b"]),
                            (0, 3, 1, 2))
    d_ref = jnp.transpose(conv_ref(xn, params["d"]["w"], params["d"]["b"]),
                          (0, 3, 1, 2))
    e_ref = jnp.transpose(conv_ref(xn, params["e"]["w"], params["e"]["b"]),
                          (0, 3, 1, 2))
    shr_ref = d_ref ** 2 + 1.0
    sel_ref = jax.nn.sigmoid(e_ref)

    def rel_err(a, b):
        return float(jnp.max(jnp.abs(a - b) / (1.0 + jnp.abs(b))))

    # bf16 MXU inputs with f32 accumulation -> loose tolerance.
    assert rel_err(key_out, key_ref) < 0.05, rel_err(key_out, key_ref)
    assert rel_err(shrinkage, shr_ref) < 0.05, rel_err(shrinkage, shr_ref)
    assert rel_err(selection, sel_ref) < 0.05, rel_err(selection, sel_ref)

    print("KERNEL_OK")
</pallas_src>

<mosaic_0001>
module attributes {stable_mosaic.version = 11 : i64} {
  func.func @_key_proj_kernel(%arg0: i32, %arg1: i32, %arg2: i32, %arg3: memref<1x18x18x256xbf16, #tpu.memory_space<vmem>>, %arg4: memref<3x3x256x128xbf16, #tpu.memory_space<vmem>>, %arg5: memref<1x128xf32, #tpu.memory_space<vmem>>, %arg6: memref<3x256x3xbf16, #tpu.memory_space<vmem>>, %arg7: memref<1x1xf32, #tpu.memory_space<vmem>>, %arg8: memref<1x16x16x128xf32, #tpu.memory_space<vmem>>, %arg9: memref<1x16x16x1xf32, #tpu.memory_space<vmem>>) attributes {dimension_semantics = [#tpu.dimension_semantics<parallel>, #tpu.dimension_semantics<parallel>, #tpu.dimension_semantics<arbitrary>], iteration_bounds = array<i64: 2, 1, 1>, scalar_prefetch = 0 : i64, scratch_operands = 0 : i64, tpu.core_type = #tpu.core_type<tc>, window_params = [{transform_indices = @transform_0, window_bounds = array<i64: 1, 18, 18, 256>}, {transform_indices = @transform_1, window_bounds = array<i64: 3, 3, 256, 128>}, {transform_indices = @transform_2, window_bounds = array<i64: 1, 128>}, {pipeline_mode = #tpu.pipeline_mode<synchronous>, transform_indices = @transform_3, window_bounds = array<i64: 3, 256, 3>}, {pipeline_mode = #tpu.pipeline_mode<synchronous>, transform_indices = @transform_4, window_bounds = array<i64: 1, 1>}, {transform_indices = @transform_5, window_bounds = array<i64: 1, 16, 16, 128>}, {transform_indices = @transform_6, window_bounds = array<i64: 1, 16, 16, 1>}]} {
    %c16_i32 = arith.constant 16 : i32
    %0 = arith.muli %arg1, %c16_i32 : i32
    %1 = tpu.assume_multiple %0, 16 : i32
    %c128_i32 = arith.constant 128 : i32
    %2 = arith.muli %arg2, %c128_i32 : i32
    %c0 = arith.constant 0 : index
    %3 = arith.index_cast %1 : i32 to index
    %c0_0 = arith.constant 0 : index
    %c0_1 = arith.constant 0 : index
    %4 = vector.load %arg3[%c0, %3, %c0_0, %c0_1] : memref<1x18x18x256xbf16, #tpu.memory_space<vmem>>, vector<1x18x18x256xbf16>
    %5 = vector.shape_cast %4 : vector<1x18x18x256xbf16> to vector<18x18x256xbf16>
    %c0_2 = arith.constant 0 : index
    %c0_3 = arith.constant 0 : index
    %6 = vector.load %arg5[%c0_2, %c0_3] : memref<1x128xf32, #tpu.memory_space<vmem>>, vector<1x128xf32>
    %cst = arith.constant 0.000000e+00 : f32
    %7 = vector.broadcast %cst : f32 to vector<16x16x3xf32>
    %8 = tpu.iota {dimensions = array<i32: 2>} : vector<1x1x3xi32>
    %9 = vector.extract_strided_slice %5 {offsets = [0, 0, 0], sizes = [18, 16, 256], strides = [1, 1, 1]} : vector<18x18x256xbf16> to vector<18x16x256xbf16>
    %10 = vector.shape_cast %9 : vector<18x16x256xbf16> to vector<288x256xbf16>
    %c0_4 = arith.constant 0 : index
    %c0_5 = arith.constant 0 : index
    %c0_6 = arith.constant 0 : index
    %11 = vector.load %arg6[%c0_4, %c0_5, %c0_6] : memref<3x256x3xbf16, #tpu.memory_space<vmem>>, vector<1x256x3xbf16>
    %12 = vector.shape_cast %11 : vector<1x256x3xbf16> to vector<256x3xbf16>
    %cst_7 = arith.constant dense<0.000000e+00> : vector<288x3xf32>
    %13 = tpu.matmul %10, %12, %cst_7 {dimension_numbers = #tpu.dot_dimension_numbers<[1], [0], [0], [1], [0, 0, 1, 1], [], []>} : vector<288x256xbf16>, vector<256x3xbf16>, vector<288x3xf32> -> vector<288x3xf32>
    %14 = vector.shape_cast %13 : vector<288x3xf32> to vector<18x16x3xf32>
    %15 = vector.extract_strided_slice %9 {offsets = [0, 0, 0], sizes = [16, 16, 256], strides = [1, 1, 1]} : vector<18x16x256xbf16> to vector<16x16x256xbf16>
    %16 = vector.shape_cast %15 : vector<16x16x256xbf16> to vector<256x256xbf16>
    %c0_8 = arith.constant 0 : index
    %c0_9 = arith.constant 0 : index
    %c0_10 = arith.constant 0 : index
    %c0_11 = arith.constant 0 : index
    %17 = vector.load %arg4[%c0_8, %c0_9, %c0_10, %c0_11] : memref<3x3x256x128xbf16, #tpu.memory_space<vmem>>, vector<1x1x256x128xbf16>
    %18 = vector.shape_cast %17 : vector<1x1x256x128xbf16> to vector<256x128xbf16>
    %cst_12 = arith.constant dense<0.000000e+00> : vector<256x128xf32>
    %19 = tpu.matmul %16, %18, %cst_12 {dimension_numbers = #tpu.dot_dimension_numbers<[1], [0], [0], [1], [0, 0, 1, 1], [], []>} : vector<256x256xbf16>, vector<256x128xbf16>, vector<256x128xf32> -> vector<256x128xf32>
    %20 = vector.broadcast %6 : vector<1x128xf32> to vector<256x128xf32>
    %21 = arith.addf %20, %19 : vector<256x128xf32>
    %c0_i32 = arith.constant 0 : i32
    %22 = vector.broadcast %c0_i32 : i32 to vector<1x1x3xi32>
    %23 = arith.cmpi eq, %8, %22 : vector<1x1x3xi32>
    %24 = vector.extract_strided_slice %14 {offsets = [0, 0, 0], sizes = [16, 16, 3], strides = [1, 1, 1]} : vector<18x16x3xf32> to vector<16x16x3xf32>
    %cst_13 = arith.constant 0.000000e+00 : f32
    %25 = vector.shape_cast %23 : vector<1x1x3xi1> to vector<1x1x3xi1>
    %26 = vector.broadcast %25 : vector<1x1x3xi1> to vector<16x16x3xi1>
    %27 = vector.broadcast %cst_13 : f32 to vector<16x16x3xf32>
    %28 = arith.select %26, %24, %27 : vector<16x16x3xi1>, vector<16x16x3xf32>
    %29 = arith.addf %7, %28 : vector<16x16x3xf32>
    %30 = vector.extract_strided_slice %9 {offsets = [1, 0, 0], sizes = [16, 16, 256], strides = [1, 1, 1]} : vector<18x16x256xbf16> to vector<16x16x256xbf16>
    %31 = vector.shape_cast %30 : vector<16x16x256xbf16> to vector<256x256xbf16>
    %c1 = arith.constant 1 : index
    %c0_14 = arith.constant 0 : index
    %c0_15 = arith.constant 0 : index
    %c0_16 = arith.constant 0 : index
    %32 = vector.load %arg4[%c1, %c0_14, %c0_15, %c0_16] : memref<3x3x256x128xbf16, #tpu.memory_space<vmem>>, vector<1x1x256x128xbf16>
    %33 = vector.shape_cast %32 : vector<1x1x256x128xbf16> to vector<256x128xbf16>
    %cst_17 = arith.constant dense<0.000000e+00> : vector<256x128xf32>
    %34 = tpu.matmul %31, %33, %cst_17 {dimension_numbers = #tpu.dot_dimension_numbers<[1], [0], [0], [1], [0, 0, 1, 1], [], []>} : vector<256x256xbf16>, vector<256x128xbf16>, vector<256x128xf32> -> vector<256x128xf32>
    %35 = arith.addf %21, %34 : vector<256x128xf32>
    %c1_i32 = arith.constant 1 : i32
    %36 = vector.broadcast %c1_i32 : i32 to vector<1x1x3xi32>
    %37 = arith.cmpi eq, %8, %36 : vector<1x1x3xi32>
    %38 = vector.extract_strided_slice %14 {offsets = [1, 0, 0], sizes = [16, 16, 3], strides = [1, 1, 1]} : vector<18x16x3xf32> to vector<16x16x3xf32>
    %cst_18 = arith.constant 0.000000e+00 : f32
    %39 = vector.shape_cast %37 : vector<1x1x3xi1> to vector<1x1x3xi1>
    %40 = vector.broadcast %39 : vector<1x1x3xi1> to vector<16x16x3xi1>
    %41 = vector.broadcast %cst_18 : f32 to vector<16x16x3xf32>
    %42 = arith.select %40, %38, %41 : vector<16x16x3xi1>, vector<16x16x3xf32>
    %43 = arith.addf %29, %42 : vector<16x16x3xf32>
    %44 = vector.extract_strided_slice %9 {offsets = [2, 0, 0], sizes = [16, 16, 256], strides = [1, 1, 1]} : vector<18x16x256xbf16> to vector<16x16x256xbf16>
    %45 = vector.shape_cast %44 : vector<16x16x256xbf16> to vector<256x256xbf16>
    %c2 = arith.constant 2 : index
    %c0_19 = arith.constant 0 : index
    %c0_20 = arith.constant 0 : index
    %c0_21 = arith.constant 0 : index
    %46 = vector.load %arg4[%c2, %c0_19, %c0_20, %c0_21] : memref<3x3x256x128xbf16, #tpu.memory_space<vmem>>, vector<1x1x256x128xbf16>
    %47 = vector.shape_cast %46 : vector<1x1x256x128xbf16> to vector<256x128xbf16>
    %cst_22 = arith.constant dense<0.000000e+00> : vector<256x128xf32>
    %48 = tpu.matmul %45, %47, %cst_22 {dimension_numbers = #tpu.dot_dimension_numbers<[1], [0], [0], [1], [0, 0, 1, 1], [], []>} : vector<256x256xbf16>, vector<256x128xbf16>, vector<256x128xf32> -> vector<256x128xf32>
    %49 = arith.addf %35, %48 : vector<256x128xf32>
    %c2_i32 = arith.constant 2 : i32
    %50 = vector.broadcast %c2_i32 : i32 to vector<1x1x3xi32>
    %51 = arith.cmpi eq, %8, %50 : vector<1x1x3xi32>
    %52 = vector.extract_strided_slice %14 {offsets = [2, 0, 0], sizes = [16, 16, 3], strides = [1, 1, 1]} : vector<18x16x3xf32> to vector<16x16x3xf32>
    %cst_23 = arith.constant 0.000000e+00 : f32
    %53 = vector.shape_cast %51 : vector<1x1x3xi1> to vector<1x1x3xi1>
    %54 = vector.broadcast %53 : vector<1x1x3xi1> to vector<16x16x3xi1>
    %55 = vector.broadcast %cst_23 : f32 to vector<16x16x3xf32>
    %56 = arith.select %54, %52, %55 : vector<16x16x3xi1>, vector<16x16x3xf32>
    %57 = arith.addf %43, %56 : vector<16x16x3xf32>
    %58 = vector.extract_strided_slice %5 {offsets = [0, 1, 0], sizes = [18, 16, 256], strides = [1, 1, 1]} : vector<18x18x256xbf16> to vector<18x16x256xbf16>
    %59 = vector.shape_cast %58 : vector<18x16x256xbf16> to vector<288x256xbf16>
    %c1_24 = arith.constant 1 : index
    %c0_25 = arith.constant 0 : index
    %c0_26 = arith.constant 0 : index
    %60 = vector.load %arg6[%c1_24, %c0_25, %c0_26] : memref<3x256x3xbf16, #tpu.memory_space<vmem>>, vector<1x256x3xbf16>
    %61 = vector.shape_cast %60 : vector<1x256x3xbf16> to vector<256x3xbf16>
    %cst_27 = arith.constant dense<0.000000e+00> : vector<288x3xf32>
    %62 = tpu.matmul %59, %61, %cst_27 {dimension_numbers = #tpu.dot_dimension_numbers<[1], [0], [0], [1], [0, 0, 1, 1], [], []>} : vector<288x256xbf16>, vector<256x3xbf16>, vector<288x3xf32> -> vector<288x3xf32>
    %63 = vector.shape_cast %62 : vector<288x3xf32> to vector<18x16x3xf32>
    %64 = vector.extract_strided_slice %58 {offsets = [0, 0, 0], sizes = [16, 16, 256], strides = [1, 1, 1]} : vector<18x16x256xbf16> to vector<16x16x256xbf16>
    %65 = vector.shape_cast %64 : vector<16x16x256xbf16> to vector<256x256xbf16>
    %c0_28 = arith.constant 0 : index
    %c1_29 = arith.constant 1 : index
    %c0_30 = arith.constant 0 : index
    %c0_31 = arith.constant 0 : index
    %66 = vector.load %arg4[%c0_28, %c1_29, %c0_30, %c0_31] : memref<3x3x256x128xbf16, #tpu.memory_space<vmem>>, vector<1x1x256x128xbf16>
    %67 = vector.shape_cast %66 : vector<1x1x256x128xbf16> to vector<256x128xbf16>
    %cst_32 = arith.constant dense<0.000000e+00> : vector<256x128xf32>
    %68 = tpu.matmul %65, %67, %cst_32 {dimension_numbers = #tpu.dot_dimension_numbers<[1], [0], [0], [1], [0, 0, 1, 1], [], []>} : vector<256x256xbf16>, vector<256x128xbf16>, vector<256x128xf32> -> vector<256x128xf32>
    %69 = arith.addf %49, %68 : vector<256x128xf32>
    %c0_i32_33 = arith.constant 0 : i32
    %70 = vector.broadcast %c0_i32_33 : i32 to vector<1x1x3xi32>
    %71 = arith.cmpi eq, %8, %70 : vector<1x1x3xi32>
    %72 = vector.extract_strided_slice %63 {offsets = [0, 0, 0], sizes = [16, 16, 3], strides = [1, 1, 1]} : vector<18x16x3xf32> to vector<16x16x3xf32>
    %cst_34 = arith.constant 0.000000e+00 : f32
    %73 = vector.shape_cast %71 : vector<1x1x3xi1> to vector<1x1x3xi1>
    %74 = vector.broadcast %73 : vector<1x1x3xi1> to vector<16x16x3xi1>
    %75 = vector.broadcast %cst_34 : f32 to vector<16x16x3xf32>
    %76 = arith.select %74, %72, %75 : vector<16x16x3xi1>, vector<16x16x3xf32>
    %77 = arith.addf %57, %76 : vector<16x16x3xf32>
    %78 = vector.extract_strided_slice %58 {offsets = [1, 0, 0], sizes = [16, 16, 256], strides = [1, 1, 1]} : vector<18x16x256xbf16> to vector<16x16x256xbf16>
    %79 = vector.shape_cast %78 : vector<16x16x256xbf16> to vector<256x256xbf16>
    %c1_35 = arith.constant 1 : index
    %c1_36 = arith.constant 1 : index
    %c0_37 = arith.constant 0 : index
    %c0_38 = arith.constant 0 : index
    %80 = vector.load %arg4[%c1_35, %c1_36, %c0_37, %c0_38] : memref<3x3x256x128xbf16, #tpu.memory_space<vmem>>, vector<1x1x256x128xbf16>
    %81 = vector.shape_cast %80 : vector<1x1x256x128xbf16> to vector<256x128xbf16>
    %cst_39 = arith.constant dense<0.000000e+00> : vector<256x128xf32>
    %82 = tpu.matmul %79, %81, %cst_39 {dimension_numbers = #tpu.dot_dimension_numbers<[1], [0], [0], [1], [0, 0, 1, 1], [], []>} : vector<256x256xbf16>, vector<256x128xbf16>, vector<256x128xf32> -> vector<256x128xf32>
    %83 = arith.addf %69, %82 : vector<256x128xf32>
    %c1_i32_40 = arith.constant 1 : i32
    %84 = vector.broadcast %c1_i32_40 : i32 to vector<1x1x3xi32>
    %85 = arith.cmpi eq, %8, %84 : vector<1x1x3xi32>
    %86 = vector.extract_strided_slice %63 {offsets = [1, 0, 0], sizes = [16, 16, 3], strides = [1, 1, 1]} : vector<18x16x3xf32> to vector<16x16x3xf32>
    %cst_41 = arith.constant 0.000000e+00 : f32
    %87 = vector.shape_cast %85 : vector<1x1x3xi1> to vector<1x1x3xi1>
    %88 = vector.broadcast %87 : vector<1x1x3xi1> to vector<16x16x3xi1>
    %89 = vector.broadcast %cst_41 : f32 to vector<16x16x3xf32>
    %90 = arith.select %88, %86, %89 : vector<16x16x3xi1>, vector<16x16x3xf32>
    %91 = arith.addf %77, %90 : vector<16x16x3xf32>
    %92 = vector.extract_strided_slice %58 {offsets = [2, 0, 0], sizes = [16, 16, 256], strides = [1, 1, 1]} : vector<18x16x256xbf16> to vector<16x16x256xbf16>
    %93 = vector.shape_cast %92 : vector<16x16x256xbf16> to vector<256x256xbf16>
    %c2_42 = arith.constant 2 : index
    %c1_43 = arith.constant 1 : index
    %c0_44 = arith.constant 0 : index
    %c0_45 = arith.constant 0 : index
    %94 = vector.load %arg4[%c2_42, %c1_43, %c0_44, %c0_45] : memref<3x3x256x128xbf16, #tpu.memory_space<vmem>>, vector<1x1x256x128xbf16>
    %95 = vector.shape_cast %94 : vector<1x1x256x128xbf16> to vector<256x128xbf16>
    %cst_46 = arith.constant dense<0.000000e+00> : vector<256x128xf32>
    %96 = tpu.matmul %93, %95, %cst_46 {dimension_numbers = #tpu.dot_dimension_numbers<[1], [0], [0], [1], [0, 0, 1, 1], [], []>} : vector<256x256xbf16>, vector<256x128xbf16>, vector<256x128xf32> -> vector<256x128xf32>
    %97 = arith.addf %83, %96 : vector<256x128xf32>
    %c2_i32_47 = arith.constant 2 : i32
    %98 = vector.broadcast %c2_i32_47 : i32 to vector<1x1x3xi32>
    %99 = arith.cmpi eq, %8, %98 : vector<1x1x3xi32>
    %100 = vector.extract_strided_slice %63 {offsets = [2, 0, 0], sizes = [16, 16, 3], strides = [1, 1, 1]} : vector<18x16x3xf32> to vector<16x16x3xf32>
    %cst_48 = arith.constant 0.000000e+00 : f32
    %101 = vector.shape_cast %99 : vector<1x1x3xi1> to vector<1x1x3xi1>
    %102 = vector.broadcast %101 : vector<1x1x3xi1> to vector<16x16x3xi1>
    %103 = vector.broadcast %cst_48 : f32 to vector<16x16x3xf32>
    %104 = arith.select %102, %100, %103 : vector<16x16x3xi1>, vector<16x16x3xf32>
    %105 = arith.addf %91, %104 : vector<16x16x3xf32>
    %106 = vector.extract_strided_slice %5 {offsets = [0, 2, 0], sizes = [18, 16, 256], strides = [1, 1, 1]} : vector<18x18x256xbf16> to vector<18x16x256xbf16>
    %107 = vector.shape_cast %106 : vector<18x16x256xbf16> to vector<288x256xbf16>
    %c2_49 = arith.constant 2 : index
    %c0_50 = arith.constant 0 : index
    %c0_51 = arith.constant 0 : index
    %108 = vector.load %arg6[%c2_49, %c0_50, %c0_51] : memref<3x256x3xbf16, #tpu.memory_space<vmem>>, vector<1x256x3xbf16>
    %109 = vector.shape_cast %108 : vector<1x256x3xbf16> to vector<256x3xbf16>
    %cst_52 = arith.constant dense<0.000000e+00> : vector<288x3xf32>
    %110 = tpu.matmul %107, %109, %cst_52 {dimension_numbers = #tpu.dot_dimension_numbers<[1], [0], [0], [1], [0, 0, 1, 1], [], []>} : vector<288x256xbf16>, vector<256x3xbf16>, vector<288x3xf32> -> vector<288x3xf32>
    %111 = vector.shape_cast %110 : vector<288x3xf32> to vector<18x16x3xf32>
    %112 = vector.extract_strided_slice %106 {offsets = [0, 0, 0], sizes = [16, 16, 256], strides = [1, 1, 1]} : vector<18x16x256xbf16> to vector<16x16x256xbf16>
    %113 = vector.shape_cast %112 : vector<16x16x256xbf16> to vector<256x256xbf16>
    %c0_53 = arith.constant 0 : index
    %c2_54 = arith.constant 2 : index
    %c0_55 = arith.constant 0 : index
    %c0_56 = arith.constant 0 : index
    %114 = vector.load %arg4[%c0_53, %c2_54, %c0_55, %c0_56] : memref<3x3x256x128xbf16, #tpu.memory_space<vmem>>, vector<1x1x256x128xbf16>
    %115 = vector.shape_cast %114 : vector<1x1x256x128xbf16> to vector<256x128xbf16>
    %cst_57 = arith.constant dense<0.000000e+00> : vector<256x128xf32>
    %116 = tpu.matmul %113, %115, %cst_57 {dimension_numbers = #tpu.dot_dimension_numbers<[1], [0], [0], [1], [0, 0, 1, 1], [], []>} : vector<256x256xbf16>, vector<256x128xbf16>, vector<256x128xf32> -> vector<256x128xf32>
    %117 = arith.addf %97, %116 : vector<256x128xf32>
    %c0_i32_58 = arith.constant 0 : i32
    %118 = vector.broadcast %c0_i32_58 : i32 to vector<1x1x3xi32>
    %119 = arith.cmpi eq, %8, %118 : vector<1x1x3xi32>
    %120 = vector.extract_strided_slice %111 {offsets = [0, 0, 0], sizes = [16, 16, 3], strides = [1, 1, 1]} : vector<18x16x3xf32> to vector<16x16x3xf32>
    %cst_59 = arith.constant 0.000000e+00 : f32
    %121 = vector.shape_cast %119 : vector<1x1x3xi1> to vector<1x1x3xi1>
    %122 = vector.broadcast %121 : vector<1x1x3xi1> to vector<16x16x3xi1>
    %123 = vector.broadcast %cst_59 : f32 to vector<16x16x3xf32>
    %124 = arith.select %122, %120, %123 : vector<16x16x3xi1>, vector<16x16x3xf32>
    %125 = arith.addf %105, %124 : vector<16x16x3xf32>
    %126 = vector.extract_strided_slice %106 {offsets = [1, 0, 0], sizes = [16, 16, 256], strides = [1, 1, 1]} : vector<18x16x256xbf16> to vector<16x16x256xbf16>
    %127 = vector.shape_cast %126 : vector<16x16x256xbf16> to vector<256x256xbf16>
    %c1_60 = arith.constant 1 : index
    %c2_61 = arith.constant 2 : index
    %c0_62 = arith.constant 0 : index
    %c0_63 = arith.constant 0 : index
    %128 = vector.load %arg4[%c1_60, %c2_61, %c0_62, %c0_63] : memref<3x3x256x128xbf16, #tpu.memory_space<vmem>>, vector<1x1x256x128xbf16>
    %129 = vector.shape_cast %128 : vector<1x1x256x128xbf16> to vector<256x128xbf16>
    %cst_64 = arith.constant dense<0.000000e+00> : vector<256x128xf32>
    %130 = tpu.matmul %127, %129, %cst_64 {dimension_numbers = #tpu.dot_dimension_numbers<[1], [0], [0], [1], [0, 0, 1, 1], [], []>} : vector<256x256xbf16>, vector<256x128xbf16>, vector<256x128xf32> -> vector<256x128xf32>
    %131 = arith.addf %117, %130 : vector<256x128xf32>
    %c1_i32_65 = arith.constant 1 : i32
    %132 = vector.broadcast %c1_i32_65 : i32 to vector<1x1x3xi32>
    %133 = arith.cmpi eq, %8, %132 : vector<1x1x3xi32>
    %134 = vector.extract_strided_slice %111 {offsets = [1, 0, 0], sizes = [16, 16, 3], strides = [1, 1, 1]} : vector<18x16x3xf32> to vector<16x16x3xf32>
    %cst_66 = arith.constant 0.000000e+00 : f32
    %135 = vector.shape_cast %133 : vector<1x1x3xi1> to vector<1x1x3xi1>
    %136 = vector.broadcast %135 : vector<1x1x3xi1> to vector<16x16x3xi1>
    %137 = vector.broadcast %cst_66 : f32 to vector<16x16x3xf32>
    %138 = arith.select %136, %134, %137 : vector<16x16x3xi1>, vector<16x16x3xf32>
    %139 = arith.addf %125, %138 : vector<16x16x3xf32>
    %140 = vector.extract_strided_slice %106 {offsets = [2, 0, 0], sizes = [16, 16, 256], strides = [1, 1, 1]} : vector<18x16x256xbf16> to vector<16x16x256xbf16>
    %141 = vector.shape_cast %140 : vector<16x16x256xbf16> to vector<256x256xbf16>
    %c2_67 = arith.constant 2 : index
    %c2_68 = arith.constant 2 : index
    %c0_69 = arith.constant 0 : index
    %c0_70 = arith.constant 0 : index
    %142 = vector.load %arg4[%c2_67, %c2_68, %c0_69, %c0_70] : memref<3x3x256x128xbf16, #tpu.memory_space<vmem>>, vector<1x1x256x128xbf16>
    %143 = vector.shape_cast %142 : vector<1x1x256x128xbf16> to vector<256x128xbf16>
    %cst_71 = arith.constant dense<0.000000e+00> : vector<256x128xf32>
    %144 = tpu.matmul %141, %143, %cst_71 {dimension_numbers = #tpu.dot_dimension_numbers<[1], [0], [0], [1], [0, 0, 1, 1], [], []>} : vector<256x256xbf16>, vector<256x128xbf16>, vector<256x128xf32> -> vector<256x128xf32>
    %145 = arith.addf %131, %144 : vector<256x128xf32>
    %c2_i32_72 = arith.constant 2 : i32
    %146 = vector.broadcast %c2_i32_72 : i32 to vector<1x1x3xi32>
    %147 = arith.cmpi eq, %8, %146 : vector<1x1x3xi32>
    %148 = vector.extract_strided_slice %111 {offsets = [2, 0, 0], sizes = [16, 16, 3], strides = [1, 1, 1]} : vector<18x16x3xf32> to vector<16x16x3xf32>
    %cst_73 = arith.constant 0.000000e+00 : f32
    %149 = vector.shape_cast %147 : vector<1x1x3xi1> to vector<1x1x3xi1>
    %150 = vector.broadcast %149 : vector<1x1x3xi1> to vector<16x16x3xi1>
    %151 = vector.broadcast %cst_73 : f32 to vector<16x16x3xf32>
    %152 = arith.select %150, %148, %151 : vector<16x16x3xi1>, vector<16x16x3xf32>
    %153 = arith.addf %139, %152 : vector<16x16x3xf32>
    %154 = tpu.iota {dimensions = array<i32: 1>} : vector<1x128xi32>
    %155 = vector.broadcast %2 : i32 to vector<1x128xi32>
    %156 = arith.addi %155, %154 : vector<1x128xi32>
    %c64_i32 = arith.constant 64 : i32
    %157 = vector.broadcast %c64_i32 : i32 to vector<1x128xi32>
    %158 = arith.cmpi sge, %156, %157 : vector<1x128xi32>
    %c128_i32_74 = arith.constant 128 : i32
    %159 = vector.broadcast %c128_i32_74 : i32 to vector<1x128xi32>
    %160 = arith.cmpi slt, %156, %159 : vector<1x128xi32>
    %161 = arith.andi %158, %160 : vector<1x128xi1>
    %162 = arith.negf %145 : vector<256x128xf32>
    %163 = math.exp %162 : vector<256x128xf32>
    %cst_75 = arith.constant 1.000000e+00 : f32
    %164 = vector.broadcast %cst_75 : f32 to vector<256x128xf32>
    %165 = arith.addf %164, %163 : vector<256x128xf32>
    %166 = arith.divf %164, %165 : vector<256x128xf32>
    %167 = vector.shape_cast %161 : vector<1x128xi1> to vector<1x128xi1>
    %168 = vector.broadcast %167 : vector<1x128xi1> to vector<256x128xi1>
    %169 = arith.select %168, %166, %145 : vector<256x128xi1>, vector<256x128xf32>
    %170 = vector.shape_cast %169 : vector<256x128xf32> to vector<1x16x16x128xf32>
    %c0_76 = arith.constant 0 : index
    %c0_77 = arith.constant 0 : index
    %c0_78 = arith.constant 0 : index
    %c0_79 = arith.constant 0 : index
    %171 = vector.load %arg8[%c0_76, %c0_77, %c0_78, %c0_79] : memref<1x16x16x128xf32, #tpu.memory_space<vmem>>, vector<1x16x16x128xf32>
    tpu.vector_store %arg8[%c0_76, %c0_77, %c0_78, %c0_79], %170 {strides = array<i32>} : memref<1x16x16x128xf32, #tpu.memory_space<vmem>>, vector<1x16x16x128xf32>,
    %cst_80 = arith.constant dense<0.000000e+00> : vector<16x16xf32>
    %172 = vector.multi_reduction <add>, %153, %cst_80 [2] : vector<16x16x3xf32> to vector<16x16xf32>
    %173 = vector.shape_cast %172 : vector<16x16xf32> to vector<16x16x1xf32>
    %c0_81 = arith.constant 0 : index
    %c0_82 = arith.constant 0 : index
    %174 = vector.load %arg7[%c0_81, %c0_82] : memref<1x1xf32, #tpu.memory_space<vmem>>, vector<1x1xf32>
    %175 = vector.shape_cast %174 : vector<1x1xf32> to vector<1x1x1xf32>
    %176 = vector.broadcast %175 : vector<1x1x1xf32> to vector<16x16x1xf32>
    %177 = arith.addf %173, %176 : vector<16x16x1xf32>
    %178 = arith.mulf %177, %177 : vector<16x16x1xf32>
    %cst_83 = arith.constant 1.000000e+00 : f32
    %179 = vector.broadcast %cst_83 : f32 to vector<16x16x1xf32>
    %180 = arith.addf %178, %179 : vector<16x16x1xf32>
    %181 = vector.shape_cast %180 : vector<16x16x1xf32> to vector<1x16x16x1xf32>
    %c0_84 = arith.constant 0 : index
    %c0_85 = arith.constant 0 : index
    %c0_86 = arith.constant 0 : index
    %c0_87 = arith.constant 0 : index
    %182 = vector.load %arg9[%c0_84, %c0_85, %c0_86, %c0_87] : memref<1x16x16x1xf32, #tpu.memory_space<vmem>>, vector<1x16x16x1xf32>
    tpu.vector_store %arg9[%c0_84, %c0_85, %c0_86, %c0_87], %181 {strides = array<i32>} : memref<1x16x16x1xf32, #tpu.memory_space<vmem>>, vector<1x16x16x1xf32>,
    return
  }
  func.func @transform_0(%arg0: i32, %arg1: i32, %arg2: i32) -> (i32, i32, i32, i32) {
    %c0_i32 = arith.constant 0 : i32
    %c0_i32_0 = arith.constant 0 : i32
    %c0_i32_1 = arith.constant 0 : i32
    %c0_i32_2 = arith.constant 0 : i32
    return %arg0, %c0_i32, %c0_i32_0, %c0_i32_1 : i32, i32, i32, i32
  }
  func.func @transform_1(%arg0: i32, %arg1: i32, %arg2: i32) -> (i32, i32, i32, i32) {
    %c0_i32 = arith.constant 0 : i32
    %c0_i32_0 = arith.constant 0 : i32
    %c0_i32_1 = arith.constant 0 : i32
    %c0_i32_2 = arith.constant 0 : i32
    return %c0_i32, %c0_i32_0, %c0_i32_1, %arg2 : i32, i32, i32, i32
  }
  func.func @transform_2(%arg0: i32, %arg1: i32, %arg2: i32) -> (i32, i32) {
    %c0_i32 = arith.constant 0 : i32
    %c0_i32_0 = arith.constant 0 : i32
    return %c0_i32, %arg2 : i32, i32
  }
  func.func @transform_3(%arg0: i32, %arg1: i32, %arg2: i32) -> (i32, i32, i32) {
    %c0_i32 = arith.constant 0 : i32
    %c0_i32_0 = arith.constant 0 : i32
    %c0_i32_1 = arith.constant 0 : i32
    %c0_i32_2 = arith.constant 0 : i32
    return %c0_i32, %c0_i32_0, %c0_i32_1 : i32, i32, i32
  }
  func.func @transform_4(%arg0: i32, %arg1: i32, %arg2: i32) -> (i32, i32) {
    %c0_i32 = arith.constant 0 : i32
    %c0_i32_0 = arith.constant 0 : i32
    %c0_i32_1 = arith.constant 0 : i32
    return %c0_i32, %c0_i32_0 : i32, i32
  }
  func.func @transform_5(%arg0: i32, %arg1: i32, %arg2: i32) -> (i32, i32, i32, i32) {
    %c0_i32 = arith.constant 0 : i32
    %c0_i32_0 = arith.constant 0 : i32
    return %arg0, %arg1, %c0_i32, %arg2 : i32, i32, i32, i32
  }
  func.func @transform_6(%arg0: i32, %arg1: i32, %arg2: i32) -> (i32, i32, i32, i32) {
    %c0_i32 = arith.constant 0 : i32
    %c0_i32_0 = arith.constant 0 : i32
    %c0_i32_1 = arith.constant 0 : i32
    return %arg0, %arg1, %c0_i32, %c0_i32_0 : i32, i32, i32, i32
  }
}

</mosaic_0001>

<bundles_post_ra>
// kernel: key_projection_forward.1
= control target key start
LH: loop header
LB: loop body
LE: loop exit
PB: predicated region body
PF: predicated region fallthrough
CT: control target
= control target key end

     0   :  { %s8799_s23 = smov 0   ;;  %s8801_s24 = smov 0   ;;  %s12560_s0 = inlined_call_operand.vmem [shape: bf16[2,18,18,256], index: 0, kind: input, shape index: {}]   ;;  %s12561_s1 = inlined_call_operand.vmem [shape: bf16[3,3,256,128], index: 1, kind: input, shape index: {}]   ;;  %s12562_s2 = inlined_call_operand.vmem [shape: f32[1,128], index: 2, kind: input, shape index: {}]   ;;  %s12563_s3 = inlined_call_operand.vmem [shape: bf16[3,256,3], index: 3, kind: input, shape index: {}]   ;;  %s12564_s4 = inlined_call_operand.<no memory space> [shape: f32[1,1], index: 4, kind: input, shape index: {}]   ;;  %s12565_s5 = inlined_call_operand.vmem [shape: f32[2,16,16,128], index: 5, kind: output, shape index: {0}]   ;;  %s12566_s6 = inlined_call_operand.vmem [shape: f32[2,16,16,1], index: 6, kind: output, shape index: {1}]  }
   0x1   :  { %v12_v0 = vstv %s12564_s4  ;;  %s8803_s25 = smov 0  }
   0x2   :  { %13 = vst [vmem:[#allocation2] sm:$0x1] %v12_v0 }
   0x3 LB: > { %s38_s4 = sadd.s32 1, %s8754_s24  ;;  %p6556_p0 = scmp.ge.s32.totalorder %s8758_s25, 1  ;;  %s8758_s25 = sphi %s8803_s25, %s19_s25   ;;  %s8754_s24 = sphi %s8801_s24, %s12940_s24   ;;  %s8750_s23 = sphi %s8799_s23, %s12939_s23  }
   0x4   : > { %p40_p1 = scmp.ge.s32.totalorder %s38_s4, 2  ;;  %p259_p2 = scmp.lt.s32.totalorder %s8758_s25, 3 }
   0x6   : > { %s12942_s4 = smov (%p40_p1, %s38_s4), 0  ;;  %p260_p3 = pnand %p6556_p0, %p259_p2 }
   0x8   : > { %263 = sbr.rel (%p260_p3) target bundleno = 1086 (0x43e), region = 40 }
   0xd   : > { %v8288_v1 = vld [vmem:[%s12563_s3 + $0x38] sm:$0xff]   ;;  %v12567_v2 = vmov 0   ;;  %v8291_v5 = vld [vmem:[%s12563_s3 + $0x30] sm:$0xff]   ;;  %v8294_v8 = vld [vmem:[%s12563_s3 + $0x28] sm:$0xff]   ;;  %p314_p4 = scmp.lt.s32.totalorder %s8750_s23, 1  ;;  %vm4132_vm6 = vcmask 1042432  }
   0xe   : > { %722 = vmatprep.subr.bf16.mxu0 %v12567_v2  ;;  %v8289_v3 = vld [vmem:[%s12561_s1 + $0x78] sm:$0xff]   ;;  %v8292_v6 = vld [vmem:[%s12561_s1 + $0x70] sm:$0xff]   ;;  %v8295_v9 = vld [vmem:[%s12561_s1 + $0x68] sm:$0xff]   ;;  %vm2071_vm2 = vsmask.f32 3328  ;;  %vm4133_vm7 = vcmask 1046532  }
   0xf   : > { %723 = vmatpush1.bf16.msra.mxu0 %v8288_v1  ;;  %v8290_v4 = vld [vmem:[%s12561_s1 + $0x38] sm:$0xff]   ;;  %7238 = vmatprep.subr.bf16.mxu1 %v8289_v3  ;;  %v8293_v7 = vld [vmem:[%s12561_s1 + $0x30] sm:$0xff]   ;;  %v8296_v10 = vld [vmem:[%s12561_s1 + $0x28] sm:$0xff]   ;;  %s12944_s23 = smov (!%p314_p4, %s8750_s23), 1  ;;  %vm2072_vm3 = vsmask.f32 7440 }
  0x10   : > { %724 = vmatprep.subr.bf16.mxu0 %v12567_v2  ;;  %7239 = vmatpush3.bf16.msra.mxu1 %v8290_v4  ;;  %v8297_v11 = vld [vmem:[%s12563_s3 + $0x20] sm:$0xff]   ;;  %v8301_v14 = vld [vmem:[%s12561_s1 + $0x58] sm:$0xff]   ;;  %v8304_v17 = vld [vmem:[%s12561_s1 + $0x50] sm:$0xff]   ;;  %s8262_s13 = smul.u32 432, %s12944_s23  ;;  %vm6132_vm9 = vcmask 23552   ;;  %vm6332_vm10 = vcmask 7168  }
  0x11   : > { %7240 = vmatprep.subr.bf16.mxu1 %v8292_v6  ;;  %v8298_v12 = vld [vmem:[%s12561_s1 + $0x60] sm:$0xff]   ;;  %v8300_v15 = vld [vmem:[%s12563_s3 + $0x18] sm:$0xff]   ;;  %v8303_v18 = vld [vmem:[%s12563_s3 + $0x10] sm:$0xff]  }
  0x12   : > { %v8299_v13 = vld [vmem:[%s12561_s1 + $0x20] sm:$0xff]   ;;  %v8302_v16 = vld [vmem:[%s12561_s1 + $0x18] sm:$0xff]   ;;  %v8305_v19 = vld [vmem:[%s12561_s1 + $0x10] sm:$0xff]   ;;  %s8890_s22 = scalar_lea.vmem %s12560_s0, %s8262_s13 }
  0x13   : > { %725 = vmatpush1.bf16.msra.mxu0 %v8291_v5  ;;  %v8307_v20 = vld [vmem:[%s12561_s1 + $0x48] sm:$0xff]   ;;  %v357_v23 = vld [vmem:[%s8890_s22] sm:$0xff]  ;;  %v8315_v29 = vld [vmem:[%s12561_s1 + $0x1f8] sm:$0xff]  }
  0x14   : > { %726 = vmatprep.subr.bf16.mxu0 %v12567_v2  ;;  %7241 = vmatpush3.bf16.msra.mxu1 %v8293_v7  ;;  %v8306_v21 = vld [vmem:[%s12563_s3 + $0x8] sm:$0xff]   ;;  %v8310_v25 = vld [vmem:[%s12561_s1 + $0x40] sm:$0xff]   ;;  %v360_v30 = vld [vmem:[%s8890_s22 + $0x18] sm:$0xff] }
  0x15   : > { %7242 = vmatprep.subr.bf16.mxu1 %v8295_v9  ;;  %v8308_v22 = vld [vmem:[%s12561_s1 + $0x8] sm:$0xff]   ;;  %v8309_v27 = vld [vmem:[%s12563_s3] sm:$0xff]   ;;  %v8313_v32 = vld [vmem:[%s12563_s3 + $0x78] sm:$0xff]  }
  0x16   : > { %v358_v24 = vld [vmem:[%s8890_s22 + $0x8] sm:$0xff]  ;;  %v8311_v28 = vld [vmem:[%s12561_s1] sm:$0xff]   ;;  %v8316_v34 = vld [vmem:[%s12561_s1 + $0x1b8] sm:$0xff]  }
  0x17   : > { %727 = vmatpush1.bf16.msra.mxu0 %v8294_v8  ;;  %v6563_v26 = vcombine.high %v357_v23, %v358_v24  ;;  %v361_v31 = vld [vmem:[%s8890_s22 + $0x20] sm:$0xff]  ;;  %v8920_v33 = vcombine.low %v357_v23, %v358_v24  ;;  %v8325_v36 = vld [vmem:[%s12561_s1 + $0x1f0] sm:$0xff]   ;;  %v364_v40 = vld [vmem:[%s8890_s22 + $0x38] sm:$0xff] }
  0x18   : > { %728 = vmatprep.subr.bf16.mxu0 %v12567_v2  ;;  %7243 = vmatpush3.bf16.msra.mxu1 %v8296_v10  ;;  %v8925_v35 = vcombine.high %v360_v30, %v361_v31  ;;  %v8317_v37 = vld [vmem:[%s12563_s3 + $0x70] sm:$0xff]   ;;  %v8319_v41 = vld [vmem:[%s12563_s3 + $0x68] sm:$0xff]   ;;  %v8945_v42 = vcombine.low %v360_v30, %v361_v31  ;;  %v8321_v45 = vld [vmem:[%s12563_s3 + $0x60] sm:$0xff]  }
  0x19   : > { %7244 = vmatprep.subr.bf16.mxu1 %v8298_v12  ;;  %1059 = vmatprep.mubr.bf16.mxu1 %v6563_v26  ;;  %v363_v38 = vld [vmem:[%s8890_s22 + $0x30] sm:$0xff]  ;;  %v8334_v44 = vld [vmem:[%s12561_s1 + $0x1e8] sm:$0xff]   ;;  %v8323_v47 = vld [vmem:[%s12563_s3 + $0x58] sm:$0xff]  }
  0x1a   : > { %754 = vmatprep.mubr.bf16.mxu0 %v6563_v26  ;;  %v8326_v39 = vld [vmem:[%s12561_s1 + $0x1b0] sm:$0xff]   ;;  %v8947_v43 = vcombine.high %v363_v38, %v364_v40  ;;  %v8336_v46 = vld [vmem:[%s12561_s1 + $0x1a8] sm:$0xff]   ;;  %v8342_v50 = vld [vmem:[%s12561_s1 + $0x1e0] sm:$0xff]   ;;  %v8973_v52 = vcombine.low %v363_v38, %v364_v40 }
  0x1b   : > { %729 = vmatpush1.bf16.msra.mxu0 %v8297_v11  ;;  %v366_v48 = vld [vmem:[%s8890_s22 + $0x48] sm:$0xff]  ;;  %v367_v49 = vld [vmem:[%s8890_s22 + $0x50] sm:$0xff]  ;;  %v8343_v51 = vld [vmem:[%s12561_s1 + $0x1a0] sm:$0xff]  }
  0x1c   : > { %730 = vmatprep.subr.bf16.mxu0 %v12567_v2  ;;  %7245 = vmatpush3.bf16.msra.mxu1 %v8299_v13  ;;  %v8975_v53 = vcombine.high %v366_v48, %v367_v49  ;;  %v8327_v54 = vld [vmem:[%s12563_s3 + $0x50] sm:$0xff]   ;;  %v8350_v55 = vld [vmem:[%s12561_s1 + $0x1d8] sm:$0xff]   ;;  %v369_v57 = vld [vmem:[%s8890_s22 + $0x60] sm:$0xff]  ;;  %v8995_v60 = vcombine.low %v366_v48, %v367_v49 }
  0x1d   : > { %7246 = vmatprep.subr.bf16.mxu1 %v8301_v14  ;;  %v8351_v56 = vld [vmem:[%s12561_s1 + $0x198] sm:$0xff]   ;;  %v370_v58 = vld [vmem:[%s8890_s22 + $0x68] sm:$0xff]  ;;  %v8358_v62 = vld [vmem:[%s12561_s1 + $0x1d0] sm:$0xff]  }
  0x1e   : > { %v8329_v59 = vld [vmem:[%s12563_s3 + $0x48] sm:$0xff]   ;;  %v8997_v61 = vcombine.high %v369_v57, %v370_v58  ;;  %v8359_v63 = vld [vmem:[%s12561_s1 + $0x190] sm:$0xff]   ;;  %v8331_v0 = vld [vmem:[%s12563_s3 + $0x40] sm:$0xff]   ;;  %v9025_v8 = vcombine.low %v369_v57, %v370_v58 }
  0x1f   : > { %731 = vmatpush1.bf16.msra.mxu0 %v8300_v15  ;;  %v8335_v1 = vld [vmem:[%s12561_s1 + $0x378] sm:$0xff]   ;;  %v373_v4 = vld [vmem:[%s8890_s22 + $0x80] sm:$0xff]  ;;  %v8366_v5 = vld [vmem:[%s12561_s1 + $0x1c8] sm:$0xff]  }
  0x20   : > { %732 = vmatprep.subr.bf16.mxu0 %v12567_v2  ;;  %7247 = vmatpush3.bf16.msra.mxu1 %v8302_v16  ;;  %v372_v3 = vld [vmem:[%s8890_s22 + $0x78] sm:$0xff]  ;;  %v8367_v7 = vld [vmem:[%s12561_s1 + $0x188] sm:$0xff]   ;;  %v8344_v9 = vld [vmem:[%s12561_s1 + $0x370] sm:$0xff]  }
  0x21   : > { %7248 = vmatprep.subr.bf16.mxu1 %v8304_v17  ;;  %v8337_v6 = vld [vmem:[%s12561_s1 + $0x338] sm:$0xff]   ;;  %v9030_v10 = vcombine.high %v372_v3, %v373_v4  ;;  %v8345_v11 = vld [vmem:[%s12561_s1 + $0x330] sm:$0xff]   ;;  %v8352_v12 = vld [vmem:[%s12561_s1 + $0x368] sm:$0xff]  }
  0x22   : > { %v8374_v13 = vld [vmem:[%s12561_s1 + $0x1c0] sm:$0xff]   ;;  %v375_v15 = vld [vmem:[%s8890_s22 + $0x90] sm:$0xff]  ;;  %v376_v16 = vld [vmem:[%s8890_s22 + $0x98] sm:$0xff] }
  0x23   : > { %733 = vmatpush1.bf16.msra.mxu0 %v8303_v18  ;;  %v8375_v14 = vld [vmem:[%s12561_s1 + $0x180] sm:$0xff]   ;;  %v8353_v17 = vld [vmem:[%s12561_s1 + $0x328] sm:$0xff]   ;;  %v9054_v18 = vcombine.low %v372_v3, %v373_v4  ;;  %v379_v24 = vld [vmem:[%s8890_s22 + $0xb0] sm:$0xff]  ;;  %v9076_v26 = vcombine.low %v375_v15, %v376_v16 }
  0x24   : > { %734 = vmatprep.subr.bf16.mxu0 %v12567_v2  ;;  %7249 = vmatpush3.bf16.msra.mxu1 %v8305_v19  ;;  %v8360_v19 = vld [vmem:[%s12561_s1 + $0x360] sm:$0xff]   ;;  %v378_v23 = vld [vmem:[%s8890_s22 + $0xa8] sm:$0xff]  ;;  %v399_v3 = vld [vmem:[%s8890_s22 + $0x150] sm:$0xff] }
  0x25   : > { %7250 = vmatprep.subr.bf16.mxu1 %v8307_v20  ;;  %v9059_v20 = vcombine.high %v375_v15, %v376_v16  ;;  %v381_v30 = vld [vmem:[%s8890_s22 + $0xc0] sm:$0xff]  ;;  %v382_v31 = vld [vmem:[%s8890_s22 + $0xc8] sm:$0xff]  ;;  %v400_v4 = vld [vmem:[%s8890_s22 + $0x158] sm:$0xff] }
  0x26   : > { %v8389_v38 = vld [vmem:[%s12561_s1 + $0x300] sm:$0xff]   ;;  %v394_v57 = vld [vmem:[%s8890_s22 + $0x128] sm:$0xff]  ;;  %v8381_v15 = vld [vmem:[%s12563_s3 + $0xb0] sm:$0xff]  }
  0x27   : > { %735 = vmatpush1.bf16.msra.mxu0 %v8306_v21  ;;  %v8362_v21 = vld [vmem:[%s12561_s1 + $0x320] sm:$0xff]   ;;  %v8390_v16 = vld [vmem:[%s12563_s3 + $0x98] sm:$0xff]   ;;  %vm9422_vm5 = vmor %vm2071_vm2, %vm2072_vm3 }
  0x28   : > { %736 = vmatprep.subr.bf16.mxu0 %v12567_v2  ;;  %7251 = vmatpush3.bf16.msra.mxu1 %v8308_v22  ;;  %v8370_v22 = vld [vmem:[%s12561_s1 + $0x358] sm:$0xff]   ;;  %v385_v40 = vld [vmem:[%s8890_s22 + $0xe0] sm:$0xff]  ;;  %vm10783_vm8 = vmor %vm4132_vm6, %vm4133_vm7 }
  0x29   : > { %7252 = vmatprep.subr.bf16.mxu1 %v8310_v25  ;;  %v8371_v25 = vld [vmem:[%s12561_s1 + $0x318] sm:$0xff]  }
  0x2b   : > { %737 = vmatpush1.bf16.msra.mxu0 %v8309_v27  ;;  %v8378_v27 = vld [vmem:[%s12561_s1 + $0x350] sm:$0xff]  }
  0x2c   : > { %738 = vmatprep.subr.bf16.mxu0 %v12567_v2  ;;  %7253 = vmatpush3.bf16.msra.mxu1 %v8311_v28  ;;  %v9081_v28 = vcombine.high %v378_v23, %v379_v24 }
  0x2d   : > { %7350 = vmatprep.subr.bf16.mxu1 %v8315_v29  ;;  %v8379_v29 = vld [vmem:[%s12561_s1 + $0x310] sm:$0xff]  }
  0x2f   : > { %739 = vmatpush2.bf16.msra.mxu0 %v8313_v32  ;;  %1060 = vmatmul.mubr.bf16.vlgmr.msra.gmra.mxu1 %v8920_v33  ;;  %v8382_v32 = vld [vmem:[%s12561_s1 + $0x348] sm:$0xff]  }
  0x30   : > { %740 = vmatprep.subr.bf16.mxu0 %v12567_v2  ;;  %7351 = vmatpush3.bf16.msra.mxu1 %v8316_v34  ;;  %v8387_v34 = vld [vmem:[%s12561_s1 + $0x340] sm:$0xff]  }
  0x31   : > { %1067 = vmatprep.mubr.bf16.mxu1 %v8925_v35  ;;  %7352 = vmatprep.subr.bf16.mxu1 %v8325_v36  ;;  %v9101_v36 = vcombine.low %v378_v23, %v379_v24  ;;  %v8395_v23 = vld [vmem:[%s12563_s3 + $0x88] sm:$0xff]   ;;  %v408_v24 = vld [vmem:[%s8890_s22 + $0x198] sm:$0xff] }
  0x33   : > { %741 = vmatpush2.bf16.msra.mxu0 %v8317_v37  ;;  %v9103_v37 = vcombine.high %v381_v30, %v382_v31 }
  0x34   : > { %742 = vmatprep.subr.bf16.mxu0 %v12567_v2  ;;  %7353 = vmatpush3.bf16.msra.mxu1 %v8326_v39  ;;  %v384_v39 = vld [vmem:[%s8890_s22 + $0xd8] sm:$0xff] }
  0x35   : > { %7354 = vmatprep.subr.bf16.mxu1 %v8334_v44  ;;  %v9117_v44 = vcombine.low %v381_v30, %v382_v31  ;;  %v9127_v48 = vcombine.low %v384_v39, %v385_v40  ;;  %v8399_v31 = vld [vmem:[%s12563_s3 + $0xf8] sm:$0xff]  }
  0x37   : > { %743 = vmatpush2.bf16.msra.mxu0 %v8319_v41  ;;  %1068 = vmatmul.mubr.bf16.gmra.mxu1 %v8945_v42  ;;  %v8394_v41 = vld [vmem:[%s12561_s1 + $0xf8] sm:$0xff]  }
  0x38   : > { %744 = vmatprep.subr.bf16.mxu0 %v12567_v2  ;;  %1075 = vmatprep.mubr.bf16.mxu1 %v8947_v43 }
  0x39   : > { %7355 = vmatpush3.bf16.msra.mxu1 %v8336_v46  ;;  %v387_v46 = vld [vmem:[%s8890_s22 + $0xf0] sm:$0xff] }
  0x3a   : > { %7356 = vmatprep.subr.bf16.mxu1 %v8342_v50  ;;  %v390_v50 = vld [vmem:[%s8890_s22 + $0x108] sm:$0xff] }
  0x3b   : > { %745 = vmatpush2.bf16.msra.mxu0 %v8321_v45  ;;  %v9119_v45 = vcombine.high %v384_v39, %v385_v40  ;;  %v8396_v39 = vld [vmem:[%s12561_s1 + $0xb8] sm:$0xff]   ;;  %v8398_v40 = vld [vmem:[%s12561_s1 + $0xf0] sm:$0xff]  }
  0x3c   : > { %746 = vmatprep.subr.bf16.mxu0 %v12567_v2 }
  0x3d   : > { %7357 = vmatpush3.bf16.msra.mxu1 %v8343_v51  ;;  %v391_v51 = vld [vmem:[%s8890_s22 + $0x110] sm:$0xff] }
  0x3e   : > { %7358 = vmatprep.subr.bf16.mxu1 %v8350_v55  ;;  %v9139_v55 = vcombine.high %v390_v50, %v391_v51  ;;  %v9147_v58 = vcombine.low %v390_v50, %v391_v51  ;;  %v8411_v50 = vld [vmem:[%s12563_s3 + $0xc8] sm:$0xff]   ;;  %v8408_v51 = vld [vmem:[%s12561_s1 + $0xa0] sm:$0xff]  }
  0x3f   : > { %747 = vmatpush2.bf16.msra.mxu0 %v8323_v47  ;;  %1076 = vmatmul.mubr.bf16.gmra.mxu1 %v8973_v52  ;;  %v388_v47 = vld [vmem:[%s8890_s22 + $0xf8] sm:$0xff] }
  0x40   : > { %748 = vmatprep.subr.bf16.mxu0 %v12567_v2  ;;  %1083 = vmatprep.mubr.bf16.mxu1 %v8975_v53  ;;  %v9129_v49 = vcombine.high %v387_v46, %v388_v47 }
  0x41   : > { %7359 = vmatpush3.bf16.msra.mxu1 %v8351_v56  ;;  %v393_v56 = vld [vmem:[%s8890_s22 + $0x120] sm:$0xff] }
  0x42   : > { %7360 = vmatprep.subr.bf16.mxu1 %v8358_v62  ;;  %v396_v62 = vld [vmem:[%s8890_s22 + $0x138] sm:$0xff] }
  0x43   : > { %749 = vmatpush2.bf16.msra.mxu0 %v8327_v54  ;;  %v9137_v54 = vcombine.low %v387_v46, %v388_v47  ;;  %v8402_v46 = vld [vmem:[%s12561_s1 + $0xe8] sm:$0xff]   ;;  %v8406_v47 = vld [vmem:[%s12561_s1 + $0xe0] sm:$0xff]  }
  0x44   : > { %750 = vmatprep.subr.bf16.mxu0 %v12567_v2 }
  0x45   : > { %7361 = vmatpush3.bf16.msra.mxu1 %v8359_v63  ;;  %v397_v63 = vld [vmem:[%s8890_s22 + $0x140] sm:$0xff] }
  0x46   : > { %7362 = vmatprep.subr.bf16.mxu1 %v8366_v5  ;;  %v9167_v5 = vcombine.low %v396_v62, %v397_v63 }
  0x47   : > { %751 = vmatpush2.bf16.msra.mxu0 %v8329_v59  ;;  %1084 = vmatmul.mubr.bf16.gmra.mxu1 %v8995_v60  ;;  %v9149_v59 = vcombine.high %v393_v56, %v394_v57 }
  0x48   : > { %752 = vmatprep.subr.bf16.mxu0 %v12567_v2  ;;  %1091 = vmatprep.mubr.bf16.mxu1 %v8997_v61 }
  0x49   : > { %7363 = vmatpush3.bf16.msra.mxu1 %v8367_v7  ;;  %v402_v7 = vld [vmem:[%s8890_s22 + $0x168] sm:$0xff] }
  0x4a   : > { %7364 = vmatprep.subr.bf16.mxu1 %v8374_v13 }
  0x4b   : > { %753 = vmatpush2.bf16.msra.mxu0 %v8331_v0  ;;  %v9157_v0 = vcombine.low %v393_v56, %v394_v57  ;;  %v8410_v56 = vld [vmem:[%s12561_s1 + $0xd8] sm:$0xff]  }
  0x4c   : > { %7462 = vmatprep.subr.bf16.mxu0 %v8335_v1  ;;  %v9159_v1 = vcombine.high %v396_v62, %v397_v63  ;;  %v8412_v57 = vld [vmem:[%s12561_s1 + $0x98] sm:$0xff]   ;;  %v8414_v62 = vld [vmem:[%s12561_s1 + $0xd0] sm:$0xff]  }
  0x4d   : > { %7365 = vmatpush3.bf16.msra.mxu1 %v8375_v14  ;;  %v8380_v14 = vld [vmem:[%s12563_s3 + $0xb8] sm:$0xff]   ;;  %v8416_v63 = vld [vmem:[%s12561_s1 + $0x90] sm:$0xff]  }
  0x4e   : > { %755 = vmatmul.mubr.bf16.vlgmr.msra.gmra.mxu0 %v8920_v33  ;;  %2779 = vmatprep.subr.bf16.mxu1 %v12567_v2  ;;  %v8383_v33 = vld [vmem:[%s12561_s1 + $0x308] sm:$0xff]  }
  0x4f   : > { %7463 = vmatpush3.bf16.msra.mxu0 %v8337_v6  ;;  %762 = vmatprep.mubr.bf16.mxu0 %v8925_v35  ;;  %v9169_v6 = vcombine.high %v399_v3, %v400_v4 }
  0x50   : > { %1092 = vmatmul.mubr.bf16.gmra.mxu1 %v9025_v8  ;;  %7464 = vmatprep.subr.bf16.mxu0 %v8344_v9  ;;  %v403_v9 = vld [vmem:[%s8890_s22 + $0x170] sm:$0xff] }
  0x51   : > { %1099 = vmatprep.mubr.bf16.mxu1 %v9030_v10  ;;  %v9185_v13 = vcombine.low %v402_v7, %v403_v9 }
  0x53   : > { %7465 = vmatpush3.bf16.msra.mxu0 %v8345_v11  ;;  %v9177_v11 = vcombine.low %v399_v3, %v400_v4  ;;  %v8418_v4 = vld [vmem:[%s12561_s1 + $0xc8] sm:$0xff]  }
  0x54   : > { %7466 = vmatprep.subr.bf16.mxu0 %v8352_v12  ;;  %v9179_v12 = vcombine.high %v402_v7, %v403_v9 }
  0x56   : > { %763 = vmatmul.mubr.bf16.gmra.mxu0 %v8945_v42 }
  0x57   : > { %770 = vmatprep.mubr.bf16.mxu0 %v8947_v43  ;;  %7467 = vmatpush3.bf16.msra.mxu0 %v8353_v17  ;;  %v405_v17 = vld [vmem:[%s8890_s22 + $0x180] sm:$0xff] }
  0x58   : > { %1100 = vmatmul.mubr.bf16.gmra.mxu1 %v9054_v18  ;;  %7468 = vmatprep.subr.bf16.mxu0 %v8360_v19  ;;  %v406_v19 = vld [vmem:[%s8890_s22 + $0x188] sm:$0xff] }
  0x59   : > { %1107 = vmatprep.mubr.bf16.mxu1 %v9059_v20 }
  0x5b   : > { %7469 = vmatpush3.bf16.msra.mxu0 %v8362_v21  ;;  %v8393_v21 = vld [vmem:[%s12563_s3 + $0x90] sm:$0xff]  }
  0x5c   : > { %7470 = vmatprep.subr.bf16.mxu0 %v8370_v22  ;;  %v9228_v22 = vcombine.high %v405_v17, %v406_v19 }
  0x5e   : > { %771 = vmatmul.mubr.bf16.gmra.mxu0 %v8973_v52 }
  0x5f   : > { %778 = vmatprep.mubr.bf16.mxu0 %v8975_v53  ;;  %7471 = vmatpush3.bf16.msra.mxu0 %v8371_v25  ;;  %v409_v25 = vld [vmem:[%s8890_s22 + $0x1a0] sm:$0xff] }
  0x60   : > { %1108 = vmatmul.mubr.bf16.gmra.mxu1 %v9076_v26  ;;  %7472 = vmatprep.subr.bf16.mxu0 %v8378_v27  ;;  %v8397_v27 = vld [vmem:[%s12563_s3 + $0x80] sm:$0xff]   ;;  %v9246_v30 = vcombine.high %v408_v24, %v409_v25 }
  0x61   : > { %1115 = vmatprep.mubr.bf16.mxu1 %v9081_v28 }
  0x63   : > { %7473 = vmatpush3.bf16.msra.mxu0 %v8379_v29  ;;  %v9243_v29 = vcombine.low %v405_v17, %v406_v19  ;;  %v8426_v17 = vld [vmem:[%s12561_s1 + $0x3f8] sm:$0xff]  }
  0x64   : > { %7474 = vmatprep.subr.bf16.mxu0 %v8382_v32  ;;  %v8401_v32 = vld [vmem:[%s12563_s3 + $0xf0] sm:$0xff]  }
  0x66   : > { %779 = vmatmul.mubr.bf16.gmra.mxu0 %v8995_v60 }
  0x67   : > { %786 = vmatprep.mubr.bf16.mxu0 %v8997_v61  ;;  %7475 = vmatpush3.bf16.msra.mxu0 %v8383_v33  ;;  %v9259_v33 = vcombine.low %v408_v24, %v409_v25 }
  0x68   : > { %1116 = vmatmul.mubr.bf16.gmra.mxu1 %v9101_v36  ;;  %7476 = vmatprep.subr.bf16.mxu0 %v8387_v34  ;;  %v8403_v34 = vld [vmem:[%s12563_s3 + $0xe8] sm:$0xff]  }
  0x69   : > { %1123 = vmatprep.mubr.bf16.mxu1 %v9103_v37 }
  0x6b   : > { %7477 = vmatpush3.bf16.msra.mxu0 %v8389_v38  ;;  %v8405_v38 = vld [vmem:[%s12563_s3 + $0xe0] sm:$0xff]  }
  0x6c   : > { %7574 = vmatprep.subr.bf16.mxu0 %v8394_v41  ;;  %v8400_v41 = vld [vmem:[%s12561_s1 + $0xb0] sm:$0xff]  }
  0x6e   : > { %787 = vmatmul.mubr.bf16.gmra.mxu0 %v9025_v8 }
  0x6f   : > { %794 = vmatprep.mubr.bf16.mxu0 %v9030_v10 }
  0x70   : > { %1124 = vmatmul.mubr.bf16.gmra.mxu1 %v9117_v44 }
  0x71   : > { %1131 = vmatprep.mubr.bf16.mxu1 %v9119_v45 }
  0x76   : > { %795 = vmatmul.mubr.bf16.gmra.mxu0 %v9054_v18 }
  0x77   : > { %802 = vmatprep.mubr.bf16.mxu0 %v9059_v20 }
  0x78   : > { %1132 = vmatmul.mubr.bf16.gmra.mxu1 %v9127_v48 }
  0x79   : > { %1139 = vmatprep.mubr.bf16.mxu1 %v9129_v49 }
  0x7e   : > { %803 = vmatmul.mubr.bf16.gmra.mxu0 %v9076_v26 }
  0x7f   : > { %810 = vmatprep.mubr.bf16.mxu0 %v9081_v28 }
  0x80   : > { %1140 = vmatmul.mubr.bf16.gmra.mxu1 %v9137_v54 }
  0x81   : > { %1147 = vmatprep.mubr.bf16.mxu1 %v9139_v55 }
  0x86   : > { %811 = vmatmul.mubr.bf16.gmra.mxu0 %v9101_v36 }
  0x87   : > { %818 = vmatprep.mubr.bf16.mxu0 %v9103_v37 }
  0x88   : > { %1148 = vmatmul.mubr.bf16.gmra.mxu1 %v9147_v58 }
  0x89   : > { %1155 = vmatprep.mubr.bf16.mxu1 %v9149_v59 }
  0x8e   : > { %819 = vmatmul.mubr.bf16.gmra.mxu0 %v9117_v44 }
  0x8f   : > { %826 = vmatprep.mubr.bf16.mxu0 %v9119_v45 }
  0x90   : > { %1156 = vmatmul.mubr.bf16.gmra.mxu1 %v9157_v0 }
  0x91   : > { %1163 = vmatprep.mubr.bf16.mxu1 %v9159_v1 }
  0x96   : > { %827 = vmatmul.mubr.bf16.gmra.mxu0 %v9127_v48 }
  0x97   : > { %834 = vmatprep.mubr.bf16.mxu0 %v9129_v49 }
  0x98   : > { %1164 = vmatmul.mubr.bf16.gmra.mxu1 %v9167_v5 }
  0x99   : > { %1171 = vmatprep.mubr.bf16.mxu1 %v9169_v6 }
  0x9e   : > { %835 = vmatmul.mubr.bf16.gmra.mxu0 %v9137_v54 }
  0x9f   : > { %842 = vmatprep.mubr.bf16.mxu0 %v9139_v55 }
  0xa0   : > { %1172 = vmatmul.mubr.bf16.gmra.mxu1 %v9177_v11 }
  0xa1   : > { %1179 = vmatprep.mubr.bf16.mxu1 %v9179_v12 }
  0xa6   : > { %843 = vmatmul.mubr.bf16.gmra.mxu0 %v9147_v58 }
  0xa7   : > { %850 = vmatprep.mubr.bf16.mxu0 %v9149_v59 }
  0xa8   : > { %1180 = vmatmul.mubr.bf16.gmra.mxu1 %v9185_v13 }
  0xa9   : > { %1454 = vmatprep.mubr.bf16.mxu1 %v8925_v35  ;;  %v8384_v35 = vld [vmem:[%s12563_s3 + $0xa8] sm:$0xff]  }
  0xae   : > { %851 = vmatmul.mubr.bf16.gmra.mxu0 %v9157_v0 }
  0xaf   : > { %858 = vmatprep.mubr.bf16.mxu0 %v9159_v1 }
  0xb0   : > { %1455 = vmatmul.mubr.bf16.vlgmr.msra.gmra.mxu1 %v8945_v42  ;;  %v8385_v42 = vld [vmem:[%s12563_s3 + $0xa0] sm:$0xff]  }
  0xb1   : > { %2780 = vmatpush1.bf16.msra.mxu1 %v8380_v14  ;;  %1462 = vmatprep.mubr.bf16.mxu1 %v8947_v43  ;;  %v8422_v14 = vld [vmem:[%s12561_s1 + $0xc0] sm:$0xff]  }
  0xb2   : > { %2781 = vmatprep.subr.bf16.mxu1 %v12567_v2 }
  0xb5   : > { %2782 = vmatpush1.bf16.msra.mxu1 %v8381_v15 }
  0xb6   : > { %859 = vmatmul.mubr.bf16.gmra.mxu0 %v9167_v5  ;;  %2783 = vmatprep.subr.bf16.mxu1 %v12567_v2 }
  0xb7   : > { %866 = vmatprep.mubr.bf16.mxu0 %v9169_v6 }
  0xb8   : > { %1463 = vmatmul.mubr.bf16.gmra.mxu1 %v8973_v52 }
  0xb9   : > { %1470 = vmatprep.mubr.bf16.mxu1 %v8975_v53  ;;  %2784 = vmatpush1.bf16.msra.mxu1 %v8384_v35 }
  0xba   : > { %2785 = vmatprep.subr.bf16.mxu1 %v12567_v2 }
  0xbd   : > { %2786 = vmatpush1.bf16.msra.mxu1 %v8385_v42  ;;  %v8423_v42 = vld [vmem:[%s12561_s1 + $0x80] sm:$0xff]  }
  0xbe   : > { %867 = vmatmul.mubr.bf16.gmra.mxu0 %v9177_v11  ;;  %2787 = vmatprep.subr.bf16.mxu1 %v12567_v2 }
  0xbf   : > { %874 = vmatprep.mubr.bf16.mxu0 %v9179_v12 }
  0xc0   : > { %1471 = vmatmul.mubr.bf16.gmra.mxu1 %v8995_v60 }
  0xc1   : > { %1478 = vmatprep.mubr.bf16.mxu1 %v8997_v61  ;;  %2788 = vmatpush1.bf16.msra.mxu1 %v8390_v16 }
  0xc2   : > { %2789 = vmatprep.subr.bf16.mxu1 %v12567_v2 }
  0xc5   : > { %2790 = vmatpush1.bf16.msra.mxu1 %v8393_v21 }
  0xc6   : > { %875 = vmatmul.mubr.bf16.gmra.mxu0 %v9185_v13  ;;  %2791 = vmatprep.subr.bf16.mxu1 %v12567_v2 }
  0xc7   : > { %882 = vmatprep.mubr.bf16.mxu0 %v9228_v22 }
  0xc8   : > { %1479 = vmatmul.mubr.bf16.gmra.mxu1 %v9025_v8 }
  0xc9   : > { %1486 = vmatprep.mubr.bf16.mxu1 %v9030_v10  ;;  %2792 = vmatpush1.bf16.msra.mxu1 %v8395_v23 }
  0xca   : > { %2793 = vmatprep.subr.bf16.mxu1 %v12567_v2 }
  0xcd   : > { %2794 = vmatpush1.bf16.msra.mxu1 %v8397_v27 }
  0xce   : > { %883 = vmatmul.mubr.bf16.gmra.mxu0 %v9243_v29  ;;  %2795 = vmatprep.subr.bf16.mxu1 %v12567_v2 }
  0xcf   : > { %890 = vmatprep.mubr.bf16.mxu0 %v9246_v30 }
  0xd0   : > { %1487 = vmatmul.mubr.bf16.gmra.mxu1 %v9054_v18 }
  0xd1   : > { %1494 = vmatprep.mubr.bf16.mxu1 %v9059_v20  ;;  %2796 = vmatpush2.bf16.msra.mxu1 %v8399_v31 }
  0xd2   : > { %2797 = vmatprep.subr.bf16.mxu1 %v12567_v2 }
  0xd5   : > { %2798 = vmatpush2.bf16.msra.mxu1 %v8401_v32 }
  0xd6   : > { %891 = vmatmul.mubr.bf16.gmra.mxu0 %v9259_v33  ;;  %2799 = vmatprep.subr.bf16.mxu1 %v12567_v2 }
  0xd7   : > { %1843 = vmatprep.mubr.bf16.mxu0 %v8947_v43  ;;  %v8407_v43 = vld [vmem:[%s12563_s3 + $0xd8] sm:$0xff]  }
  0xd8   : > { %1495 = vmatmul.mubr.bf16.gmra.mxu1 %v9076_v26 }
  0xd9   : > { %1502 = vmatprep.mubr.bf16.mxu1 %v9081_v28  ;;  %2800 = vmatpush2.bf16.msra.mxu1 %v8403_v34 }
  0xda   : > { %2801 = vmatprep.subr.bf16.mxu1 %v12567_v2 }
  0xdd   : > { %2802 = vmatpush2.bf16.msra.mxu1 %v8405_v38 }
  0xde   : > { %1844 = vmatmul.mubr.bf16.vlgmr.msra.gmra.mxu0 %v8973_v52  ;;  %2803 = vmatprep.subr.bf16.mxu1 %v12567_v2  ;;  %v8409_v52 = vld [vmem:[%s12563_s3 + $0xd0] sm:$0xff]  }
  0xdf   : > { %7575 = vmatpush3.bf16.msra.mxu0 %v8396_v39  ;;  %1851 = vmatprep.mubr.bf16.mxu0 %v8975_v53  ;;  %v8404_v53 = vld [vmem:[%s12561_s1 + $0xa8] sm:$0xff]  }
  0xe0   : > { %1503 = vmatmul.mubr.bf16.gmra.mxu1 %v9101_v36  ;;  %7576 = vmatprep.subr.bf16.mxu0 %v8398_v40  ;;  %v412_v40 = vlaneseq }
  0xe1   : > { %1510 = vmatprep.mubr.bf16.mxu1 %v9103_v37  ;;  %2804 = vmatpush2.bf16.msra.mxu1 %v8407_v43  ;;  %v8644_v43 = vld [vmem:[%s8890_s22] sm:$0xff] }
  0xe2   : > { %2805 = vmatprep.subr.bf16.mxu1 %v12567_v2 }
  0xe3   : > { %7577 = vmatpush3.bf16.msra.mxu0 %v8400_v41  ;;  %v2075_v41 = vshrl.u32 %v8644_v43, 16 }
  0xe4   : > { %7578 = vmatprep.subr.bf16.mxu0 %v8402_v46  ;;  %v2078_v46 = vshll.u32 %v8644_v43, 16 }
  0xe5   : > { %2806 = vmatpush2.bf16.msra.mxu1 %v8409_v52 }
  0xe6   : > { %1852 = vmatmul.mubr.bf16.gmra.mxu0 %v8995_v60  ;;  %2807 = vmatprep.subr.bf16.mxu1 %v12567_v2  ;;  %v8413_v60 = vld [vmem:[%s12563_s3 + $0xc0] sm:$0xff]  }
  0xe7   : > { %1859 = vmatprep.mubr.bf16.mxu0 %v8997_v61  ;;  %7579 = vmatpush3.bf16.msra.mxu0 %v8404_v53  ;;  %v8415_v61 = vld [vmem:[%s12561_s1 + $0x278] sm:$0xff]   ;;  %v8645_v53 = vld [vmem:[%s8890_s22 + $0x8] sm:$0xff] }
  0xe8   : > { %1511 = vmatmul.mubr.bf16.gmra.mxu1 %v9117_v44  ;;  %7580 = vmatprep.subr.bf16.mxu0 %v8406_v47  ;;  %v2084_v47 = vshll.u32 %v8645_v53, 16 }
  0xe9   : > { %1518 = vmatprep.mubr.bf16.mxu1 %v9119_v45  ;;  %2808 = vmatpush2.bf16.msra.mxu1 %v8411_v50 }
  0xea   : > { %2809 = vmatprep.subr.bf16.mxu1 %v12567_v2 }
  0xeb   : > { %7581 = vmatpush3.bf16.msra.mxu0 %v8408_v51  ;;  %v9385_v51 = vand.u32 127, %v412_v40  ;;  %v8648_v40 = vld [vmem:[%s8890_s22 + $0x30] sm:$0xff] }
  0xec   : > { %7582 = vmatprep.subr.bf16.mxu0 %v8410_v56  ;;  %v2123_v43 = vshrl.u32 %v8648_v40, 16 }
  0xed   : > { %2810 = vmatpush2.bf16.msra.mxu1 %v8413_v60  ;;  %12635 = vst [vmem:[#allocation3_spill] sm:$0xff] %v9385_v51  ;;  %vm1226_vm0 = vcmp.eq.s32.totalorder %v9385_v51, 0  ;;  %vm1615_vm1 = vcmp.eq.s32.totalorder %v9385_v51, 1  ;;  %vm2004_vm4 = vcmp.eq.s32.totalorder %v9385_v51, 2 }
  0xee   : > { %1860 = vmatmul.mubr.bf16.gmra.mxu0 %v9025_v8  ;;  %7686 = vmatprep.subr.bf16.mxu1 %v8415_v61  ;;  %v2077_v61 = vrot.slane %v2075_v41, 4  ;;  %v2126_v41 = vshll.u32 %v8648_v40, 16 }
  0xef   : > { %1867 = vmatprep.mubr.bf16.mxu0 %v9030_v10  ;;  %7583 = vmatpush3.bf16.msra.mxu0 %v8412_v57  ;;  %v7254_v3 = vpop.f32.mrf.mxu1  ;;  %v8419_v10 = vld [vmem:[%s12561_s1 + $0x88] sm:$0xff]   ;;  %v2080_v57 = vrot.slane %v2078_v46, 5  ;;  %v8649_v46 = vld [vmem:[%s8890_s22 + $0x38] sm:$0xff] }
  0xf0   : > { %1519 = vmatmul.mubr.bf16.gmra.mxu1 %v9127_v48  ;;  %7584 = vmatprep.subr.bf16.mxu0 %v8414_v62 }
  0xf1   : > { %1526 = vmatprep.mubr.bf16.mxu1 %v9129_v49  ;;  %v7255_v7 = vpop.f32.mrf.mxu1 }
  0xf2   : > { %v9341_v8 = vadd.f32 %v7255_v7, %v7254_v3  ;;  %v359_v7 = vld [vmem:[%s8890_s22 + $0x10] sm:$0x11] }
  0xf3   : > { %7585 = vmatpush3.bf16.msra.mxu0 %v8416_v63  ;;  %v7257_v9 = vpop.f32.mrf.mxu1  ;;  %v9389_v63 = vrot.slane %v2084_v47, 5 }
  0xf4   : > { %7586 = vmatprep.subr.bf16.mxu0 %v8418_v4 }
  0xf5   : > { %v7258_v15 = vpop.f32.mrf.mxu1 }
  0xf6   : > { %1868 = vmatmul.mubr.bf16.gmra.mxu0 %v9054_v18  ;;  %v9350_v35 = vadd.f32 %v7258_v15, %v7257_v9  ;;  %v2081_v9 = vor.u32 %v2080_v57, %v2077_v61 }
  0xf7   : > { %1875 = vmatprep.mubr.bf16.mxu0 %v9059_v20  ;;  %7587 = vmatpush3.bf16.msra.mxu0 %v8419_v10  ;;  %v7260_v16 = vpop.f32.mrf.mxu1 }
  0xf8   : > { %1527 = vmatmul.mubr.bf16.gmra.mxu1 %v9137_v54  ;;  %7588 = vmatprep.subr.bf16.mxu0 %v8422_v14  ;;  %v2082_v47 = vrot.slane %v2081_v9, 4 }
  0xf9   : > { %1534 = vmatprep.mubr.bf16.mxu1 %v9139_v55  ;;  %v7261_v18 = vpop.f32.mrf.mxu1 }
  0xfa   : > { %v9361_v19 = vadd.f32 %v7261_v18, %v7260_v16  ;;  %v2094_v16 = vshll.u32 %v359_v7, 16 }
  0xfb   : > { %7589 = vmatpush3.bf16.msra.mxu0 %v8423_v42  ;;  %v7263_v20 = vpop.f32.mrf.mxu1 }
  0xfc   : > { %7798 = vmatprep.subr.bf16.mxu0 %v8426_v17 }
  0xfd   : > { %v7264_v21 = vpop.f32.mrf.mxu1 }
  0xfe   : > { %1876 = vmatmul.mubr.bf16.gmra.mxu0 %v9076_v26  ;;  %v9364_v23 = vadd.f32 %v7264_v21, %v7263_v20  ;;  %v8646_v21 = vld [vmem:[%s8890_s22 + $0x18] sm:$0xff] }
  0xff   : > { %1883 = vmatprep.mubr.bf16.mxu0 %v9081_v28  ;;  %v7266_v24 = vpop.f32.mrf.mxu1 }
 0x100   : > { %1535 = vmatmul.mubr.bf16.gmra.mxu1 %v9147_v58 }
 0x101   : > { %1542 = vmatprep.mubr.bf16.mxu1 %v9149_v59  ;;  %v7267_v25 = vpop.f32.mrf.mxu1 }
 0x102   : > { %v9369_v27 = vadd.f32 %v7267_v25, %v7266_v24 }
 0x103   : > { %v7269_v31 = vpop.f32.mrf.mxu1 }
 0x105   : > { %v7270_v32 = vpop.f32.mrf.mxu1 }
 0x106   : > { %1884 = vmatmul.mubr.bf16.gmra.mxu0 %v9101_v36  ;;  %v9372_v34 = vadd.f32 %v7270_v32, %v7269_v31  ;;  %v2102_v32 = vshll.u32 %v8646_v21, 16 }
 0x107   : > { %1891 = vmatprep.mubr.bf16.mxu0 %v9103_v37  ;;  %v7272_v26 = vpop.f32.mrf.mxu1  ;;  %v2088_v37 = vshrl.u32 %v8645_v53, 16 }
 0x108   : > { %1543 = vmatmul.mubr.bf16.gmra.mxu1 %v9157_v0  ;;  %v2104_v9 = vrot.slane %v2102_v32, 5 }
 0x109   : > { %1550 = vmatprep.mubr.bf16.mxu1 %v9159_v1  ;;  %v7273_v28 = vpop.f32.mrf.mxu1  ;;  %v2090_v3 = vrot.slane %v2088_v37, 4 }
 0x10a   : > { %v9377_v38 = vadd.f32 %v7273_v28, %v7272_v26  ;;  %v8647_v26 = vld [vmem:[%s8890_s22 + $0x20] sm:$0xff] }
 0x10b   : > { %v7275_v39 = vpop.f32.mrf.mxu1  ;;  %v2091_v42 = vor.u32 %v2090_v3, %v9389_v63  ;;  %v2108_v28 = vshll.u32 %v8647_v26, 16 }
 0x10d   : > { %v7276_v52 = vpop.f32.mrf.mxu1  ;;  %v2092_v37 = vrot.slane %v2091_v42, 4  ;;  %v362_v42 = vld [vmem:[%s8890_s22 + $0x28] sm:$0x11] }
 0x10e   : > { %v756_v36 = vpop.f32.mrf.mxu0  ;;  %1892 = vmatmul.mubr.bf16.gmra.mxu0 %v9117_v44  ;;  %v9382_v50 = vadd.f32 %v7276_v52, %v7275_v39  ;;  %v2112_v39 = vshrl.u32 %v8647_v26, 16  ;;  %v2132_v52 = vshll.u32 %v8649_v46, 16  ;;  %v365_v26 = vld [vmem:[%s8890_s22 + $0x40] sm:$0x11] }
 0x10f   : > { %1899 = vmatprep.mubr.bf16.mxu0 %v9119_v45  ;;  %v1229_v17 = vsel %vm1226_vm0, %v756_v36, 0.0 }
 0x110   : > { %v7278_v56 = vpop.f32.mrf.mxu1  ;;  %1551 = vmatmul.mubr.bf16.gmra.mxu1 %v9167_v5  ;;  %v758_v60 = vpop.f32.mrf.mxu0 }
 0x111   : > { %1558 = vmatprep.mubr.bf16.mxu1 %v9169_v6 }
 0x112   : > { %v7279_v62 = vpop.f32.mrf.mxu1  ;;  %v759_v44 = vpop.f32.mrf.mxu0 }
 0x113   : > { %v9391_v4 = vadd.f32 %v7279_v62, %v7278_v56  ;;  %v2096_v56 = vrot.slane %v2094_v16, 5  ;;  %v1230_v60 = vsel %vm1226_vm0, %v759_v44, 0.0  ;;  %v2114_v44 = vrot.slane %v2112_v39, 4 }
 0x114   : > { %v7281_v45 = vpop.f32.mrf.mxu1  ;;  %v761_v10 = vpop.f32.mrf.mxu0  ;;  %v2125_v16 = vrot.slane %v2123_v43, 4 }
 0x115   : > { %v9439_v32 = vsel %vm9422_vm5, %v2092_v37, %v2096_v56 }
 0x116   : > { %v7282_v14 = vpop.f32.mrf.mxu1  ;;  %v764_v15 = vpop.f32.mrf.mxu0  ;;  %1900 = vmatmul.mubr.bf16.gmra.mxu0 %v9127_v48  ;;  %v2099_v48 = vshrl.u32 %v8646_v21, 16 }
 0x117   : > { %v9400_v18 = vadd.f32 %v7282_v14, %v7281_v45  ;;  %v1618_v20 = vsel %vm1615_vm1, %v764_v15, 0.0  ;;  %1907 = vmatprep.mubr.bf16.mxu0 %v9129_v49  ;;  %v2136_v49 = vshrl.u32 %v8649_v46, 16  ;;  %v9426_v14 = vrot.slane %v2108_v28, 5 }
 0x118   : > { %v9406_v24 = vadd.f32 %v1618_v20, %v1229_v17  ;;  %v7284_v25 = vpop.f32.mrf.mxu1  ;;  %1559 = vmatmul.mubr.bf16.gmra.mxu1 %v9177_v11  ;;  %v766_v31 = vpop.f32.mrf.mxu0  ;;  %v2101_v3 = vrot.slane %v2099_v48, 4  ;;  %v2128_v17 = vrot.slane %v2126_v41, 5  ;;  %v9429_v20 = vrot.slane %v2132_v52, 5 }
 0x119   : > { %1566 = vmatprep.mubr.bf16.mxu1 %v9179_v12  ;;  %v2138_v21 = vrot.slane %v2136_v49, 4  ;;  %v9435_v48 = vsel %vm9422_vm5, %v2082_v47, %v9389_v63  ;;  %v1231_v28 = vsel %vm1226_vm0, %v764_v15, 0.0  ;;  %v2115_v52 = vor.u32 %v2114_v44, %v9426_v14 }
 0x11a   : > { %v7285_v36 = vpop.f32.mrf.mxu1  ;;  %v767_v53 = vpop.f32.mrf.mxu0  ;;  %v2105_v46 = vor.u32 %v2104_v9, %v2101_v3  ;;  %v2118_v15 = vshll.u32 %v362_v42, 16  ;;  %v2129_v49 = vor.u32 %v2128_v17, %v2125_v16  ;;  %v2142_v47 = vshll.u32 %v365_v26, 16 }
 0x11b   : > { %v9416_v61 = vadd.f32 %v7285_v36, %v7284_v25  ;;  %v1619_v57 = vsel %vm1615_vm1, %v767_v53, 0.0  ;;  %v2139_v36 = vor.u32 %v2138_v21, %v9429_v20  ;;  %v2116_v26 = vrot.slane %v2115_v52, 4 }
 0x11c   : > { %v1651_v7 = vadd.f32 %v1619_v57, %v1230_v60  ;;  %v7287_v45 = vpop.f32.mrf.mxu1  ;;  %v769_v10 = vpop.f32.mrf.mxu0  ;;  %v8650_v60 = vld [vmem:[%s8890_s22 + $0x48] sm:$0xff] }
 0x11d   : > { %v2147_v57 = vshrl.u32 %v8650_v60, 16  ;;  %v1232_v10 = vsel %vm1226_vm0, %v767_v53, 0.0 }
 0x11e   : > { %v7288_v25 = vpop.f32.mrf.mxu1  ;;  %v772_v31 = vpop.f32.mrf.mxu0  ;;  %1908 = vmatmul.mubr.bf16.gmra.mxu0 %v9137_v54 }
 0x11f   : > { %v9444_v39 = vadd.f32 %v7288_v25, %v7287_v45  ;;  %v1620_v40 = vsel %vm1615_vm1, %v772_v31, 0.0  ;;  %v2007_v54 = vsel %vm2004_vm4, %v772_v31, 0.0  ;;  %1915 = vmatprep.mubr.bf16.mxu0 %v9139_v55  ;;  %v9457_v55 = vcombine.high %v9435_v48, %v9439_v32 }
 0x120   : > { %v1652_v63 = vadd.f32 %v1620_v40, %v1231_v28  ;;  %v7290_v43 = vpop.f32.mrf.mxu1  ;;  %1567 = vmatmul.mubr.bf16.gmra.mxu1 %v9185_v13  ;;  %v774_v41 = vpop.f32.mrf.mxu0  ;;  %v2150_v45 = vshll.u32 %v8650_v60, 16  ;;  %v9461_v3 = vadd.f32 %v2007_v54, %v9406_v24  ;;  %v2106_v25 = vrot.slane %v2105_v46, 4 }
 0x121   : > { %1574 = vmatprep.mubr.bf16.mxu1 %v9228_v22  ;;  %v2120_v28 = vrot.slane %v2118_v15, 5  ;;  %v2130_v40 = vrot.slane %v2129_v49, 4  ;;  %v2140_v24 = vrot.slane %v2139_v36, 4  ;;  %v2144_v54 = vrot.slane %v2142_v47, 5  ;;  %v8651_v41 = vld [vmem:[%s8890_s22 + $0x50] sm:$0xff] }
 0x122   : > { %v7291_v37 = vpop.f32.mrf.mxu1  ;;  %v775_v56 = vpop.f32.mrf.mxu0  ;;  %12638 = vst [vmem:[#allocation4_spill] sm:$0xff] %v9461_v3  ;;  %v2156_v60 = vshll.u32 %v8651_v41, 16  ;;  %v2152_v2 = vrot.slane %v2150_v45, 5  ;;  %v2160_v3 = vshrl.u32 %v8651_v41, 16 }
 0x123   : > { %v9465_v9 = vadd.f32 %v7291_v37, %v7290_v43  ;;  %v1621_v44 = vsel %vm1615_vm1, %v775_v56, 0.0  ;;  %v2008_v42 = vsel %vm2004_vm4, %v775_v56, 0.0  ;;  %v2149_v37 = vrot.slane %v2147_v57, 4 }
 0x124   : > { %v1653_v16 = vadd.f32 %v1621_v44, %v1232_v10  ;;  %v7293_v17 = vpop.f32.mrf.mxu1  ;;  %v777_v21 = vpop.f32.mrf.mxu0  ;;  %v1233_v10 = vsel %vm1226_vm0, %v772_v31, 0.0  ;;  %v2111_v31 = vsel %vm9422_vm5, %v2106_v25, %v9426_v14  ;;  %v2121_v47 = vsel %vm9422_vm5, %v2116_v26, %v2120_v28  ;;  %v368_v44 = vld [vmem:[%s8890_s22 + $0x58] sm:$0x11] }
 0x125   : > { %12639 = vst [vmem:[#allocation5_spill] sm:$0xff] %v9465_v9  ;;  %v9473_v9 = vadd.f32 %v2008_v42, %v1651_v7  ;;  %v9500_v45 = vsel %vm9422_vm5, %v2140_v24, %v2144_v54  ;;  %v2153_v42 = vor.u32 %v2152_v2, %v2149_v37  ;;  %v2162_v21 = vrot.slane %v2160_v3, 4 }
 0x126   : > { %v7294_v53 = vpop.f32.mrf.mxu1  ;;  %v780_v43 = vpop.f32.mrf.mxu0  ;;  %1916 = vmatmul.mubr.bf16.gmra.mxu0 %v9147_v58  ;;  %v1234_v14 = vsel %vm1226_vm0, %v775_v56, 0.0  ;;  %v9517_v3 = vcombine.low %v9435_v48, %v9439_v32  ;;  %v8417_v56 = vld [vmem:[%s12561_s1 + $0x238] sm:$0xff]   ;;  %v9522_v54 = vcombine.low %v2111_v31, %v2121_v47  ;;  %v9524_v41 = vcombine.high %v2111_v31, %v2121_v47  ;;  %v8420_v48 = vld [vmem:[%s12561_s1 + $0x270] sm:$0xff]  }
 0x127   : > { %12640 = vst [vmem:[#allocation6_spill] sm:$0xff] %v9473_v9  ;;  %v9477_v46 = vadd.f32 %v7294_v53, %v7293_v17  ;;  %v1622_v52 = vsel %vm1615_vm1, %v780_v43, 0.0  ;;  %v2009_v15 = vsel %vm2004_vm4, %v780_v43, 0.0  ;;  %1923 = vmatprep.mubr.bf16.mxu0 %v9149_v59  ;;  %v9496_v59 = vsel %vm9422_vm5, %v2130_v40, %v9429_v20 }
 0x128   : > { %v1654_v58 = vadd.f32 %v1622_v52, %v1233_v10  ;;  %v9484_v49 = vadd.f32 %v2009_v15, %v1652_v63  ;;  %v7296_v36 = vpop.f32.mrf.mxu1  ;;  %1575 = vmatmul.mubr.bf16.gmra.mxu1 %v9243_v29  ;;  %v782_v7 = vpop.f32.mrf.mxu0  ;;  %v9503_v17 = vrot.slane %v2156_v60, 5  ;;  %v9528_v60 = vcombine.high %v9496_v59, %v9500_v45  ;;  %v8652_v52 = vld [vmem:[%s8890_s22 + $0x60] sm:$0xff] }
 0x129   : > { %12641 = vst [vmem:[#allocation7_spill] sm:$0xff] %v9477_v46  ;;  %2811 = vmatprep.mubr.bf16.mxu1 %v9457_v55  ;;  %v2154_v32 = vrot.slane %v2153_v42, 4  ;;  %v2171_v15 = vshrl.u32 %v8652_v52, 16  ;;  %v1235_v7 = vsel %vm1226_vm0, %v780_v43, 0.0 }
 0x12a   : > { %12642 = vst [vmem:[#allocation8_spill] sm:$0xff] %v9484_v49  ;;  %v7297_v63 = vpop.f32.mrf.mxu1  ;;  %v783_v57 = vpop.f32.mrf.mxu0  ;;  %v2163_v10 = vor.u32 %v2162_v21, %v9503_v17  ;;  %v8653_v21 = vld [vmem:[%s8890_s22 + $0x68] sm:$0xff]  ;;  %v371_v49 = vld [vmem:[%s8890_s22 + $0x70] sm:$0x11] }
 0x12b   : > { %v9507_v25 = vadd.f32 %v7297_v63, %v7296_v36  ;;  %v1623_v20 = vsel %vm1615_vm1, %v783_v57, 0.0  ;;  %v2010_v26 = vsel %vm2004_vm4, %v783_v57, 0.0  ;;  %v2174_v36 = vshll.u32 %v8652_v52, 16 }
 0x12c   : > { %v1655_v28 = vadd.f32 %v1623_v20, %v1234_v14  ;;  %v9513_v40 = vadd.f32 %v2010_v26, %v1653_v16  ;;  %v7299_v24 = vpop.f32.mrf.mxu1  ;;  %v785_v2 = vpop.f32.mrf.mxu0  ;;  %v2166_v16 = vshll.u32 %v368_v44, 16  ;;  %v2180_v14 = vshll.u32 %v8653_v21, 16  ;;  %v8421_v26 = vld [vmem:[%s12561_s1 + $0x230] sm:$0xff]  }
 0x12d   : > { %12643 = vst [vmem:[#allocation9_spill] sm:$0xff] %v9507_v25  ;;  %v2184_v20 = vshrl.u32 %v8653_v21, 16  ;;  %v9559_v21 = vrot.slane %v2171_v15, 4 }
 0x12e   : > { %12644 = vst [vmem:[#allocation10_spill] sm:$0xff] %v9513_v40  ;;  %v7300_v53 = vpop.f32.mrf.mxu1  ;;  %v9530_v37 = vpop.f32.mrf.mxu0  ;;  %1924 = vmatmul.mubr.bf16.gmra.mxu0 %v9157_v0  ;;  %v9577_v9 = vrot.slane %v2180_v14, 5  ;;  %v9588_v14 = vsel %vm9422_vm5, %v2154_v32, %v9503_v17 }
 0x12f   : > { %v9540_v31 = vadd.f32 %v7300_v53, %v7299_v24  ;;  %v1624_v0 = vsel %vm1615_vm1, %v9530_v37, 0.0  ;;  %v2011_v47 = vsel %vm2004_vm4, %v9530_v37, 0.0  ;;  %1931 = vmatprep.mubr.bf16.mxu0 %v9159_v1  ;;  %v8654_v24 = vld [vmem:[%s8890_s22 + $0x78] sm:$0xff]  ;;  %v8655_v53 = vld [vmem:[%s8890_s22 + $0x80] sm:$0xff] }
 0x130   : > { %v1656_v63 = vadd.f32 %v1624_v0, %v1235_v7  ;;  %v9549_v44 = vadd.f32 %v2011_v47, %v1654_v58  ;;  %v7302_v42 = vpop.f32.mrf.mxu1  ;;  %2812 = vmatmul.mubr.bf16.vlgmr.msra.gmra.mxu1 %v9517_v3  ;;  %v790_v43 = vpop.f32.mrf.mxu0  ;;  %v2195_v2 = vshrl.u32 %v8654_v24, 16  ;;  %v2198_v1 = vshll.u32 %v8654_v24, 16 }
 0x131   : > { %12645 = vst [vmem:[#allocation11_spill] sm:$0xff] %v9540_v31  ;;  %7687 = vmatpush3.bf16.msra.mxu1 %v8417_v56  ;;  %2819 = vmatprep.mubr.bf16.mxu1 %v9524_v41  ;;  %v2204_v58 = vshll.u32 %v8655_v53, 16  ;;  %v2208_v52 = vshrl.u32 %v8655_v53, 16  ;;  %v2164_v47 = vrot.slane %v2163_v10, 4  ;;  %v2168_v43 = vrot.slane %v2166_v16, 5 }
 0x132   : > { %12646 = vst [vmem:[#allocation12_spill] sm:$0xff] %v9549_v44  ;;  %v7303_v7 = vpop.f32.mrf.mxu1  ;;  %v791_v0 = vpop.f32.mrf.mxu0  ;;  %7688 = vmatprep.subr.bf16.mxu1 %v8420_v48  ;;  %v9561_v56 = vrot.slane %v2174_v36, 5  ;;  %v8424_v44 = vld [vmem:[%s12561_s1 + $0x268] sm:$0xff]   ;;  %v1236_v24 = vsel %vm1226_vm0, %v783_v57, 0.0  ;;  %v2186_v31 = vrot.slane %v2184_v20, 4 }
 0x133   : > { %v9568_v40 = vadd.f32 %v7303_v7, %v7302_v42  ;;  %v1625_v53 = vsel %vm1615_vm1, %v791_v0, 0.0  ;;  %v2012_v48 = vsel %vm2004_vm4, %v791_v0, 0.0  ;;  %v8425_v57 = vld [vmem:[%s12561_s1 + $0x228] sm:$0xff]   ;;  %v2197_v42 = vrot.slane %v2195_v2, 4  ;;  %v8428_v2 = vld [vmem:[%s12561_s1 + $0x260] sm:$0xff]  }
 0x134   : > { %v1657_v16 = vadd.f32 %v1625_v53, %v1236_v24  ;;  %v9574_v10 = vadd.f32 %v2012_v48, %v1655_v28  ;;  %v7305_v15 = vpop.f32.mrf.mxu1  ;;  %v793_v36 = vpop.f32.mrf.mxu0  ;;  %v2200_v7 = vrot.slane %v2198_v1, 5  ;;  %v2210_v25 = vrot.slane %v2208_v52, 4 }
 0x135   : > { %12647 = vst [vmem:[#allocation13_spill] sm:$0xff] %v9568_v40  ;;  %7689 = vmatpush3.bf16.msra.mxu1 %v8421_v26  ;;  %v9582_v40 = vrot.slane %v2204_v58, 5  ;;  %v9592_v20 = vsel %vm9422_vm5, %v2164_v47, %v2168_v43  ;;  %v374_v26 = vld [vmem:[%s8890_s22 + $0x88] sm:$0x11]  ;;  %v1237_v1 = vsel %vm1226_vm0, %v9530_v37, 0.0  ;;  %v2177_v37 = vor.u32 %v9561_v56, %v9559_v21 }
 0x136   : > { %12648 = vst [vmem:[#allocation14_spill] sm:$0xff] %v9574_v10  ;;  %v7306_v24 = vpop.f32.mrf.mxu1  ;;  %v796_v28 = vpop.f32.mrf.mxu0  ;;  %1932 = vmatmul.mubr.bf16.gmra.mxu0 %v9167_v5  ;;  %7690 = vmatprep.subr.bf16.mxu1 %v8424_v44  ;;  %v2190_v43 = vshll.u32 %v371_v49, 16  ;;  %v2187_v53 = vor.u32 %v2186_v31, %v9577_v9  ;;  %v2201_v48 = vor.u32 %v2200_v7, %v2197_v42  ;;  %v8656_v31 = vld [vmem:[%s8890_s22 + $0x90] sm:$0xff] }
 0x137   : > { %v9601_v5 = vadd.f32 %v7306_v24, %v7305_v15  ;;  %v1626_v17 = vsel %vm1615_vm1, %v796_v28, 0.0  ;;  %v2013_v32 = vsel %vm2004_vm4, %v796_v28, 0.0  ;;  %1939 = vmatprep.mubr.bf16.mxu0 %v9169_v6  ;;  %v2211_v6 = vor.u32 %v2210_v25, %v9582_v40  ;;  %v8432_v25 = vld [vmem:[%s12561_s1 + $0x258] sm:$0xff]  }
 0x138   : > { %v1658_v44 = vadd.f32 %v1626_v17, %v1237_v1  ;;  %v9608_v58 = vadd.f32 %v2013_v32, %v1656_v63  ;;  %v7308_v52 = vpop.f32.mrf.mxu1  ;;  %2820 = vmatmul.mubr.bf16.gmra.mxu1 %v9522_v54  ;;  %v798_v47 = vpop.f32.mrf.mxu0  ;;  %v2214_v15 = vshll.u32 %v374_v26, 16  ;;  %v8429_v63 = vld [vmem:[%s12561_s1 + $0x220] sm:$0xff]   ;;  %v9621_v1 = vcombine.low %v9496_v59, %v9500_v45 }
 0x139   : > { %12649 = vst [vmem:[#allocation15_spill] sm:$0xff] %v9601_v5  ;;  %2827 = vmatprep.mubr.bf16.mxu1 %v9528_v60  ;;  %7691 = vmatpush3.bf16.msra.mxu1 %v8425_v57  ;;  %v9625_v49 = vcombine.high %v9588_v14, %v9592_v20  ;;  %v2219_v21 = vshrl.u32 %v8656_v31, 16  ;;  %v2222_v56 = vshll.u32 %v8656_v31, 16  ;;  %v1238_v57 = vsel %vm1226_vm0, %v791_v0, 0.0  ;;  %v12703_v62 = vld [vmem:[#allocation11_spill] sm:$0xff] }
 0x13a   : > { %12650 = vst [vmem:[#allocation16_spill] sm:$0xff] %v9608_v58  ;;  %v7309_v36 = vpop.f32.mrf.mxu1  ;;  %v799_v24 = vpop.f32.mrf.mxu0  ;;  %12651 = vst [vmem:[#allocation17_spill] sm:$0xff] %v9621_v1  ;;  %7692 = vmatprep.subr.bf16.mxu1 %v8428_v2  ;;  %v2178_v32 = vrot.slane %v2177_v37, 4  ;;  %v2192_v47 = vrot.slane %v2190_v43, 5  ;;  %v2188_v31 = vrot.slane %v2187_v53, 4  ;;  %v2202_v58 = vrot.slane %v2201_v48, 4 }
 0x13b   : > { %12652 = vst [vmem:[#allocation18_spill] sm:$0xff] %v9625_v49  ;;  %v9633_v42 = vadd.f32 %v7309_v36, %v7308_v52  ;;  %v1627_v59 = vsel %vm1615_vm1, %v799_v24, 0.0  ;;  %v2014_v45 = vsel %vm2004_vm4, %v799_v24, 0.0  ;;  %v2212_v10 = vrot.slane %v2211_v6, 4  ;;  %v8433_v52 = vld [vmem:[%s12561_s1 + $0x218] sm:$0xff]   ;;  %v8436_v37 = vld [vmem:[%s12561_s1 + $0x250] sm:$0xff]  }
 0x13c   : > { %v1659_v7 = vadd.f32 %v1627_v59, %v1238_v57  ;;  %v9639_v26 = vadd.f32 %v2014_v45, %v1657_v16  ;;  %v7311_v2 = vpop.f32.mrf.mxu1  ;;  %v801_v17 = vpop.f32.mrf.mxu0  ;;  %v2216_v0 = vrot.slane %v2214_v15, 5  ;;  %v2221_v16 = vrot.slane %v2219_v21, 4  ;;  %v8657_v59 = vld [vmem:[%s8890_s22 + $0x98] sm:$0xff] }
 0x13d   : > { %12653 = vst [vmem:[#allocation19_spill] sm:$0xff] %v9633_v42  ;;  %7693 = vmatpush3.bf16.msra.mxu1 %v8429_v63  ;;  %v2224_v57 = vrot.slane %v2222_v56, 5  ;;  %v2228_v45 = vshll.u32 %v8657_v59, 16  ;;  %v2232_v17 = vshrl.u32 %v8657_v59, 16  ;;  %v1239_v43 = vsel %vm1226_vm0, %v796_v28, 0.0 }
 0x13e   : > { %12654 = vst [vmem:[#allocation20_spill] sm:$0xff] %v9639_v26  ;;  %v7312_v36 = vpop.f32.mrf.mxu1  ;;  %v804_v42 = vpop.f32.mrf.mxu0  ;;  %1940 = vmatmul.mubr.bf16.gmra.mxu0 %v9177_v11  ;;  %7694 = vmatprep.subr.bf16.mxu1 %v8432_v25  ;;  %v2183_v28 = vsel %vm9422_vm5, %v2178_v32, %v9577_v9  ;;  %v2193_v56 = vsel %vm9422_vm5, %v2188_v31, %v2192_v47  ;;  %v377_v9 = vld [vmem:[%s8890_s22 + $0xa0] sm:$0x11] }
 0x13f   : > { %v9651_v53 = vadd.f32 %v7312_v36, %v7311_v2  ;;  %v1628_v48 = vsel %vm1615_vm1, %v804_v42, 0.0  ;;  %v2015_v11 = vsel %vm2004_vm4, %v804_v42, 0.0  ;;  %1947 = vmatprep.mubr.bf16.mxu0 %v9179_v12  ;;  %v9670_v12 = vsel %vm9422_vm5, %v2202_v58, %v9582_v40  ;;  %v8440_v40 = vld [vmem:[%s12561_s1 + $0x248] sm:$0xff]  }
 0x140   : > { %v1660_v6 = vadd.f32 %v1628_v48, %v1239_v43  ;;  %v9658_v15 = vadd.f32 %v2015_v11, %v1658_v44  ;;  %v7314_v63 = vpop.f32.mrf.mxu1  ;;  %2828 = vmatmul.mubr.bf16.gmra.mxu1 %v9621_v1  ;;  %v806_v21 = vpop.f32.mrf.mxu0  ;;  %v8437_v44 = vld [vmem:[%s12561_s1 + $0x210] sm:$0xff]   ;;  %v9677_v36 = vsel %vm9422_vm5, %v2212_v10, %v2216_v0  ;;  %v2225_v32 = vor.u32 %v2224_v57, %v2221_v16 }
 0x141   : > { %12655 = vst [vmem:[#allocation21_spill] sm:$0xff] %v9651_v53  ;;  %2835 = vmatprep.mubr.bf16.mxu1 %v9625_v49  ;;  %7695 = vmatpush3.bf16.msra.mxu1 %v8433_v52  ;;  %v9680_v59 = vrot.slane %v2228_v45, 5  ;;  %v2234_v47 = vrot.slane %v2232_v17, 4  ;;  %v1240_v58 = vsel %vm1226_vm0, %v799_v24, 0.0  ;;  %v9697_v17 = vcombine.low %v9588_v14, %v9592_v20  ;;  %v8658_v21 = vld [vmem:[%s8890_s22 + $0xa8] sm:$0xff] }
 0x142   : > { %12656 = vst [vmem:[#allocation22_spill] sm:$0xff] %v9658_v15  ;;  %v7315_v25 = vpop.f32.mrf.mxu1  ;;  %v807_v2 = vpop.f32.mrf.mxu0  ;;  %7696 = vmatprep.subr.bf16.mxu1 %v8436_v37  ;;  %v9699_v37 = vcombine.high %v2183_v28, %v2193_v56  ;;  %v9701_v24 = vcombine.low %v2183_v28, %v2193_v56  ;;  %v9705_v43 = vcombine.high %v9670_v12, %v9677_v36  ;;  %v2238_v48 = vshll.u32 %v377_v9, 16 }
 0x143   : > { %v9687_v31 = vadd.f32 %v7315_v25, %v7314_v63  ;;  %v1629_v52 = vsel %vm1615_vm1, %v807_v2, 0.0  ;;  %v2016_v10 = vsel %vm2004_vm4, %v807_v2, 0.0  ;;  %12659 = vst [vmem:[#allocation25_spill] sm:$0xff] %v9697_v17  ;;  %v2226_v14 = vrot.slane %v2225_v32, 4 }
 0x144   : > { %v1661_v0 = vadd.f32 %v1629_v52, %v1240_v58  ;;  %v9693_v16 = vadd.f32 %v2016_v10, %v1659_v7  ;;  %v7317_v57 = vpop.f32.mrf.mxu1  ;;  %v809_v45 = vpop.f32.mrf.mxu0  ;;  %12660 = vst [vmem:[#allocation26_spill] sm:$0xff] %v9699_v37  ;;  %12661 = vst [vmem:[#allocation27_spill] sm:$0xff] %v9705_v43  ;;  %v8441_v7 = vld [vmem:[%s12561_s1 + $0x208] sm:$0xff]   ;;  %v2235_v20 = vor.u32 %v2234_v47, %v9680_v59  ;;  %v2243_v28 = vshrl.u32 %v8658_v21, 16  ;;  %v8659_v10 = vld [vmem:[%s8890_s22 + $0xb0] sm:$0xff] }
 0x145   : > { %12657 = vst [vmem:[#allocation23_spill] sm:$0xff] %v9687_v31  ;;  %7697 = vmatpush3.bf16.msra.mxu1 %v8437_v44  ;;  %v2246_v56 = vshll.u32 %v8658_v21, 16  ;;  %v8444_v44 = vld [vmem:[%s12561_s1 + $0x240] sm:$0xff]   ;;  %v1241_v25 = vsel %vm1226_vm0, %v804_v42, 0.0  ;;  %v2252_v42 = vshll.u32 %v8659_v10, 16 }
 0x146   : > { %12658 = vst [vmem:[#allocation24_spill] sm:$0xff] %v9693_v16  ;;  %v7318_v11 = vpop.f32.mrf.mxu1  ;;  %v812_v63 = vpop.f32.mrf.mxu0  ;;  %1948 = vmatmul.mubr.bf16.gmra.mxu0 %v9185_v13  ;;  %7698 = vmatprep.subr.bf16.mxu1 %v8440_v40  ;;  %v8660_v45 = vld [vmem:[%s8890_s22 + $0xc0] sm:$0xff]  ;;  %v8661_v16 = vld [vmem:[%s8890_s22 + $0xc8] sm:$0xff] }
 0x147   : > { %v9718_v9 = vadd.f32 %v7318_v11, %v7317_v57  ;;  %v1630_v13 = vsel %vm1615_vm1, %v812_v63, 0.0  ;;  %v2017_v32 = vsel %vm2004_vm4, %v812_v63, 0.0  ;;  %1955 = vmatprep.mubr.bf16.mxu0 %v9228_v22  ;;  %v2256_v57 = vshrl.u32 %v8659_v10, 16  ;;  %v8445_v22 = vld [vmem:[%s12561_s1 + $0x200] sm:$0xff]  }
 0x148   : > { %v1662_v47 = vadd.f32 %v1630_v13, %v1241_v25  ;;  %v9725_v40 = vadd.f32 %v2017_v32, %v1660_v6  ;;  %v7320_v58 = vpop.f32.mrf.mxu1  ;;  %2836 = vmatmul.mubr.bf16.gmra.mxu1 %v9697_v17  ;;  %v814_v52 = vpop.f32.mrf.mxu0  ;;  %v2267_v11 = vshrl.u32 %v8660_v45, 16  ;;  %v2270_v21 = vshll.u32 %v8660_v45, 16 }
 0x149   : > { %12662 = vst [vmem:[#allocation28_spill] sm:$0xff] %v9718_v9  ;;  %2843 = vmatprep.mubr.bf16.mxu1 %v9699_v37  ;;  %v2276_v15 = vshll.u32 %v8661_v16, 16  ;;  %v2280_v26 = vshrl.u32 %v8661_v16, 16  ;;  %7699 = vmatpush3.bf16.msra.mxu1 %v8441_v7  ;;  %v2236_v13 = vrot.slane %v2235_v20, 4  ;;  %v2240_v32 = vrot.slane %v2238_v48, 5 }
 0x14a   : > { %12663 = vst [vmem:[#allocation29_spill] sm:$0xff] %v9725_v40  ;;  %v7321_v6 = vpop.f32.mrf.mxu1  ;;  %v815_v25 = vpop.f32.mrf.mxu0  ;;  %v2245_v52 = vrot.slane %v2243_v28, 4  ;;  %v2248_v10 = vrot.slane %v2246_v56, 5  ;;  %7700 = vmatprep.subr.bf16.mxu1 %v8444_v44  ;;  %v1242_v40 = vsel %vm1226_vm0, %v807_v2, 0.0  ;;  %v9745_v28 = vrot.slane %v2252_v42, 5 }
 0x14b   : > { %v9737_v45 = vadd.f32 %v7321_v6, %v7320_v58  ;;  %v1631_v16 = vsel %vm1615_vm1, %v815_v25, 0.0  ;;  %v2018_v7 = vsel %vm2004_vm4, %v815_v25, 0.0  ;;  %v2258_v56 = vrot.slane %v2256_v57, 4  ;;  %v380_v44 = vld [vmem:[%s8890_s22 + $0xb8] sm:$0x11] }
 0x14c   : > { %v1663_v9 = vadd.f32 %v1631_v16, %v1242_v40  ;;  %v9743_v31 = vadd.f32 %v2018_v7, %v1661_v0  ;;  %v7323_v20 = vpop.f32.mrf.mxu1  ;;  %v817_v48 = vpop.f32.mrf.mxu0  ;;  %v2269_v53 = vrot.slane %v2267_v11, 4  ;;  %v2272_v2 = vrot.slane %v2270_v21, 5  ;;  %v383_v42 = vld [vmem:[%s8890_s22 + $0xd0] sm:$0x11] }
 0x14d   : > { %12664 = vst [vmem:[#allocation30_spill] sm:$0xff] %v9737_v45  ;;  %v9748_v58 = vrot.slane %v2276_v15, 5  ;;  %v2282_v6 = vrot.slane %v2280_v26, 4  ;;  %7701 = vmatpush3.bf16.msra.mxu1 %v8445_v22  ;;  %v9754_v0 = vsel %vm9422_vm5, %v2226_v14, %v9680_v59  ;;  %v9758_v40 = vsel %vm9422_vm5, %v2236_v13, %v2240_v32 }
 0x14e   : > { %12665 = vst [vmem:[#allocation31_spill] sm:$0xff] %v9743_v31  ;;  %v7324_v45 = vpop.f32.mrf.mxu1  ;;  %v820_v5 = vpop.f32.mrf.mxu0  ;;  %1956 = vmatmul.mubr.bf16.gmra.mxu0 %v9243_v29  ;;  %v12666_v57 = vmov 0   ;;  %v1243_v26 = vsel %vm1226_vm0, %v812_v63, 0.0  ;;  %v2249_v13 = vor.u32 %v2248_v10, %v2245_v52  ;;  %v2262_v63 = vshll.u32 %v380_v44, 16  ;;  %v8662_v52 = vld [vmem:[%s8890_s22 + $0xd8] sm:$0xff] }
 0x14f   : > { %4534 = vmatprep.subr.bf16.mxu1 %v12666_v57  ;;  %v9764_v15 = vadd.f32 %v7324_v45, %v7323_v20  ;;  %v1632_v29 = vsel %vm1615_vm1, %v820_v5, 0.0  ;;  %v2019_v11 = vsel %vm2004_vm4, %v820_v5, 0.0  ;;  %1963 = vmatprep.mubr.bf16.mxu0 %v9246_v30  ;;  %v2259_v32 = vor.u32 %v2258_v56, %v9745_v28 }
 0x150   : > { %v1664_v59 = vadd.f32 %v1632_v29, %v1243_v26  ;;  %v9771_v14 = vadd.f32 %v2019_v11, %v1662_v47  ;;  %v7326_v21 = vpop.f32.mrf.mxu1  ;;  %2844 = vmatmul.mubr.bf16.gmra.mxu1 %v9701_v24  ;;  %v822_v22 = vpop.f32.mrf.mxu0  ;;  %v2273_v45 = vor.u32 %v2272_v2, %v2269_v53  ;;  %v2283_v16 = vor.u32 %v2282_v6, %v9748_v58 }
 0x151   : > { %12667 = vst [vmem:[#allocation32_spill] sm:$0xff] %v9764_v15  ;;  %2851 = vmatprep.mubr.bf16.mxu1 %v9705_v43  ;;  %v2286_v7 = vshll.u32 %v383_v42, 16  ;;  %v9779_v47 = vcombine.low %v9670_v12, %v9677_v36  ;;  %v9783_v48 = vcombine.high %v9754_v0, %v9758_v40  ;;  %v2291_v10 = vshrl.u32 %v8662_v52, 16  ;;  %v8663_v15 = vld [vmem:[%s8890_s22 + $0xe0] sm:$0xff] }
 0x152   : > { %12668 = vst [vmem:[#allocation33_spill] sm:$0xff] %v9771_v14  ;;  %v7327_v20 = vpop.f32.mrf.mxu1  ;;  %v823_v30 = vpop.f32.mrf.mxu0  ;;  %v2294_v44 = vshll.u32 %v8662_v52, 16  ;;  %v1244_v56 = vsel %vm1226_vm0, %v815_v25, 0.0  ;;  %v2250_v29 = vrot.slane %v2249_v13, 4  ;;  %v2264_v11 = vrot.slane %v2262_v63, 5 }
 0x153   : > { %12669 = vst [vmem:[#allocation34_spill] sm:$0xff] %v9783_v48  ;;  %v9788_v53 = vadd.f32 %v7327_v20, %v7326_v21  ;;  %v1633_v2 = vsel %vm1615_vm1, %v823_v30, 0.0  ;;  %v2020_v6 = vsel %vm2004_vm4, %v823_v30, 0.0  ;;  %v2260_v22 = vrot.slane %v2259_v32, 4 }
 0x154   : > { %v1665_v12 = vadd.f32 %v1633_v2, %v1244_v56  ;;  %v9794_v36 = vadd.f32 %v2020_v6, %v1663_v9  ;;  %v7329_v42 = vpop.f32.mrf.mxu1  ;;  %v825_v26 = vpop.f32.mrf.mxu0  ;;  %v2274_v52 = vrot.slane %v2273_v45, 4  ;;  %v2284_v14 = vrot.slane %v2283_v16, 4 }
 0x155   : > { %12670 = vst [vmem:[#allocation35_spill] sm:$0xff] %v9788_v53  ;;  %v2288_v25 = vrot.slane %v2286_v7, 5  ;;  %v2293_v31 = vrot.slane %v2291_v10, 4  ;;  %v2296_v53 = vrot.slane %v2294_v44, 5  ;;  %v2300_v57 = vshll.u32 %v8663_v15, 16 }
 0x156   : > { %12671 = vst [vmem:[#allocation36_spill] sm:$0xff] %v9794_v36  ;;  %v7330_v21 = vpop.f32.mrf.mxu1  ;;  %v828_v20 = vpop.f32.mrf.mxu0  ;;  %1964 = vmatmul.mubr.bf16.gmra.mxu0 %v9259_v33  ;;  %v2304_v46 = vshrl.u32 %v8663_v15, 16  ;;  %v1245_v9 = vsel %vm1226_vm0, %v820_v5, 0.0  ;;  %v2255_v5 = vsel %vm9422_vm5, %v2250_v29, %v9745_v28  ;;  %v2265_v16 = vsel %vm9422_vm5, %v2260_v22, %v2264_v11  ;;  %v386_v44 = vld [vmem:[%s8890_s22 + $0xe8] sm:$0x11]  ;;  %v8430_v11 = vld [vmem:[%s12561_s1 + $0x3f0] sm:$0xff]  }
 0x157   : > { %v9800_v56 = vadd.f32 %v7330_v21, %v7329_v42  ;;  %v1634_v13 = vsel %vm1615_vm1, %v828_v20, 0.0  ;;  %v2021_v63 = vsel %vm2004_vm4, %v828_v20, 0.0  ;;  %3117 = vmatprep.mubr.bf16.mxu0 %v9457_v55  ;;  %v9819_v55 = vsel %vm9422_vm5, %v2274_v52, %v9748_v58 }
 0x158   : > { %v1666_v33 = vadd.f32 %v1634_v13, %v1245_v9  ;;  %v9807_v32 = vadd.f32 %v2021_v63, %v1664_v59  ;;  %v7332_v45 = vpop.f32.mrf.mxu1  ;;  %2852 = vmatmul.mubr.bf16.gmra.mxu1 %v9779_v47  ;;  %v830_v15 = vpop.f32.mrf.mxu0  ;;  %v9823_v10 = vsel %vm9422_vm5, %v2284_v14, %v2288_v25  ;;  %v2297_v2 = vor.u32 %v2296_v53, %v2293_v31  ;;  %v8427_v14 = vld [vmem:[%s12561_s1 + $0x3b8] sm:$0xff]   ;;  %v8664_v13 = vld [vmem:[%s8890_s22 + $0xf0] sm:$0xff] }
 0x159   : > { %12672 = vst [vmem:[#allocation37_spill] sm:$0xff] %v9800_v56  ;;  %2859 = vmatprep.mubr.bf16.mxu1 %v9783_v48  ;;  %v9826_v6 = vrot.slane %v2300_v57, 5  ;;  %v2306_v42 = vrot.slane %v2304_v46, 4  ;;  %v1246_v28 = vsel %vm1226_vm0, %v823_v30, 0.0  ;;  %v9843_v30 = vcombine.low %v9754_v0, %v9758_v40 }
 0x15a   : > { %12673 = vst [vmem:[#allocation38_spill] sm:$0xff] %v9807_v32  ;;  %v7333_v59 = vpop.f32.mrf.mxu1  ;;  %v831_v7 = vpop.f32.mrf.mxu0  ;;  %v9848_v22 = vcombine.high %v2255_v5, %v2265_v16  ;;  %v9850_v52 = vcombine.low %v2255_v5, %v2265_v16  ;;  %v9854_v25 = vcombine.high %v9819_v55, %v9823_v10  ;;  %v2298_v0 = vrot.slane %v2297_v2, 4 }
 0x15b   : > { %v9830_v26 = vadd.f32 %v7333_v59, %v7332_v45  ;;  %v1635_v58 = vsel %vm1615_vm1, %v831_v7, 0.0  ;;  %v2022_v29 = vsel %vm2004_vm4, %v831_v7, 0.0  ;;  %12676 = vst [vmem:[#allocation41_spill] sm:$0xff] %v9843_v30  ;;  %v2307_v40 = vor.u32 %v2306_v42, %v9826_v6  ;;  %v8431_v59 = vld [vmem:[%s12561_s1 + $0x3b0] sm:$0xff]  }
 0x15c   : > { %v1667_v31 = vadd.f32 %v1635_v58, %v1246_v28  ;;  %v9839_v57 = vadd.f32 %v2022_v29, %v1665_v12  ;;  %v7335_v46 = vpop.f32.mrf.mxu1  ;;  %v833_v53 = vpop.f32.mrf.mxu0  ;;  %12677 = vst [vmem:[#allocation42_spill] sm:$0xff] %v9848_v22  ;;  %v2310_v12 = vshll.u32 %v386_v44, 16  ;;  %v2315_v63 = vshrl.u32 %v8664_v13, 16  ;;  %v8665_v28 = vld [vmem:[%s8890_s22 + $0xf8] sm:$0xff] }
 0x15d   : > { %12674 = vst [vmem:[#allocation39_spill] sm:$0xff] %v9830_v26  ;;  %v2318_v45 = vshll.u32 %v8664_v13, 16  ;;  %v1247_v15 = vsel %vm1226_vm0, %v828_v20, 0.0  ;;  %v2324_v58 = vshll.u32 %v8665_v28, 16  ;;  %v2328_v29 = vshrl.u32 %v8665_v28, 16  ;;  %v8667_v13 = vld [vmem:[%s8890_s22 + $0x110] sm:$0xff] }
 0x15e   : > { %12675 = vst [vmem:[#allocation40_spill] sm:$0xff] %v9839_v57  ;;  %v7336_v21 = vpop.f32.mrf.mxu1  ;;  %v9856_v9 = vpop.f32.mrf.mxu0  ;;  %3118 = vmatmul.mubr.bf16.vlgmr.msra.gmra.mxu0 %v9517_v3  ;;  %v1248_v57 = vsel %vm1226_vm0, %v831_v7, 0.0 }
 0x15f   : > { %v9863_v5 = vadd.f32 %v7336_v21, %v7335_v46  ;;  %v1636_v16 = vsel %vm1615_vm1, %v9856_v9, 0.0  ;;  %v2023_v3 = vsel %vm2004_vm4, %v9856_v9, 0.0  ;;  %7799 = vmatpush3.bf16.msra.mxu0 %v8427_v14  ;;  %3125 = vmatprep.mubr.bf16.mxu0 %v9524_v41  ;;  %v8434_v14 = vld [vmem:[%s12561_s1 + $0x3e8] sm:$0xff]   ;;  %v9887_v28 = vrot.slane %v2318_v45, 5 }
 0x160   : > { %v1668_v20 = vadd.f32 %v1636_v16, %v1247_v15  ;;  %v9875_v44 = vadd.f32 %v2023_v3, %v1666_v33  ;;  %v7338_v2 = vpop.f32.mrf.mxu1  ;;  %2860 = vmatmul.mubr.bf16.gmra.mxu1 %v9843_v30  ;;  %v838_v42 = vpop.f32.mrf.mxu0  ;;  %7800 = vmatprep.subr.bf16.mxu0 %v8430_v11  ;;  %v8666_v46 = vld [vmem:[%s8890_s22 + $0x108] sm:$0xff]  ;;  %v2348_v33 = vshll.u32 %v8667_v13, 16  ;;  %v2352_v15 = vshrl.u32 %v8667_v13, 16 }
 0x161   : > { %12678 = vst [vmem:[#allocation43_spill] sm:$0xff] %v9863_v5  ;;  %2867 = vmatprep.mubr.bf16.mxu1 %v9848_v22  ;;  %v2339_v53 = vshrl.u32 %v8666_v46, 16  ;;  %v2342_v21 = vshll.u32 %v8666_v46, 16  ;;  %v2312_v42 = vrot.slane %v2310_v12, 5  ;;  %v9885_v11 = vrot.slane %v2315_v63, 4  ;;  %v8435_v12 = vld [vmem:[%s12561_s1 + $0x3a8] sm:$0xff]  }
 0x162   : > { %12679 = vst [vmem:[#allocation44_spill] sm:$0xff] %v9875_v44  ;;  %v7339_v16 = vpop.f32.mrf.mxu1  ;;  %v839_v3 = vpop.f32.mrf.mxu0  ;;  %v2308_v44 = vrot.slane %v2307_v40, 4  ;;  %v9902_v7 = vrot.slane %v2324_v58, 5  ;;  %v9908_v26 = vrot.slane %v2348_v33, 5  ;;  %v2354_v56 = vrot.slane %v2352_v15, 4 }
 0x163   : > { %v9891_v32 = vadd.f32 %v7339_v16, %v7338_v2  ;;  %v1637_v46 = vsel %vm1615_vm1, %v839_v3, 0.0  ;;  %v2024_v13 = vsel %vm2004_vm4, %v839_v3, 0.0  ;;  %7801 = vmatpush3.bf16.msra.mxu0 %v8431_v59  ;;  %v2330_v2 = vrot.slane %v2328_v29, 4  ;;  %v8438_v16 = vld [vmem:[%s12561_s1 + $0x3e0] sm:$0xff]  }
 0x164   : > { %v1669_v40 = vadd.f32 %v1637_v46, %v1248_v57  ;;  %v9900_v63 = vadd.f32 %v2024_v13, %v1667_v31  ;;  %v7341_v45 = vpop.f32.mrf.mxu1  ;;  %v841_v36 = vpop.f32.mrf.mxu0  ;;  %7802 = vmatprep.subr.bf16.mxu0 %v8434_v14  ;;  %v2341_v59 = vrot.slane %v2339_v53, 4  ;;  %v2344_v5 = vrot.slane %v2342_v21, 5  ;;  %v392_v14 = vld [vmem:[%s8890_s22 + $0x118] sm:$0x11]  ;;  %v9924_v53 = vld [vmem:[%s12562_s2] ss:$0 sm:$0xff] }
 0x165   : > { %12680 = vst [vmem:[#allocation45_spill] sm:$0xff] %v9891_v32  ;;  %v389_v32 = vld [vmem:[%s8890_s22 + $0x100] sm:$0x11]  ;;  %v9913_v36 = vcombine.low %v9819_v55, %v9823_v10  ;;  %v2303_v58 = vsel %vm9422_vm5, %v2298_v0, %v9826_v6  ;;  %v2313_v29 = vsel %vm9422_vm5, %v2308_v44, %v2312_v42  ;;  %v1249_v21 = vsel %vm1226_vm0, %v9856_v9, 0.0  ;;  %v8442_v13 = vld [vmem:[%s12561_s1 + $0x3d8] sm:$0xff]  }
 0x166   : > { %12681 = vst [vmem:[#allocation46_spill] sm:$0xff] %v9900_v63  ;;  %v7342_v57 = vpop.f32.mrf.mxu1  ;;  %v844_v31 = vpop.f32.mrf.mxu0  ;;  %3126 = vmatmul.mubr.bf16.gmra.mxu0 %v9522_v54  ;;  %v8439_v6 = vld [vmem:[%s12561_s1 + $0x3a0] sm:$0xff]   ;;  %v2321_v42 = vor.u32 %v9887_v28, %v9885_v11  ;;  %v2334_v46 = vshll.u32 %v389_v32, 16  ;;  %v9956_v32 = vadd.f32 %v9350_v35, %v9924_v53  ;;  %v8443_v35 = vld [vmem:[%s12561_s1 + $0x398] sm:$0xff]  }
 0x167   : > { %v9929_v33 = vadd.f32 %v7342_v57, %v7341_v45  ;;  %v1638_v55 = vsel %vm1615_vm1, %v844_v31, 0.0  ;;  %v2025_v10 = vsel %vm2004_vm4, %v844_v31, 0.0  ;;  %3133 = vmatprep.mubr.bf16.mxu0 %v9528_v60  ;;  %7803 = vmatpush3.bf16.msra.mxu0 %v8435_v12  ;;  %v2331_v12 = vor.u32 %v2330_v2, %v9902_v7 }
 0x168   : > { %v1670_v0 = vadd.f32 %v1638_v55, %v1249_v21  ;;  %v9939_v44 = vadd.f32 %v2025_v10, %v1668_v20  ;;  %v7344_v15 = vpop.f32.mrf.mxu1  ;;  %2868 = vmatmul.mubr.bf16.gmra.mxu1 %v9850_v52  ;;  %v846_v9 = vpop.f32.mrf.mxu0  ;;  %7804 = vmatprep.subr.bf16.mxu0 %v8438_v16  ;;  %v2345_v45 = vor.u32 %v2344_v5, %v2341_v59  ;;  %v2358_v57 = vshll.u32 %v392_v14, 16 }
 0x169   : > { %12682 = vst [vmem:[#allocation47_spill] sm:$0xff] %v9929_v33  ;;  %2875 = vmatprep.mubr.bf16.mxu1 %v9854_v25  ;;  %v2355_v20 = vor.u32 %v2354_v56, %v9908_v26  ;;  %v9952_v21 = vadd.f32 %v9341_v8, %v9924_v53  ;;  %v9958_v16 = vcombine.high %v2303_v58, %v2313_v29  ;;  %v1250_v5 = vsel %vm1226_vm0, %v839_v3, 0.0 }
 0x16a   : > { %12683 = vst [vmem:[#allocation48_spill] sm:$0xff] %v9939_v44  ;;  %v7345_v11 = vpop.f32.mrf.mxu1  ;;  %v847_v28 = vpop.f32.mrf.mxu0  ;;  %v9960_v55 = vcombine.low %v2303_v58, %v2313_v29  ;;  %v2322_v14 = vrot.slane %v2321_v42, 4  ;;  %v2336_v10 = vrot.slane %v2334_v46, 5  ;;  %v2332_v9 = vrot.slane %v2331_v12, 4 }
 0x16b   : > { %v9964_v2 = vadd.f32 %v7345_v11, %v7344_v15  ;;  %v1639_v56 = vsel %vm1615_vm1, %v847_v28, 0.0  ;;  %v2026_v8 = vsel %vm2004_vm4, %v847_v28, 0.0  ;;  %7805 = vmatpush3.bf16.msra.mxu0 %v8439_v6  ;;  %v8446_v15 = vld [vmem:[%s12561_s1 + $0x3d0] sm:$0xff]   ;;  %v2346_v6 = vrot.slane %v2345_v45, 4 }
 0x16c   : > { %v1671_v59 = vadd.f32 %v1639_v56, %v1250_v5  ;;  %v9973_v58 = vadd.f32 %v2026_v8, %v1669_v40  ;;  %v7347_v29 = vpop.f32.mrf.mxu1  ;;  %v849_v3 = vpop.f32.mrf.mxu0  ;;  %7806 = vmatprep.subr.bf16.mxu0 %v8442_v13  ;;  %v2356_v11 = vrot.slane %v2355_v20, 4  ;;  %v2360_v44 = vrot.slane %v2358_v57, 5  ;;  %v8668_v40 = vld [vmem:[%s8890_s22 + $0x120] sm:$0xff]  ;;  %v8669_v8 = vld [vmem:[%s8890_s22 + $0x128] sm:$0xff]  ;;  %v8447_v20 = vld [vmem:[%s12561_s1 + $0x390] sm:$0xff]  }
 0x16d   : > { %12684 = vst [vmem:[#allocation49_spill] sm:$0xff] %v9964_v2  ;;  %v2363_v5 = vshrl.u32 %v8668_v40, 16  ;;  %v2366_v56 = vshll.u32 %v8668_v40, 16  ;;  %v2372_v3 = vshll.u32 %v8669_v8, 16  ;;  %v2376_v42 = vshrl.u32 %v8669_v8, 16 }
 0x16e   : > { %12685 = vst [vmem:[#allocation50_spill] sm:$0xff] %v9973_v58  ;;  %v7348_v63 = vpop.f32.mrf.mxu1  ;;  %v852_v2 = vpop.f32.mrf.mxu0  ;;  %3134 = vmatmul.mubr.bf16.gmra.mxu0 %v9621_v1  ;;  %v1251_v46 = vsel %vm1226_vm0, %v844_v31, 0.0  ;;  %v2327_v31 = vsel %vm9422_vm5, %v2322_v14, %v9902_v7  ;;  %v2361_v7 = vsel %vm9422_vm5, %v2356_v11, %v2360_v44  ;;  %v8449_v44 = vld [vmem:[%s12561_s1 + $0x388] sm:$0xff]  }
 0x16f   : > { %v9983_v13 = vadd.f32 %v7348_v63, %v7347_v29  ;;  %v1640_v12 = vsel %vm1615_vm1, %v852_v2, 0.0  ;;  %v2027_v45 = vsel %vm2004_vm4, %v852_v2, 0.0  ;;  %3141 = vmatprep.mubr.bf16.mxu0 %v9625_v49  ;;  %7807 = vmatpush3.bf16.msra.mxu0 %v8443_v35  ;;  %v8448_v35 = vld [vmem:[%s12561_s1 + $0x3c8] sm:$0xff]   ;;  %v10004_v29 = vadd.f32 %v9361_v19, %v9924_v53 }
 0x170   : > { %v1672_v57 = vadd.f32 %v1640_v12, %v1251_v46  ;;  %v9993_v40 = vadd.f32 %v2027_v45, %v1670_v0  ;;  %v7366_v8 = vpop.f32.mrf.mxu1  ;;  %2876 = vmatmul.mubr.bf16.gmra.mxu1 %v9913_v36  ;;  %v854_v63 = vpop.f32.mrf.mxu0  ;;  %7808 = vmatprep.subr.bf16.mxu0 %v8446_v15  ;;  %v2337_v0 = vsel %vm9422_vm5, %v2332_v9, %v2336_v10  ;;  %v2365_v12 = vrot.slane %v2363_v5, 4  ;;  %v395_v9 = vld [vmem:[%s8890_s22 + $0x130] sm:$0x11] }
 0x171   : > { %12686 = vst [vmem:[#allocation51_spill] sm:$0xff] %v9983_v13  ;;  %2883 = vmatprep.mubr.bf16.mxu1 %v9958_v16  ;;  %v2351_v46 = vsel %vm9422_vm5, %v2346_v6, %v9908_v26  ;;  %v2368_v45 = vrot.slane %v2366_v56, 5  ;;  %v10014_v63 = vrot.slane %v2372_v3, 5  ;;  %v2378_v19 = vrot.slane %v2376_v42, 4  ;;  %v8452_v42 = vld [vmem:[%s12561_s1 + $0x3c0] sm:$0xff]   ;;  %v8456_v13 = vld [vmem:[%s12561_s1 + $0x178] sm:$0xff]  }
 0x172   : > { %12687 = vst [vmem:[#allocation52_spill] sm:$0xff] %v9993_v40  ;;  %v7367_v14 = vpop.f32.mrf.mxu1  ;;  %v855_v15 = vpop.f32.mrf.mxu0  ;;  %v1252_v40 = vsel %vm1226_vm0, %v847_v28, 0.0  ;;  %v10028_v28 = vcombine.high %v2327_v31, %v2337_v0  ;;  %v10030_v3 = vcombine.low %v2327_v31, %v2337_v0 }
 0x173   : > { %v7368_v58 = vadd.f32 %v7367_v14, %v7366_v8  ;;  %v1641_v10 = vsel %vm1615_vm1, %v855_v15, 0.0  ;;  %v2028_v26 = vsel %vm2004_vm4, %v855_v15, 0.0  ;;  %7809 = vmatpush3.bf16.msra.mxu0 %v8447_v20  ;;  %v10037_v20 = vadd.f32 %v9364_v23, %v9924_v53  ;;  %v8670_v23 = vld [vmem:[%s8890_s22 + $0x138] sm:$0xff] }
 0x174   : > { %v1673_v6 = vadd.f32 %v1641_v10, %v1252_v40  ;;  %v10026_v11 = vadd.f32 %v2028_v26, %v1671_v59  ;;  %v7369_v5 = vpop.f32.mrf.mxu1  ;;  %v857_v56 = vpop.f32.mrf.mxu0  ;;  %7810 = vmatprep.subr.bf16.mxu0 %v8448_v35  ;;  %v10041_v59 = vadd.f32 %v9369_v27, %v9924_v53  ;;  %v10046_v8 = vcombine.high %v2351_v46, %v2361_v7 }
 0x175   : > { %v10044_v40 = vadd.f32 %v7368_v58, %v9952_v21  ;;  %v2369_v35 = vor.u32 %v2368_v45, %v2365_v12  ;;  %v2379_v14 = vor.u32 %v2378_v19, %v10014_v63  ;;  %v2382_v10 = vshll.u32 %v395_v9, 16  ;;  %v8453_v12 = vld [vmem:[%s12561_s1 + $0x380] sm:$0xff]  }
 0x176   : > { %12688 = vst [vmem:[#allocation53_spill] sm:$0xff] %v10026_v11  ;;  %v7370_v31 = vpop.f32.mrf.mxu1  ;;  %v860_v0 = vpop.f32.mrf.mxu0  ;;  %3142 = vmatmul.mubr.bf16.gmra.mxu0 %v9697_v17  ;;  %v2387_v26 = vshrl.u32 %v8670_v23, 16  ;;  %v1253_v27 = vsel %vm1226_vm0, %v852_v2, 0.0 }
 0x177   : > { %v7371_v56 = vadd.f32 %v7370_v31, %v7369_v5  ;;  %v1642_v21 = vsel %vm1615_vm1, %v860_v0, 0.0  ;;  %v2029_v58 = vsel %vm2004_vm4, %v860_v0, 0.0  ;;  %3149 = vmatprep.mubr.bf16.mxu0 %v9699_v37  ;;  %7811 = vmatpush3.bf16.msra.mxu0 %v8449_v44  ;;  %v2390_v5 = vshll.u32 %v8670_v23, 16  ;;  %v8671_v31 = vld [vmem:[%s8890_s22 + $0x140] sm:$0xff] }
 0x178   : > { %v1674_v45 = vadd.f32 %v1642_v21, %v1253_v27  ;;  %v10061_v19 = vadd.f32 %v2029_v58, %v1672_v57  ;;  %v7372_v9 = vpop.f32.mrf.mxu1  ;;  %2884 = vmatmul.mubr.bf16.gmra.mxu1 %v9960_v55  ;;  %v862_v2 = vpop.f32.mrf.mxu0  ;;  %v2396_v11 = vshll.u32 %v8671_v31, 16  ;;  %7812 = vmatprep.subr.bf16.mxu0 %v8452_v42  ;;  %v10070_v44 = vadd.f32 %v9372_v34, %v9924_v53 }
 0x179   : > { %v10073_v27 = vadd.f32 %v7371_v56, %v9956_v32  ;;  %2891 = vmatprep.mubr.bf16.mxu1 %v10028_v28  ;;  %v10076_v57 = vcombine.low %v2351_v46, %v2361_v7  ;;  %v2400_v21 = vshrl.u32 %v8671_v31, 16  ;;  %v2370_v2 = vrot.slane %v2369_v35, 4 }
 0x17a   : > { %12689 = vst [vmem:[#allocation54_spill] sm:$0xff] %v10061_v19  ;;  %v7373_v23 = vpop.f32.mrf.mxu1  ;;  %v863_v58 = vpop.f32.mrf.mxu0  ;;  %v2380_v42 = vrot.slane %v2379_v14, 4  ;;  %v2384_v19 = vrot.slane %v2382_v10, 5  ;;  %v2389_v33 = vrot.slane %v2387_v26, 4  ;;  %v1254_v34 = vsel %vm1226_vm0, %v855_v15, 0.0 }
 0x17b   : > { %v7374_v37 = vadd.f32 %v7373_v23, %v7372_v9  ;;  %v1643_v32 = vsel %vm1615_vm1, %v863_v58, 0.0  ;;  %v2030_v46 = vsel %vm2004_vm4, %v863_v58, 0.0  ;;  %7813 = vmatpush3.bf16.msra.mxu0 %v8453_v12  ;;  %v2392_v10 = vrot.slane %v2390_v5, 5  ;;  %v398_v9 = vld [vmem:[%s8890_s22 + $0x148] sm:$0x11]  ;;  %v8672_v23 = vld [vmem:[%s8890_s22 + $0x150] sm:$0xff] }
 0x17c   : > { %v1675_v7 = vadd.f32 %v1643_v32, %v1254_v34  ;;  %v10084_v56 = vadd.f32 %v2030_v46, %v1673_v6  ;;  %v7375_v35 = vpop.f32.mrf.mxu1  ;;  %v865_v14 = vpop.f32.mrf.mxu0  ;;  %v10086_v26 = vrot.slane %v2396_v11, 5  ;;  %7910 = vmatprep.subr.bf16.mxu0 %v8456_v13  ;;  %v2402_v31 = vrot.slane %v2400_v21, 4  ;;  %v8673_v13 = vld [vmem:[%s8890_s22 + $0x158] sm:$0xff] }
 0x17d   : > { %v10089_v15 = vadd.f32 %v7374_v37, %v10004_v29  ;;  %v2411_v17 = vshrl.u32 %v8672_v23, 16  ;;  %v2414_v49 = vshll.u32 %v8672_v23, 16  ;;  %v2375_v6 = vsel %vm9422_vm5, %v2370_v2, %v10014_v63 }
 0x17e   : > { %12690 = vst [vmem:[#allocation55_spill] sm:$0xff] %v10084_v56  ;;  %v7376_v1 = vpop.f32.mrf.mxu1  ;;  %v868_v12 = vpop.f32.mrf.mxu0  ;;  %3150 = vmatmul.mubr.bf16.gmra.mxu0 %v9701_v24  ;;  %v2385_v11 = vsel %vm9422_vm5, %v2380_v42, %v2384_v19  ;;  %v2420_v5 = vshll.u32 %v8673_v13, 16  ;;  %v2424_v37 = vshrl.u32 %v8673_v13, 16  ;;  %v1255_v29 = vsel %vm1226_vm0, %v860_v0, 0.0 }
 0x17f   : > { %v7377_v21 = vadd.f32 %v7376_v1, %v7375_v35  ;;  %v1644_v34 = vsel %vm1615_vm1, %v868_v12, 0.0  ;;  %v2031_v32 = vsel %vm2004_vm4, %v868_v12, 0.0  ;;  %3157 = vmatprep.mubr.bf16.mxu0 %v9705_v43  ;;  %v2393_v42 = vor.u32 %v2392_v10, %v2389_v33 }
 0x180   : > { %v1676_v46 = vadd.f32 %v1644_v34, %v1255_v29  ;;  %v10107_v63 = vadd.f32 %v2031_v32, %v1674_v45  ;;  %v7378_v2 = vpop.f32.mrf.mxu1  ;;  %2892 = vmatmul.mubr.bf16.gmra.mxu1 %v10030_v3  ;;  %v870_v19 = vpop.f32.mrf.mxu0  ;;  %v2406_v14 = vshll.u32 %v398_v9, 16  ;;  %v2403_v0 = vor.u32 %v2402_v31, %v10086_v26 }
 0x181   : > { %v10111_v1 = vadd.f32 %v7377_v21, %v10037_v20  ;;  %2899 = vmatprep.mubr.bf16.mxu1 %v10046_v8  ;;  %v2413_v35 = vrot.slane %v2411_v17, 4  ;;  %v2416_v23 = vrot.slane %v2414_v49, 5  ;;  %v10117_v45 = vadd.f32 %v9377_v38, %v9924_v53  ;;  %v401_v17 = vld [vmem:[%s8890_s22 + $0x160] sm:$0x11] }
 0x182   : > { %12691 = vst [vmem:[#allocation56_spill] sm:$0xff] %v10107_v63  ;;  %v7379_v13 = vpop.f32.mrf.mxu1  ;;  %v871_v29 = vpop.f32.mrf.mxu0  ;;  %v10119_v34 = vcombine.high %v2375_v6, %v2385_v11  ;;  %v10121_v33 = vrot.slane %v2420_v5, 5  ;;  %v2426_v10 = vrot.slane %v2424_v37, 4  ;;  %v1256_v20 = vsel %vm1226_vm0, %v863_v58, 0.0 }
 0x183   : > { %v7380_v9 = vadd.f32 %v7379_v13, %v7378_v2  ;;  %v1645_v31 = vsel %vm1615_vm1, %v871_v29, 0.0  ;;  %v2032_v49 = vsel %vm2004_vm4, %v871_v29, 0.0  ;;  %v10132_v5 = vcombine.low %v2375_v6, %v2385_v11 }
 0x184   : > { %v1677_v38 = vadd.f32 %v1645_v31, %v1256_v20  ;;  %v10130_v21 = vadd.f32 %v2032_v49, %v1675_v7  ;;  %v7381_v32 = vpop.f32.mrf.mxu1  ;;  %v873_v19 = vpop.f32.mrf.mxu0  ;;  %v2394_v37 = vrot.slane %v2393_v42, 4  ;;  %v2404_v58 = vrot.slane %v2403_v0, 4  ;;  %v8674_v31 = vld [vmem:[%s8890_s22 + $0x168] sm:$0xff] }
 0x185   : > { %v10135_v63 = vadd.f32 %v7380_v9, %v10041_v59  ;;  %v2408_v2 = vrot.slane %v2406_v14, 5  ;;  %v2417_v13 = vor.u32 %v2416_v23, %v2413_v35  ;;  %v2427_v20 = vor.u32 %v2426_v10, %v10121_v33  ;;  %v8675_v10 = vld [vmem:[%s8890_s22 + $0x170] sm:$0xff] }
 0x186   : > { %12692 = vst [vmem:[#allocation57_spill] sm:$0xff] %v10130_v21  ;;  %v7382_v56 = vpop.f32.mrf.mxu1  ;;  %v876_v43 = vpop.f32.mrf.mxu0  ;;  %3158 = vmatmul.mubr.bf16.gmra.mxu0 %v9779_v47  ;;  %v2430_v7 = vshll.u32 %v401_v17, 16  ;;  %v2435_v49 = vshrl.u32 %v8674_v31, 16  ;;  %v2438_v19 = vshll.u32 %v8674_v31, 16  ;;  %v1257_v6 = vsel %vm1226_vm0, %v868_v12, 0.0 }
 0x187   : > { %v7383_v11 = vadd.f32 %v7382_v56, %v7381_v32  ;;  %v1646_v59 = vsel %vm1615_vm1, %v876_v43, 0.0  ;;  %v2033_v42 = vsel %vm2004_vm4, %v876_v43, 0.0  ;;  %3165 = vmatprep.mubr.bf16.mxu0 %v9783_v48  ;;  %v2444_v9 = vshll.u32 %v8675_v10, 16  ;;  %v407_v48 = vld [vmem:[%s8890_s22 + $0x190] sm:$0x11] }
 0x188   : > { %v1678_v14 = vadd.f32 %v1646_v59, %v1257_v6  ;;  %v10147_v0 = vadd.f32 %v2033_v42, %v1676_v46  ;;  %v7384_v35 = vpop.f32.mrf.mxu1  ;;  %2900 = vmatmul.mubr.bf16.gmra.mxu1 %v10076_v57  ;;  %v878_v23 = vpop.f32.mrf.mxu0  ;;  %v2448_v17 = vshrl.u32 %v8675_v10, 16  ;;  %v2399_v12 = vsel %vm9422_vm5, %v2394_v37, %v10086_v26  ;;  %v404_v37 = vld [vmem:[%s8890_s22 + $0x178] sm:$0x11] }
 0x189   : > { %v10152_v56 = vadd.f32 %v7383_v11, %v10070_v44  ;;  %2907 = vmatprep.mubr.bf16.mxu1 %v10119_v34  ;;  %v2409_v46 = vsel %vm9422_vm5, %v2404_v58, %v2408_v2  ;;  %v2418_v32 = vrot.slane %v2417_v13, 4  ;;  %v2428_v59 = vrot.slane %v2427_v20, 4 }
 0x18a   : > { %12693 = vst [vmem:[#allocation58_spill] sm:$0xff] %v10147_v0  ;;  %v7385_v31 = vpop.f32.mrf.mxu1  ;;  %v879_v6 = vpop.f32.mrf.mxu0  ;;  %v2432_v42 = vrot.slane %v2430_v7, 5  ;;  %v2437_v23 = vrot.slane %v2435_v49, 4  ;;  %v2440_v10 = vrot.slane %v2438_v19, 5  ;;  %v1258_v44 = vsel %vm1226_vm0, %v871_v29, 0.0 }
 0x18b   : > { %v7386_v11 = vadd.f32 %v7385_v31, %v7384_v35  ;;  %v1647_v0 = vsel %vm1615_vm1, %v879_v6, 0.0  ;;  %v2034_v26 = vsel %vm2004_vm4, %v879_v6, 0.0  ;;  %v10169_v20 = vrot.slane %v2444_v9, 5 }
 0x18c   : > { %v1679_v21 = vadd.f32 %v1647_v0, %v1258_v44  ;;  %v10167_v58 = vadd.f32 %v2034_v26, %v1677_v38  ;;  %v7387_v2 = vpop.f32.mrf.mxu1  ;;  %v881_v13 = vpop.f32.mrf.mxu0  ;;  %v2450_v7 = vrot.slane %v2448_v17, 4  ;;  %v1201_v49 = vadd.f32 %v9382_v50, %v9924_v53 }
 0x18d   : > { %v1202_v29 = vadd.f32 %v9391_v4, %v9924_v53  ;;  %v10176_v19 = vadd.f32 %v7386_v11, %v10117_v45  ;;  %v10178_v35 = vcombine.high %v2399_v12, %v2409_v46  ;;  %v10184_v38 = vsel %vm9422_vm5, %v2418_v32, %v10121_v33 }
 0x18e   : > { %12694 = vst [vmem:[#allocation59_spill] sm:$0xff] %v10167_v58  ;;  %v7388_v31 = vpop.f32.mrf.mxu1  ;;  %v884_v0 = vpop.f32.mrf.mxu0  ;;  %3166 = vmatmul.mubr.bf16.gmra.mxu0 %v9843_v30  ;;  %v10188_v50 = vsel %vm9422_vm5, %v2428_v59, %v2432_v42  ;;  %v2441_v4 = vor.u32 %v2440_v10, %v2437_v23  ;;  %v2454_v9 = vshll.u32 %v404_v37, 16  ;;  %v1259_v45 = vsel %vm1226_vm0, %v876_v43, 0.0  ;;  %v8676_v43 = vld [vmem:[%s8890_s22 + $0x180] sm:$0xff] }
 0x18f   : > { %v7389_v17 = vadd.f32 %v7388_v31, %v7387_v2  ;;  %v1648_v44 = vsel %vm1615_vm1, %v884_v0, 0.0  ;;  %v2035_v11 = vsel %vm2004_vm4, %v884_v0, 0.0  ;;  %3173 = vmatprep.mubr.bf16.mxu0 %v9848_v22  ;;  %v2451_v23 = vor.u32 %v2450_v7, %v10169_v20  ;;  %v8677_v2 = vld [vmem:[%s8890_s22 + $0x188] sm:$0xff] }
 0x190   : > { %v1680_v33 = vadd.f32 %v1648_v44, %v1259_v45  ;;  %v10197_v32 = vadd.f32 %v2035_v11, %v1678_v14  ;;  %v7390_v59 = vpop.f32.mrf.mxu1  ;;  %2908 = vmatmul.mubr.bf16.gmra.mxu1 %v10132_v5  ;;  %v886_v42 = vpop.f32.mrf.mxu0  ;;  %v2459_v10 = vshrl.u32 %v8676_v43, 16  ;;  %v2462_v37 = vshll.u32 %v8676_v43, 16 }
 0x191   : > { %v10202_v26 = vadd.f32 %v7389_v17, %v1201_v49  ;;  %2915 = vmatprep.mubr.bf16.mxu1 %v10178_v35  ;;  %v2468_v13 = vshll.u32 %v8677_v2, 16  ;;  %v2472_v31 = vshrl.u32 %v8677_v2, 16  ;;  %v10206_v14 = vcombine.low %v2399_v12, %v2409_v46 }
 0x192   : > { %12695 = vst [vmem:[#allocation60_spill] sm:$0xff] %v10197_v32  ;;  %v7391_v0 = vpop.f32.mrf.mxu1  ;;  %v887_v45 = vpop.f32.mrf.mxu0  ;;  %v10210_v44 = vcombine.high %v10184_v38, %v10188_v50  ;;  %v2442_v11 = vrot.slane %v2441_v4, 4  ;;  %v2456_v7 = vrot.slane %v2454_v9, 5  ;;  %v1260_v49 = vsel %vm1226_vm0, %v879_v6, 0.0 }
 0x193   : > { %v7392_v17 = vadd.f32 %v7391_v0, %v7390_v59  ;;  %v1649_v42 = vsel %vm1615_vm1, %v887_v45, 0.0  ;;  %v2036_v43 = vsel %vm2004_vm4, %v887_v45, 0.0  ;;  %v2452_v58 = vrot.slane %v2451_v23, 4 }
 0x194   : > { %v1681_v2 = vadd.f32 %v1649_v42, %v1260_v49  ;;  %v10218_v12 = vadd.f32 %v2036_v43, %v1679_v21  ;;  %v7393_v46 = vpop.f32.mrf.mxu1  ;;  %v889_v32 = vpop.f32.mrf.mxu0  ;;  %v2461_v22 = vrot.slane %v2459_v10, 4  ;;  %v2464_v9 = vrot.slane %v2462_v37, 5  ;;  %v8678_v43 = vld [vmem:[%s8890_s22 + $0x198] sm:$0xff] }
 0x195   : > { %v10220_v4 = vadd.f32 %v7392_v17, %v1202_v29  ;;  %v2470_v30 = vrot.slane %v2468_v13, 5  ;;  %v2474_v6 = vrot.slane %v2472_v31, 4  ;;  %v1203_v45 = vadd.f32 %v9400_v18, %v9924_v53 }
 0x196   : > { %12696 = vst [vmem:[#allocation61_spill] sm:$0xff] %v10218_v12  ;;  %v7394_v59 = vpop.f32.mrf.mxu1  ;;  %v892_v0 = vpop.f32.mrf.mxu0  ;;  %3174 = vmatmul.mubr.bf16.gmra.mxu0 %v9850_v52  ;;  %v2447_v10 = vsel %vm9422_vm5, %v2442_v11, %v10169_v20  ;;  %v2457_v18 = vsel %vm9422_vm5, %v2452_v58, %v2456_v7  ;;  %v2465_v13 = vor.u32 %v2464_v9, %v2461_v22 }
 0x197   : > { %v7395_v49 = vadd.f32 %v7394_v59, %v7393_v46  ;;  %v2037_v21 = vsel %vm2004_vm4, %v892_v0, 0.0  ;;  %3181 = vmatprep.mubr.bf16.mxu0 %v9854_v25  ;;  %v2475_v31 = vor.u32 %v2474_v6, %v2470_v30  ;;  %v2483_v46 = vshrl.u32 %v8678_v43, 16  ;;  %v8679_v0 = vld [vmem:[%s8890_s22 + $0x1a0] sm:$0xff] }
 0x198   : > { %v10229_v29 = vadd.f32 %v2037_v21, %v1680_v33  ;;  %v7396_v32 = vpop.f32.mrf.mxu1  ;;  %2916 = vmatmul.mubr.bf16.gmra.mxu1 %v10206_v14  ;;  %v894_v23 = vpop.f32.mrf.mxu0  ;;  %v2478_v33 = vshll.u32 %v407_v48, 16  ;;  %v2486_v59 = vshll.u32 %v8678_v43, 16  ;;  %v2492_v21 = vshll.u32 %v8679_v0, 16 }
 0x199   : > { %v10237_v37 = vadd.f32 %v7395_v49, %v1203_v45  ;;  %2923 = vmatprep.mubr.bf16.mxu1 %v10210_v44  ;;  %v2496_v23 = vshrl.u32 %v8679_v0, 16  ;;  %v1204_v20 = vadd.f32 %v9416_v61, %v9924_v53  ;;  %v10250_v48 = vcombine.low %v10184_v38, %v10188_v50 }
 0x19a   : > { %12697 = vst [vmem:[#allocation62_spill] sm:$0xff] %v10229_v29  ;;  %v7397_v17 = vpop.f32.mrf.mxu1  ;;  %v895_v42 = vpop.f32.mrf.mxu0  ;;  %v10252_v6 = vcombine.high %v2447_v10, %v2457_v18  ;;  %v2466_v49 = vrot.slane %v2465_v13, 4  ;;  %v2476_v43 = vrot.slane %v2475_v31, 4  ;;  %v2480_v61 = vrot.slane %v2478_v33, 5 }
 0x19b   : > { %v7398_v11 = vadd.f32 %v7397_v17, %v7396_v32  ;;  %v2038_v58 = vsel %vm2004_vm4, %v895_v42, 0.0  ;;  %v2488_v42 = vrot.slane %v2486_v59, 5  ;;  %v2494_v0 = vrot.slane %v2492_v21, 5 }
 0x19c   : > { %v10246_v7 = vadd.f32 %v2038_v58, %v1681_v2  ;;  %v7399_v22 = vpop.f32.mrf.mxu1  ;;  %v897_v9 = vpop.f32.mrf.mxu0  ;;  %v2485_v2 = vrot.slane %v2483_v46, 4  ;;  %v2498_v58 = vrot.slane %v2496_v23, 4  ;;  %v1205_v38 = vadd.f32 %v9444_v39, %v9924_v53 }
 0x19d   : > { %v10254_v45 = vadd.f32 %v7398_v11, %v1204_v20  ;;  %v410_v9 = vld [vmem:[%s8890_s22 + $0x1a8] sm:$0x11]  ;;  %v2471_v46 = vsel %vm9422_vm5, %v2466_v49, %v2470_v30  ;;  %v2481_v39 = vsel %vm9422_vm5, %v2476_v43, %v2480_v61  ;;  %v10274_v29 = vcombine.low %v2447_v10, %v2457_v18 }
 0x19e   : > { %12698 = vst [vmem:[#allocation63_spill] sm:$0xff] %v10246_v7  ;;  %v7400_v32 = vpop.f32.mrf.mxu1  ;;  %v7478_v17 = vpop.f32.mrf.mxu0  ;;  %3182 = vmatmul.mubr.bf16.gmra.mxu0 %v9913_v36  ;;  %v2489_v23 = vor.u32 %v2488_v42, %v2485_v2  ;;  %v2499_v11 = vor.u32 %v2498_v58, %v2494_v0  ;;  %v10278_v12 = vcombine.high %v2471_v46, %v2481_v39 }
 0x19f   : > { %v7401_v50 = vadd.f32 %v7400_v32, %v7399_v22  ;;  %3189 = vmatprep.mubr.bf16.mxu0 %v9958_v16  ;;  %v2502_v22 = vshll.u32 %v410_v9, 16  ;;  %v12699_v32 = vld [vmem:[#allocation5_spill] sm:$0xff] }
 0x1a0   : > { %v7402_v20 = vpop.f32.mrf.mxu1  ;;  %2924 = vmatmul.mubr.bf16.gmra.mxu1 %v10250_v48  ;;  %v7479_v13 = vpop.f32.mrf.mxu0  ;;  %v1206_v7 = vadd.f32 %v12699_v32, %v9924_v53  ;;  %v2490_v2 = vrot.slane %v2489_v23, 4  ;;  %v2500_v42 = vrot.slane %v2499_v11, 4 }
 0x1a1   : > { %v10262_v31 = vadd.f32 %v7401_v50, %v1205_v38  ;;  %v7480_v33 = vadd.f32 %v7479_v13, %v7478_v17  ;;  %2931 = vmatprep.mubr.bf16.mxu1 %v10252_v6  ;;  %v2504_v58 = vrot.slane %v2502_v22, 5  ;;  %v12701_v22 = vld [vmem:[#allocation9_spill] sm:$0xff] }
 0x1a2   : > { %v7403_v59 = vpop.f32.mrf.mxu1  ;;  %v7481_v21 = vpop.f32.mrf.mxu0  ;;  %v2495_v11 = vsel %vm9422_vm5, %v2490_v2, %v2494_v0  ;;  %v1208_v32 = vadd.f32 %v12701_v22, %v9924_v53 }
 0x1a3   : > { %v10272_v38 = vadd.f32 %v7480_v33, %v10044_v40  ;;  %v7404_v17 = vadd.f32 %v7403_v59, %v7402_v20  ;;  %v12700_v40 = vld [vmem:[#allocation7_spill] sm:$0xff] }
 0x1a4   : > { %v7405_v50 = vpop.f32.mrf.mxu1  ;;  %v7482_v13 = vpop.f32.mrf.mxu0  ;;  %v1207_v9 = vadd.f32 %v12700_v40, %v9924_v53 }
 0x1a5   : > { %v10276_v30 = vadd.f32 %v7404_v17, %v1206_v7  ;;  %v7483_v49 = vadd.f32 %v7482_v13, %v7481_v21 }
 0x1a6   : > { %v7406_v43 = vpop.f32.mrf.mxu1  ;;  %v7484_v61 = vpop.f32.mrf.mxu0  ;;  %3190 = vmatmul.mubr.bf16.gmra.mxu0 %v9960_v55 }
 0x1a7   : > { %v10284_v20 = vadd.f32 %v7483_v49, %v10073_v27  ;;  %v7407_v10 = vadd.f32 %v7406_v43, %v7405_v50  ;;  %3197 = vmatprep.mubr.bf16.mxu0 %v10028_v28  ;;  %v2505_v27 = vsel %vm9422_vm5, %v2500_v42, %v2504_v58  ;;  %v10300_v43 = vcombine.low %v2471_v46, %v2481_v39 }
 0x1a8   : > { %v7408_v18 = vpop.f32.mrf.mxu1  ;;  %2932 = vmatmul.mubr.bf16.gmra.mxu1 %v10274_v29  ;;  %v7485_v7 = vpop.f32.mrf.mxu0  ;;  %v1209_v42 = vadd.f32 %v12703_v62, %v9924_v53  ;;  %v12706_v62 = vld [vmem:[#allocation15_spill] sm:$0xff] }
 0x1a9   : > { %v10288_v33 = vadd.f32 %v7407_v10, %v1207_v9  ;;  %v7486_v59 = vadd.f32 %v7485_v7, %v7484_v61  ;;  %2939 = vmatprep.mubr.bf16.mxu1 %v10278_v12  ;;  %v10304_v9 = vcombine.high %v2495_v11, %v2505_v27 }
 0x1aa   : > { %v7409_v21 = vpop.f32.mrf.mxu1  ;;  %v7487_v23 = vpop.f32.mrf.mxu0 }
 0x1ab   : > { %v10298_v17 = vadd.f32 %v7486_v59, %v10089_v15  ;;  %v7410_v50 = vadd.f32 %v7409_v21, %v7408_v18  ;;  %12702 = vst [vmem:[#allocation5_spill] sm:$0xff] %v10304_v9  ;;  %v12704_v21 = vld [vmem:[#allocation13_spill] sm:$0xff] }
 0x1ac   : > { %v7411_v13 = vpop.f32.mrf.mxu1  ;;  %v7488_v49 = vpop.f32.mrf.mxu0 }
 0x1ad   : > { %v10302_v61 = vadd.f32 %v7410_v50, %v1208_v32  ;;  %v7489_v40 = vadd.f32 %v7488_v49, %v7487_v23  ;;  %v1210_v23 = vadd.f32 %v12704_v21, %v9924_v53 }
 0x1ae   : > { %v7412_v0 = vpop.f32.mrf.mxu1  ;;  %v7490_v2 = vpop.f32.mrf.mxu0  ;;  %3198 = vmatmul.mubr.bf16.gmra.mxu0 %v10030_v3 }
 0x1af   : > { %v10310_v15 = vadd.f32 %v7489_v40, %v10111_v1  ;;  %v7413_v58 = vadd.f32 %v7412_v0, %v7411_v13  ;;  %3205 = vmatprep.mubr.bf16.mxu0 %v10046_v8  ;;  %v10322_v13 = vcombine.low %v2495_v11, %v2505_v27 }
 0x1b0   : > { %v7414_v46 = vpop.f32.mrf.mxu1  ;;  %2940 = vmatmul.mubr.bf16.gmra.mxu1 %v10300_v43  ;;  %v7491_v39 = vpop.f32.mrf.mxu0 }
 0x1b1   : > { %v10314_v10 = vadd.f32 %v7413_v58, %v1209_v42  ;;  %v7492_v18 = vadd.f32 %v7491_v39, %v7490_v2  ;;  %2947 = vmatprep.mubr.bf16.mxu1 %v10304_v9  ;;  %12705 = vst [vmem:[#allocation7_spill] sm:$0xff] %v10322_v13  ;;  %v1211_v42 = vadd.f32 %v12706_v62, %v9924_v53  ;;  %v12708_v62 = vld [vmem:[#allocation21_spill] sm:$0xff] }
 0x1b2   : > { %v7415_v7 = vpop.f32.mrf.mxu1  ;;  %v7493_v59 = vpop.f32.mrf.mxu0 }
 0x1b3   : > { %v10320_v1 = vadd.f32 %v7492_v18, %v10135_v63  ;;  %v7416_v22 = vadd.f32 %v7415_v7, %v7414_v46 }
 0x1b4   : > { %v7417_v32 = vpop.f32.mrf.mxu1  ;;  %v7494_v50 = vpop.f32.mrf.mxu0 }
 0x1b5   : > { %v10324_v49 = vadd.f32 %v7416_v22, %v1210_v23  ;;  %v7495_v40 = vadd.f32 %v7494_v50, %v7493_v59  ;;  %v12707_v59 = vld [vmem:[#allocation19_spill] sm:$0xff] }
 0x1b6   : > { %v7418_v0 = vpop.f32.mrf.mxu1  ;;  %v7496_v2 = vpop.f32.mrf.mxu0  ;;  %3206 = vmatmul.mubr.bf16.gmra.mxu0 %v10076_v57  ;;  %v1212_v21 = vadd.f32 %v12707_v59, %v9924_v53 }
 0x1b7   : > { %v10330_v58 = vadd.f32 %v7495_v40, %v10152_v56  ;;  %v7419_v63 = vadd.f32 %v7418_v0, %v7417_v32  ;;  %3213 = vmatprep.mubr.bf16.mxu0 %v10119_v34  ;;  %v8450_v0 = vld [vmem:[%s12563_s3 + $0x138] sm:$0xff]  }
 0x1b8   : > { %v7420_v46 = vpop.f32.mrf.mxu1  ;;  %2948 = vmatmul.mubr.bf16.gmra.mxu1 %v10322_v13  ;;  %v7497_v11 = vpop.f32.mrf.mxu0  ;;  %v8457_v13 = vld [vmem:[%s12563_s3 + $0x118] sm:$0xff]  }
 0x1b9   : > { %v10334_v27 = vadd.f32 %v7419_v63, %v1211_v42  ;;  %v7498_v39 = vadd.f32 %v7497_v11, %v7496_v2  ;;  %3503 = vmatprep.mubr.bf16.mxu1 %v9524_v41  ;;  %v1213_v42 = vadd.f32 %v12708_v62, %v9924_v53  ;;  %v8454_v62 = vld [vmem:[%s12563_s3 + $0x128] sm:$0xff]  }
 0x1ba   : > { %v7421_v18 = vpop.f32.mrf.mxu1  ;;  %v7499_v7 = vpop.f32.mrf.mxu0 }
 0x1bb   : > { %v10340_v56 = vadd.f32 %v7498_v39, %v10176_v19  ;;  %v7422_v23 = vadd.f32 %v7421_v18, %v7420_v46 }
 0x1bc   : > { %v7423_v22 = vpop.f32.mrf.mxu1  ;;  %v7500_v32 = vpop.f32.mrf.mxu0 }
 0x1bd   : > { %v10342_v50 = vadd.f32 %v7422_v23, %v1212_v21  ;;  %v7501_v40 = vadd.f32 %v7500_v32, %v7499_v7  ;;  %v8451_v7 = vld [vmem:[%s12563_s3 + $0x130] sm:$0xff]   ;;  %v12710_v21 = vmov 0   ;;  %v12711_v23 = vld [vmem:[#allocation23_spill] sm:$0xff] }
 0x1be   : > { %v7424_v2 = vpop.f32.mrf.mxu1  ;;  %v7502_v41 = vpop.f32.mrf.mxu0  ;;  %3214 = vmatmul.mubr.bf16.gmra.mxu0 %v10132_v5 }
 0x1bf   : > { %v10351_v19 = vadd.f32 %v7501_v40, %v10202_v26  ;;  %v7425_v63 = vadd.f32 %v7424_v2, %v7423_v22  ;;  %3221 = vmatprep.mubr.bf16.mxu0 %v10178_v35  ;;  %v1214_v22 = vadd.f32 %v12711_v23, %v9924_v53 }
 0x1c0   : > { %v7426_v46 = vpop.f32.mrf.mxu1  ;;  %3504 = vmatmul.mubr.bf16.vlgmr.msra.gmra.mxu1 %v9522_v54  ;;  %v7503_v11 = vpop.f32.mrf.mxu0 }
 0x1c1   : > { %12709 = vst [vmem:[#allocation9_spill] sm:$0xff] %v10351_v19  ;;  %v10355_v39 = vadd.f32 %v7425_v63, %v1213_v42  ;;  %v7504_v18 = vadd.f32 %v7503_v11, %v7502_v41  ;;  %4535 = vmatpush1.bf16.msra.mxu1 %v8450_v0  ;;  %3511 = vmatprep.mubr.bf16.mxu1 %v9528_v60 }
 0x1c2   : > { %v7427_v59 = vpop.f32.mrf.mxu1  ;;  %v7505_v26 = vpop.f32.mrf.mxu0  ;;  %4536 = vmatprep.subr.bf16.mxu1 %v12710_v21 }
 0x1c3   : > { %v10365_v54 = vadd.f32 %v7504_v18, %v10220_v4  ;;  %v7428_v32 = vadd.f32 %v7427_v59, %v7426_v46  ;;  %v12713_v4 = vld [vmem:[#allocation28_spill] sm:$0xff]  ;;  %v12715_v59 = vld [vmem:[#allocation17_spill] sm:$0xff] }
 0x1c4   : > { %v7429_v40 = vpop.f32.mrf.mxu1  ;;  %v7506_v2 = vpop.f32.mrf.mxu0  ;;  %v1215_v11 = vadd.f32 %v12713_v4, %v9924_v53 }
 0x1c5   : > { %12712 = vst [vmem:[#allocation11_spill] sm:$0xff] %v10365_v54  ;;  %v10367_v0 = vadd.f32 %v7428_v32, %v1214_v22  ;;  %v7507_v41 = vadd.f32 %v7506_v2, %v7505_v26  ;;  %4537 = vmatpush1.bf16.msra.mxu1 %v8451_v7  ;;  %v12716_v32 = vld [vmem:[#allocation18_spill] sm:$0xff] }
 0x1c6   : > { %v7430_v42 = vpop.f32.mrf.mxu1  ;;  %v7508_v63 = vpop.f32.mrf.mxu0  ;;  %3222 = vmatmul.mubr.bf16.gmra.mxu0 %v10206_v14  ;;  %4538 = vmatprep.subr.bf16.mxu1 %v12710_v21  ;;  %v8455_v2 = vld [vmem:[%s12563_s3 + $0x120] sm:$0xff]  }
 0x1c7   : > { %v10377_v46 = vadd.f32 %v7507_v41, %v10237_v37  ;;  %v7431_v18 = vadd.f32 %v7430_v42, %v7429_v40  ;;  %3229 = vmatprep.mubr.bf16.mxu0 %v10210_v44  ;;  %v12717_v40 = vld [vmem:[#allocation30_spill] sm:$0xff] }
 0x1c8   : > { %v7432_v7 = vpop.f32.mrf.mxu1  ;;  %3512 = vmatmul.mubr.bf16.gmra.mxu1 %v12715_v59  ;;  %v7509_v26 = vpop.f32.mrf.mxu0  ;;  %v1216_v41 = vadd.f32 %v12717_v40, %v9924_v53 }
 0x1c9   : > { %12714 = vst [vmem:[#allocation13_spill] sm:$0xff] %v10377_v46  ;;  %v10381_v23 = vadd.f32 %v7431_v18, %v1215_v11  ;;  %v7510_v22 = vadd.f32 %v7509_v26, %v7508_v63  ;;  %3519 = vmatprep.mubr.bf16.mxu1 %v12716_v32  ;;  %4539 = vmatpush1.bf16.msra.mxu1 %v8454_v62 }
 0x1ca   : > { %v7433_v4 = vpop.f32.mrf.mxu1  ;;  %v7511_v37 = vpop.f32.mrf.mxu0  ;;  %4540 = vmatprep.subr.bf16.mxu1 %v12710_v21 }
 0x1cb   : > { %v10391_v42 = vadd.f32 %v7510_v22, %v10254_v45  ;;  %v7434_v11 = vadd.f32 %v7433_v4, %v7432_v7  ;;  %v12719_v45 = vld [vmem:[#allocation32_spill] sm:$0xff] }
 0x1cc   : > { %v7435_v18 = vpop.f32.mrf.mxu1  ;;  %v7512_v63 = vpop.f32.mrf.mxu0  ;;  %v1217_v22 = vadd.f32 %v12719_v45, %v9924_v53  ;;  %v8459_v45 = vld [vmem:[%s12563_s3 + $0x110] sm:$0xff]  }
 0x1cd   : > { %12718 = vst [vmem:[#allocation15_spill] sm:$0xff] %v10391_v42  ;;  %v10393_v26 = vadd.f32 %v7434_v11, %v1216_v41  ;;  %v7513_v62 = vadd.f32 %v7512_v63, %v7511_v37  ;;  %4541 = vmatpush1.bf16.msra.mxu1 %v8455_v2  ;;  %v12721_v37 = vld [vmem:[#allocation25_spill] sm:$0xff]  ;;  %v12722_v63 = vld [vmem:[#allocation26_spill] sm:$0xff] }
 0x1ce   : > { %v7436_v9 = vpop.f32.mrf.mxu1  ;;  %v7514_v46 = vpop.f32.mrf.mxu0  ;;  %3230 = vmatmul.mubr.bf16.gmra.mxu0 %v10250_v48  ;;  %4542 = vmatprep.subr.bf16.mxu1 %v12710_v21 }
 0x1cf   : > { %v10403_v7 = vadd.f32 %v7513_v62, %v10262_v31  ;;  %v7437_v4 = vadd.f32 %v7436_v9, %v7435_v18  ;;  %3237 = vmatprep.mubr.bf16.mxu0 %v10252_v6  ;;  %v12723_v9 = vld [vmem:[#allocation35_spill] sm:$0xff] }
 0x1d0   : > { %v7438_v2 = vpop.f32.mrf.mxu1  ;;  %3520 = vmatmul.mubr.bf16.gmra.mxu1 %v12721_v37  ;;  %v7515_v40 = vpop.f32.mrf.mxu0  ;;  %v1218_v18 = vadd.f32 %v12723_v9, %v9924_v53  ;;  %v10429_v53 = vld [vmem:[%s12562_s2] ss:$0 sm:$0xff] }
 0x1d1   : > { %12720 = vst [vmem:[#allocation19_spill] sm:$0xff] %v10403_v7  ;;  %v10407_v41 = vadd.f32 %v7437_v4, %v1217_v22  ;;  %v7516_v11 = vadd.f32 %v7515_v40, %v7514_v46  ;;  %3527 = vmatprep.mubr.bf16.mxu1 %v12722_v63  ;;  %4543 = vmatpush1.bf16.msra.mxu1 %v8457_v13  ;;  %v8461_v7 = vld [vmem:[%s12563_s3 + $0x108] sm:$0xff]  }
 0x1d2   : > { %v7439_v42 = vpop.f32.mrf.mxu1  ;;  %v7517_v31 = vpop.f32.mrf.mxu0  ;;  %4544 = vmatprep.subr.bf16.mxu1 %v12710_v21 }
 0x1d3   : > { %v10417_v62 = vadd.f32 %v7516_v11, %v10276_v30  ;;  %v7440_v22 = vadd.f32 %v7439_v42, %v7438_v2  ;;  %v12725_v30 = vld [vmem:[#allocation37_spill] sm:$0xff] }
 0x1d4   : > { %v7441_v4 = vpop.f32.mrf.mxu1  ;;  %v7518_v46 = vpop.f32.mrf.mxu0  ;;  %v1219_v42 = vadd.f32 %v10429_v53, %v12725_v30 }
 0x1d5   : > { %12724 = vst [vmem:[#allocation21_spill] sm:$0xff] %v10417_v62  ;;  %v10419_v40 = vadd.f32 %v7440_v22, %v1218_v18  ;;  %v7519_v13 = vadd.f32 %v7518_v46, %v7517_v31  ;;  %4545 = vmatpush1.bf16.msra.mxu1 %v8459_v45  ;;  %v12727_v22 = vld [vmem:[#allocation27_spill] sm:$0xff] }
 0x1d6   : > { %v7442_v54 = vpop.f32.mrf.mxu1  ;;  %v7520_v19 = vpop.f32.mrf.mxu0  ;;  %3238 = vmatmul.mubr.bf16.gmra.mxu0 %v10274_v29  ;;  %4546 = vmatprep.subr.bf16.mxu1 %v12710_v21  ;;  %v8463_v46 = vld [vmem:[%s12563_s3 + $0x100] sm:$0xff]  }
 0x1d7   : > { %v10434_v2 = vadd.f32 %v7519_v13, %v10288_v33  ;;  %v7443_v11 = vadd.f32 %v7442_v54, %v7441_v4  ;;  %3889 = vmatprep.mubr.bf16.mxu0 %v9528_v60  ;;  %v12728_v54 = vld [vmem:[#allocation39_spill] sm:$0xff] }
 0x1d8   : > { %v7444_v45 = vpop.f32.mrf.mxu1  ;;  %3528 = vmatmul.mubr.bf16.gmra.mxu1 %v9701_v24  ;;  %v7521_v31 = vpop.f32.mrf.mxu0  ;;  %v1220_v60 = vadd.f32 %v10429_v53, %v12728_v54 }
 0x1d9   : > { %12726 = vst [vmem:[#allocation23_spill] sm:$0xff] %v10434_v2  ;;  %v10438_v9 = vadd.f32 %v7443_v11, %v1219_v42  ;;  %v7522_v18 = vadd.f32 %v7521_v31, %v7520_v19  ;;  %3535 = vmatprep.mubr.bf16.mxu1 %v12727_v22  ;;  %4547 = vmatpush1.bf16.msra.mxu1 %v8461_v7  ;;  %v8458_v19 = vld [vmem:[%s12561_s1 + $0x138] sm:$0xff]   ;;  %v8460_v11 = vld [vmem:[%s12561_s1 + $0x170] sm:$0xff]  }
 0x1da   : > { %v7445_v30 = vpop.f32.mrf.mxu1  ;;  %v7523_v33 = vpop.f32.mrf.mxu0  ;;  %4548 = vmatprep.subr.bf16.mxu1 %v12710_v21 }
 0x1db   : > { %v10448_v4 = vadd.f32 %v7522_v18, %v10302_v61  ;;  %v7446_v13 = vadd.f32 %v7445_v30, %v7444_v45  ;;  %v8465_v61 = vld [vmem:[%s12563_s3 + $0x178] sm:$0xff]   ;;  %v12730_v30 = vld [vmem:[#allocation43_spill] sm:$0xff] }
 0x1dc   : > { %v7447_v7 = vpop.f32.mrf.mxu1  ;;  %v7524_v42 = vpop.f32.mrf.mxu0  ;;  %v1221_v54 = vadd.f32 %v10429_v53, %v12730_v30 }
 0x1dd   : > { %12729 = vst [vmem:[#allocation28_spill] sm:$0xff] %v10448_v4  ;;  %v10456_v31 = vadd.f32 %v7446_v13, %v1220_v60  ;;  %v7525_v2 = vadd.f32 %v7524_v42, %v7523_v33  ;;  %4549 = vmatpush1.bf16.msra.mxu1 %v8463_v46  ;;  %v8462_v46 = vld [vmem:[%s12561_s1 + $0x130] sm:$0xff]   ;;  %v8464_v13 = vld [vmem:[%s12561_s1 + $0x168] sm:$0xff]  }
 0x1de   : > { %v7448_v18 = vpop.f32.mrf.mxu1  ;;  %v7526_v45 = vpop.f32.mrf.mxu0  ;;  %3890 = vmatmul.mubr.bf16.vlgmr.msra.gmra.mxu0 %v12715_v59  ;;  %4550 = vmatprep.subr.bf16.mxu1 %v12710_v21 }
 0x1df   : > { %v10466_v4 = vadd.f32 %v7525_v2, %v10314_v10  ;;  %v7449_v60 = vadd.f32 %v7448_v18, %v7447_v7  ;;  %7911 = vmatpush3.bf16.msra.mxu0 %v8458_v19  ;;  %3897 = vmatprep.mubr.bf16.mxu0 %v12716_v32  ;;  %v12732_v2 = vld [vmem:[#allocation34_spill] sm:$0xff]  ;;  %v8467_v32 = vld [vmem:[%s12563_s3 + $0x170] sm:$0xff]  }
 0x1e0   : > { %v7450_v33 = vpop.f32.mrf.mxu1  ;;  %3536 = vmatmul.mubr.bf16.gmra.mxu1 %v9779_v47  ;;  %v7527_v59 = vpop.f32.mrf.mxu0  ;;  %7912 = vmatprep.subr.bf16.mxu0 %v8460_v11  ;;  %v12733_v18 = vld [vmem:[#allocation45_spill] sm:$0xff] }
 0x1e1   : > { %12731 = vst [vmem:[#allocation17_spill] sm:$0xff] %v10466_v4  ;;  %v10476_v42 = vadd.f32 %v7449_v60, %v1221_v54  ;;  %v7528_v10 = vadd.f32 %v7527_v59, %v7526_v45  ;;  %3543 = vmatprep.mubr.bf16.mxu1 %v12732_v2  ;;  %4551 = vmatpush2.bf16.msra.mxu1 %v8465_v61  ;;  %v8466_v61 = vld [vmem:[%s12561_s1 + $0x128] sm:$0xff]   ;;  %v8468_v59 = vld [vmem:[%s12561_s1 + $0x160] sm:$0xff]  }
 0x1e2   : > { %v7451_v19 = vpop.f32.mrf.mxu1  ;;  %v7529_v7 = vpop.f32.mrf.mxu0  ;;  %4552 = vmatprep.subr.bf16.mxu1 %v12710_v21  ;;  %v1222_v11 = vadd.f32 %v10429_v53, %v12733_v18 }
 0x1e3   : > { %v10486_v30 = vadd.f32 %v7528_v10, %v10324_v49  ;;  %v7452_v54 = vadd.f32 %v7451_v19, %v7450_v33  ;;  %7913 = vmatpush3.bf16.msra.mxu0 %v8462_v46  ;;  %v8469_v49 = vld [vmem:[%s12563_s3 + $0x168] sm:$0xff]  }
 0x1e4   : > { %v7453_v45 = vpop.f32.mrf.mxu1  ;;  %v7530_v60 = vpop.f32.mrf.mxu0  ;;  %7914 = vmatprep.subr.bf16.mxu0 %v8464_v13  ;;  %v12735_v10 = vld [vmem:[#allocation47_spill] sm:$0xff] }
 0x1e5   : > { %12734 = vst [vmem:[#allocation18_spill] sm:$0xff] %v10486_v30  ;;  %v10494_v4 = vadd.f32 %v7452_v54, %v1222_v11  ;;  %v7531_v62 = vadd.f32 %v7530_v60, %v7529_v7  ;;  %4553 = vmatpush2.bf16.msra.mxu1 %v8467_v32  ;;  %v1223_v13 = vadd.f32 %v10429_v53, %v12735_v10  ;;  %v8470_v32 = vld [vmem:[%s12561_s1 + $0x120] sm:$0xff]   ;;  %v12737_v11 = vld [vmem:[#allocation41_spill] sm:$0xff] }
 0x1e6   : > { %v7454_v46 = vpop.f32.mrf.mxu1  ;;  %v7532_v33 = vpop.f32.mrf.mxu0  ;;  %3898 = vmatmul.mubr.bf16.gmra.mxu0 %v12721_v37  ;;  %4554 = vmatprep.subr.bf16.mxu1 %v12710_v21  ;;  %v8472_v54 = vld [vmem:[%s12561_s1 + $0x158] sm:$0xff]  }
 0x1e7   : > { %v10504_v19 = vadd.f32 %v7531_v62, %v10334_v27  ;;  %v7455_v18 = vadd.f32 %v7454_v46, %v7453_v45  ;;  %3905 = vmatprep.mubr.bf16.mxu0 %v12722_v63  ;;  %7915 = vmatpush3.bf16.msra.mxu0 %v8466_v61  ;;  %v12738_v62 = vld [vmem:[#allocation42_spill] sm:$0xff]  ;;  %v12739_v46 = vld [vmem:[#allocation49_spill] sm:$0xff] }
 0x1e8   : > { %v7456_v7 = vpop.f32.mrf.mxu1  ;;  %3544 = vmatmul.mubr.bf16.gmra.mxu1 %v12737_v11  ;;  %v7533_v37 = vpop.f32.mrf.mxu0  ;;  %7916 = vmatprep.subr.bf16.mxu0 %v8468_v59  ;;  %v8471_v63 = vld [vmem:[%s12563_s3 + $0x160] sm:$0xff]   ;;  %v1224_v59 = vadd.f32 %v10429_v53, %v12739_v46 }
 0x1e9   : > { %12736 = vst [vmem:[#allocation30_spill] sm:$0xff] %v10504_v19  ;;  %v10514_v60 = vadd.f32 %v7455_v18, %v1223_v13  ;;  %v7534_v27 = vadd.f32 %v7533_v37, %v7532_v33  ;;  %3551 = vmatprep.mubr.bf16.mxu1 %v12738_v62  ;;  %4555 = vmatpush2.bf16.msra.mxu1 %v8469_v49  ;;  %v8474_v49 = vld [vmem:[%s12561_s1 + $0x118] sm:$0xff]   ;;  %v8476_v37 = vld [vmem:[%s12561_s1 + $0x150] sm:$0xff]  }
 0x1ea   : > { %v7457_v61 = vpop.f32.mrf.mxu1  ;;  %v7535_v45 = vpop.f32.mrf.mxu0  ;;  %4556 = vmatprep.subr.bf16.mxu1 %v12710_v21 }
 0x1eb   : > { %v10524_v10 = vadd.f32 %v7534_v27, %v10342_v50  ;;  %v7458_v13 = vadd.f32 %v7457_v61, %v7456_v7  ;;  %7917 = vmatpush3.bf16.msra.mxu0 %v8470_v32  ;;  %v8473_v50 = vld [vmem:[%s12563_s3 + $0x158] sm:$0xff]   ;;  %v12740_v27 = vld [vmem:[#allocation51_spill] sm:$0xff] }
 0x1ec   : > { %v7459_v33 = vpop.f32.mrf.mxu1  ;;  %v7536_v18 = vpop.f32.mrf.mxu0  ;;  %7918 = vmatprep.subr.bf16.mxu0 %v8472_v54  ;;  %v1225_v54 = vadd.f32 %v10429_v53, %v12740_v27  ;;  %v8480_v53 = vld [vmem:[%s12561_s1 + $0x148] sm:$0xff]   ;;  %v8484_v27 = vld [vmem:[%s12561_s1 + $0x140] sm:$0xff]  }
 0x1ed   : > { %v10532_v19 = vadd.f32 %v7458_v13, %v1224_v59  ;;  %v7537_v30 = vadd.f32 %v7536_v18, %v7535_v45  ;;  %4557 = vmatpush2.bf16.msra.mxu1 %v8471_v63  ;;  %v8478_v63 = vld [vmem:[%s12561_s1 + $0x110] sm:$0xff]  }
 0x1ee   : > { %v7460_v32 = vpop.f32.mrf.mxu1  ;;  %v7538_v7 = vpop.f32.mrf.mxu0  ;;  %3906 = vmatmul.mubr.bf16.gmra.mxu0 %v9701_v24  ;;  %4558 = vmatprep.subr.bf16.mxu1 %v12710_v21  ;;  %v12741_v13 = vld [vmem:[#allocation4_spill] sm:$0xff] }
 0x1ef   : > { %v10542_v61 = vadd.f32 %v7537_v30, %v10355_v39  ;;  %v7461_v46 = vadd.f32 %v7460_v32, %v7459_v33  ;;  %3913 = vmatprep.mubr.bf16.mxu0 %v12727_v22  ;;  %7919 = vmatpush3.bf16.msra.mxu0 %v8474_v49  ;;  %v8475_v30 = vld [vmem:[%s12563_s3 + $0x150] sm:$0xff]   ;;  %v8482_v32 = vld [vmem:[%s12561_s1 + $0x108] sm:$0xff]  }
 0x1f0   : > { %v2813_v45 = vpop.f32.mrf.mxu1  ;;  %3552 = vmatmul.mubr.bf16.gmra.mxu1 %v9850_v52  ;;  %v7539_v24 = vpop.f32.mrf.mxu0  ;;  %7920 = vmatprep.subr.bf16.mxu0 %v8476_v37 }
 0x1f1   : > { %v10552_v59 = vadd.f32 %v7461_v46, %v1225_v54  ;;  %v3278_v39 = vsel %vm1226_vm0, %v2813_v45, 0.0  ;;  %v7540_v22 = vadd.f32 %v7539_v24, %v7538_v7  ;;  %3559 = vmatprep.mubr.bf16.mxu1 %v9854_v25  ;;  %4559 = vmatpush2.bf16.msra.mxu1 %v8473_v50 }
 0x1f2   : > { %v3310_v49 = vadd.f32 %v3278_v39, %v12741_v13  ;;  %v2815_v33 = vpop.f32.mrf.mxu1  ;;  %v7541_v18 = vpop.f32.mrf.mxu0  ;;  %4560 = vmatprep.subr.bf16.mxu1 %v12710_v21 }
 0x1f3   : > { %v10563_v37 = vadd.f32 %v7540_v22, %v10367_v0  ;;  %7921 = vmatpush3.bf16.msra.mxu0 %v8478_v63  ;;  %v8477_v0 = vld [vmem:[%s12563_s3 + $0x148] sm:$0xff]   ;;  %v12742_v63 = vld [vmem:[#allocation6_spill] sm:$0xff] }
 0x1f4   : > { %v2816_v7 = vpop.f32.mrf.mxu1  ;;  %v7542_v50 = vpop.f32.mrf.mxu0  ;;  %7922 = vmatprep.subr.bf16.mxu0 %v8480_v53  ;;  %v8485_v22 = vld [vmem:[%s12561_s1 + $0x100] sm:$0xff]  }
 0x1f5   : > { %v3279_v54 = vsel %vm1226_vm0, %v2816_v7, 0.0  ;;  %v7543_v46 = vadd.f32 %v7542_v50, %v7541_v18  ;;  %4561 = vmatpush2.bf16.msra.mxu1 %v8475_v30  ;;  %v8479_v18 = vld [vmem:[%s12563_s3 + $0x140] sm:$0xff]  }
 0x1f6   : > { %v3311_v45 = vadd.f32 %v3279_v54, %v12742_v63  ;;  %v2818_v24 = vpop.f32.mrf.mxu1  ;;  %v7544_v39 = vpop.f32.mrf.mxu0  ;;  %3914 = vmatmul.mubr.bf16.gmra.mxu0 %v9779_v47  ;;  %4562 = vmatprep.subr.bf16.mxu1 %v12710_v21  ;;  %v10590_v47 = vld [vmem:[%s12561_s1 + $0x478] sm:$0xff]  }
 0x1f7   : > { %v10580_v53 = vadd.f32 %v7543_v46, %v10381_v23  ;;  %3921 = vmatprep.mubr.bf16.mxu0 %v12732_v2  ;;  %7923 = vmatpush3.bf16.msra.mxu0 %v8482_v32  ;;  %v12743_v32 = vld [vmem:[#allocation8_spill] sm:$0xff]  ;;  %v8481_v46 = vld [vmem:[%s12561_s1 + $0x2f8] sm:$0xff]  }
 0x1f8   : > { %v2821_v30 = vpop.f32.mrf.mxu1  ;;  %3560 = vmatmul.mubr.bf16.gmra.mxu1 %v9913_v36  ;;  %v7545_v13 = vpop.f32.mrf.mxu0  ;;  %7924 = vmatprep.subr.bf16.mxu0 %v8484_v27 }
 0x1f9   : > { %v3280_v23 = vsel %vm1226_vm0, %v2821_v30, 0.0  ;;  %v3664_v2 = vsel %vm1615_vm1, %v2821_v30, 0.0  ;;  %v7546_v33 = vadd.f32 %v7545_v13, %v7544_v39  ;;  %3567 = vmatprep.mubr.bf16.mxu1 %v9958_v16  ;;  %4563 = vmatpush2.bf16.msra.mxu1 %v8477_v0 }
 0x1fa   : > { %v3312_v7 = vadd.f32 %v3280_v23, %v12743_v32  ;;  %v3696_v50 = vadd.f32 %v3664_v2, %v3310_v49  ;;  %v2823_v27 = vpop.f32.mrf.mxu1  ;;  %v7547_v54 = vpop.f32.mrf.mxu0  ;;  %4564 = vmatprep.subr.bf16.mxu1 %v12710_v21  ;;  %v12744_v21 = vld [vmem:[#allocation10_spill] sm:$0xff] }
 0x1fb   : > { %v10606_v63 = vadd.f32 %v7546_v33, %v10393_v26  ;;  %7925 = vmatpush3.bf16.msra.mxu0 %v8485_v22 }
 0x1fc   : > { %v2824_v0 = vpop.f32.mrf.mxu1  ;;  %v7548_v24 = vpop.f32.mrf.mxu0  ;;  %8134 = vmatprep.subr.bf16.mxu0 %v10590_v47 }
 0x1fd   : > { %v3281_v39 = vsel %vm1226_vm0, %v2824_v0, 0.0  ;;  %v3665_v49 = vsel %vm1615_vm1, %v2824_v0, 0.0  ;;  %v7549_v30 = vadd.f32 %v7548_v24, %v7547_v54  ;;  %4565 = vmatpush2.bf16.msra.mxu1 %v8479_v18 }
 0x1fe   : > { %v3313_v13 = vadd.f32 %v3281_v39, %v12744_v21  ;;  %v3697_v23 = vadd.f32 %v3665_v49, %v3311_v45  ;;  %v2826_v2 = vpop.f32.mrf.mxu1  ;;  %v7550_v32 = vpop.f32.mrf.mxu0  ;;  %3922 = vmatmul.mubr.bf16.gmra.mxu0 %v12737_v11  ;;  %8022 = vmatprep.subr.bf16.mxu1 %v8481_v46 }
 0x1ff   : > { %v10616_v26 = vadd.f32 %v7549_v30, %v10407_v41  ;;  %3929 = vmatprep.mubr.bf16.mxu0 %v12738_v62  ;;  %v12745_v41 = vld [vmem:[#allocation12_spill] sm:$0xff] }
 0x200   : > { %v2829_v22 = vpop.f32.mrf.mxu1  ;;  %3568 = vmatmul.mubr.bf16.gmra.mxu1 %v9960_v55  ;;  %v7551_v33 = vpop.f32.mrf.mxu0 }
 0x201   : > { %v3282_v18 = vsel %vm1226_vm0, %v2829_v22, 0.0  ;;  %v3666_v45 = vsel %vm1615_vm1, %v2829_v22, 0.0  ;;  %v4050_v27 = vsel %vm2004_vm4, %v2829_v22, 0.0  ;;  %v7552_v11 = vadd.f32 %v7551_v33, %v7550_v32  ;;  %3575 = vmatprep.mubr.bf16.mxu1 %v10028_v28 }
 0x202   : > { %v3314_v54 = vadd.f32 %v3282_v18, %v12745_v41  ;;  %v3698_v46 = vadd.f32 %v3666_v45, %v3312_v7  ;;  %v2831_v62 = vpop.f32.mrf.mxu1  ;;  %v7553_v0 = vpop.f32.mrf.mxu0  ;;  %v10628_v24 = vadd.f32 %v4050_v27, %v3696_v50  ;;  %v12747_v7 = vld [vmem:[#allocation14_spill] sm:$0xff] }
 0x203   : > { %v10631_v39 = vadd.f32 %v7552_v11, %v10419_v40 }
 0x204   : > { %12746 = vst [vmem:[#allocation32_spill] sm:$0xff] %v10628_v24  ;;  %v2832_v49 = vpop.f32.mrf.mxu1  ;;  %v7554_v30 = vpop.f32.mrf.mxu0 }
 0x205   : > { %v3283_v21 = vsel %vm1226_vm0, %v2832_v49, 0.0  ;;  %v3667_v2 = vsel %vm1615_vm1, %v2832_v49, 0.0  ;;  %v4051_v32 = vsel %vm2004_vm4, %v2832_v49, 0.0  ;;  %v7555_v22 = vadd.f32 %v7554_v30, %v7553_v0 }
 0x206   : > { %v3315_v33 = vadd.f32 %v3283_v21, %v12747_v7  ;;  %v3699_v18 = vadd.f32 %v3667_v2, %v3313_v13  ;;  %v2834_v50 = vpop.f32.mrf.mxu1  ;;  %v7556_v45 = vpop.f32.mrf.mxu0  ;;  %3930 = vmatmul.mubr.bf16.gmra.mxu0 %v9850_v52  ;;  %v10645_v27 = vadd.f32 %v4051_v32, %v3697_v23 }
 0x207   : > { %v10642_v40 = vadd.f32 %v7555_v22, %v10438_v9  ;;  %3937 = vmatprep.mubr.bf16.mxu0 %v9854_v25  ;;  %v12749_v9 = vld [vmem:[#allocation16_spill] sm:$0xff] }
 0x208   : > { %12748 = vst [vmem:[#allocation25_spill] sm:$0xff] %v10645_v27  ;;  %v2837_v11 = vpop.f32.mrf.mxu1  ;;  %3576 = vmatmul.mubr.bf16.gmra.mxu1 %v10030_v3  ;;  %v7557_v41 = vpop.f32.mrf.mxu0 }
 0x209   : > { %v3284_v62 = vsel %vm1226_vm0, %v2837_v11, 0.0  ;;  %v3668_v13 = vsel %vm1615_vm1, %v2837_v11, 0.0  ;;  %v4052_v52 = vsel %vm2004_vm4, %v2837_v11, 0.0  ;;  %v7558_v0 = vadd.f32 %v7557_v41, %v7556_v45  ;;  %3583 = vmatprep.mubr.bf16.mxu1 %v10046_v8 }
 0x20a   : > { %v3316_v25 = vadd.f32 %v3284_v62, %v12749_v9  ;;  %v3700_v23 = vadd.f32 %v3668_v13, %v3314_v54  ;;  %v10656_v49 = vadd.f32 %v4052_v52, %v3698_v46  ;;  %v2839_v30 = vpop.f32.mrf.mxu1  ;;  %v7559_v21 = vpop.f32.mrf.mxu0  ;;  %v12751_v54 = vld [vmem:[#allocation20_spill] sm:$0xff] }
 0x20b   : > { %v10659_v2 = vadd.f32 %v7558_v0, %v10456_v31 }
 0x20c   : > { %12750 = vst [vmem:[#allocation26_spill] sm:$0xff] %v10656_v49  ;;  %v2840_v32 = vpop.f32.mrf.mxu1  ;;  %v7560_v22 = vpop.f32.mrf.mxu0 }
 0x20d   : > { %v3285_v7 = vsel %vm1226_vm0, %v2840_v32, 0.0  ;;  %v3669_v50 = vsel %vm1615_vm1, %v2840_v32, 0.0  ;;  %v4053_v45 = vsel %vm2004_vm4, %v2840_v32, 0.0  ;;  %v7561_v11 = vadd.f32 %v7560_v22, %v7559_v21 }
 0x20e   : > { %v3317_v46 = vadd.f32 %v3285_v7, %v12751_v54  ;;  %v3701_v41 = vadd.f32 %v3669_v50, %v3315_v33  ;;  %v10668_v62 = vadd.f32 %v4053_v45, %v3699_v18  ;;  %v2842_v13 = vpop.f32.mrf.mxu1  ;;  %v7562_v31 = vpop.f32.mrf.mxu0  ;;  %3938 = vmatmul.mubr.bf16.gmra.mxu0 %v9913_v36  ;;  %v12753_v36 = vld [vmem:[#allocation22_spill] sm:$0xff] }
 0x20f   : > { %v10672_v52 = vadd.f32 %v7561_v11, %v10476_v42  ;;  %3945 = vmatprep.mubr.bf16.mxu0 %v9958_v16 }
 0x210   : > { %12752 = vst [vmem:[#allocation35_spill] sm:$0xff] %v10668_v62  ;;  %v2845_v0 = vpop.f32.mrf.mxu1  ;;  %3584 = vmatmul.mubr.bf16.gmra.mxu1 %v10076_v57  ;;  %v7563_v9 = vpop.f32.mrf.mxu0 }
 0x211   : > { %v3286_v30 = vsel %vm1226_vm0, %v2845_v0, 0.0  ;;  %v3670_v33 = vsel %vm1615_vm1, %v2845_v0, 0.0  ;;  %v4054_v18 = vsel %vm2004_vm4, %v2845_v0, 0.0  ;;  %v7564_v21 = vadd.f32 %v7563_v9, %v7562_v31  ;;  %3591 = vmatprep.mubr.bf16.mxu1 %v10119_v34 }
 0x212   : > { %v3318_v42 = vadd.f32 %v3286_v30, %v12753_v36  ;;  %v3702_v32 = vadd.f32 %v3670_v33, %v3316_v25  ;;  %v10684_v16 = vadd.f32 %v4054_v18, %v3700_v23  ;;  %v2847_v22 = vpop.f32.mrf.mxu1  ;;  %v7565_v7 = vpop.f32.mrf.mxu0  ;;  %v12755_v25 = vld [vmem:[#allocation24_spill] sm:$0xff] }
 0x213   : > { %v10687_v50 = vadd.f32 %v7564_v21, %v10494_v4 }
 0x214   : > { %12754 = vst [vmem:[#allocation37_spill] sm:$0xff] %v10684_v16  ;;  %v2848_v45 = vpop.f32.mrf.mxu1  ;;  %v7566_v11 = vpop.f32.mrf.mxu0 }
 0x215   : > { %v3287_v54 = vsel %vm1226_vm0, %v2848_v45, 0.0  ;;  %v3671_v13 = vsel %vm1615_vm1, %v2848_v45, 0.0  ;;  %v4055_v31 = vsel %vm2004_vm4, %v2848_v45, 0.0  ;;  %v7567_v0 = vadd.f32 %v7566_v11, %v7565_v7 }
 0x216   : > { %v3319_v23 = vadd.f32 %v3287_v54, %v12755_v25  ;;  %v3703_v9 = vadd.f32 %v3671_v13, %v3317_v46  ;;  %v10696_v30 = vadd.f32 %v4055_v31, %v3701_v41  ;;  %v2850_v33 = vpop.f32.mrf.mxu1  ;;  %v7568_v4 = vpop.f32.mrf.mxu0  ;;  %3946 = vmatmul.mubr.bf16.gmra.mxu0 %v9960_v55  ;;  %v12757_v55 = vld [vmem:[#allocation29_spill] sm:$0xff] }
 0x217   : > { %v10700_v18 = vadd.f32 %v7567_v0, %v10514_v60  ;;  %3953 = vmatprep.mubr.bf16.mxu0 %v10028_v28 }
 0x218   : > { %12756 = vst [vmem:[#allocation27_spill] sm:$0xff] %v10696_v30  ;;  %v2853_v21 = vpop.f32.mrf.mxu1  ;;  %3592 = vmatmul.mubr.bf16.gmra.mxu1 %v10132_v5  ;;  %v7569_v36 = vpop.f32.mrf.mxu0 }
 0x219   : > { %v3288_v22 = vsel %vm1226_vm0, %v2853_v21, 0.0  ;;  %v3672_v46 = vsel %vm1615_vm1, %v2853_v21, 0.0  ;;  %v4056_v41 = vsel %vm2004_vm4, %v2853_v21, 0.0  ;;  %v7570_v7 = vadd.f32 %v7569_v36, %v7568_v4  ;;  %3599 = vmatprep.mubr.bf16.mxu1 %v10178_v35 }
 0x21a   : > { %v3320_v60 = vadd.f32 %v3288_v22, %v12757_v55  ;;  %v3704_v45 = vadd.f32 %v3672_v46, %v3318_v42  ;;  %v10712_v28 = vadd.f32 %v4056_v41, %v3702_v32  ;;  %v2855_v11 = vpop.f32.mrf.mxu1  ;;  %v7571_v54 = vpop.f32.mrf.mxu0  ;;  %v12759_v42 = vld [vmem:[#allocation31_spill] sm:$0xff] }
 0x21b   : > { %v10715_v13 = vadd.f32 %v7570_v7, %v10532_v19 }
 0x21c   : > { %12758 = vst [vmem:[#allocation39_spill] sm:$0xff] %v10712_v28  ;;  %v2856_v31 = vpop.f32.mrf.mxu1  ;;  %v7572_v0 = vpop.f32.mrf.mxu0 }
 0x21d   : > { %v3289_v25 = vsel %vm1226_vm0, %v2856_v31, 0.0  ;;  %v3673_v33 = vsel %vm1615_vm1, %v2856_v31, 0.0  ;;  %v4057_v4 = vsel %vm2004_vm4, %v2856_v31, 0.0  ;;  %v7573_v21 = vadd.f32 %v7572_v0, %v7571_v54 }
 0x21e   : > { %v3321_v32 = vadd.f32 %v3289_v25, %v12759_v42  ;;  %v3705_v36 = vadd.f32 %v3673_v33, %v3319_v23  ;;  %v10724_v22 = vadd.f32 %v4057_v4, %v3703_v9  ;;  %v2858_v46 = vpop.f32.mrf.mxu1  ;;  %v7590_v19 = vpop.f32.mrf.mxu0  ;;  %3954 = vmatmul.mubr.bf16.gmra.mxu0 %v10030_v3  ;;  %v12761_v3 = vld [vmem:[#allocation33_spill] sm:$0xff] }
 0x21f   : > { %v10728_v41 = vadd.f32 %v7573_v21, %v10552_v59  ;;  %3961 = vmatprep.mubr.bf16.mxu0 %v10046_v8 }
 0x220   : > { %12760 = vst [vmem:[#allocation43_spill] sm:$0xff] %v10724_v22  ;;  %v2861_v7 = vpop.f32.mrf.mxu1  ;;  %3600 = vmatmul.mubr.bf16.gmra.mxu1 %v10206_v14  ;;  %v7591_v55 = vpop.f32.mrf.mxu0 }
 0x221   : > { %v3290_v11 = vsel %vm1226_vm0, %v2861_v7, 0.0  ;;  %v3674_v23 = vsel %vm1615_vm1, %v2861_v7, 0.0  ;;  %v4058_v9 = vsel %vm2004_vm4, %v2861_v7, 0.0  ;;  %v7592_v54 = vadd.f32 %v7591_v55, %v7590_v19  ;;  %3607 = vmatprep.mubr.bf16.mxu1 %v10210_v44 }
 0x222   : > { %v3322_v59 = vadd.f32 %v3290_v11, %v12761_v3  ;;  %v3706_v31 = vadd.f32 %v3674_v23, %v3320_v60  ;;  %v10740_v8 = vadd.f32 %v4058_v9, %v3704_v45  ;;  %v2863_v0 = vpop.f32.mrf.mxu1  ;;  %v7593_v25 = vpop.f32.mrf.mxu0  ;;  %v12763_v45 = vld [vmem:[#allocation36_spill] sm:$0xff] }
 0x223   : > { %v10743_v33 = vadd.f32 %v7592_v54, %v10272_v38  ;;  %v8681_v0 = vld [vmem:[%s8890_s22 + $0x8] sm:$0xff] }
 0x224   : > { %12762 = vst [vmem:[#allocation34_spill] sm:$0xff] %v10740_v8  ;;  %v2864_v4 = vpop.f32.mrf.mxu1  ;;  %v7594_v21 = vpop.f32.mrf.mxu0 }
 0x225   : > { %v3291_v42 = vsel %vm1226_vm0, %v2864_v4, 0.0  ;;  %v3675_v46 = vsel %vm1615_vm1, %v2864_v4, 0.0  ;;  %v4059_v19 = vsel %vm2004_vm4, %v2864_v4, 0.0  ;;  %v7595_v60 = vadd.f32 %v7594_v21, %v7593_v25 }
 0x226   : > { %v3323_v7 = vadd.f32 %v3291_v42, %v12763_v45  ;;  %v3707_v55 = vadd.f32 %v3675_v46, %v3321_v32  ;;  %v10752_v11 = vadd.f32 %v4059_v19, %v3705_v36  ;;  %v2866_v38 = vpop.f32.mrf.mxu1  ;;  %v7596_v23 = vpop.f32.mrf.mxu0  ;;  %3962 = vmatmul.mubr.bf16.gmra.mxu0 %v10076_v57  ;;  %v4137_v25 = vrot.slane %v8681_v0, 5  ;;  %v8682_v0 = vld [vmem:[%s8890_s22] sm:$0xff] }
 0x227   : > { %v10756_v9 = vadd.f32 %v7595_v60, %v10284_v20  ;;  %3969 = vmatprep.mubr.bf16.mxu0 %v10119_v34  ;;  %v12765_v34 = vld [vmem:[#allocation38_spill] sm:$0xff] }
 0x228   : > { %12764 = vst [vmem:[#allocation45_spill] sm:$0xff] %v10752_v11  ;;  %v2869_v54 = vpop.f32.mrf.mxu1  ;;  %3608 = vmatmul.mubr.bf16.gmra.mxu1 %v10250_v48  ;;  %v7597_v3 = vpop.f32.mrf.mxu0  ;;  %v6955_v11 = vrot.slane %v8682_v0, 9  ;;  %v4139_v8 = vrot.slane %v4137_v25, 4 }
 0x229   : > { %v3292_v32 = vsel %vm1226_vm0, %v2869_v54, 0.0  ;;  %v3676_v36 = vsel %vm1615_vm1, %v2869_v54, 0.0  ;;  %v4060_v57 = vsel %vm2004_vm4, %v2869_v54, 0.0  ;;  %v7598_v20 = vadd.f32 %v7597_v3, %v7596_v23  ;;  %3615 = vmatprep.mubr.bf16.mxu1 %v10252_v6  ;;  %v8683_v54 = vld [vmem:[%s8890_s22 + $0x10] sm:$0x11] }
 0x22a   : > { %v3324_v4 = vadd.f32 %v3292_v32, %v12765_v34  ;;  %v3708_v21 = vadd.f32 %v3676_v36, %v3322_v59  ;;  %v10769_v42 = vadd.f32 %v4060_v57, %v3706_v31  ;;  %v2871_v46 = vpop.f32.mrf.mxu1  ;;  %v7599_v19 = vpop.f32.mrf.mxu0  ;;  %v4140_v23 = vrot.slane %v8683_v54, 5  ;;  %v12769_v36 = vld [vmem:[#allocation40_spill] sm:$0xff] }
 0x22b   : > { %v10772_v60 = vadd.f32 %v7598_v20, %v10298_v17 }
 0x22c   : > { %12766 = vst [vmem:[#allocation47_spill] sm:$0xff] %v10769_v42  ;;  %v2872_v45 = vpop.f32.mrf.mxu1  ;;  %v7600_v38 = vpop.f32.mrf.mxu0  ;;  %v8685_v42 = vld [vmem:[%s8890_s22 + $0x18] sm:$0xff] }
 0x22d   : > { %v3293_v3 = vsel %vm1226_vm0, %v2872_v45, 0.0  ;;  %v3677_v59 = vsel %vm1615_vm1, %v2872_v45, 0.0  ;;  %v4061_v31 = vsel %vm2004_vm4, %v2872_v45, 0.0  ;;  %v7601_v32 = vadd.f32 %v7600_v38, %v7599_v19 }
 0x22e   : > { %v3325_v57 = vadd.f32 %v3293_v3, %v12769_v36  ;;  %v3709_v20 = vadd.f32 %v3677_v59, %v3323_v7  ;;  %v10788_v34 = vadd.f32 %v4061_v31, %v3707_v55  ;;  %v2874_v46 = vpop.f32.mrf.mxu1  ;;  %v7602_v0 = vpop.f32.mrf.mxu0  ;;  %3970 = vmatmul.mubr.bf16.gmra.mxu0 %v10132_v5  ;;  %v4138_v38 = vsel %vm10783_vm8, %v6955_v11, %v4137_v25  ;;  %v8684_v55 = vld [vmem:[%s8890_s22 + $0x20] sm:$0xff]  ;;  %v12771_v11 = vld [vmem:[#allocation44_spill] sm:$0xff] }
 0x22f   : > { %v10792_v54 = vadd.f32 %v7601_v32, %v10310_v15  ;;  %3977 = vmatprep.mubr.bf16.mxu0 %v10178_v35  ;;  %v4141_v7 = vsel %vm10783_vm8, %v4139_v8, %v4140_v23  ;;  %v4144_v3 = vrot.slane %v8684_v55, 5  ;;  %v6956_v22 = vrot.slane %v8685_v42, 9 }
 0x230   : > { %12770 = vst [vmem:[#allocation41_spill] sm:$0xff] %v10788_v34  ;;  %v2877_v19 = vpop.f32.mrf.mxu1  ;;  %3616 = vmatmul.mubr.bf16.gmra.mxu1 %v10274_v29  ;;  %v7603_v45 = vpop.f32.mrf.mxu0  ;;  %v10814_v34 = vcombine.high %v4138_v38, %v4141_v7 }
 0x231   : > { %v3294_v5 = vsel %vm1226_vm0, %v2877_v19, 0.0  ;;  %v3678_v15 = vsel %vm1615_vm1, %v2877_v19, 0.0  ;;  %v4062_v35 = vsel %vm2004_vm4, %v2877_v19, 0.0  ;;  %v7604_v59 = vadd.f32 %v7603_v45, %v7602_v0  ;;  %3623 = vmatprep.mubr.bf16.mxu1 %v10278_v12  ;;  %v8686_v0 = vld [vmem:[%s8890_s22 + $0x28] sm:$0x11] }
 0x232   : > { %v3326_v25 = vadd.f32 %v3294_v5, %v12771_v11  ;;  %v3710_v31 = vadd.f32 %v3678_v15, %v3324_v4  ;;  %v10809_v8 = vadd.f32 %v4062_v35, %v3708_v21  ;;  %v2879_v23 = vpop.f32.mrf.mxu1  ;;  %v7605_v32 = vpop.f32.mrf.mxu0  ;;  %v4146_v19 = vrot.slane %v4144_v3, 4  ;;  %v12773_v15 = vld [vmem:[#allocation46_spill] sm:$0xff] }
 0x233   : > { %v10812_v36 = vadd.f32 %v7604_v59, %v10320_v1  ;;  %v4147_v45 = vrot.slane %v8686_v0, 5 }
 0x234   : > { %12772 = vst [vmem:[#allocation42_spill] sm:$0xff] %v10809_v8  ;;  %v2880_v46 = vpop.f32.mrf.mxu1  ;;  %v7606_v55 = vpop.f32.mrf.mxu0 }
 0x235   : > { %v3295_v5 = vsel %vm1226_vm0, %v2880_v46, 0.0  ;;  %v3679_v4 = vsel %vm1615_vm1, %v2880_v46, 0.0  ;;  %v4063_v1 = vsel %vm2004_vm4, %v2880_v46, 0.0  ;;  %v7607_v21 = vadd.f32 %v7606_v55, %v7605_v32 }
 0x236   : > { %v3327_v35 = vadd.f32 %v3295_v5, %v12773_v15  ;;  %v3711_v59 = vadd.f32 %v3679_v4, %v3325_v57  ;;  %v10825_v11 = vadd.f32 %v4063_v1, %v3709_v20  ;;  %v2882_v42 = vpop.f32.mrf.mxu1  ;;  %v7608_v23 = vpop.f32.mrf.mxu0  ;;  %3978 = vmatmul.mubr.bf16.gmra.mxu0 %v10206_v14  ;;  %v4145_v32 = vsel %vm10783_vm8, %v6956_v22, %v4144_v3  ;;  %v8687_v20 = vld [vmem:[%s8890_s22 + $0x38] sm:$0xff]  ;;  %v12775_v22 = vld [vmem:[#allocation48_spill] sm:$0xff] }
 0x237   : > { %v10829_v0 = vadd.f32 %v7607_v21, %v10330_v58  ;;  %3985 = vmatprep.mubr.bf16.mxu0 %v10210_v44  ;;  %v4148_v57 = vsel %vm10783_vm8, %v4146_v19, %v4147_v45  ;;  %v4151_v46 = vrot.slane %v8687_v20, 5  ;;  %v10851_v21 = vcombine.low %v4138_v38, %v4141_v7  ;;  %v8483_v7 = vld [vmem:[%s12561_s1 + $0x2b8] sm:$0xff]  }
 0x238   : > { %12774 = vst [vmem:[#allocation49_spill] sm:$0xff] %v10825_v11  ;;  %v2885_v8 = vpop.f32.mrf.mxu1  ;;  %3624 = vmatmul.mubr.bf16.gmra.mxu1 %v10300_v43  ;;  %v7609_v28 = vpop.f32.mrf.mxu0  ;;  %v10853_v20 = vcombine.high %v4145_v32, %v4148_v57  ;;  %v8689_v11 = vld [vmem:[%s8890_s22 + $0x40] sm:$0x11] }
 0x239   : > { %v3296_v14 = vsel %vm1226_vm0, %v2885_v8, 0.0  ;;  %v3680_v58 = vsel %vm1615_vm1, %v2885_v8, 0.0  ;;  %v4064_v44 = vsel %vm2004_vm4, %v2885_v8, 0.0  ;;  %v7610_v55 = vadd.f32 %v7609_v28, %v7608_v23  ;;  %4566 = vmatprep.mubr.bf16.mxu1 %v10814_v34  ;;  %v8688_v8 = vld [vmem:[%s8890_s22 + $0x30] sm:$0xff] }
 0x23a   : > { %v3328_v3 = vadd.f32 %v3296_v14, %v12775_v22  ;;  %v3712_v5 = vadd.f32 %v3680_v58, %v3326_v25  ;;  %v10846_v19 = vadd.f32 %v4064_v44, %v3710_v31  ;;  %v2887_v45 = vpop.f32.mrf.mxu1  ;;  %v7611_v4 = vpop.f32.mrf.mxu0  ;;  %12777 = vst [vmem:[#allocation4_spill] sm:$0xff] %v10853_v20  ;;  %v6957_v28 = vrot.slane %v8688_v8, 9  ;;  %v12778_v14 = vld [vmem:[#allocation50_spill] sm:$0xff] }
 0x23b   : > { %v10849_v1 = vadd.f32 %v7610_v55, %v10340_v56  ;;  %v4153_v23 = vrot.slane %v4151_v46, 4  ;;  %v4154_v30 = vrot.slane %v8689_v11, 5  ;;  %v8486_v45 = vld [vmem:[%s12561_s1 + $0x2f0] sm:$0xff]  }
 0x23c   : > { %12776 = vst [vmem:[#allocation51_spill] sm:$0xff] %v10846_v19  ;;  %v2888_v15 = vpop.f32.mrf.mxu1  ;;  %v7612_v42 = vpop.f32.mrf.mxu0 }
 0x23d   : > { %v3297_v25 = vsel %vm1226_vm0, %v2888_v15, 0.0  ;;  %v3681_v31 = vsel %vm1615_vm1, %v2888_v15, 0.0  ;;  %v4065_v56 = vsel %vm2004_vm4, %v2888_v15, 0.0  ;;  %v7613_v38 = vadd.f32 %v7612_v42, %v7611_v4  ;;  %v12780_v15 = vld [vmem:[#allocation9_spill] sm:$0xff] }
 0x23e   : > { %v3329_v58 = vadd.f32 %v3297_v25, %v12778_v14  ;;  %v3713_v44 = vadd.f32 %v3681_v31, %v3327_v35  ;;  %v10867_v55 = vadd.f32 %v4065_v56, %v3711_v59  ;;  %v2890_v11 = vpop.f32.mrf.mxu1  ;;  %v7614_v22 = vpop.f32.mrf.mxu0  ;;  %3986 = vmatmul.mubr.bf16.gmra.mxu0 %v10250_v48  ;;  %v10880_v35 = vsel %vm10783_vm8, %v6957_v28, %v4151_v46  ;;  %v8690_v59 = vld [vmem:[%s8890_s22 + $0x50] sm:$0xff] }
 0x23f   : > { %v10874_v4 = vadd.f32 %v7613_v38, %v12780_v15  ;;  %3993 = vmatprep.mubr.bf16.mxu0 %v10252_v6  ;;  %v10884_v48 = vsel %vm10783_vm8, %v4153_v23, %v4154_v30  ;;  %v4158_v25 = vrot.slane %v8690_v59, 5  ;;  %v8487_v30 = vld [vmem:[%s12561_s1 + $0x2b0] sm:$0xff]  }
 0x240   : > { %12779 = vst [vmem:[#allocation6_spill] sm:$0xff] %v10867_v55  ;;  %v2893_v42 = vpop.f32.mrf.mxu1  ;;  %4567 = vmatmul.mubr.bf16.vlgmr.msra.gmra.mxu1 %v10851_v21  ;;  %v7615_v8 = vpop.f32.mrf.mxu0  ;;  %v12781_v46 = vld [vmem:[#allocation52_spill] sm:$0xff] }
 0x241   : > { %v3298_v31 = vsel %vm1226_vm0, %v2893_v42, 0.0  ;;  %v3682_v6 = vsel %vm1615_vm1, %v2893_v42, 0.0  ;;  %v4066_v56 = vsel %vm2004_vm4, %v2893_v42, 0.0  ;;  %v7616_v38 = vadd.f32 %v7615_v8, %v7614_v22  ;;  %8023 = vmatpush3.bf16.msra.mxu1 %v8483_v7  ;;  %4574 = vmatprep.mubr.bf16.mxu1 %v10853_v20  ;;  %v8490_v22 = vld [vmem:[%s12561_s1 + $0x2e8] sm:$0xff]  }
 0x242   : > { %v3330_v28 = vadd.f32 %v3298_v31, %v12781_v46  ;;  %v3714_v23 = vadd.f32 %v3682_v6, %v3328_v3  ;;  %v10898_v14 = vadd.f32 %v4066_v56, %v3712_v5  ;;  %v2895_v11 = vpop.f32.mrf.mxu1  ;;  %v7617_v15 = vpop.f32.mrf.mxu0  ;;  %8024 = vmatprep.subr.bf16.mxu1 %v8486_v45  ;;  %v12783_v7 = vld [vmem:[#allocation11_spill] sm:$0xff]  ;;  %v10906_v8 = vcombine.low %v4145_v32, %v4148_v57  ;;  %v8692_v56 = vld [vmem:[%s8890_s22 + $0x58] sm:$0x11] }
 0x243   : > { %v10904_v42 = vadd.f32 %v7616_v38, %v12783_v7  ;;  %v10910_v31 = vcombine.high %v10880_v35, %v10884_v48  ;;  %v8691_v3 = vld [vmem:[%s8890_s22 + $0x48] sm:$0xff]  ;;  %v4160_v6 = vrot.slane %v4158_v25, 4  ;;  %v4161_v45 = vrot.slane %v8692_v56, 5  ;;  %v12786_v7 = vld [vmem:[#allocation53_spill] sm:$0xff] }
 0x244   : > { %12782 = vst [vmem:[#allocation8_spill] sm:$0xff] %v10898_v14  ;;  %12784 = vst [vmem:[#allocation10_spill] sm:$0xff] %v10906_v8  ;;  %v2896_v59 = vpop.f32.mrf.mxu1  ;;  %v7618_v55 = vpop.f32.mrf.mxu0  ;;  %v6958_v5 = vrot.slane %v8691_v3, 9  ;;  %v8491_v11 = vld [vmem:[%s12561_s1 + $0x2a8] sm:$0xff]  }
 0x245   : > { %12785 = vst [vmem:[#allocation12_spill] sm:$0xff] %v10910_v31  ;;  %v3299_v46 = vsel %vm1226_vm0, %v2896_v59, 0.0  ;;  %v3683_v38 = vsel %vm1615_vm1, %v2896_v59, 0.0  ;;  %v4067_v32 = vsel %vm2004_vm4, %v2896_v59, 0.0  ;;  %v7619_v57 = vadd.f32 %v7618_v55, %v7617_v15  ;;  %8025 = vmatpush3.bf16.msra.mxu1 %v8487_v30  ;;  %v8494_v55 = vld [vmem:[%s12561_s1 + $0x2e0] sm:$0xff]   ;;  %v12788_v30 = vld [vmem:[#allocation13_spill] sm:$0xff] }
 0x246   : > { %v3331_v3 = vadd.f32 %v3299_v46, %v12786_v7  ;;  %v3715_v14 = vadd.f32 %v3683_v38, %v3329_v58  ;;  %v10924_v56 = vadd.f32 %v4067_v32, %v3713_v44  ;;  %v2898_v19 = vpop.f32.mrf.mxu1  ;;  %v7620_v16 = vpop.f32.mrf.mxu0  ;;  %3994 = vmatmul.mubr.bf16.gmra.mxu0 %v10274_v29  ;;  %8026 = vmatprep.subr.bf16.mxu1 %v8490_v22  ;;  %v8693_v44 = vld [vmem:[%s8890_s22 + $0x68] sm:$0xff] }
 0x247   : > { %v10931_v15 = vadd.f32 %v7619_v57, %v12788_v30  ;;  %4001 = vmatprep.mubr.bf16.mxu0 %v10278_v12  ;;  %v10937_v19 = vsel %vm10783_vm8, %v6958_v5, %v4158_v25  ;;  %v10941_v29 = vsel %vm10783_vm8, %v4160_v6, %v4161_v45  ;;  %v4165_v22 = vrot.slane %v8693_v44, 5  ;;  %v8495_v25 = vld [vmem:[%s12561_s1 + $0x2a0] sm:$0xff]  }
 0x248   : > { %12787 = vst [vmem:[#allocation14_spill] sm:$0xff] %v10924_v56  ;;  %v2901_v59 = vpop.f32.mrf.mxu1  ;;  %4575 = vmatmul.mubr.bf16.gmra.mxu1 %v10906_v8  ;;  %v7621_v58 = vpop.f32.mrf.mxu0  ;;  %v12790_v5 = vld [vmem:[#allocation54_spill] sm:$0xff] }
 0x249   : > { %12789 = vst [vmem:[#allocation16_spill] sm:$0xff] %v10931_v15  ;;  %v3300_v46 = vsel %vm1226_vm0, %v2901_v59, 0.0  ;;  %v3684_v12 = vsel %vm1615_vm1, %v2901_v59, 0.0  ;;  %v4068_v38 = vsel %vm2004_vm4, %v2901_v59, 0.0  ;;  %v7622_v32 = vadd.f32 %v7621_v58, %v7620_v16  ;;  %4582 = vmatprep.mubr.bf16.mxu1 %v10910_v31  ;;  %8027 = vmatpush3.bf16.msra.mxu1 %v8491_v11  ;;  %v8498_v16 = vld [vmem:[%s12561_s1 + $0x2d8] sm:$0xff]   ;;  %v12792_v59 = vld [vmem:[#allocation15_spill] sm:$0xff] }
 0x24a   : > { %v3332_v6 = vadd.f32 %v3300_v46, %v12790_v5  ;;  %v3716_v45 = vadd.f32 %v3684_v12, %v3330_v28  ;;  %v10955_v57 = vadd.f32 %v4068_v38, %v3714_v23  ;;  %v2903_v7 = vpop.f32.mrf.mxu1  ;;  %v7623_v30 = vpop.f32.mrf.mxu0  ;;  %8028 = vmatprep.subr.bf16.mxu1 %v8494_v55  ;;  %v10965_v11 = vcombine.low %v10880_v35, %v10884_v48  ;;  %v8694_v23 = vld [vmem:[%s8890_s22 + $0x60] sm:$0xff]  ;;  %v8695_v12 = vld [vmem:[%s8890_s22 + $0x70] sm:$0x11] }
 0x24b   : > { %v10961_v58 = vadd.f32 %v7622_v32, %v12792_v59  ;;  %v10969_v28 = vcombine.high %v10937_v19, %v10941_v29  ;;  %v6959_v46 = vrot.slane %v8694_v23, 9  ;;  %v4167_v55 = vrot.slane %v4165_v22, 4  ;;  %v8499_v7 = vld [vmem:[%s12561_s1 + $0x298] sm:$0xff]   ;;  %v12794_v59 = vld [vmem:[#allocation55_spill] sm:$0xff] }
 0x24c   : > { %12791 = vst [vmem:[#allocation20_spill] sm:$0xff] %v10955_v57  ;;  %v2904_v44 = vpop.f32.mrf.mxu1  ;;  %v7624_v56 = vpop.f32.mrf.mxu0  ;;  %v4168_v38 = vrot.slane %v8695_v12, 5 }
 0x24d   : > { %12793 = vst [vmem:[#allocation22_spill] sm:$0xff] %v10961_v58  ;;  %v3301_v5 = vsel %vm1226_vm0, %v2904_v44, 0.0  ;;  %v3685_v32 = vsel %vm1615_vm1, %v2904_v44, 0.0  ;;  %v4069_v35 = vsel %vm2004_vm4, %v2904_v44, 0.0  ;;  %v7625_v48 = vadd.f32 %v7624_v56, %v7623_v30  ;;  %8029 = vmatpush3.bf16.msra.mxu1 %v8495_v25  ;;  %v8502_v56 = vld [vmem:[%s12561_s1 + $0x2d0] sm:$0xff]   ;;  %v12796_v25 = vld [vmem:[#allocation19_spill] sm:$0xff] }
 0x24e   : > { %v3333_v23 = vadd.f32 %v3301_v5, %v12794_v59  ;;  %v3717_v57 = vadd.f32 %v3685_v32, %v3331_v3  ;;  %v10983_v12 = vadd.f32 %v4069_v35, %v3715_v14  ;;  %v2906_v62 = vpop.f32.mrf.mxu1  ;;  %v7626_v49 = vpop.f32.mrf.mxu0  ;;  %4002 = vmatmul.mubr.bf16.gmra.mxu0 %v10300_v43  ;;  %8030 = vmatprep.subr.bf16.mxu1 %v8498_v16  ;;  %v12798_v44 = vld [vmem:[#allocation5_spill] sm:$0xff]  ;;  %v8696_v14 = vld [vmem:[%s8890_s22 + $0x80] sm:$0xff] }
 0x24f   : > { %v10990_v30 = vadd.f32 %v7625_v48, %v12796_v25  ;;  %4009 = vmatprep.mubr.bf16.mxu0 %v12798_v44  ;;  %v10996_v62 = vsel %vm10783_vm8, %v6959_v46, %v4165_v22  ;;  %v11000_v43 = vsel %vm10783_vm8, %v4167_v55, %v4168_v38  ;;  %v4172_v16 = vrot.slane %v8696_v14, 5  ;;  %v8503_v22 = vld [vmem:[%s12561_s1 + $0x290] sm:$0xff]  }
 0x250   : > { %12795 = vst [vmem:[#allocation24_spill] sm:$0xff] %v10983_v12  ;;  %v2909_v27 = vpop.f32.mrf.mxu1  ;;  %4583 = vmatmul.mubr.bf16.gmra.mxu1 %v10965_v11  ;;  %v7627_v3 = vpop.f32.mrf.mxu0  ;;  %v12799_v46 = vld [vmem:[#allocation56_spill] sm:$0xff]  ;;  %v12816_v58 = vld [vmem:[#allocation17_spill] sm:$0xff] }
 0x251   : > { %12797 = vst [vmem:[#allocation29_spill] sm:$0xff] %v10990_v30  ;;  %v3302_v5 = vsel %vm1226_vm0, %v2909_v27, 0.0  ;;  %v3686_v32 = vsel %vm1615_vm1, %v2909_v27, 0.0  ;;  %v4070_v35 = vsel %vm2004_vm4, %v2909_v27, 0.0  ;;  %v7628_v48 = vadd.f32 %v7627_v3, %v7626_v49  ;;  %4590 = vmatprep.mubr.bf16.mxu1 %v10969_v28  ;;  %8031 = vmatpush3.bf16.msra.mxu1 %v8499_v7  ;;  %v8506_v27 = vld [vmem:[%s12561_s1 + $0x2c8] sm:$0xff]   ;;  %v12801_v49 = vld [vmem:[#allocation21_spill] sm:$0xff] }
 0x252   : > { %v3334_v55 = vadd.f32 %v3302_v5, %v12799_v46  ;;  %v3718_v38 = vadd.f32 %v3686_v32, %v3332_v6  ;;  %v11014_v59 = vadd.f32 %v4070_v35, %v3716_v45  ;;  %v2911_v25 = vpop.f32.mrf.mxu1  ;;  %v7629_v44 = vpop.f32.mrf.mxu0  ;;  %8032 = vmatprep.subr.bf16.mxu1 %v8502_v56  ;;  %v11024_v7 = vcombine.low %v10937_v19, %v10941_v29  ;;  %v8697_v45 = vld [vmem:[%s8890_s22 + $0x78] sm:$0xff]  ;;  %v8698_v32 = vld [vmem:[%s8890_s22 + $0x88] sm:$0x11] }
 0x253   : > { %v11020_v3 = vadd.f32 %v7628_v48, %v12801_v49  ;;  %v11028_v6 = vcombine.high %v10996_v62, %v11000_v43  ;;  %v6960_v5 = vrot.slane %v8697_v45, 9  ;;  %v4174_v56 = vrot.slane %v4172_v16, 4  ;;  %v8507_v25 = vld [vmem:[%s12561_s1 + $0x288] sm:$0xff]   ;;  %v12803_v49 = vld [vmem:[#allocation57_spill] sm:$0xff] }
 0x254   : > { %12800 = vst [vmem:[#allocation31_spill] sm:$0xff] %v11014_v59  ;;  %v2912_v14 = vpop.f32.mrf.mxu1  ;;  %v7630_v12 = vpop.f32.mrf.mxu0  ;;  %v4175_v35 = vrot.slane %v8698_v32, 5  ;;  %v12805_v30 = vld [vmem:[#allocation7_spill] sm:$0xff] }
 0x255   : > { %12802 = vst [vmem:[#allocation33_spill] sm:$0xff] %v11020_v3  ;;  %v3303_v46 = vsel %vm1226_vm0, %v2912_v14, 0.0  ;;  %v3687_v48 = vsel %vm1615_vm1, %v2912_v14, 0.0  ;;  %v4071_v19 = vsel %vm2004_vm4, %v2912_v14, 0.0  ;;  %v7631_v29 = vadd.f32 %v7630_v12, %v7629_v44  ;;  %8033 = vmatpush3.bf16.msra.mxu1 %v8503_v22  ;;  %v8510_v12 = vld [vmem:[%s12561_s1 + $0x2c0] sm:$0xff]  }
 0x256   : > { %v3335_v45 = vadd.f32 %v3303_v46, %v12803_v49  ;;  %v3719_v59 = vadd.f32 %v3687_v48, %v3333_v23  ;;  %v11042_v32 = vadd.f32 %v4071_v19, %v3717_v57  ;;  %v2914_v24 = vpop.f32.mrf.mxu1  ;;  %v7632_v3 = vpop.f32.mrf.mxu0  ;;  %4010 = vmatmul.mubr.bf16.gmra.mxu0 %v12805_v30  ;;  %8034 = vmatprep.subr.bf16.mxu1 %v8506_v27  ;;  %v12806_v22 = vld [vmem:[#allocation23_spill] sm:$0xff]  ;;  %v8699_v30 = vld [vmem:[%s8890_s22 + $0x98] sm:$0xff] }
 0x257   : > { %v11049_v44 = vadd.f32 %v7631_v29, %v12806_v22  ;;  %4872 = vmatprep.mubr.bf16.mxu0 %v10814_v34  ;;  %v11055_v24 = vsel %vm10783_vm8, %v6960_v5, %v4172_v16  ;;  %v11059_v57 = vsel %vm10783_vm8, %v4174_v56, %v4175_v35  ;;  %v4179_v27 = vrot.slane %v8699_v30, 5  ;;  %v8511_v16 = vld [vmem:[%s12561_s1 + $0x280] sm:$0xff]   ;;  %v12810_v30 = vld [vmem:[#allocation28_spill] sm:$0xff] }
 0x258   : > { %12804 = vst [vmem:[#allocation36_spill] sm:$0xff] %v11042_v32  ;;  %v2917_v14 = vpop.f32.mrf.mxu1  ;;  %4591 = vmatmul.mubr.bf16.gmra.mxu1 %v11024_v7  ;;  %v7633_v23 = vpop.f32.mrf.mxu0  ;;  %v12808_v5 = vld [vmem:[#allocation58_spill] sm:$0xff] }
 0x259   : > { %12807 = vst [vmem:[#allocation38_spill] sm:$0xff] %v11049_v44  ;;  %v3304_v46 = vsel %vm1226_vm0, %v2917_v14, 0.0  ;;  %v3688_v34 = vsel %vm1615_vm1, %v2917_v14, 0.0  ;;  %v4072_v48 = vsel %vm2004_vm4, %v2917_v14, 0.0  ;;  %v7634_v19 = vadd.f32 %v7633_v23, %v7632_v3  ;;  %4598 = vmatprep.mubr.bf16.mxu1 %v11028_v6  ;;  %8035 = vmatpush3.bf16.msra.mxu1 %v8507_v25  ;;  %v11085_v25 = vld [vmem:[%s12561_s1 + $0x438] sm:$0xff]  }
 0x25a   : > { %v3336_v56 = vadd.f32 %v3304_v46, %v12808_v5  ;;  %v3720_v35 = vadd.f32 %v3688_v34, %v3334_v55  ;;  %v11073_v29 = vadd.f32 %v4072_v48, %v3718_v38  ;;  %v2919_v49 = vpop.f32.mrf.mxu1  ;;  %v7635_v22 = vpop.f32.mrf.mxu0  ;;  %8036 = vmatprep.subr.bf16.mxu1 %v8510_v12  ;;  %v11080_v3 = vcombine.low %v10996_v62, %v11000_v43  ;;  %v8700_v38 = vld [vmem:[%s8890_s22 + $0x90] sm:$0xff]  ;;  %v8701_v48 = vld [vmem:[%s8890_s22 + $0xa0] sm:$0x11] }
 0x25b   : > { %v11076_v14 = vadd.f32 %v7634_v19, %v12810_v30  ;;  %12812 = vst [vmem:[#allocation46_spill] sm:$0xff] %v11085_v25  ;;  %v11089_v55 = vcombine.high %v11055_v24, %v11059_v57  ;;  %v6961_v12 = vrot.slane %v8700_v38, 9  ;;  %v4181_v34 = vrot.slane %v4179_v27, 4  ;;  %v11096_v62 = vld [vmem:[%s12561_s1 + $0x470] sm:$0xff]   ;;  %v12814_v38 = vld [vmem:[#allocation59_spill] sm:$0xff] }
 0x25c   : > { %12809 = vst [vmem:[#allocation40_spill] sm:$0xff] %v11073_v29  ;;  %v2920_v23 = vpop.f32.mrf.mxu1  ;;  %v7636_v46 = vpop.f32.mrf.mxu0  ;;  %v4182_v19 = vrot.slane %v8701_v48, 5  ;;  %12813 = vst [vmem:[#allocation48_spill] sm:$0xff] %v11096_v62 }
 0x25d   : > { %12811 = vst [vmem:[#allocation44_spill] sm:$0xff] %v11076_v14  ;;  %v3305_v43 = vsel %vm1226_vm0, %v2920_v23, 0.0  ;;  %v3689_v5 = vsel %vm1615_vm1, %v2920_v23, 0.0  ;;  %v4073_v49 = vsel %vm2004_vm4, %v2920_v23, 0.0  ;;  %v7637_v30 = vadd.f32 %v7636_v46, %v7635_v22  ;;  %8037 = vmatpush3.bf16.msra.mxu1 %v8511_v16 }
 0x25e   : > { %v3337_v29 = vadd.f32 %v3305_v43, %v12814_v38  ;;  %v3721_v32 = vadd.f32 %v3689_v5, %v3335_v45  ;;  %v11105_v48 = vadd.f32 %v4073_v49, %v3719_v59  ;;  %v2922_v14 = vpop.f32.mrf.mxu1  ;;  %v7638_v44 = vpop.f32.mrf.mxu0  ;;  %4873 = vmatmul.mubr.bf16.vlgmr.msra.gmra.mxu0 %v10851_v21  ;;  %8246 = vmatprep.subr.bf16.mxu1 %v10590_v47  ;;  %v11117_v45 = vld [vmem:[%s12561_s1 + $0x430] sm:$0xff]   ;;  %v12821_v38 = vld [vmem:[#allocation18_spill] sm:$0xff] }
 0x25f   : > { %v11110_v15 = vadd.f32 %v7637_v30, %v12816_v58  ;;  %8135 = vmatpush3.bf16.msra.mxu0 %v11085_v25  ;;  %4880 = vmatprep.mubr.bf16.mxu0 %v10853_v20  ;;  %12817 = vst [vmem:[#allocation9_spill] sm:$0xff] %v11117_v45  ;;  %v11122_v21 = vsel %vm10783_vm8, %v6961_v12, %v4179_v27  ;;  %v8702_v58 = vld [vmem:[%s8890_s22 + $0xb0] sm:$0xff]  ;;  %v11133_v14 = vld [vmem:[%s12561_s1 + $0x468] sm:$0xff]   ;;  %v12828_v25 = vld [vmem:[#allocation30_spill] sm:$0xff] }
 0x260   : > { %12815 = vst [vmem:[#allocation50_spill] sm:$0xff] %v11105_v48  ;;  %v2925_v59 = vpop.f32.mrf.mxu1  ;;  %4599 = vmatmul.mubr.bf16.gmra.mxu1 %v11080_v3  ;;  %v7639_v16 = vpop.f32.mrf.mxu0  ;;  %v11126_v47 = vsel %vm10783_vm8, %v4181_v34, %v4182_v19  ;;  %8136 = vmatprep.subr.bf16.mxu0 %v11096_v62  ;;  %v4186_v22 = vrot.slane %v8702_v58, 5  ;;  %12818 = vst [vmem:[#allocation52_spill] sm:$0xff] %v11133_v14  ;;  %v12819_v34 = vld [vmem:[#allocation60_spill] sm:$0xff]  ;;  %v11150_v48 = vcombine.low %v11055_v24, %v11059_v57  ;;  %v11168_v24 = vld [vmem:[%s12561_s1 + $0x460] sm:$0xff]  }
 0x261   : > { %v3306_v23 = vsel %vm1226_vm0, %v2925_v59, 0.0  ;;  %v3690_v27 = vsel %vm1615_vm1, %v2925_v59, 0.0  ;;  %v4074_v46 = vsel %vm2004_vm4, %v2925_v59, 0.0  ;;  %v7640_v12 = vadd.f32 %v7639_v16, %v7638_v44  ;;  %4606 = vmatprep.mubr.bf16.mxu1 %v11089_v55  ;;  %v11156_v44 = vld [vmem:[%s12561_s1 + $0x428] sm:$0xff]   ;;  %12825 = vst [vmem:[#allocation15_spill] sm:$0xff] %v11168_v24 }
 0x262   : > { %v3338_v19 = vadd.f32 %v3306_v23, %v12819_v34  ;;  %v3722_v43 = vadd.f32 %v3690_v27, %v3336_v56  ;;  %v11143_v5 = vadd.f32 %v4074_v46, %v3720_v35  ;;  %v2927_v49 = vpop.f32.mrf.mxu1  ;;  %v7641_v30 = vpop.f32.mrf.mxu0  ;;  %12822 = vst [vmem:[#allocation53_spill] sm:$0xff] %v11150_v48  ;;  %12823 = vst [vmem:[#allocation13_spill] sm:$0xff] %v11156_v44  ;;  %v8703_v16 = vld [vmem:[%s8890_s22 + $0xa8] sm:$0xff]  ;;  %v4188_v27 = vrot.slane %v4186_v22, 4  ;;  %v8704_v46 = vld [vmem:[%s8890_s22 + $0xb8] sm:$0x11] }
 0x263   : > { %v11146_v58 = vadd.f32 %v7640_v12, %v12821_v38  ;;  %8137 = vmatpush3.bf16.msra.mxu0 %v11117_v45  ;;  %v11160_v35 = vcombine.high %v11122_v21, %v11126_v47  ;;  %v6962_v23 = vrot.slane %v8703_v16, 9  ;;  %v4189_v12 = vrot.slane %v8704_v46, 5  ;;  %v12826_v16 = vld [vmem:[#allocation61_spill] sm:$0xff] }
 0x264   : > { %12820 = vst [vmem:[#allocation11_spill] sm:$0xff] %v11143_v5  ;;  %v2928_v59 = vpop.f32.mrf.mxu1  ;;  %v7642_v56 = vpop.f32.mrf.mxu0  ;;  %8138 = vmatprep.subr.bf16.mxu0 %v11133_v14 }
 0x265   : > { %12824 = vst [vmem:[#allocation54_spill] sm:$0xff] %v11160_v35  ;;  %v3307_v57 = vsel %vm1226_vm0, %v2928_v59, 0.0  ;;  %v3691_v34 = vsel %vm1615_vm1, %v2928_v59, 0.0  ;;  %v4075_v49 = vsel %vm2004_vm4, %v2928_v59, 0.0  ;;  %v7643_v38 = vadd.f32 %v7642_v56, %v7641_v30  ;;  %v11188_v30 = vld [vmem:[%s12561_s1 + $0x420] sm:$0xff]  }
 0x266   : > { %v3339_v46 = vadd.f32 %v3307_v57, %v12826_v16  ;;  %v3723_v5 = vadd.f32 %v3691_v34, %v3337_v29  ;;  %v11177_v14 = vadd.f32 %v4075_v49, %v3721_v32  ;;  %v2930_v45 = vpop.f32.mrf.mxu1  ;;  %v7644_v62 = vpop.f32.mrf.mxu0  ;;  %4881 = vmatmul.mubr.bf16.gmra.mxu0 %v10906_v8  ;;  %12829 = vst [vmem:[#allocation19_spill] sm:$0xff] %v11188_v30  ;;  %v11204_v57 = vld [vmem:[%s12561_s1 + $0x458] sm:$0xff]  }
 0x267   : > { %v11181_v20 = vadd.f32 %v7643_v38, %v12828_v25  ;;  %4888 = vmatprep.mubr.bf16.mxu0 %v10910_v31  ;;  %8139 = vmatpush3.bf16.msra.mxu0 %v11156_v44  ;;  %v11193_v29 = vsel %vm10783_vm8, %v6962_v23, %v4186_v22  ;;  %v11197_v25 = vsel %vm10783_vm8, %v4188_v27, %v4189_v12  ;;  %v8705_v45 = vld [vmem:[%s8890_s22 + $0xc8] sm:$0xff]  ;;  %v12831_v12 = vld [vmem:[#allocation62_spill] sm:$0xff] }
 0x268   : > { %12827 = vst [vmem:[#allocation55_spill] sm:$0xff] %v11177_v14  ;;  %v2933_v59 = vpop.f32.mrf.mxu1  ;;  %4607 = vmatmul.mubr.bf16.gmra.mxu1 %v11150_v48  ;;  %v7645_v32 = vpop.f32.mrf.mxu0  ;;  %v4193_v56 = vrot.slane %v8705_v45, 5  ;;  %8140 = vmatprep.subr.bf16.mxu0 %v11168_v24  ;;  %12830 = vst [vmem:[#allocation5_spill] sm:$0xff] %v11204_v57  ;;  %v11221_v44 = vcombine.low %v11122_v21, %v11126_v47  ;;  %v11239_v21 = vld [vmem:[%s12561_s1 + $0x450] sm:$0xff]  }
 0x269   : > { %v3308_v34 = vsel %vm1226_vm0, %v2933_v59, 0.0  ;;  %v3692_v22 = vsel %vm1615_vm1, %v2933_v59, 0.0  ;;  %v4076_v23 = vsel %vm2004_vm4, %v2933_v59, 0.0  ;;  %v7646_v27 = vadd.f32 %v7645_v32, %v7644_v62  ;;  %4614 = vmatprep.mubr.bf16.mxu1 %v11160_v35  ;;  %v11227_v62 = vld [vmem:[%s12561_s1 + $0x418] sm:$0xff]   ;;  %v8706_v32 = vld [vmem:[%s8890_s22 + $0xc0] sm:$0xff]  ;;  %12836 = vst [vmem:[#allocation23_spill] sm:$0xff] %v11239_v21 }
 0x26a   : > { %v3340_v49 = vadd.f32 %v3308_v34, %v12831_v12  ;;  %v3724_v38 = vadd.f32 %v3692_v22, %v3338_v19  ;;  %v11214_v16 = vadd.f32 %v4076_v23, %v3722_v43  ;;  %v2935_v45 = vpop.f32.mrf.mxu1  ;;  %v7647_v14 = vpop.f32.mrf.mxu0  ;;  %12833 = vst [vmem:[#allocation21_spill] sm:$0xff] %v11221_v44  ;;  %12834 = vst [vmem:[#allocation57_spill] sm:$0xff] %v11227_v62  ;;  %v4195_v34 = vrot.slane %v4193_v56, 4  ;;  %v8707_v22 = vld [vmem:[%s8890_s22 + $0xd0] sm:$0x11] }
 0x26b   : > { %v11217_v24 = vadd.f32 %v7646_v27, %v10524_v10  ;;  %8141 = vmatpush3.bf16.msra.mxu0 %v11188_v30  ;;  %v11231_v43 = vcombine.high %v11193_v29, %v11197_v25  ;;  %v6963_v10 = vrot.slane %v8706_v32, 9  ;;  %v4196_v23 = vrot.slane %v8707_v22, 5  ;;  %v12837_v32 = vld [vmem:[#allocation63_spill] sm:$0xff] }
 0x26c   : > { %12832 = vst [vmem:[#allocation56_spill] sm:$0xff] %v11214_v16  ;;  %v2936_v59 = vpop.f32.mrf.mxu1  ;;  %v7648_v19 = vpop.f32.mrf.mxu0  ;;  %8142 = vmatprep.subr.bf16.mxu0 %v11204_v57 }
 0x26d   : > { %12835 = vst [vmem:[#allocation7_spill] sm:$0xff] %v11231_v43  ;;  %v3309_v47 = vsel %vm1226_vm0, %v2936_v59, 0.0  ;;  %v3693_v27 = vsel %vm1615_vm1, %v2936_v59, 0.0  ;;  %v4077_v12 = vsel %vm2004_vm4, %v2936_v59, 0.0  ;;  %v7649_v45 = vadd.f32 %v7648_v19, %v7647_v14  ;;  %v11259_v14 = vld [vmem:[%s12561_s1 + $0x410] sm:$0xff]  }
 0x26e   : > { %v3341_v16 = vadd.f32 %v3309_v47, %v12837_v32  ;;  %v3725_v22 = vadd.f32 %v3693_v27, %v3339_v46  ;;  %v11248_v30 = vadd.f32 %v4077_v12, %v3723_v5  ;;  %v2938_v57 = vpop.f32.mrf.mxu1  ;;  %v7650_v31 = vpop.f32.mrf.mxu0  ;;  %4889 = vmatmul.mubr.bf16.gmra.mxu0 %v10965_v11  ;;  %12839 = vst [vmem:[#allocation28_spill] sm:$0xff] %v11259_v14  ;;  %v8708_v32 = vld [vmem:[%s8890_s22 + $0xe0] sm:$0xff] }
 0x26f   : > { %v11252_v8 = vadd.f32 %v7649_v45, %v10542_v61  ;;  %4896 = vmatprep.mubr.bf16.mxu0 %v10969_v28  ;;  %8143 = vmatpush3.bf16.msra.mxu0 %v11227_v62  ;;  %v4194_v57 = vsel %vm10783_vm8, %v6963_v10, %v4193_v56  ;;  %v11268_v61 = vld [vmem:[%s12561_s1 + $0x448] sm:$0xff]   ;;  %v4197_v27 = vsel %vm10783_vm8, %v4195_v34, %v4196_v23 }
 0x270   : > { %12838 = vst [vmem:[#allocation58_spill] sm:$0xff] %v11248_v30  ;;  %v2941_v46 = vpop.f32.mrf.mxu1  ;;  %4615 = vmatmul.mubr.bf16.gmra.mxu1 %v11221_v44  ;;  %v7651_v5 = vpop.f32.mrf.mxu0  ;;  %8144 = vmatprep.subr.bf16.mxu0 %v11239_v21  ;;  %12840 = vst [vmem:[#allocation59_spill] sm:$0xff] %v11268_v61  ;;  %v4200_v30 = vrot.slane %v8708_v32, 5 }
 0x271   : > { %v3694_v59 = vsel %vm1615_vm1, %v2941_v46, 0.0  ;;  %v4078_v19 = vsel %vm2004_vm4, %v2941_v46, 0.0  ;;  %v7652_v47 = vadd.f32 %v7651_v5, %v7650_v31  ;;  %4622 = vmatprep.mubr.bf16.mxu1 %v11231_v43  ;;  %v11287_v31 = vld [vmem:[%s12561_s1 + $0x408] sm:$0xff]  }
 0x272   : > { %v3726_v56 = vadd.f32 %v3694_v59, %v3340_v49  ;;  %v11277_v10 = vadd.f32 %v4078_v19, %v3724_v38  ;;  %v2943_v12 = vpop.f32.mrf.mxu1  ;;  %v7653_v45 = vpop.f32.mrf.mxu0  ;;  %v11291_v49 = vcombine.low %v11193_v29, %v11197_v25  ;;  %v11293_v38 = vcombine.high %v4194_v57, %v4197_v27  ;;  %v8709_v19 = vld [vmem:[%s8890_s22 + $0xd8] sm:$0xff] }
 0x273   : > { %v11281_v21 = vadd.f32 %v7652_v47, %v10563_v37  ;;  %8145 = vmatpush3.bf16.msra.mxu0 %v11259_v14  ;;  %v11299_v37 = vld [vmem:[%s12561_s1 + $0x440] sm:$0xff]   ;;  %v6964_v47 = vrot.slane %v8709_v19, 9  ;;  %v8711_v19 = vld [vmem:[%s8890_s22 + $0xf8] sm:$0xff] }
 0x274   : > { %12841 = vst [vmem:[#allocation17_spill] sm:$0xff] %v11277_v10  ;;  %v2944_v46 = vpop.f32.mrf.mxu1  ;;  %v7654_v34 = vpop.f32.mrf.mxu0  ;;  %12842 = vst [vmem:[#allocation60_spill] sm:$0xff] %v11291_v49  ;;  %8146 = vmatprep.subr.bf16.mxu0 %v11268_v61  ;;  %v4202_v10 = vrot.slane %v4200_v30, 4  ;;  %v8710_v61 = vld [vmem:[%s8890_s22 + $0xe8] sm:$0x11] }
 0x275   : > { %12843 = vst [vmem:[#allocation18_spill] sm:$0xff] %v11293_v38  ;;  %12844 = vst [vmem:[#allocation61_spill] sm:$0xff] %v11299_v37  ;;  %v3695_v23 = vsel %vm1615_vm1, %v2944_v46, 0.0  ;;  %v4079_v5 = vsel %vm2004_vm4, %v2944_v46, 0.0  ;;  %v7655_v59 = vadd.f32 %v7654_v34, %v7653_v45  ;;  %v4203_v14 = vrot.slane %v8710_v61, 5 }
 0x276   : > { %v3727_v29 = vadd.f32 %v3695_v23, %v3341_v16  ;;  %v11306_v25 = vadd.f32 %v4079_v5, %v3725_v22  ;;  %v2946_v12 = vpop.f32.mrf.mxu1  ;;  %v7656_v32 = vpop.f32.mrf.mxu0  ;;  %4897 = vmatmul.mubr.bf16.gmra.mxu0 %v11024_v7  ;;  %v11318_v16 = vld [vmem:[%s12561_s1 + $0x400] sm:$0xff]   ;;  %v4201_v5 = vsel %vm10783_vm8, %v6964_v47, %v4200_v30 }
 0x277   : > { %v11311_v62 = vadd.f32 %v7655_v59, %v10580_v53  ;;  %4904 = vmatprep.mubr.bf16.mxu0 %v11028_v6  ;;  %8147 = vmatpush3.bf16.msra.mxu0 %v11287_v31  ;;  %12846 = vst [vmem:[#allocation62_spill] sm:$0xff] %v11318_v16  ;;  %v4204_v59 = vsel %vm10783_vm8, %v4202_v10, %v4203_v14  ;;  %v4207_v12 = vrot.slane %v8711_v19, 5  ;;  %v8713_v19 = vld [vmem:[%s8890_s22 + $0x100] sm:$0x11] }
 0x278   : > { %12845 = vst [vmem:[#allocation30_spill] sm:$0xff] %v11306_v25  ;;  %v2949_v22 = vpop.f32.mrf.mxu1  ;;  %4623 = vmatmul.mubr.bf16.gmra.mxu1 %v11291_v49  ;;  %v7657_v45 = vpop.f32.mrf.mxu0  ;;  %8148 = vmatprep.subr.bf16.mxu0 %v11299_v37  ;;  %v11340_v47 = vcombine.high %v4201_v5, %v4204_v59 }
 0x279   : > { %v4080_v53 = vsel %vm2004_vm4, %v2949_v22, 0.0  ;;  %v7658_v61 = vadd.f32 %v7657_v45, %v7656_v32  ;;  %4630 = vmatprep.mubr.bf16.mxu1 %v11293_v38  ;;  %v11336_v22 = vcombine.low %v4194_v57, %v4197_v27 }
 0x27a   : > { %v11325_v46 = vadd.f32 %v4080_v53, %v3726_v56  ;;  %v2951_v34 = vpop.f32.mrf.mxu1  ;;  %v7659_v23 = vpop.f32.mrf.mxu0  ;;  %12849 = vst [vmem:[#allocation65_spill] sm:$0xff] %v11340_v47 }
 0x27b   : > { %v11333_v25 = vadd.f32 %v7658_v61, %v10606_v63  ;;  %8149 = vmatpush3.bf16.msra.mxu0 %v11318_v16  ;;  %12848 = vst [vmem:[#allocation64_spill] sm:$0xff] %v11336_v22  ;;  %v8712_v63 = vld [vmem:[%s8890_s22 + $0xf0] sm:$0xff]  ;;  %v4209_v34 = vrot.slane %v4207_v12, 4 }
 0x27c   : > { %12847 = vst [vmem:[#allocation63_spill] sm:$0xff] %v11325_v46  ;;  %v2952_v32 = vpop.f32.mrf.mxu1  ;;  %v7660_v56 = vpop.f32.mrf.mxu0  ;;  %v6965_v61 = vrot.slane %v8712_v63, 9  ;;  %v4210_v46 = vrot.slane %v8713_v19, 5 }
 0x27d   : > { %v4081_v45 = vsel %vm2004_vm4, %v2952_v32, 0.0  ;;  %v7661_v30 = vadd.f32 %v7660_v56, %v7659_v23 }
 0x27e   : > { %v11342_v53 = vadd.f32 %v4081_v45, %v3727_v29  ;;  %v2954_v14 = vpop.f32.mrf.mxu1  ;;  %v7662_v10 = vpop.f32.mrf.mxu0  ;;  %4905 = vmatmul.mubr.bf16.gmra.mxu0 %v11080_v3  ;;  %v4208_v45 = vsel %vm10783_vm8, %v6965_v61, %v4207_v12 }
 0x27f   : > { %v11348_v57 = vadd.f32 %v7661_v30, %v10616_v26  ;;  %4912 = vmatprep.mubr.bf16.mxu0 %v11089_v55  ;;  %v4211_v14 = vsel %vm10783_vm8, %v4209_v34, %v4210_v46  ;;  %v8714_v26 = vld [vmem:[%s8890_s22 + $0x110] sm:$0xff]  ;;  %v8715_v46 = vld [vmem:[%s8890_s22 + $0x108] sm:$0xff] }
 0x280   : > { %12850 = vst [vmem:[#allocation66_spill] sm:$0xff] %v11342_v53  ;;  %v7702_v27 = vpop.f32.mrf.mxu1  ;;  %4631 = vmatmul.mubr.bf16.gmra.mxu1 %v11336_v22  ;;  %v7663_v29 = vpop.f32.mrf.mxu0  ;;  %v4214_v30 = vrot.slane %v8714_v26, 5  ;;  %v11366_v37 = vcombine.high %v4208_v45, %v4211_v14  ;;  %v6966_v34 = vrot.slane %v8715_v46, 9 }
 0x281   : > { %v7664_v23 = vadd.f32 %v7663_v29, %v7662_v10  ;;  %4638 = vmatprep.mubr.bf16.mxu1 %v11340_v47  ;;  %v11361_v29 = vcombine.low %v4201_v5, %v4204_v59 }
 0x282   : > { %v7703_v32 = vpop.f32.mrf.mxu1  ;;  %v7665_v56 = vpop.f32.mrf.mxu0  ;;  %12852 = vst [vmem:[#allocation68_spill] sm:$0xff] %v11366_v37  ;;  %v4216_v26 = vrot.slane %v4214_v30, 4 }
 0x283   : > { %v11359_v63 = vadd.f32 %v7664_v23, %v10631_v39  ;;  %v7704_v19 = vadd.f32 %v7703_v32, %v7702_v27  ;;  %12851 = vst [vmem:[#allocation67_spill] sm:$0xff] %v11361_v29  ;;  %v8716_v39 = vld [vmem:[%s8890_s22 + $0x118] sm:$0x11] }
 0x284   : > { %v7705_v53 = vpop.f32.mrf.mxu1  ;;  %v7666_v10 = vpop.f32.mrf.mxu0  ;;  %v4217_v27 = vrot.slane %v8716_v39, 5 }
 0x285   : > { %v11364_v51 = vadd.f32 %v7704_v19, %v10743_v33  ;;  %v7667_v16 = vadd.f32 %v7666_v10, %v7665_v56 }
 0x286   : > { %v7706_v12 = vpop.f32.mrf.mxu1  ;;  %v7668_v61 = vpop.f32.mrf.mxu0  ;;  %4913 = vmatmul.mubr.bf16.gmra.mxu0 %v11150_v48 }
 0x287   : > { %v11372_v23 = vadd.f32 %v7667_v16, %v10642_v40  ;;  %v7707_v5 = vadd.f32 %v7706_v12, %v7705_v53  ;;  %4920 = vmatprep.mubr.bf16.mxu0 %v11160_v35  ;;  %v4215_v40 = vsel %vm10783_vm8, %v6966_v34, %v4214_v30  ;;  %v4218_v16 = vsel %vm10783_vm8, %v4216_v26, %v4217_v27  ;;  %v8717_v53 = vld [vmem:[%s8890_s22 + $0x128] sm:$0xff]  ;;  %v8718_v26 = vld [vmem:[%s8890_s22 + $0x120] sm:$0xff] }
 0x288   : > { %v7708_v33 = vpop.f32.mrf.mxu1  ;;  %4639 = vmatmul.mubr.bf16.gmra.mxu1 %v11361_v29  ;;  %v7669_v59 = vpop.f32.mrf.mxu0  ;;  %v4221_v12 = vrot.slane %v8717_v53, 5  ;;  %v11393_v48 = vcombine.high %v4215_v40, %v4218_v16  ;;  %v6967_v27 = vrot.slane %v8718_v26, 9 }
 0x289   : > { %v11377_v32 = vadd.f32 %v7707_v5, %v10756_v9  ;;  %v7670_v56 = vadd.f32 %v7669_v59, %v7668_v61  ;;  %4646 = vmatprep.mubr.bf16.mxu1 %v11366_v37  ;;  %v11388_v5 = vcombine.low %v4208_v45, %v4211_v14 }
 0x28a   : > { %v7709_v19 = vpop.f32.mrf.mxu1  ;;  %v7671_v10 = vpop.f32.mrf.mxu0  ;;  %12854 = vst [vmem:[#allocation70_spill] sm:$0xff] %v11393_v48  ;;  %v4223_v53 = vrot.slane %v4221_v12, 4 }
 0x28b   : > { %v11386_v46 = vadd.f32 %v7670_v56, %v10659_v2  ;;  %v7710_v9 = vadd.f32 %v7709_v19, %v7708_v33  ;;  %12853 = vst [vmem:[#allocation69_spill] sm:$0xff] %v11388_v5  ;;  %v8719_v2 = vld [vmem:[%s8890_s22 + $0x130] sm:$0x11] }
 0x28c   : > { %v7711_v39 = vpop.f32.mrf.mxu1  ;;  %v7672_v61 = vpop.f32.mrf.mxu0  ;;  %v4224_v33 = vrot.slane %v8719_v2, 5 }
 0x28d   : > { %v11391_v59 = vadd.f32 %v7710_v9, %v10772_v60  ;;  %v7673_v35 = vadd.f32 %v7672_v61, %v7671_v10 }
 0x28e   : > { %v7712_v30 = vpop.f32.mrf.mxu1  ;;  %v7674_v34 = vpop.f32.mrf.mxu0  ;;  %4921 = vmatmul.mubr.bf16.gmra.mxu0 %v11221_v44 }
 0x28f   : > { %v11399_v56 = vadd.f32 %v7673_v35, %v10672_v52  ;;  %v7713_v45 = vadd.f32 %v7712_v30, %v7711_v39  ;;  %4928 = vmatprep.mubr.bf16.mxu0 %v11231_v43  ;;  %v4222_v52 = vsel %vm10783_vm8, %v6967_v27, %v4221_v12  ;;  %v4225_v35 = vsel %vm10783_vm8, %v4223_v53, %v4224_v33  ;;  %v8720_v39 = vld [vmem:[%s8890_s22 + $0x140] sm:$0xff]  ;;  %v8721_v53 = vld [vmem:[%s8890_s22 + $0x138] sm:$0xff] }
 0x290   : > { %v7714_v60 = vpop.f32.mrf.mxu1  ;;  %4647 = vmatmul.mubr.bf16.gmra.mxu1 %v11388_v5  ;;  %v7675_v14 = vpop.f32.mrf.mxu0  ;;  %v4228_v30 = vrot.slane %v8720_v39, 5  ;;  %v11420_v44 = vcombine.high %v4222_v52, %v4225_v35  ;;  %v6968_v33 = vrot.slane %v8721_v53, 9 }
 0x291   : > { %v11404_v19 = vadd.f32 %v7713_v45, %v10792_v54  ;;  %v7676_v10 = vadd.f32 %v7675_v14, %v7674_v34  ;;  %4654 = vmatprep.mubr.bf16.mxu1 %v11393_v48  ;;  %v11415_v45 = vcombine.low %v4215_v40, %v4218_v16 }
 0x292   : > { %v7715_v9 = vpop.f32.mrf.mxu1  ;;  %v7677_v61 = vpop.f32.mrf.mxu0  ;;  %12855 = vst [vmem:[#allocation71_spill] sm:$0xff] %v11420_v44  ;;  %v4230_v39 = vrot.slane %v4228_v30, 4 }
 0x293   : > { %v11413_v26 = vadd.f32 %v7676_v10, %v10687_v50  ;;  %v7716_v54 = vadd.f32 %v7715_v9, %v7714_v60  ;;  %v8722_v50 = vld [vmem:[%s8890_s22 + $0x148] sm:$0x11] }
 0x294   : > { %v7717_v2 = vpop.f32.mrf.mxu1  ;;  %v7678_v34 = vpop.f32.mrf.mxu0  ;;  %v4231_v60 = vrot.slane %v8722_v50, 5 }
 0x295   : > { %v11418_v14 = vadd.f32 %v7716_v54, %v10812_v36  ;;  %v7679_v43 = vadd.f32 %v7678_v34, %v7677_v61 }
 0x296   : > { %v7718_v12 = vpop.f32.mrf.mxu1  ;;  %v7680_v27 = vpop.f32.mrf.mxu0  ;;  %4929 = vmatmul.mubr.bf16.gmra.mxu0 %v11291_v49 }
 0x297   : > { %v11426_v10 = vadd.f32 %v7679_v43, %v10700_v18  ;;  %v7719_v40 = vadd.f32 %v7718_v12, %v7717_v2  ;;  %4936 = vmatprep.mubr.bf16.mxu0 %v11293_v38  ;;  %v4229_v18 = vsel %vm10783_vm8, %v6968_v33, %v4228_v30  ;;  %v4232_v43 = vsel %vm10783_vm8, %v4230_v39, %v4231_v60  ;;  %v8723_v2 = vld [vmem:[%s8890_s22 + $0x158] sm:$0xff]  ;;  %v8724_v39 = vld [vmem:[%s8890_s22 + $0x150] sm:$0xff] }
 0x298   : > { %v7720_v36 = vpop.f32.mrf.mxu1  ;;  %4655 = vmatmul.mubr.bf16.gmra.mxu1 %v11415_v45  ;;  %v7681_v16 = vpop.f32.mrf.mxu0  ;;  %v4235_v12 = vrot.slane %v8723_v2, 5  ;;  %v11447_v49 = vcombine.high %v4229_v18, %v4232_v43  ;;  %v6969_v60 = vrot.slane %v8724_v39, 9 }
 0x299   : > { %v11431_v9 = vadd.f32 %v7719_v40, %v10829_v0  ;;  %v7682_v61 = vadd.f32 %v7681_v16, %v7680_v27  ;;  %4662 = vmatprep.mubr.bf16.mxu1 %v11420_v44  ;;  %v11442_v40 = vcombine.low %v4222_v52, %v4225_v35 }
 0x29a   : > { %v7721_v54 = vpop.f32.mrf.mxu1  ;;  %v7683_v34 = vpop.f32.mrf.mxu0  ;;  %v4237_v2 = vrot.slane %v4235_v12, 4 }
 0x29b   : > { %v11440_v53 = vadd.f32 %v7682_v61, %v10715_v13  ;;  %v7722_v0 = vadd.f32 %v7721_v54, %v7720_v36  ;;  %v8725_v13 = vld [vmem:[%s8890_s22 + $0x160] sm:$0x11] }
 0x29c   : > { %v7723_v50 = vpop.f32.mrf.mxu1  ;;  %v7684_v27 = vpop.f32.mrf.mxu0  ;;  %v4238_v36 = vrot.slane %v8725_v13, 5 }
 0x29d   : > { %v11445_v16 = vadd.f32 %v7722_v0, %v10849_v1  ;;  %v7685_v38 = vadd.f32 %v7684_v27, %v7683_v34 }
 0x29e   : > { %v7724_v30 = vpop.f32.mrf.mxu1  ;;  %v7814_v33 = vpop.f32.mrf.mxu0  ;;  %4937 = vmatmul.mubr.bf16.gmra.mxu0 %v11336_v22 }
 0x29f   : > { %v11453_v61 = vadd.f32 %v7685_v38, %v10728_v41  ;;  %v7725_v52 = vadd.f32 %v7724_v30, %v7723_v50  ;;  %4944 = vmatprep.mubr.bf16.mxu0 %v11340_v47  ;;  %v4236_v41 = vsel %vm10783_vm8, %v6969_v60, %v4235_v12  ;;  %v4239_v38 = vsel %vm10783_vm8, %v4237_v2, %v4238_v36  ;;  %v8726_v50 = vld [vmem:[%s8890_s22 + $0x170] sm:$0xff]  ;;  %v8727_v2 = vld [vmem:[%s8890_s22 + $0x168] sm:$0xff] }
 0x2a0   : > { %v7726_v1 = vpop.f32.mrf.mxu1  ;;  %4663 = vmatmul.mubr.bf16.gmra.mxu1 %v11442_v40  ;;  %v7815_v35 = vpop.f32.mrf.mxu0  ;;  %v4242_v30 = vrot.slane %v8726_v50, 5  ;;  %v11474_v22 = vcombine.high %v4236_v41, %v4239_v38  ;;  %v6970_v36 = vrot.slane %v8727_v2, 9 }
 0x2a1   : > { %v11458_v54 = vadd.f32 %v7725_v52, %v10874_v4  ;;  %v7816_v34 = vadd.f32 %v7815_v35, %v7814_v33  ;;  %4670 = vmatprep.mubr.bf16.mxu1 %v11447_v49  ;;  %v11469_v52 = vcombine.low %v4229_v18, %v4232_v43 }
 0x2a2   : > { %v7727_v0 = vpop.f32.mrf.mxu1  ;;  %v7817_v27 = vpop.f32.mrf.mxu0  ;;  %v4244_v50 = vrot.slane %v4242_v30, 4 }
 0x2a3   : > { %v11467_v39 = vadd.f32 %v7816_v34, %v11364_v51  ;;  %v7728_v4 = vadd.f32 %v7727_v0, %v7726_v1  ;;  %v8728_v51 = vld [vmem:[%s8890_s22 + $0x178] sm:$0x11]  ;;  %v12858_v0 = vld [vmem:[#allocation16_spill] sm:$0xff] }
 0x2a4   : > { %v7729_v13 = vpop.f32.mrf.mxu1  ;;  %v7818_v33 = vpop.f32.mrf.mxu0  ;;  %v4245_v1 = vrot.slane %v8728_v51, 5 }
 0x2a5   : > { %12856 = vst [vmem:[#allocation72_spill] sm:$0xff] %v11467_v39  ;;  %v11472_v35 = vadd.f32 %v7728_v4, %v10904_v42  ;;  %v7819_v47 = vadd.f32 %v7818_v33, %v7817_v27 }
 0x2a6   : > { %v7730_v12 = vpop.f32.mrf.mxu1  ;;  %v7820_v60 = vpop.f32.mrf.mxu0  ;;  %4945 = vmatmul.mubr.bf16.gmra.mxu0 %v11361_v29 }
 0x2a7   : > { %v11480_v34 = vadd.f32 %v7819_v47, %v11377_v32  ;;  %v7731_v18 = vadd.f32 %v7730_v12, %v7729_v13  ;;  %4952 = vmatprep.mubr.bf16.mxu0 %v11366_v37  ;;  %v4243_v47 = vsel %vm10783_vm8, %v6970_v36, %v4242_v30  ;;  %v4246_v32 = vsel %vm10783_vm8, %v4244_v50, %v4245_v1  ;;  %v8729_v13 = vld [vmem:[%s8890_s22 + $0x188] sm:$0xff]  ;;  %v8730_v50 = vld [vmem:[%s8890_s22 + $0x180] sm:$0xff] }
 0x2a8   : > { %v7732_v42 = vpop.f32.mrf.mxu1  ;;  %4671 = vmatmul.mubr.bf16.gmra.mxu1 %v11469_v52  ;;  %v7821_v43 = vpop.f32.mrf.mxu0  ;;  %v4249_v12 = vrot.slane %v8729_v13, 5  ;;  %v11501_v29 = vcombine.high %v4243_v47, %v4246_v32  ;;  %v6971_v1 = vrot.slane %v8730_v50, 9 }
 0x2a9   : > { %12857 = vst [vmem:[#allocation73_spill] sm:$0xff] %v11480_v34  ;;  %v11485_v27 = vadd.f32 %v7731_v18, %v12858_v0  ;;  %v7822_v4 = vadd.f32 %v7821_v43, %v7820_v60  ;;  %4678 = vmatprep.mubr.bf16.mxu1 %v11474_v22  ;;  %v11496_v43 = vcombine.low %v4236_v41, %v4239_v38  ;;  %v12860_v34 = vld [vmem:[#allocation22_spill] sm:$0xff] }
 0x2aa   : > { %v7733_v33 = vpop.f32.mrf.mxu1  ;;  %v7823_v2 = vpop.f32.mrf.mxu0  ;;  %v4251_v13 = vrot.slane %v4249_v12, 4 }
 0x2ab   : > { %v11494_v51 = vadd.f32 %v7822_v4, %v11391_v59  ;;  %v7734_v18 = vadd.f32 %v7733_v33, %v7732_v42  ;;  %v8731_v59 = vld [vmem:[%s8890_s22 + $0x190] sm:$0x11] }
 0x2ac   : > { %v7735_v0 = vpop.f32.mrf.mxu1  ;;  %v7824_v60 = vpop.f32.mrf.mxu0  ;;  %v4252_v42 = vrot.slane %v8731_v59, 5  ;;  %v12862_v33 = vld [vmem:[#allocation29_spill] sm:$0xff] }
 0x2ad   : > { %12859 = vst [vmem:[#allocation16_spill] sm:$0xff] %v11494_v51  ;;  %v11499_v39 = vadd.f32 %v7734_v18, %v12860_v34  ;;  %v7825_v37 = vadd.f32 %v7824_v60, %v7823_v2 }
 0x2ae   : > { %v7736_v30 = vpop.f32.mrf.mxu1  ;;  %v7826_v36 = vpop.f32.mrf.mxu0  ;;  %4953 = vmatmul.mubr.bf16.gmra.mxu0 %v11388_v5 }
 0x2af   : > { %v11507_v4 = vadd.f32 %v7825_v37, %v11404_v19  ;;  %v7737_v41 = vadd.f32 %v7736_v30, %v7735_v0  ;;  %4960 = vmatprep.mubr.bf16.mxu0 %v11393_v48  ;;  %v4250_v37 = vsel %vm10783_vm8, %v6971_v1, %v4249_v12  ;;  %v4253_v19 = vsel %vm10783_vm8, %v4251_v13, %v4252_v42  ;;  %v8732_v0 = vld [vmem:[%s8890_s22 + $0x1a0] sm:$0xff]  ;;  %v8733_v13 = vld [vmem:[%s8890_s22 + $0x198] sm:$0xff] }
 0x2b0   : > { %v7738_v38 = vpop.f32.mrf.mxu1  ;;  %4679 = vmatmul.mubr.bf16.gmra.mxu1 %v11496_v43  ;;  %v7827_v34 = vpop.f32.mrf.mxu0  ;;  %v4256_v30 = vrot.slane %v8732_v0, 5  ;;  %v11528_v5 = vcombine.high %v4250_v37, %v4253_v19  ;;  %v6972_v42 = vrot.slane %v8733_v13, 9 }
 0x2b1   : > { %12861 = vst [vmem:[#allocation22_spill] sm:$0xff] %v11507_v4  ;;  %v11512_v2 = vadd.f32 %v7737_v41, %v12862_v33  ;;  %v7828_v18 = vadd.f32 %v7827_v34, %v7826_v36  ;;  %4686 = vmatprep.mubr.bf16.mxu1 %v11501_v29  ;;  %v11523_v34 = vcombine.low %v4243_v47, %v4246_v32  ;;  %v12864_v4 = vld [vmem:[#allocation33_spill] sm:$0xff] }
 0x2b2   : > { %v7739_v60 = vpop.f32.mrf.mxu1  ;;  %v7829_v50 = vpop.f32.mrf.mxu0  ;;  %12865 = vst [vmem:[#allocation33_spill] sm:$0xff] %v11528_v5  ;;  %v4258_v0 = vrot.slane %v4256_v30, 4 }
 0x2b3   : > { %v11521_v59 = vadd.f32 %v7828_v18, %v11418_v14  ;;  %v7740_v41 = vadd.f32 %v7739_v60, %v7738_v38  ;;  %v8734_v14 = vld [vmem:[%s8890_s22 + $0x1a8] sm:$0x11]  ;;  %v12867_v60 = vld [vmem:[#allocation38_spill] sm:$0xff]  ;;  %s7236_s22 = sshll.u32 %s12944_s23, 8 }
 0x2b4   : > { %v7741_v33 = vpop.f32.mrf.mxu1  ;;  %v7830_v36 = vpop.f32.mrf.mxu0  ;;  %v4259_v18 = vrot.slane %v8734_v14, 5  ;;  %v4257_v14 = vsel %vm10783_vm8, %v6972_v42, %v4256_v30  ;;  %s12135_s14 = scalar_lea.vmem %s12566_s6, %s7236_s22  ;;  %s12204_s17 = scalar_lea.vmem %s12565_s5, %s7236_s22 }
 0x2b5   : > { %12863 = vst [vmem:[#allocation29_spill] sm:$0xff] %v11521_v59  ;;  %v11526_v51 = vadd.f32 %v7740_v41, %v12864_v4  ;;  %v7831_v48 = vadd.f32 %v7830_v36, %v7829_v50  ;;  %v11549_v59 = vcombine.low %v4250_v37, %v4253_v19 }
 0x2b6   : > { %v7742_v12 = vpop.f32.mrf.mxu1  ;;  %v7832_v1 = vpop.f32.mrf.mxu0  ;;  %4961 = vmatmul.mubr.bf16.gmra.mxu0 %v11415_v45 }
 0x2b7   : > { %v11534_v38 = vadd.f32 %v7831_v48, %v11431_v9  ;;  %v7743_v47 = vadd.f32 %v7742_v12, %v7741_v33  ;;  %4968 = vmatprep.mubr.bf16.mxu0 %v11420_v44  ;;  %v4260_v48 = vsel %vm10783_vm8, %v4258_v0, %v4259_v18 }
 0x2b8   : > { %v7744_v32 = vpop.f32.mrf.mxu1  ;;  %4687 = vmatmul.mubr.bf16.gmra.mxu1 %v11523_v34  ;;  %v7833_v4 = vpop.f32.mrf.mxu0 }
 0x2b9   : > { %12866 = vst [vmem:[#allocation74_spill] sm:$0xff] %v11534_v38  ;;  %v11539_v50 = vadd.f32 %v7743_v47, %v12867_v60  ;;  %v7834_v41 = vadd.f32 %v7833_v4, %v7832_v1  ;;  %4694 = vmatprep.mubr.bf16.mxu1 %v11528_v5  ;;  %v12868_v47 = vld [vmem:[#allocation44_spill] sm:$0xff]  ;;  %v11554_v60 = vcombine.high %v4257_v14, %v4260_v48 }
 0x2ba   : > { %v7745_v36 = vpop.f32.mrf.mxu1  ;;  %v7835_v13 = vpop.f32.mrf.mxu0 }
 0x2bb   : > { %v11547_v9 = vadd.f32 %v7834_v41, %v11445_v16  ;;  %v7746_v33 = vadd.f32 %v7745_v36, %v7744_v32  ;;  %v11569_v41 = vcombine.low %v4257_v14, %v4260_v48  ;;  %v12869_v48 = vld [vmem:[#allocation4_spill] sm:$0xff] }
 0x2bc   : > { %v7747_v12 = vpop.f32.mrf.mxu1  ;;  %v7836_v38 = vpop.f32.mrf.mxu0 }
 0x2bd   : > { %v11552_v1 = vadd.f32 %v7746_v33, %v12868_v47  ;;  %v7837_v4 = vadd.f32 %v7836_v38, %v7835_v13 }
 0x2be   : > { %v7748_v5 = vpop.f32.mrf.mxu1  ;;  %v7838_v44 = vpop.f32.mrf.mxu0  ;;  %4969 = vmatmul.mubr.bf16.gmra.mxu0 %v11442_v40 }
 0x2bf   : > { %v11558_v17 = vadd.f32 %v7837_v4, %v11458_v54  ;;  %v7749_v16 = vadd.f32 %v7748_v5, %v7747_v12  ;;  %4976 = vmatprep.mubr.bf16.mxu0 %v11447_v49 }
 0x2c0   : > { %v7750_v30 = vpop.f32.mrf.mxu1  ;;  %4695 = vmatmul.mubr.bf16.gmra.mxu1 %v11549_v59  ;;  %v7839_v37 = vpop.f32.mrf.mxu0 }
 0x2c1   : > { %v11563_v19 = vadd.f32 %v7749_v16, %v11110_v15  ;;  %v7840_v42 = vadd.f32 %v7839_v37, %v7838_v44  ;;  %4702 = vmatprep.mubr.bf16.mxu1 %v11554_v60 }
 0x2c2   : > { %v7751_v0 = vpop.f32.mrf.mxu1  ;;  %v7841_v18 = vpop.f32.mrf.mxu0 }
 0x2c3   : > { %v11567_v38 = vadd.f32 %v7840_v42, %v11472_v35  ;;  %v7752_v54 = vadd.f32 %v7751_v0, %v7750_v30 }
 0x2c4   : > { %v7753_v32 = vpop.f32.mrf.mxu1  ;;  %v7842_v5 = vpop.f32.mrf.mxu0 }
 0x2c5   : > { %v11572_v36 = vadd.f32 %v7752_v54, %v11146_v58  ;;  %v7843_v13 = vadd.f32 %v7842_v5, %v7841_v18 }
 0x2c6   : > { %v7754_v33 = vpop.f32.mrf.mxu1  ;;  %v7844_v15 = vpop.f32.mrf.mxu0  ;;  %4977 = vmatmul.mubr.bf16.gmra.mxu0 %v11469_v52 }
 0x2c7   : > { %v11576_v44 = vadd.f32 %v7843_v13, %v11485_v27  ;;  %v7755_v12 = vadd.f32 %v7754_v33, %v7753_v32  ;;  %4984 = vmatprep.mubr.bf16.mxu0 %v11474_v22 }
 0x2c8   : > { %v7756_v35 = vpop.f32.mrf.mxu1  ;;  %4703 = vmatmul.mubr.bf16.gmra.mxu1 %v11569_v41  ;;  %v7845_v47 = vpop.f32.mrf.mxu0 }
 0x2c9   : > { %v11581_v14 = vadd.f32 %v7755_v12, %v11181_v20  ;;  %v7846_v58 = vadd.f32 %v7845_v47, %v7844_v15  ;;  %5258 = vmatprep.mubr.bf16.mxu1 %v12869_v48  ;;  %v12871_v12 = vld [vmem:[#allocation46_spill] sm:$0xff]  ;;  %v12873_v48 = vld [vmem:[#allocation48_spill] sm:$0xff] }
 0x2ca   : > { %v7757_v4 = vpop.f32.mrf.mxu1  ;;  %v7847_v16 = vpop.f32.mrf.mxu0 }
 0x2cb   : > { %v11585_v30 = vadd.f32 %v7846_v58, %v11499_v39  ;;  %v7758_v27 = vadd.f32 %v7757_v4, %v7756_v35  ;;  %v12870_v39 = vld [vmem:[#allocation10_spill] sm:$0xff]  ;;  %v12872_v35 = vld [vmem:[#allocation12_spill] sm:$0xff] }
 0x2cc   : > { %v7759_v37 = vpop.f32.mrf.mxu1  ;;  %v7848_v42 = vpop.f32.mrf.mxu0 }
 0x2cd   : > { %v11588_v0 = vadd.f32 %v7758_v27, %v11217_v24  ;;  %v7849_v18 = vadd.f32 %v7848_v42, %v7847_v16  ;;  %v12874_v42 = vld [vmem:[#allocation9_spill] sm:$0xff] }
 0x2ce   : > { %v7760_v54 = vpop.f32.mrf.mxu1  ;;  %v7850_v32 = vpop.f32.mrf.mxu0  ;;  %4985 = vmatmul.mubr.bf16.gmra.mxu0 %v11496_v43 }
 0x2cf   : > { %v11592_v20 = vadd.f32 %v7849_v18, %v11512_v2  ;;  %v7761_v5 = vadd.f32 %v7760_v54, %v7759_v37  ;;  %4992 = vmatprep.mubr.bf16.mxu0 %v11501_v29 }
 0x2d0   : > { %v7762_v13 = vpop.f32.mrf.mxu1  ;;  %5259 = vmatmul.mubr.bf16.vlgmr.msra.gmra.mxu1 %v12870_v39  ;;  %v7851_v33 = vpop.f32.mrf.mxu0 }
 0x2d1   : > { %v11597_v15 = vadd.f32 %v7761_v5, %v11252_v8  ;;  %v7852_v24 = vadd.f32 %v7851_v33, %v7850_v32  ;;  %8254 = vmatpush3.bf16.msra.mxu1 %v12871_v12  ;;  %5266 = vmatprep.mubr.bf16.mxu1 %v12872_v35  ;;  %v12875_v32 = vld [vmem:[#allocation52_spill] sm:$0xff] }
 0x2d2   : > { %v7763_v47 = vpop.f32.mrf.mxu1  ;;  %v7853_v58 = vpop.f32.mrf.mxu0  ;;  %8247 = vmatprep.subr.bf16.mxu1 %v12873_v48 }
 0x2d3   : > { %v11603_v2 = vadd.f32 %v7852_v24, %v11526_v51  ;;  %v7764_v4 = vadd.f32 %v7763_v47, %v7762_v13  ;;  %v12876_v24 = vld [vmem:[#allocation13_spill] sm:$0xff] }
 0x2d4   : > { %v7765_v16 = vpop.f32.mrf.mxu1  ;;  %v7854_v27 = vpop.f32.mrf.mxu0 }
 0x2d5   : > { %v11606_v37 = vadd.f32 %v7764_v4, %v11281_v21  ;;  %v7855_v8 = vadd.f32 %v7854_v27, %v7853_v58  ;;  %8255 = vmatpush3.bf16.msra.mxu1 %v12874_v42  ;;  %v12877_v58 = vld [vmem:[#allocation15_spill] sm:$0xff] }
 0x2d6   : > { %v7766_v18 = vpop.f32.mrf.mxu1  ;;  %v7856_v54 = vpop.f32.mrf.mxu0  ;;  %4993 = vmatmul.mubr.bf16.gmra.mxu0 %v11523_v34  ;;  %8248 = vmatprep.subr.bf16.mxu1 %v12875_v32  ;;  %v12878_v27 = vld [vmem:[#allocation19_spill] sm:$0xff] }
 0x2d7   : > { %v11612_v5 = vadd.f32 %v7855_v8, %v11539_v50  ;;  %v7767_v51 = vadd.f32 %v7766_v18, %v7765_v16  ;;  %5644 = vmatprep.mubr.bf16.mxu0 %v12872_v35  ;;  %v12879_v18 = vld [vmem:[#allocation5_spill] sm:$0xff] }
 0x2d8   : > { %v7768_v13 = vpop.f32.mrf.mxu1  ;;  %5267 = vmatmul.mubr.bf16.gmra.mxu1 %v10965_v11  ;;  %v7857_v21 = vpop.f32.mrf.mxu0 }
 0x2d9   : > { %v11617_v39 = vadd.f32 %v7767_v51, %v11311_v62  ;;  %v7858_v33 = vadd.f32 %v7857_v21, %v7856_v54  ;;  %5274 = vmatprep.mubr.bf16.mxu1 %v10969_v28  ;;  %8256 = vmatpush3.bf16.msra.mxu1 %v12876_v24  ;;  %v12880_v21 = vld [vmem:[#allocation57_spill] sm:$0xff]  ;;  %v12881_v24 = vld [vmem:[#allocation23_spill] sm:$0xff] }
 0x2da   : > { %v7769_v12 = vpop.f32.mrf.mxu1  ;;  %v7859_v47 = vpop.f32.mrf.mxu0  ;;  %8249 = vmatprep.subr.bf16.mxu1 %v12877_v58 }
 0x2db   : > { %v11623_v50 = vadd.f32 %v7858_v33, %v11552_v1  ;;  %v7770_v35 = vadd.f32 %v7769_v12, %v7768_v13 }
 0x2dc   : > { %v7771_v48 = vpop.f32.mrf.mxu1  ;;  %v7860_v4 = vpop.f32.mrf.mxu0 }
 0x2dd   : > { %v11626_v16 = vadd.f32 %v7770_v35, %v11333_v25  ;;  %v7861_v62 = vadd.f32 %v7860_v4, %v7859_v47  ;;  %8257 = vmatpush3.bf16.msra.mxu1 %v12878_v27  ;;  %v12882_v35 = vld [vmem:[#allocation28_spill] sm:$0xff] }
 0x2de   : > { %v7772_v8 = vpop.f32.mrf.mxu1  ;;  %v7862_v42 = vpop.f32.mrf.mxu0  ;;  %5645 = vmatmul.mubr.bf16.vlgmr.msra.gmra.mxu0 %v10965_v11  ;;  %8250 = vmatprep.subr.bf16.mxu1 %v12879_v18 }
 0x2df   : > { %v11632_v54 = vadd.f32 %v7861_v62, %v11563_v19  ;;  %v7773_v1 = vadd.f32 %v7772_v8, %v7771_v48  ;;  %5652 = vmatprep.mubr.bf16.mxu0 %v10969_v28  ;;  %v12883_v62 = vld [vmem:[#allocation59_spill] sm:$0xff] }
 0x2e0   : > { %v7774_v32 = vpop.f32.mrf.mxu1  ;;  %5275 = vmatmul.mubr.bf16.gmra.mxu1 %v11024_v7  ;;  %v7863_v25 = vpop.f32.mrf.mxu0 }
 0x2e1   : > { %v11637_v51 = vadd.f32 %v7773_v1, %v11348_v57  ;;  %v7864_v13 = vadd.f32 %v7863_v25, %v7862_v42  ;;  %5282 = vmatprep.mubr.bf16.mxu1 %v11028_v6  ;;  %8258 = vmatpush3.bf16.msra.mxu1 %v12880_v21 }
 0x2e2   : > { %v7775_v11 = vpop.f32.mrf.mxu1  ;;  %v7865_v33 = vpop.f32.mrf.mxu0  ;;  %8251 = vmatprep.subr.bf16.mxu1 %v12881_v24 }
 0x2e3   : > { %v11643_v19 = vadd.f32 %v7864_v13, %v11572_v36  ;;  %v7776_v28 = vadd.f32 %v7775_v11, %v7774_v32  ;;  %v12884_v32 = vld [vmem:[#allocation61_spill] sm:$0xff]  ;;  %v12885_v11 = vld [vmem:[#allocation62_spill] sm:$0xff] }
 0x2e4   : > { %v7777_v12 = vpop.f32.mrf.mxu1  ;;  %v7866_v47 = vpop.f32.mrf.mxu0 }
 0x2e5   : > { %v11646_v58 = vadd.f32 %v7776_v28, %v11359_v63  ;;  %v7867_v57 = vadd.f32 %v7866_v47, %v7865_v33  ;;  %8259 = vmatpush3.bf16.msra.mxu1 %v12882_v35  ;;  %v12887_v35 = vld [vmem:[#allocation54_spill] sm:$0xff] }
 0x2e6   : > { %v7778_v48 = vpop.f32.mrf.mxu1  ;;  %v7868_v4 = vpop.f32.mrf.mxu0  ;;  %5653 = vmatmul.mubr.bf16.gmra.mxu0 %v11024_v7  ;;  %8252 = vmatprep.subr.bf16.mxu1 %v12883_v62 }
 0x2e7   : > { %v11652_v27 = vadd.f32 %v7867_v57, %v11581_v14  ;;  %v7779_v36 = vadd.f32 %v7778_v48, %v7777_v12  ;;  %5660 = vmatprep.mubr.bf16.mxu0 %v11028_v6  ;;  %v12886_v12 = vld [vmem:[#allocation53_spill] sm:$0xff] }
 0x2e8   : > { %v7780_v8 = vpop.f32.mrf.mxu1  ;;  %5283 = vmatmul.mubr.bf16.gmra.mxu1 %v11080_v3  ;;  %v7869_v63 = vpop.f32.mrf.mxu0 }
 0x2e9   : > { %v11657_v42 = vadd.f32 %v7779_v36, %v11372_v23  ;;  %v7870_v18 = vadd.f32 %v7869_v63, %v7868_v4  ;;  %5290 = vmatprep.mubr.bf16.mxu1 %v11089_v55  ;;  %8260 = vmatpush3.bf16.msra.mxu1 %v11287_v31 }
 0x2ea   : > { %v7781_v7 = vpop.f32.mrf.mxu1  ;;  %v7871_v1 = vpop.f32.mrf.mxu0  ;;  %8253 = vmatprep.subr.bf16.mxu1 %v12884_v32 }
 0x2eb   : > { %v11663_v14 = vadd.f32 %v7870_v18, %v11588_v0  ;;  %v7782_v6 = vadd.f32 %v7781_v7, %v7780_v8 }
 0x2ec   : > { %v7783_v25 = vpop.f32.mrf.mxu1  ;;  %v7872_v13 = vpop.f32.mrf.mxu0 }
 0x2ed   : > { %v11666_v21 = vadd.f32 %v7782_v6, %v11386_v46  ;;  %v7873_v23 = vadd.f32 %v7872_v13, %v7871_v1  ;;  %8261 = vmatpush3.bf16.msra.mxu1 %v12885_v11 }
 0x2ee   : > { %v7784_v33 = vpop.f32.mrf.mxu1  ;;  %v7874_v24 = vpop.f32.mrf.mxu0  ;;  %5661 = vmatmul.mubr.bf16.gmra.mxu0 %v11080_v3 }
 0x2ef   : > { %v11671_v31 = vadd.f32 %v7873_v23, %v11597_v15  ;;  %v7785_v28 = vadd.f32 %v7784_v33, %v7783_v25  ;;  %5668 = vmatprep.mubr.bf16.mxu0 %v11089_v55  ;;  %v12889_v25 = vld [vmem:[#allocation7_spill] sm:$0xff] }
 0x2f0   : > { %v7786_v0 = vpop.f32.mrf.mxu1  ;;  %5291 = vmatmul.mubr.bf16.gmra.mxu1 %v12886_v12  ;;  %v7875_v47 = vpop.f32.mrf.mxu0 }
 0x2f1   : > { %v11676_v46 = vadd.f32 %v7785_v28, %v11399_v56  ;;  %v7876_v57 = vadd.f32 %v7875_v47, %v7874_v24  ;;  %5298 = vmatprep.mubr.bf16.mxu1 %v12887_v35 }
 0x2f2   : > { %v7787_v48 = vpop.f32.mrf.mxu1  ;;  %v7877_v4 = vpop.f32.mrf.mxu0 }
 0x2f3   : > { %v11680_v3 = vadd.f32 %v7876_v57, %v11606_v37  ;;  %v7788_v15 = vadd.f32 %v7787_v48, %v7786_v0  ;;  %v12888_v37 = vld [vmem:[#allocation21_spill] sm:$0xff] }
 0x2f4   : > { %v7789_v62 = vpop.f32.mrf.mxu1  ;;  %v7878_v36 = vpop.f32.mrf.mxu0 }
 0x2f5   : > { %v11683_v55 = vadd.f32 %v7788_v15, %v11413_v26  ;;  %v7879_v8 = vadd.f32 %v7878_v36, %v7877_v4  ;;  %v12891_v15 = vld [vmem:[#allocation18_spill] sm:$0xff] }
 0x2f6   : > { %v7790_v63 = vpop.f32.mrf.mxu1  ;;  %v7880_v18 = vpop.f32.mrf.mxu0  ;;  %5669 = vmatmul.mubr.bf16.gmra.mxu0 %v12886_v12 }
 0x2f7   : > { %v11687_v56 = vadd.f32 %v7879_v8, %v11617_v39  ;;  %v7791_v7 = vadd.f32 %v7790_v63, %v7789_v62  ;;  %5676 = vmatprep.mubr.bf16.mxu0 %v12887_v35 }
 0x2f8   : > { %v7792_v1 = vpop.f32.mrf.mxu1  ;;  %5299 = vmatmul.mubr.bf16.gmra.mxu1 %v12888_v37  ;;  %v7881_v32 = vpop.f32.mrf.mxu0 }
 0x2f9   : > { %v11692_v6 = vadd.f32 %v7791_v7, %v11426_v10  ;;  %v7882_v26 = vadd.f32 %v7881_v32, %v7880_v18  ;;  %5306 = vmatprep.mubr.bf16.mxu1 %v12889_v25  ;;  %v12892_v32 = vld [vmem:[#allocation64_spill] sm:$0xff] }
 0x2fa   : > { %v7793_v13 = vpop.f32.mrf.mxu1  ;;  %v7883_v23 = vpop.f32.mrf.mxu0 }
 0x2fb   : > { %v11696_v11 = vadd.f32 %v7882_v26, %v11626_v16  ;;  %v7794_v39 = vadd.f32 %v7793_v13, %v7792_v1  ;;  %v12890_v16 = vld [vmem:[#allocation60_spill] sm:$0xff]  ;;  %v12893_v13 = vld [vmem:[#allocation65_spill] sm:$0xff] }
 0x2fc   : > { %v7795_v33 = vpop.f32.mrf.mxu1  ;;  %v7884_v24 = vpop.f32.mrf.mxu0 }
 0x2fd   : > { %v11699_v28 = vadd.f32 %v7794_v39, %v11440_v53  ;;  %v7885_v0 = vadd.f32 %v7884_v24, %v7883_v23  ;;  %v12894_v39 = vld [vmem:[#allocation3_spill] sm:$0xff] }
 0x2fe   : > { %v7796_v12 = vpop.f32.mrf.mxu1  ;;  %v7886_v47 = vpop.f32.mrf.mxu0  ;;  %5677 = vmatmul.mubr.bf16.gmra.mxu0 %v12888_v37  ;;  %vm5871_vm11 = vcmp.ge.s32.totalorder %v12894_v39, 64 }
 0x2ff   : > { %v11703_v10 = vadd.f32 %v7885_v0, %v11637_v51  ;;  %v7797_v57 = vadd.f32 %v7796_v12, %v7795_v33  ;;  %5684 = vmatprep.mubr.bf16.mxu0 %v12889_v25 }
 0x300   : > { %v4568_v35 = vpop.f32.mrf.mxu1  ;;  %5307 = vmatmul.mubr.bf16.gmra.mxu1 %v12890_v16  ;;  %v7887_v48 = vpop.f32.mrf.mxu0 }
 0x301   : > { %v11708_v4 = vadd.f32 %v7797_v57, %v11453_v61  ;;  %v7888_v53 = vadd.f32 %v7887_v48, %v7886_v47  ;;  %5314 = vmatprep.mubr.bf16.mxu1 %v12891_v15  ;;  %v5033_v33 = vsel %vm1226_vm0, %v4568_v35, 0.0  ;;  %v12895_v57 = vld [vmem:[#allocation32_spill] sm:$0xff] }
 0x302   : > { %v4570_v62 = vpop.f32.mrf.mxu1  ;;  %v7889_v36 = vpop.f32.mrf.mxu0 }
 0x303   : > { %v11712_v8 = vadd.f32 %v7888_v53, %v11646_v58 }
 0x304   : > { %v4571_v51 = vpop.f32.mrf.mxu1  ;;  %v7890_v63 = vpop.f32.mrf.mxu0 }
 0x305   : > { %v7891_v18 = vadd.f32 %v7890_v63, %v7889_v36  ;;  %v12896_v36 = vld [vmem:[#allocation67_spill] sm:$0xff] }
 0x306   : > { %v4573_v7 = vpop.f32.mrf.mxu1  ;;  %v7892_v1 = vpop.f32.mrf.mxu0  ;;  %5685 = vmatmul.mubr.bf16.gmra.mxu0 %v12890_v16  ;;  %v5065_v16 = vadd.f32 %v5033_v33, %v12895_v57 }
 0x307   : > { %v11716_v37 = vadd.f32 %v7891_v18, %v11657_v42  ;;  %5692 = vmatprep.mubr.bf16.mxu0 %v12891_v15  ;;  %v5034_v15 = vsel %vm1226_vm0, %v4571_v51, 0.0  ;;  %v12898_v51 = vld [vmem:[#allocation25_spill] sm:$0xff] }
 0x308   : > { %v4576_v61 = vpop.f32.mrf.mxu1  ;;  %5315 = vmatmul.mubr.bf16.gmra.mxu1 %v12892_v32  ;;  %v7893_v26 = vpop.f32.mrf.mxu0 }
 0x309   : > { %v7894_v25 = vadd.f32 %v7893_v26, %v7892_v1  ;;  %5322 = vmatprep.mubr.bf16.mxu1 %v12893_v13  ;;  %v5419_v12 = vsel %vm1615_vm1, %v4576_v61, 0.0 }
 0x30a   : > { %v4578_v58 = vpop.f32.mrf.mxu1  ;;  %v7895_v23 = vpop.f32.mrf.mxu0 }
 0x30b   : > { %v11724_v24 = vadd.f32 %v7894_v25, %v11666_v21  ;;  %v5451_v21 = vadd.f32 %v5419_v12, %v5065_v16  ;;  %v5035_v58 = vsel %vm1226_vm0, %v4576_v61, 0.0 }
 0x30c   : > { %v4579_v0 = vpop.f32.mrf.mxu1  ;;  %v7896_v42 = vpop.f32.mrf.mxu0 }
 0x30d   : > { %v7897_v47 = vadd.f32 %v7896_v42, %v7895_v23  ;;  %v5420_v18 = vsel %vm1615_vm1, %v4579_v0, 0.0 }
 0x30e   : > { %v4581_v48 = vpop.f32.mrf.mxu1  ;;  %v7898_v53 = vpop.f32.mrf.mxu0  ;;  %5693 = vmatmul.mubr.bf16.gmra.mxu0 %v12892_v32  ;;  %v12897_v32 = vld [vmem:[#allocation68_spill] sm:$0xff] }
 0x30f   : > { %v11733_v35 = vadd.f32 %v7897_v47, %v11676_v46  ;;  %5700 = vmatprep.mubr.bf16.mxu0 %v12893_v13  ;;  %v5066_v46 = vadd.f32 %v5034_v15, %v12898_v51 }
 0x310   : > { %v4584_v62 = vpop.f32.mrf.mxu1  ;;  %5323 = vmatmul.mubr.bf16.gmra.mxu1 %v12896_v36  ;;  %v7899_v63 = vpop.f32.mrf.mxu0 }
 0x311   : > { %v7900_v7 = vadd.f32 %v7899_v63, %v7898_v53  ;;  %v5805_v1 = vsel %vm2004_vm4, %v4584_v62, 0.0  ;;  %5330 = vmatprep.mubr.bf16.mxu1 %v12897_v32  ;;  %v5452_v33 = vadd.f32 %v5420_v18, %v5066_v46  ;;  %v5421_v57 = vsel %vm1615_vm1, %v4584_v62, 0.0  ;;  %v12899_v53 = vld [vmem:[#allocation26_spill] sm:$0xff] }
 0x312   : > { %v4586_v26 = vpop.f32.mrf.mxu1  ;;  %v7901_v25 = vpop.f32.mrf.mxu0  ;;  %v5837_v13 = vadd.f32 %v5805_v1, %v5451_v21  ;;  %v5067_v15 = vadd.f32 %v5035_v58, %v12899_v53  ;;  %v5036_v63 = vsel %vm1226_vm0, %v4579_v0, 0.0  ;;  %v12900_v1 = vld [vmem:[#allocation69_spill] sm:$0xff] }
 0x313   : > { %v11746_v23 = vadd.f32 %v7900_v7, %v11683_v55 }
 0x314   : > { %v4587_v42 = vpop.f32.mrf.mxu1  ;;  %v6133_v12 = vsel %vm6132_vm9, %v5837_v13, 0.0  ;;  %v7902_v47 = vpop.f32.mrf.mxu0  ;;  %v5453_v26 = vadd.f32 %v5421_v57, %v5067_v15  ;;  %v12901_v13 = vld [vmem:[#allocation70_spill] sm:$0xff] }
 0x315   : > { %6134 = vadd.xlane.f32.xlu0 %v6133_v12  ;;  %v7903_v16 = vadd.f32 %v7902_v47, %v7901_v25  ;;  %v5806_v48 = vsel %vm2004_vm4, %v4587_v42, 0.0  ;;  %v5422_v25 = vsel %vm1615_vm1, %v4587_v42, 0.0  ;;  %v5037_v47 = vsel %vm1226_vm0, %v4584_v62, 0.0 }
 0x316   : > { %v4589_v21 = vpop.f32.mrf.mxu1  ;;  %v7904_v61 = vpop.f32.mrf.mxu0  ;;  %5701 = vmatmul.mubr.bf16.gmra.mxu0 %v12896_v36  ;;  %v5838_v55 = vadd.f32 %v5806_v48, %v5452_v33 }
 0x317   : > { %v11758_v18 = vadd.f32 %v7903_v16, %v11692_v6  ;;  %5708 = vmatprep.mubr.bf16.mxu0 %v12897_v32  ;;  %v12902_v6 = vld [vmem:[#allocation35_spill] sm:$0xff] }
 0x318   : > { %v4592_v7 = vpop.f32.mrf.mxu1  ;;  %5331 = vmatmul.mubr.bf16.gmra.mxu1 %v12900_v1  ;;  %v6136_v51 = vsel %vm6132_vm9, %v5838_v55, 0.0  ;;  %v7905_v46 = vpop.f32.mrf.mxu0  ;;  %v5068_v58 = vadd.f32 %v5036_v63, %v12902_v6  ;;  %v12903_v63 = vld [vmem:[#allocation37_spill] sm:$0xff] }
 0x319   : > { %6137 = vadd.xlane.f32.xlu0 %v6136_v51  ;;  %v7906_v36 = vadd.f32 %v7905_v46, %v7904_v61  ;;  %v5807_v0 = vsel %vm2004_vm4, %v4592_v7, 0.0  ;;  %5338 = vmatprep.mubr.bf16.mxu1 %v12901_v13  ;;  %v5423_v21 = vsel %vm1615_vm1, %v4592_v7, 0.0  ;;  %v5069_v51 = vadd.f32 %v5037_v47, %v12903_v63 }
 0x31a   : > { %v4594_v32 = vpop.f32.mrf.mxu1  ;;  %v7907_v33 = vpop.f32.mrf.mxu0  ;;  %v5839_v12 = vadd.f32 %v5807_v0, %v5453_v26  ;;  %v5454_v15 = vadd.f32 %v5422_v25, %v5068_v58  ;;  %v5038_v26 = vsel %vm1226_vm0, %v4587_v42, 0.0 }
 0x31b   : > { %v11772_v57 = vadd.f32 %v7906_v36, %v11699_v28  ;;  %v5455_v58 = vadd.f32 %v5423_v21, %v5069_v51 }
 0x31c   : > { %v4595_v16 = vpop.f32.mrf.mxu1  ;;  %v6139_v48 = vsel %vm6132_vm9, %v5839_v12, 0.0  ;;  %v7908_v53 = vpop.f32.mrf.mxu0 }
 0x31d   : > { %6140 = vadd.xlane.f32.xlu1 %v6139_v48  ;;  %v7909_v61 = vadd.f32 %v7908_v53, %v7907_v33  ;;  %v5808_v55 = vsel %vm2004_vm4, %v4595_v16, 0.0  ;;  %v5424_v32 = vsel %vm1615_vm1, %v4595_v16, 0.0  ;;  %v12904_v33 = vld [vmem:[#allocation71_spill] sm:$0xff]  ;;  %v5039_v53 = vsel %vm1226_vm0, %v4592_v7, 0.0 }
 0x31e   : > { %v4597_v46 = vpop.f32.mrf.mxu1  ;;  %v7926_v62 = vpop.f32.mrf.mxu0  ;;  %5709 = vmatmul.mubr.bf16.gmra.mxu0 %v12900_v1  ;;  %v5840_v28 = vadd.f32 %v5808_v55, %v5454_v15  ;;  %v12906_v15 = vld [vmem:[#allocation72_spill] sm:$0xff] }
 0x31f   : > { %v11784_v25 = vadd.f32 %v7909_v61, %v11708_v4  ;;  %5716 = vmatprep.mubr.bf16.mxu0 %v12901_v13  ;;  %v12905_v4 = vld [vmem:[#allocation27_spill] sm:$0xff] }
 0x320   : > { %v4600_v36 = vpop.f32.mrf.mxu1  ;;  %5339 = vmatmul.mubr.bf16.gmra.mxu1 %v11415_v45  ;;  %v6142_v0 = vsel %vm6132_vm9, %v5840_v28, 0.0  ;;  %v7927_v6 = vpop.f32.mrf.mxu0  ;;  %v5070_v12 = vadd.f32 %v5038_v26, %v12905_v4  ;;  %v12907_v26 = vld [vmem:[#allocation39_spill] sm:$0xff] }
 0x321   : > { %6143 = vadd.xlane.f32.xlu1 %v6142_v0  ;;  %v7928_v1 = vadd.f32 %v7927_v6, %v7926_v62  ;;  %v5809_v42 = vsel %vm2004_vm4, %v4600_v36, 0.0  ;;  %5346 = vmatprep.mubr.bf16.mxu1 %v12904_v33  ;;  %v5425_v46 = vsel %vm1615_vm1, %v4600_v36, 0.0  ;;  %v5071_v0 = vadd.f32 %v5039_v53, %v12907_v26  ;;  %v12909_v53 = vld [vmem:[#allocation43_spill] sm:$0xff] }
 0x322   : > { %v4602_v13 = vpop.f32.mrf.mxu1  ;;  %v7929_v47 = vpop.f32.mrf.mxu0  ;;  %v5841_v48 = vadd.f32 %v5809_v42, %v5455_v58  ;;  %v5456_v51 = vadd.f32 %v5424_v32, %v5070_v12  ;;  %v12908_v42 = vld [vmem:[#allocation73_spill] sm:$0xff] }
 0x323   : > { %v11798_v21 = vadd.f32 %v7928_v1, %v12906_v15  ;;  %v5040_v1 = vsel %vm1226_vm0, %v4595_v16, 0.0 }
 0x324   : > { %v4603_v61 = vpop.f32.mrf.mxu1  ;;  %v6145_v55 = vsel %vm6132_vm9, %v5841_v48, 0.0  ;;  %v7930_v63 = vpop.f32.mrf.mxu0  ;;  %v5072_v15 = vadd.f32 %v5040_v1, %v12909_v53 }
 0x325   : > { %6146 = vadd.xlane.f32.xlu0 %v6145_v55  ;;  %v7931_v62 = vadd.f32 %v7930_v63, %v7929_v47  ;;  %v5810_v28 = vsel %vm2004_vm4, %v4603_v61, 0.0  ;;  %v5457_v47 = vadd.f32 %v5425_v46, %v5071_v0  ;;  %v5426_v48 = vsel %vm1615_vm1, %v4603_v61, 0.0 }
 0x326   : > { %v4605_v6 = vpop.f32.mrf.mxu1  ;;  %v7932_v7 = vpop.f32.mrf.mxu0  ;;  %5717 = vmatmul.mubr.bf16.gmra.mxu0 %v11415_v45  ;;  %v5842_v58 = vadd.f32 %v5810_v28, %v5456_v51  ;;  %v5041_v51 = vsel %vm1226_vm0, %v4600_v36, 0.0 }
 0x327   : > { %v11810_v32 = vadd.f32 %v7931_v62, %v12908_v42  ;;  %5724 = vmatprep.mubr.bf16.mxu0 %v12904_v33  ;;  %v12910_v62 = vld [vmem:[#allocation16_spill] sm:$0xff]  ;;  %v5458_v6 = vadd.f32 %v5426_v48, %v5072_v15  ;;  %v12911_v42 = vld [vmem:[#allocation34_spill] sm:$0xff] }
 0x328   : > { %v4608_v4 = vpop.f32.mrf.mxu1  ;;  %5347 = vmatmul.mubr.bf16.gmra.mxu1 %v11442_v40  ;;  %v6148_v12 = vsel %vm6132_vm9, %v5842_v58, 0.0  ;;  %v7933_v13 = vpop.f32.mrf.mxu0 }
 0x329   : > { %6149 = vadd.xlane.f32.xlu1 %v6148_v12  ;;  %v7934_v45 = vadd.f32 %v7933_v13, %v7932_v7  ;;  %v5811_v16 = vsel %vm2004_vm4, %v4608_v4, 0.0  ;;  %5354 = vmatprep.mubr.bf16.mxu1 %v11447_v49  ;;  %v5427_v7 = vsel %vm1615_vm1, %v4608_v4, 0.0  ;;  %v5073_v12 = vadd.f32 %v5041_v51, %v12911_v42  ;;  %v12913_v51 = vld [vmem:[#allocation45_spill] sm:$0xff] }
 0x32a   : > { %v4610_v33 = vpop.f32.mrf.mxu1  ;;  %v7935_v55 = vpop.f32.mrf.mxu0  ;;  %v5843_v63 = vadd.f32 %v5811_v16, %v5457_v47  ;;  %v12912_v16 = vld [vmem:[#allocation22_spill] sm:$0xff] }
 0x32b   : > { %v11824_v46 = vadd.f32 %v7934_v45, %v12910_v62  ;;  %v5042_v45 = vsel %vm1226_vm0, %v4603_v61, 0.0 }
 0x32c   : > { %v4611_v28 = vpop.f32.mrf.mxu1  ;;  %v6151_v26 = vsel %vm6132_vm9, %v5843_v63, 0.0  ;;  %v7936_v0 = vpop.f32.mrf.mxu0  ;;  %v5074_v62 = vadd.f32 %v5042_v45, %v12913_v51 }
 0x32d   : > { %6152 = vadd.xlane.f32.xlu0 %v6151_v26  ;;  %v7937_v58 = vadd.f32 %v7936_v0, %v7935_v55  ;;  %v5812_v1 = vsel %vm2004_vm4, %v4611_v28, 0.0  ;;  %v5459_v55 = vadd.f32 %v5427_v7, %v5073_v12  ;;  %v5428_v63 = vsel %vm1615_vm1, %v4611_v28, 0.0 }
 0x32e   : > { %v4613_v13 = vpop.f32.mrf.mxu1  ;;  %v7938_v36 = vpop.f32.mrf.mxu0  ;;  %5725 = vmatmul.mubr.bf16.gmra.mxu0 %v11442_v40  ;;  %v5844_v47 = vadd.f32 %v5812_v1, %v5458_v6  ;;  %v5043_v6 = vsel %vm1226_vm0, %v4608_v4, 0.0 }
 0x32f   : > { %v11836_v48 = vadd.f32 %v7937_v58, %v12912_v16  ;;  %5732 = vmatprep.mubr.bf16.mxu0 %v11447_v49  ;;  %v12914_v58 = vld [vmem:[#allocation29_spill] sm:$0xff]  ;;  %v5460_v13 = vadd.f32 %v5428_v63, %v5074_v62  ;;  %v12915_v16 = vld [vmem:[#allocation47_spill] sm:$0xff] }
 0x330   : > { %v4616_v53 = vpop.f32.mrf.mxu1  ;;  %5355 = vmatmul.mubr.bf16.gmra.mxu1 %v11469_v52  ;;  %v6154_v15 = vsel %vm6132_vm9, %v5844_v47, 0.0  ;;  %v7939_v33 = vpop.f32.mrf.mxu0 }
 0x331   : > { %6155 = vadd.xlane.f32.xlu1 %v6154_v15  ;;  %v7940_v40 = vadd.f32 %v7939_v33, %v7938_v36  ;;  %v5813_v61 = vsel %vm2004_vm4, %v4616_v53, 0.0  ;;  %5362 = vmatprep.mubr.bf16.mxu1 %v11474_v22  ;;  %v5429_v36 = vsel %vm1615_vm1, %v4616_v53, 0.0  ;;  %v5075_v15 = vadd.f32 %v5043_v6, %v12915_v16  ;;  %v12917_v6 = vld [vmem:[#allocation41_spill] sm:$0xff] }
 0x332   : > { %v4618_v49 = vpop.f32.mrf.mxu1  ;;  %v7941_v26 = vpop.f32.mrf.mxu0  ;;  %v5845_v0 = vadd.f32 %v5813_v61, %v5459_v55  ;;  %v12916_v61 = vld [vmem:[#allocation74_spill] sm:$0xff] }
 0x333   : > { %v11850_v7 = vadd.f32 %v7940_v40, %v12914_v58  ;;  %v5044_v40 = vsel %vm1226_vm0, %v4611_v28, 0.0 }
 0x334   : > { %v4619_v1 = vpop.f32.mrf.mxu1  ;;  %v6157_v42 = vsel %vm6132_vm9, %v5845_v0, 0.0  ;;  %v7942_v12 = vpop.f32.mrf.mxu0  ;;  %v5076_v58 = vadd.f32 %v5044_v40, %v12917_v6  ;;  %v12918_v40 = vld [vmem:[#allocation42_spill] sm:$0xff] }
 0x335   : > { %6158 = vadd.xlane.f32.xlu0 %v6157_v42  ;;  %v7943_v47 = vadd.f32 %v7942_v12, %v7941_v26  ;;  %v5814_v45 = vsel %vm2004_vm4, %v4619_v1, 0.0  ;;  %v5461_v26 = vadd.f32 %v5429_v36, %v5075_v15  ;;  %v5430_v0 = vsel %vm1615_vm1, %v4619_v1, 0.0 }
 0x336   : > { %v4621_v33 = vpop.f32.mrf.mxu1  ;;  %v7944_v4 = vpop.f32.mrf.mxu0  ;;  %5733 = vmatmul.mubr.bf16.gmra.mxu0 %v11469_v52  ;;  %v5846_v55 = vadd.f32 %v5814_v45, %v5460_v13  ;;  %v5045_v13 = vsel %vm1226_vm0, %v4616_v53, 0.0  ;;  %v5462_v15 = vadd.f32 %v5430_v0, %v5076_v58 }
 0x337   : > { %v11862_v63 = vadd.f32 %v7943_v47, %v12916_v61  ;;  %5740 = vmatprep.mubr.bf16.mxu0 %v11474_v22  ;;  %v5077_v61 = vadd.f32 %v5045_v13, %v12918_v40 }
 0x338   : > { %v4624_v51 = vpop.f32.mrf.mxu1  ;;  %5363 = vmatmul.mubr.bf16.gmra.mxu1 %v11496_v43  ;;  %v6160_v62 = vsel %vm6132_vm9, %v5846_v55, 0.0  ;;  %v7945_v49 = vpop.f32.mrf.mxu0 }
 0x339   : > { %6161 = vadd.xlane.f32.xlu1 %v6160_v62  ;;  %v7946_v52 = vadd.f32 %v7945_v49, %v7944_v4  ;;  %v5815_v28 = vsel %vm2004_vm4, %v4624_v51, 0.0  ;;  %5370 = vmatprep.mubr.bf16.mxu1 %v11501_v29  ;;  %v5431_v33 = vsel %vm1615_vm1, %v4624_v51, 0.0  ;;  %v5046_v49 = vsel %vm1226_vm0, %v4619_v1, 0.0 }
 0x33a   : > { %v4626_v22 = vpop.f32.mrf.mxu1  ;;  %v7947_v42 = vpop.f32.mrf.mxu0  ;;  %v5847_v12 = vadd.f32 %v5815_v28, %v5461_v26  ;;  %v5463_v6 = vadd.f32 %v5431_v33, %v5077_v61 }
 0x33b   : > { %v11876_v36 = vadd.f32 %v7946_v52, %v11547_v9  ;;  %v12919_v22 = vld [vmem:[#allocation33_spill] sm:$0xff] }
 0x33c   : > { %v4627_v47 = vpop.f32.mrf.mxu1  ;;  %v6163_v45 = vsel %vm6132_vm9, %v5847_v12, 0.0  ;;  %v7948_v16 = vpop.f32.mrf.mxu0 }
 0x33d   : > { %6164 = vadd.xlane.f32.xlu0 %v6163_v45  ;;  %v7949_v4 = vadd.f32 %v7948_v16, %v7947_v42  ;;  %v5816_v55 = vsel %vm2004_vm4, %v4627_v47, 0.0  ;;  %v5432_v58 = vsel %vm1615_vm1, %v4627_v47, 0.0  ;;  %v5047_v45 = vsel %vm1226_vm0, %v4624_v51, 0.0 }
 0x33e   : > { %v4629_v62 = vpop.f32.mrf.mxu1  ;;  %v7950_v53 = vpop.f32.mrf.mxu0  ;;  %5741 = vmatmul.mubr.bf16.gmra.mxu0 %v11496_v43  ;;  %v5848_v9 = vadd.f32 %v5816_v55, %v5462_v15 }
 0x33f   : > { %v11888_v26 = vadd.f32 %v7949_v4, %v11558_v17  ;;  %5748 = vmatprep.mubr.bf16.mxu0 %v11501_v29  ;;  %v12920_v17 = vld [vmem:[#allocation49_spill] sm:$0xff] }
 0x340   : > { %v4632_v0 = vpop.f32.mrf.mxu1  ;;  %5371 = vmatmul.mubr.bf16.gmra.mxu1 %v11523_v34  ;;  %v6166_v52 = vsel %vm6132_vm9, %v5848_v9, 0.0  ;;  %v7951_v28 = vpop.f32.mrf.mxu0  ;;  %v5078_v42 = vadd.f32 %v5046_v49, %v12920_v17 }
 0x341   : > { %6167 = vadd.xlane.f32.xlu1 %v6166_v52  ;;  %v7952_v43 = vadd.f32 %v7951_v28, %v7950_v53  ;;  %v5817_v1 = vsel %vm2004_vm4, %v4632_v0, 0.0  ;;  %5378 = vmatprep.mubr.bf16.mxu1 %v12919_v22  ;;  %v5433_v40 = vsel %vm1615_vm1, %v4632_v0, 0.0  ;;  %v12921_v53 = vld [vmem:[#allocation51_spill] sm:$0xff]  ;;  %v5048_v52 = vsel %vm1226_vm0, %v4627_v47, 0.0 }
 0x342   : > { %v4634_v29 = vpop.f32.mrf.mxu1  ;;  %v7953_v12 = vpop.f32.mrf.mxu0  ;;  %v5849_v13 = vadd.f32 %v5817_v1, %v5463_v6  ;;  %v5464_v55 = vadd.f32 %v5432_v58, %v5078_v42  ;;  %v5079_v9 = vadd.f32 %v5047_v45, %v12921_v53  ;;  %v12923_v53 = vld [vmem:[#allocation8_spill] sm:$0xff] }
 0x343   : > { %v11902_v16 = vadd.f32 %v7952_v43, %v11567_v38 }
 0x344   : > { %v4635_v15 = vpop.f32.mrf.mxu1  ;;  %v6169_v33 = vsel %vm6132_vm9, %v5849_v13, 0.0  ;;  %v7954_v4 = vpop.f32.mrf.mxu0  ;;  %v5465_v1 = vadd.f32 %v5433_v40, %v5079_v9  ;;  %v5049_v13 = vsel %vm1226_vm0, %v4632_v0, 0.0 }
 0x345   : > { %6170 = vadd.xlane.f32.xlu0 %v6169_v33  ;;  %v7955_v61 = vadd.f32 %v7954_v4, %v7953_v12  ;;  %v5818_v62 = vsel %vm2004_vm4, %v4635_v15, 0.0  ;;  %v5434_v17 = vsel %vm1615_vm1, %v4635_v15, 0.0  ;;  %v5081_v9 = vadd.f32 %v5049_v13, %v12923_v53 }
 0x346   : > { %v4637_v49 = vpop.f32.mrf.mxu1  ;;  %v7956_v51 = vpop.f32.mrf.mxu0  ;;  %5749 = vmatmul.mubr.bf16.gmra.mxu0 %v11523_v34  ;;  %v5850_v38 = vadd.f32 %v5818_v62, %v5464_v55 }
 0x347   : > { %v11914_v28 = vadd.f32 %v7955_v61, %v11576_v44  ;;  %5756 = vmatprep.mubr.bf16.mxu0 %v12919_v22  ;;  %v12922_v44 = vld [vmem:[#allocation6_spill] sm:$0xff] }
 0x348   : > { %v4640_v6 = vpop.f32.mrf.mxu1  ;;  %5379 = vmatmul.mubr.bf16.gmra.mxu1 %v11549_v59  ;;  %v6172_v58 = vsel %vm6132_vm9, %v5850_v38, 0.0  ;;  %v7957_v43 = vpop.f32.mrf.mxu0  ;;  %v5080_v42 = vadd.f32 %v5048_v52, %v12922_v44 }
 0x349   : > { %6173 = vadd.xlane.f32.xlu1 %v6172_v58  ;;  %v7958_v34 = vadd.f32 %v7957_v43, %v7956_v51  ;;  %v5819_v47 = vsel %vm2004_vm4, %v4640_v6, 0.0  ;;  %5764 = vmatprep.mubr.bf16.mxu1 %v11554_v60  ;;  %v5435_v61 = vsel %vm1615_vm1, %v4640_v6, 0.0  ;;  %v5050_v51 = vsel %vm1226_vm0, %v4635_v15, 0.0 }
 0x34a   : > { %v4642_v22 = vpop.f32.mrf.mxu1  ;;  %v7959_v29 = vpop.f32.mrf.mxu0  ;;  %v5851_v12 = vadd.f32 %v5819_v47, %v5465_v1  ;;  %v5466_v40 = vadd.f32 %v5434_v17, %v5080_v42  ;;  %v5467_v1 = vadd.f32 %v5435_v61, %v5081_v9  ;;  %v12924_v47 = vld [vmem:[#allocation14_spill] sm:$0xff] }
 0x34b   : > { %v11928_v45 = vadd.f32 %v7958_v34, %v11585_v30  ;;  %v5082_v15 = vadd.f32 %v5050_v51, %v12924_v47 }
 0x34c   : > { %v4643_v33 = vpop.f32.mrf.mxu1  ;;  %v6175_v4 = vsel %vm6132_vm9, %v5851_v12, 0.0  ;;  %v7960_v55 = vpop.f32.mrf.mxu0 }
 0x34d   : > { %6176 = vadd.xlane.f32.xlu0 %v6175_v4  ;;  %v7961_v60 = vadd.f32 %v7960_v55, %v7959_v29  ;;  %v5820_v62 = vsel %vm2004_vm4, %v4643_v33, 0.0  ;;  %v5436_v17 = vsel %vm1615_vm1, %v4643_v33, 0.0 }
 0x34e   : > { %v4645_v49 = vpop.f32.mrf.mxu1  ;;  %v7962_v0 = vpop.f32.mrf.mxu0  ;;  %5757 = vmatmul.mubr.bf16.gmra.mxu0 %v11549_v59  ;;  %v5852_v30 = vadd.f32 %v5820_v62, %v5466_v40  ;;  %v5468_v4 = vadd.f32 %v5436_v17, %v5082_v15 }
 0x34f   : > { %v11940_v38 = vadd.f32 %v7961_v60, %v11592_v20  ;;  %v12925_v60 = vld [vmem:[#allocation20_spill] sm:$0xff] }
 0x350   : > { %v4648_v52 = vpop.f32.mrf.mxu1  ;;  %5765 = vmatmul.mubr.bf16.vlgmr.msra.gmra.mxu1 %v11569_v41  ;;  %v6178_v58 = vsel %vm6132_vm9, %v5852_v30, 0.0  ;;  %v7963_v43 = vpop.f32.mrf.mxu0  ;;  %v5051_v41 = vsel %vm1226_vm0, %v4640_v6, 0.0 }
 0x351   : > { %6179 = vadd.xlane.f32.xlu1 %v6178_v58  ;;  %v7964_v34 = vadd.f32 %v7963_v43, %v7962_v0  ;;  %v5821_v59 = vsel %vm2004_vm4, %v4648_v52, 0.0  ;;  %v5437_v55 = vsel %vm1615_vm1, %v4648_v52, 0.0  ;;  %v5083_v62 = vadd.f32 %v5051_v41, %v12925_v60 }
 0x352   : > { %v4650_v44 = vpop.f32.mrf.mxu1  ;;  %v7965_v20 = vpop.f32.mrf.mxu0  ;;  %v5853_v42 = vadd.f32 %v5821_v59, %v5467_v1 }
 0x353   : > { %v11952_v22 = vadd.f32 %v7964_v34, %v11603_v2  ;;  %v5052_v2 = vsel %vm1226_vm0, %v4643_v33, 0.0  ;;  %v5469_v58 = vadd.f32 %v5437_v55, %v5083_v62  ;;  %v12926_v34 = vld [vmem:[#allocation24_spill] sm:$0xff] }
 0x354   : > { %v4651_v29 = vpop.f32.mrf.mxu1  ;;  %v6181_v12 = vsel %vm6132_vm9, %v5853_v42, 0.0  ;;  %v7966_v13 = vpop.f32.mrf.mxu0  ;;  %v5084_v59 = vadd.f32 %v5052_v2, %v12926_v34 }
 0x355   : > { %6182 = vadd.xlane.f32.xlu0 %v6181_v12  ;;  %v7967_v40 = vadd.f32 %v7966_v13, %v7965_v20  ;;  %v5822_v61 = vsel %vm2004_vm4, %v4651_v29, 0.0  ;;  %v5438_v43 = vsel %vm1615_vm1, %v4651_v29, 0.0 }
 0x356   : > { %v4653_v53 = vpop.f32.mrf.mxu1  ;;  %v7968_v6 = vpop.f32.mrf.mxu0  ;;  %v5854_v9 = vadd.f32 %v5822_v61, %v5468_v4  ;;  %v5470_v12 = vadd.f32 %v5438_v43, %v5084_v59 }
 0x357   : > { %v11963_v49 = vadd.f32 %v7967_v40, %v11612_v5  ;;  %v5053_v5 = vsel %vm1226_vm0, %v4648_v52, 0.0  ;;  %v12927_v40 = vld [vmem:[#allocation31_spill] sm:$0xff] }
 0x358   : > { %v4656_v0 = vpop.f32.mrf.mxu1  ;;  %v6184_v30 = vsel %vm6132_vm9, %v5854_v9, 0.0  ;;  %v7969_v51 = vpop.f32.mrf.mxu0  ;;  %v5085_v61 = vadd.f32 %v5053_v5, %v12927_v40 }
 0x359   : > { %6185 = vadd.xlane.f32.xlu1 %v6184_v30  ;;  %v7970_v1 = vadd.f32 %v7969_v51, %v7968_v6  ;;  %v5823_v17 = vsel %vm2004_vm4, %v4656_v0, 0.0  ;;  %v5439_v13 = vsel %vm1615_vm1, %v4656_v0, 0.0 }
 0x35a   : > { %v4658_v47 = vpop.f32.mrf.mxu1  ;;  %v7971_v33 = vpop.f32.mrf.mxu0  ;;  %v5855_v15 = vadd.f32 %v5823_v17, %v5469_v58  ;;  %v5471_v30 = vadd.f32 %v5439_v13, %v5085_v61 }
 0x35b   : > { %v11974_v44 = vadd.f32 %v7970_v1, %v11623_v50  ;;  %v5054_v50 = vsel %vm1226_vm0, %v4651_v29, 0.0  ;;  %v12928_v1 = vld [vmem:[#allocation36_spill] sm:$0xff] }
 0x35c   : > { %v4659_v20 = vpop.f32.mrf.mxu1  ;;  %v6187_v42 = vsel %vm6132_vm9, %v5855_v15, 0.0  ;;  %v7972_v41 = vpop.f32.mrf.mxu0  ;;  %v5086_v17 = vadd.f32 %v5054_v50, %v12928_v1 }
 0x35d   : > { %6188 = vadd.xlane.f32.xlu0 %v6187_v42  ;;  %v7973_v4 = vadd.f32 %v7972_v41, %v7971_v33  ;;  %v5824_v55 = vsel %vm2004_vm4, %v4659_v20, 0.0  ;;  %v5440_v51 = vsel %vm1615_vm1, %v4659_v20, 0.0 }
 0x35e   : > { %v4661_v60 = vpop.f32.mrf.mxu1  ;;  %v7974_v52 = vpop.f32.mrf.mxu0  ;;  %v5856_v62 = vadd.f32 %v5824_v55, %v5470_v12  ;;  %v5472_v42 = vadd.f32 %v5440_v51, %v5086_v17 }
 0x35f   : > { %v11985_v53 = vadd.f32 %v7973_v4, %v11632_v54  ;;  %v5055_v54 = vsel %vm1226_vm0, %v4656_v0, 0.0  ;;  %v12929_v4 = vld [vmem:[#allocation40_spill] sm:$0xff] }
 0x360   : > { %v4664_v6 = vpop.f32.mrf.mxu1  ;;  %v6190_v9 = vsel %vm6132_vm9, %v5856_v62, 0.0  ;;  %v7975_v2 = vpop.f32.mrf.mxu0  ;;  %v5087_v55 = vadd.f32 %v5055_v54, %v12929_v4 }
 0x361   : > { %6191 = vadd.xlane.f32.xlu1 %v6190_v9  ;;  %v7976_v58 = vadd.f32 %v7975_v2, %v7974_v52  ;;  %v5825_v43 = vsel %vm2004_vm4, %v4664_v6, 0.0  ;;  %v5441_v41 = vsel %vm1615_vm1, %v4664_v6, 0.0 }
 0x362   : > { %v4666_v34 = vpop.f32.mrf.mxu1  ;;  %v7977_v29 = vpop.f32.mrf.mxu0  ;;  %v5857_v59 = vadd.f32 %v5825_v43, %v5471_v30  ;;  %v5473_v9 = vadd.f32 %v5441_v41, %v5087_v55 }
 0x363   : > { %v11996_v47 = vadd.f32 %v7976_v58, %v11643_v19  ;;  %v5056_v19 = vsel %vm1226_vm0, %v4659_v20, 0.0  ;;  %v12930_v58 = vld [vmem:[#allocation50_spill] sm:$0xff] }
 0x364   : > { %v4667_v33 = vpop.f32.mrf.mxu1  ;;  %v6193_v15 = vsel %vm6132_vm9, %v5857_v59, 0.0  ;;  %v7978_v5 = vpop.f32.mrf.mxu0  ;;  %v5088_v43 = vadd.f32 %v5056_v19, %v12930_v58 }
 0x365   : > { %6194 = vadd.xlane.f32.xlu0 %v6193_v15  ;;  %v7979_v12 = vadd.f32 %v7978_v5, %v7977_v29  ;;  %v5826_v13 = vsel %vm2004_vm4, %v4667_v33, 0.0  ;;  %v5442_v2 = vsel %vm1615_vm1, %v4667_v33, 0.0 }
 0x366   : > { %v4669_v40 = vpop.f32.mrf.mxu1  ;;  %v7980_v0 = vpop.f32.mrf.mxu0  ;;  %v5858_v61 = vadd.f32 %v5826_v13, %v5472_v42  ;;  %v5474_v15 = vadd.f32 %v5442_v2, %v5088_v43 }
 0x367   : > { %v12007_v60 = vadd.f32 %v7979_v12, %v11652_v27  ;;  %v5057_v27 = vsel %vm1226_vm0, %v4664_v6, 0.0  ;;  %v12931_v12 = vld [vmem:[#allocation11_spill] sm:$0xff] }
 0x368   : > { %v4672_v52 = vpop.f32.mrf.mxu1  ;;  %v6196_v62 = vsel %vm6132_vm9, %v5858_v61, 0.0  ;;  %v7981_v50 = vpop.f32.mrf.mxu0  ;;  %v5089_v13 = vadd.f32 %v5057_v27, %v12931_v12 }
 0x369   : > { %6197 = vadd.xlane.f32.xlu1 %v6196_v62  ;;  %v7982_v30 = vadd.f32 %v7981_v50, %v7980_v0  ;;  %v5827_v51 = vsel %vm2004_vm4, %v4672_v52, 0.0  ;;  %v5443_v5 = vsel %vm1615_vm1, %v4672_v52, 0.0 }
 0x36a   : > { %v4674_v1 = vpop.f32.mrf.mxu1  ;;  %v7983_v20 = vpop.f32.mrf.mxu0  ;;  %v5859_v17 = vadd.f32 %v5827_v51, %v5473_v9  ;;  %v5475_v62 = vadd.f32 %v5443_v5, %v5089_v13 }
 0x36b   : > { %v12018_v34 = vadd.f32 %v7982_v30, %v11663_v14  ;;  %v5058_v14 = vsel %vm1226_vm0, %v4667_v33, 0.0  ;;  %v12932_v30 = vld [vmem:[#allocation55_spill] sm:$0xff] }
 0x36c   : > { %v4675_v29 = vpop.f32.mrf.mxu1  ;;  %v6199_v59 = vsel %vm6132_vm9, %v5859_v17, 0.0  ;;  %v7984_v54 = vpop.f32.mrf.mxu0  ;;  %v5090_v51 = vadd.f32 %v5058_v14, %v12932_v30 }
 0x36d   : > { %6200 = vadd.xlane.f32.xlu0 %v6199_v59  ;;  %v7985_v42 = vadd.f32 %v7984_v54, %v7983_v20  ;;  %v5828_v41 = vsel %vm2004_vm4, %v4675_v29, 0.0  ;;  %v5444_v50 = vsel %vm1615_vm1, %v4675_v29, 0.0 }
 0x36e   : > { %v4677_v4 = vpop.f32.mrf.mxu1  ;;  %v7986_v6 = vpop.f32.mrf.mxu0  ;;  %v5860_v55 = vadd.f32 %v5828_v41, %v5474_v15  ;;  %v5476_v59 = vadd.f32 %v5444_v50, %v5090_v51 }
 0x36f   : > { %v12029_v40 = vadd.f32 %v7985_v42, %v11671_v31  ;;  %v5059_v31 = vsel %vm1226_vm0, %v4672_v52, 0.0  ;;  %v12933_v42 = vld [vmem:[#allocation56_spill] sm:$0xff] }
 0x370   : > { %v4680_v0 = vpop.f32.mrf.mxu1  ;;  %v6202_v61 = vsel %vm6132_vm9, %v5860_v55, 0.0  ;;  %v7987_v19 = vpop.f32.mrf.mxu0  ;;  %v5091_v41 = vadd.f32 %v5059_v31, %v12933_v42 }
 0x371   : > { %6203 = vadd.xlane.f32.xlu1 %v6202_v61  ;;  %v7988_v9 = vadd.f32 %v7987_v19, %v7986_v6  ;;  %v5829_v2 = vsel %vm2004_vm4, %v4680_v0, 0.0  ;;  %v5445_v54 = vsel %vm1615_vm1, %v4680_v0, 0.0 }
 0x372   : > { %v4682_v58 = vpop.f32.mrf.mxu1  ;;  %v7989_v33 = vpop.f32.mrf.mxu0  ;;  %v5861_v43 = vadd.f32 %v5829_v2, %v5475_v62  ;;  %v5477_v61 = vadd.f32 %v5445_v54, %v5091_v41 }
 0x373   : > { %v12040_v1 = vadd.f32 %v7988_v9, %v11680_v3  ;;  %v5060_v3 = vsel %vm1226_vm0, %v4675_v29, 0.0  ;;  %v12934_v9 = vld [vmem:[#allocation58_spill] sm:$0xff] }
 0x374   : > { %v4683_v20 = vpop.f32.mrf.mxu1  ;;  %v6205_v17 = vsel %vm6132_vm9, %v5861_v43, 0.0  ;;  %v7990_v27 = vpop.f32.mrf.mxu0  ;;  %v5092_v2 = vadd.f32 %v5060_v3, %v12934_v9 }
 0x375   : > { %6206 = vadd.xlane.f32.xlu0 %v6205_v17  ;;  %v7991_v15 = vadd.f32 %v7990_v27, %v7989_v33  ;;  %v5830_v5 = vsel %vm2004_vm4, %v4683_v20, 0.0  ;;  %v5446_v19 = vsel %vm1615_vm1, %v4683_v20, 0.0 }
 0x376   : > { %v4685_v12 = vpop.f32.mrf.mxu1  ;;  %v7992_v52 = vpop.f32.mrf.mxu0  ;;  %v5862_v13 = vadd.f32 %v5830_v5, %v5476_v59  ;;  %v5478_v17 = vadd.f32 %v5446_v19, %v5092_v2 }
 0x377   : > { %v12051_v4 = vadd.f32 %v7991_v15, %v11687_v56  ;;  %v5061_v56 = vsel %vm1226_vm0, %v4680_v0, 0.0  ;;  %v12935_v15 = vld [vmem:[#allocation17_spill] sm:$0xff] }
 0x378   : > { %v4688_v6 = vpop.f32.mrf.mxu1  ;;  %v6208_v55 = vsel %vm6132_vm9, %v5862_v13, 0.0  ;;  %v7993_v14 = vpop.f32.mrf.mxu0  ;;  %v5093_v5 = vadd.f32 %v5061_v56, %v12935_v15 }
 0x379   : > { %6209 = vadd.xlane.f32.xlu1 %v6208_v55  ;;  %v7994_v62 = vadd.f32 %v7993_v14, %v7992_v52  ;;  %v5831_v50 = vsel %vm2004_vm4, %v4688_v6, 0.0  ;;  %v5447_v27 = vsel %vm1615_vm1, %v4688_v6, 0.0 }
 0x37a   : > { %v4690_v30 = vpop.f32.mrf.mxu1  ;;  %v7995_v29 = vpop.f32.mrf.mxu0  ;;  %v5863_v51 = vadd.f32 %v5831_v50, %v5477_v61  ;;  %v5479_v55 = vadd.f32 %v5447_v27, %v5093_v5 }
 0x37b   : > { %v12062_v58 = vadd.f32 %v7994_v62, %v11696_v11  ;;  %v5062_v11 = vsel %vm1226_vm0, %v4683_v20, 0.0  ;;  %v12936_v62 = vld [vmem:[#allocation30_spill] sm:$0xff] }
 0x37c   : > { %v4691_v33 = vpop.f32.mrf.mxu1  ;;  %v6211_v43 = vsel %vm6132_vm9, %v5863_v51, 0.0  ;;  %v7996_v31 = vpop.f32.mrf.mxu0  ;;  %v5094_v50 = vadd.f32 %v5062_v11, %v12936_v62 }
 0x37d   : > { %6212 = vadd.xlane.f32.xlu0 %v6211_v43  ;;  %v7997_v59 = vadd.f32 %v7996_v31, %v7995_v29  ;;  %v5832_v54 = vsel %vm2004_vm4, %v4691_v33, 0.0  ;;  %v5448_v14 = vsel %vm1615_vm1, %v4691_v33, 0.0 }
 0x37e   : > { %v4693_v42 = vpop.f32.mrf.mxu1  ;;  %v7998_v0 = vpop.f32.mrf.mxu0  ;;  %v5864_v41 = vadd.f32 %v5832_v54, %v5478_v17  ;;  %v5480_v43 = vadd.f32 %v5448_v14, %v5094_v50  ;;  %v12938_v14 = vld [vmem:[#allocation66_spill] sm:$0xff] }
 0x37f   : > { %v12073_v12 = vadd.f32 %v7997_v59, %v11703_v10  ;;  %v5063_v10 = vsel %vm1226_vm0, %v4688_v6, 0.0  ;;  %v12937_v59 = vld [vmem:[#allocation63_spill] sm:$0xff] }
 0x380   : > { %v4696_v52 = vpop.f32.mrf.mxu1  ;;  %v6214_v13 = vsel %vm6132_vm9, %v5864_v41, 0.0  ;;  %v7999_v3 = vpop.f32.mrf.mxu0  ;;  %v5095_v54 = vadd.f32 %v5063_v10, %v12937_v59 }
 0x381   : > { %v5833_v61 = vsel %vm2004_vm4, %v4696_v52, 0.0  ;;  %6215 = vadd.xlane.f32.xlu1 %v6214_v13  ;;  %v8000_v19 = vadd.f32 %v7999_v3, %v7998_v0  ;;  %v5449_v31 = vsel %vm1615_vm1, %v4696_v52, 0.0 }
 0x382   : > { %v4698_v9 = vpop.f32.mrf.mxu1  ;;  %v8001_v20 = vpop.f32.mrf.mxu0  ;;  %v5865_v2 = vadd.f32 %v5833_v61, %v5479_v55  ;;  %v5481_v0 = vadd.f32 %v5449_v31, %v5095_v54 }
 0x383   : > { %v12084_v30 = vadd.f32 %v8000_v19, %v11712_v8  ;;  %v5064_v8 = vsel %vm1226_vm0, %v4691_v33, 0.0 }
 0x384   : > { %v4699_v29 = vpop.f32.mrf.mxu1  ;;  %v6217_v51 = vsel %vm6132_vm9, %v5865_v2, 0.0  ;;  %v8002_v56 = vpop.f32.mrf.mxu0  ;;  %v5096_v61 = vadd.f32 %v5064_v8, %v12938_v14 }
 0x385   : > { %v5834_v17 = vsel %vm2004_vm4, %v4699_v29, 0.0  ;;  %6218 = vadd.xlane.f32.xlu0 %v6217_v51  ;;  %v8003_v27 = vadd.f32 %v8002_v56, %v8001_v20  ;;  %v5450_v13 = vsel %vm1615_vm1, %v4699_v29, 0.0 }
 0x386   : > { %v4701_v15 = vpop.f32.mrf.mxu1  ;;  %v8004_v6 = vpop.f32.mrf.mxu0  ;;  %v5866_v5 = vadd.f32 %v5834_v17, %v5480_v43  ;;  %v5482_v50 = vadd.f32 %v5450_v13, %v5096_v61 }
 0x387   : > { %v12095_v42 = vadd.f32 %v8003_v27, %v11716_v37 }
 0x388   : > { %v4704_v41 = vpop.f32.mrf.mxu1  ;;  %v6220_v11 = vsel %vm6132_vm9, %v5866_v5, 0.0  ;;  %v8005_v52 = vpop.f32.mrf.mxu0 }
 0x389   : > { %v5835_v3 = vsel %vm2004_vm4, %v4704_v41, 0.0  ;;  %6221 = vadd.xlane.f32.xlu1 %v6220_v11  ;;  %v8006_v55 = vadd.f32 %v8005_v52, %v8004_v6 }
 0x38a   : > { %v5867_v19 = vadd.f32 %v5835_v3, %v5481_v0  ;;  %v4706_v33 = vpop.f32.mrf.mxu1  ;;  %v8007_v62 = vpop.f32.mrf.mxu0 }
 0x38b   : > { %v12104_v37 = vadd.f32 %v8006_v55, %v11724_v24  ;;  %v12122_v33 = vld [vmem:[#allocation2] ss:$0 sm:$0xff] }
 0x38c   : > { %v4707_v9 = vpop.f32.mrf.mxu1  ;;  %v6223_v20 = vsel %vm6132_vm9, %v5867_v19, 0.0  ;;  %v8008_v2 = vpop.f32.mrf.mxu0 }
 0x38d   : > { %v5836_v10 = vsel %vm2004_vm4, %v4707_v9, 0.0  ;;  %6224 = vadd.xlane.f32.xlu0 %v6223_v20  ;;  %v8009_v29 = vadd.f32 %v8008_v2, %v8007_v62 }
 0x38e   : > { %v5868_v51 = vadd.f32 %v5836_v10, %v5482_v50  ;;  %v4709_v56 = vpop.f32.mrf.mxu1  ;;  %v8010_v43 = vpop.f32.mrf.mxu0 }
 0x38f   : > { %v12110_v31 = vadd.f32 %v8009_v29, %v11733_v35 }
 0x390   : > { %v8038_v17 = vpop.f32.mrf.mxu1  ;;  %v6226_v24 = vsel %vm6132_vm9, %v5868_v51, 0.0  ;;  %v8011_v27 = vpop.f32.mrf.mxu0 }
 0x391   : > { %6227 = vadd.xlane.f32.xlu1 %v6226_v24  ;;  %v8012_v59 = vadd.f32 %v8011_v27, %v8010_v43 }
 0x392   : > { %v8039_v54 = vpop.f32.mrf.mxu1  ;;  %v8013_v15 = vpop.f32.mrf.mxu0 }
 0x393   : > { %v12114_v6 = vadd.f32 %v8012_v59, %v11746_v23  ;;  %v8040_v50 = vadd.f32 %v8039_v54, %v8038_v17 }
 0x394   : > { %v8041_v5 = vpop.f32.mrf.mxu1  ;;  %v8014_v8 = vpop.f32.mrf.mxu0 }
 0x395   : > { %v8015_v0 = vadd.f32 %v8014_v8, %v8013_v15  ;;  %v5387_v56 = vadd.f32 %v8040_v50, %v11798_v21 }
 0x396   : > { %v8042_v41 = vpop.f32.mrf.mxu1  ;;  %v8016_v11 = vpop.f32.mrf.mxu0 }
 0x397   : > { %v12117_v35 = vadd.f32 %v8015_v0, %v11758_v18  ;;  %v8043_v43 = vadd.f32 %v8042_v41, %v8041_v5 }
 0x398   : > { %v8044_v52 = vpop.f32.mrf.mxu1  ;;  %v8017_v13 = vpop.f32.mrf.mxu0 }
 0x399   : > { %v8018_v3 = vadd.f32 %v8017_v13, %v8016_v11  ;;  %v5388_v0 = vadd.f32 %v8043_v43, %v11810_v32 }
 0x39a   : > { %v8045_v55 = vpop.f32.mrf.mxu1  ;;  %v8019_v14 = vpop.f32.mrf.mxu0 }
 0x39b   : > { %v12120_v61 = vadd.f32 %v8018_v3, %v11772_v57  ;;  %v8046_v41 = vadd.f32 %v8045_v55, %v8044_v52 }
 0x39c   : > { %v8047_v19 = vpop.f32.mrf.mxu1  ;;  %v8020_v23 = vpop.f32.mrf.mxu0 }
 0x39d   : > { %v8021_v62 = vadd.f32 %v8020_v23, %v8019_v14  ;;  %v5389_v32 = vadd.f32 %v8046_v41, %v11824_v46 }
 0x39e   : > { %v8048_v9 = vpop.f32.mrf.mxu1  ;;  %v6135_v20 = vpop.xlane.xlu0 %6134 }
 0x39f   : > { %v12125_v18 = vadd.f32 %v8021_v62, %v11784_v25  ;;  %v6236_v2 = vadd.f32 %v12122_v33, %v6135_v20  ;;  %v8150_v10 = vpop.f32.mrf.mxu0  ;;  %v8049_v52 = vadd.f32 %v8048_v9, %v8047_v19 }
 0x3a0   : > { %v8050_v29 = vpop.f32.mrf.mxu1 }
 0x3a1   : > { %v6268_v51 = vmul.f32 %v6236_v2, %v6236_v2  ;;  %v8151_v57 = vpop.f32.mrf.mxu0  ;;  %v5390_v46 = vadd.f32 %v8049_v52, %v11836_v48 }
 0x3a2   : > { %v8152_v25 = vadd.f32 %v8151_v57, %v8150_v10  ;;  %v8051_v17 = vpop.f32.mrf.mxu1  ;;  %v6138_v24 = vpop.xlane.xlu0 %6137 }
 0x3a3   : > { %v6300_v27 = vadd.f32 1.0, %v6268_v51  ;;  %v6237_v59 = vadd.f32 %v12122_v33, %v6138_v24  ;;  %v8153_v54 = vpop.f32.mrf.mxu0  ;;  %v8052_v19 = vadd.f32 %v8051_v17, %v8050_v29 }
 0x3a4   : > { %v12138_v15 = vadd.f32 %v8152_v25, %v5387_v56  ;;  %v8053_v8 = vpop.f32.mrf.mxu1 }
 0x3a5   : > { %6333 = vst.msk [vmem:[%s12135_s14] sm:$0xff] %vm6332_vm10, %v6300_v27  ;;  %v6269_v21 = vmul.f32 %v6237_v59, %v6237_v59  ;;  %v8154_v5 = vpop.f32.mrf.mxu0  ;;  %v5391_v48 = vadd.f32 %v8052_v19, %v11850_v7 }
 0x3a6   : > { %v7201_v11 = vmul.f32 -1.442695, %v12138_v15  ;;  %v8155_v13 = vadd.f32 %v8154_v5, %v8153_v54  ;;  %v8054_v3 = vpop.f32.mrf.mxu1  ;;  %v6141_v14 = vpop.xlane.xlu1 %6140 }
 0x3a7   : > { %v6301_v23 = vadd.f32 1.0, %v6269_v21  ;;  %v6238_v62 = vadd.f32 %v12122_v33, %v6141_v14  ;;  %v8156_v50 = vpop.f32.mrf.mxu0  ;;  %v8055_v29 = vadd.f32 %v8054_v3, %v8053_v8 }
 0x3a8   : > { %8516 = vpow2.f32 %v7201_v11  ;;  %v12145_v20 = vadd.f32 %v8155_v13, %v5388_v0  ;;  %v8056_v2 = vpop.f32.mrf.mxu1 }
 0x3a9   : > { %6334 = vst.msk [vmem:[%s12135_s14 + $0x8] sm:$0xff] %vm6332_vm10, %v6301_v23  ;;  %v6270_v10 = vmul.f32 %v6238_v62, %v6238_v62  ;;  %v8157_v51 = vpop.f32.mrf.mxu0  ;;  %v5392_v3 = vadd.f32 %v8055_v29, %v11862_v63 }
 0x3aa   : > { %v7202_v55 = vmul.f32 -1.442695, %v12145_v20  ;;  %v8158_v57 = vadd.f32 %v8157_v51, %v8156_v50  ;;  %v8057_v56 = vpop.f32.mrf.mxu1  ;;  %v6144_v43 = vpop.xlane.xlu1 %6143 }
 0x3ab   : > { %v6302_v25 = vadd.f32 1.0, %v6270_v10  ;;  %v6239_v24 = vadd.f32 %v12122_v33, %v6144_v43  ;;  %v8159_v27 = vpop.f32.mrf.mxu0 }
 0x3ac   : > { %8518 = vpow2.f32 %v7202_v55  ;;  %v12152_v59 = vadd.f32 %v8158_v57, %v5389_v32  ;;  %v8059_v54 = vpop.f32.mrf.mxu1 }
 0x3ad   : > { %6335 = vst.msk [vmem:[%s12135_s14 + $0x10] sm:$0xff] %vm6332_vm10, %v6302_v25  ;;  %v6271_v21 = vmul.f32 %v6239_v24, %v6239_v24  ;;  %v8160_v5 = vpop.f32.mrf.mxu0 }
 0x3ae   : > { %v7203_v9 = vmul.f32 -1.442695, %v12152_v59  ;;  %v8161_v0 = vadd.f32 %v8160_v5, %v8159_v27  ;;  %v8060_v41 = vpop.f32.mrf.mxu1  ;;  %v6147_v11 = vpop.xlane.xlu0 %6146  ;;  %v8058_v5 = vadd.f32 %v8057_v56, %v8056_v2 }
 0x3af   : > { %v6303_v13 = vadd.f32 1.0, %v6271_v21  ;;  %v6240_v14 = vadd.f32 %v12122_v33, %v6147_v11  ;;  %v8162_v23 = vpop.f32.mrf.mxu0 }
 0x3b0   : > { %8520 = vpow2.f32 %v7203_v9  ;;  %v12159_v62 = vadd.f32 %v8161_v0, %v5390_v46  ;;  %v8062_v50 = vpop.f32.mrf.mxu1 }
 0x3b1   : > { %6336 = vst.msk [vmem:[%s12135_s14 + $0x18] sm:$0xff] %vm6332_vm10, %v6303_v13  ;;  %v6272_v10 = vmul.f32 %v6240_v14, %v6240_v14  ;;  %v8163_v51 = vpop.f32.mrf.mxu0 }
 0x3b2   : > { %v7204_v17 = vmul.f32 -1.442695, %v12159_v62  ;;  %v8164_v32 = vadd.f32 %v8163_v51, %v8162_v23  ;;  %v8063_v52 = vpop.f32.mrf.mxu1  ;;  %v6150_v55 = vpop.xlane.xlu1 %6149  ;;  %v5393_v51 = vadd.f32 %v8058_v5, %v11876_v36 }
 0x3b3   : > { %v6304_v57 = vadd.f32 1.0, %v6272_v10  ;;  %v6241_v43 = vadd.f32 %v12122_v33, %v6150_v55  ;;  %v8165_v25 = vpop.f32.mrf.mxu0 }
 0x3b4   : > { %8522 = vpow2.f32 %v7204_v17  ;;  %v12166_v24 = vadd.f32 %v8164_v32, %v5391_v48  ;;  %v8065_v27 = vpop.f32.mrf.mxu1  ;;  %v8061_v17 = vadd.f32 %v8060_v41, %v8059_v54 }
 0x3b5   : > { %v8517_v21 = vpop.eup %8516  ;;  %6337 = vst.msk [vmem:[%s12135_s14 + $0x20] sm:$0xff] %vm6332_vm10, %v6304_v57  ;;  %v6273_v46 = vmul.f32 %v6241_v43, %v6241_v43  ;;  %v8166_v7 = vpop.f32.mrf.mxu0 }
 0x3b6   : > { %v5970_v8 = vadd.f32 1.0, %v8517_v21  ;;  %v7205_v19 = vmul.f32 -1.442695, %v12166_v24  ;;  %v8167_v9 = vadd.f32 %v8166_v7, %v8165_v25  ;;  %v8066_v0 = vpop.f32.mrf.mxu1  ;;  %v6153_v11 = vpop.xlane.xlu0 %6152 }
 0x3b7   : > { %v6305_v13 = vadd.f32 1.0, %v6273_v46  ;;  %v6242_v14 = vadd.f32 %v12122_v33, %v6153_v11  ;;  %v8168_v23 = vpop.f32.mrf.mxu0 }
 0x3b8   : > { %8524 = vrcp.f32 %v5970_v8  ;;  %v12173_v10 = vadd.f32 %v8167_v9, %v5392_v3  ;;  %v8068_v2 = vpop.f32.mrf.mxu1  ;;  %v8064_v8 = vadd.f32 %v8063_v52, %v8062_v50 }
 0x3b9   : > { %v8519_v56 = vpop.eup %8518  ;;  %8526 = vpow2.f32 %v7205_v19  ;;  %6338 = vst.msk [vmem:[%s12135_s14 + $0x28] sm:$0xff] %vm6332_vm10, %v6305_v13  ;;  %v6274_v63 = vmul.f32 %v6242_v14, %v6242_v14  ;;  %v8169_v48 = vpop.f32.mrf.mxu0  ;;  %v5394_v19 = vadd.f32 %v8061_v17, %v11888_v26 }
 0x3ba   : > { %v5971_v29 = vadd.f32 1.0, %v8519_v56  ;;  %v7206_v32 = vmul.f32 -1.442695, %v12173_v10  ;;  %v8170_v55 = vadd.f32 %v8169_v48, %v8168_v23  ;;  %v8069_v57 = vpop.f32.mrf.mxu1  ;;  %v6156_v43 = vpop.xlane.xlu1 %6155  ;;  %v5395_v48 = vadd.f32 %v8064_v8, %v11902_v16 }
 0x3bb   : > { %v6306_v25 = vadd.f32 1.0, %v6274_v63  ;;  %v6243_v21 = vadd.f32 %v12122_v33, %v6156_v43  ;;  %v8171_v46 = vpop.f32.mrf.mxu0  ;;  %v8070_v8 = vadd.f32 %v8069_v57, %v8068_v2 }
 0x3bc   : > { %8528 = vrcp.f32 %v5971_v29  ;;  %v12180_v7 = vadd.f32 %v8170_v55, %v5393_v51  ;;  %v12182_v36 = vpop.f32.mrf.mxu1 }
 0x3bd   : > { %v8521_v5 = vpop.eup %8520  ;;  %8530 = vpow2.f32 %v7206_v32  ;;  %6339 = vst.msk [vmem:[%s12135_s14 + $0x30] sm:$0xff] %vm6332_vm10, %v6306_v25  ;;  %v6275_v54 = vmul.f32 %v6243_v21, %v6243_v21  ;;  %v8172_v41 = vpop.f32.mrf.mxu0  ;;  %v8067_v32 = vadd.f32 %v8066_v0, %v8065_v27 }
 0x3be   : > { %v5972_v3 = vadd.f32 1.0, %v8521_v5  ;;  %v7207_v9 = vmul.f32 -1.442695, %v12180_v7  ;;  %v8173_v11 = vadd.f32 %v8172_v41, %v8171_v46  ;;  %v8072_v13 = vpop.f32.mrf.mxu1  ;;  %v6159_v14 = vpop.xlane.xlu0 %6158 }
 0x3bf   : > { %v6307_v23 = vadd.f32 1.0, %v6275_v54  ;;  %v6244_v56 = vadd.f32 %v12122_v33, %v6159_v14  ;;  %v8174_v51 = vpop.f32.mrf.mxu0 }
 0x3c0   : > { %8532 = vrcp.f32 %v5972_v3  ;;  %v12189_v50 = vadd.f32 %v8173_v11, %v5394_v19  ;;  %v12191_v52 = vpop.f32.mrf.mxu1  ;;  %v5396_v11 = vadd.f32 %v8067_v32, %v11914_v28  ;;  %v5397_v28 = vadd.f32 %v8070_v8, %v11928_v45 }
 0x3c1   : > { %v8523_v63 = vpop.eup %8522  ;;  %8534 = vpow2.f32 %v7207_v9  ;;  %6340 = vst.msk [vmem:[%s12135_s14 + $0x38] sm:$0xff] %vm6332_vm10, %v6307_v23  ;;  %v6276_v26 = vmul.f32 %v6244_v56, %v6244_v56  ;;  %v8175_v29 = vpop.f32.mrf.mxu0 }
 0x3c2   : > { %v5973_v17 = vadd.f32 1.0, %v8523_v63  ;;  %v7208_v55 = vmul.f32 -1.442695, %v12189_v50  ;;  %v8176_v43 = vadd.f32 %v8175_v29, %v8174_v51  ;;  %v8075_v25 = vpop.f32.mrf.mxu1  ;;  %v6162_v21 = vpop.xlane.xlu1 %6161 }
 0x3c3   : > { %v6308_v46 = vadd.f32 1.0, %v6276_v26  ;;  %v6245_v5 = vadd.f32 %v12122_v33, %v6162_v21  ;;  %v8177_v54 = vpop.f32.mrf.mxu0  ;;  %v8073_v21 = vadd.f32 %v8072_v13, %v12182_v36  ;;  %v8076_v36 = vadd.f32 %v8075_v25, %v12191_v52 }
 0x3c4   : > { %8536 = vrcp.f32 %v5973_v17  ;;  %v12206_v16 = vadd.f32 %v8176_v43, %v5395_v48  ;;  %v12208_v27 = vpop.f32.mrf.mxu1 }
 0x3c5   : > { %v8525_v0 = vpop.eup %8524  ;;  %8538 = vpow2.f32 %v7208_v55  ;;  %6341 = vst.msk [vmem:[%s12135_s14 + $0x40] sm:$0xff] %vm6332_vm10, %v6308_v46  ;;  %v6277_v41 = vmul.f32 %v6245_v5, %v6245_v5  ;;  %v8178_v3 = vpop.f32.mrf.mxu0 }
 0x3c6   : > { %v8527_v19 = vpop.eup %8526  ;;  %v6068_v9 = vsel %vm5871_vm11, %v8525_v0, %v12138_v15  ;;  %v7209_v14 = vmul.f32 -1.442695, %v12206_v16  ;;  %v8179_v23 = vadd.f32 %v8178_v3, %v8177_v54  ;;  %v8078_v56 = vpop.f32.mrf.mxu1 }
 0x3c7   : > { %v6165_v51 = vpop.xlane.xlu0 %6164  ;;  %6100 = vst [vmem:[%s12204_s17] sm:$0xff] %v6068_v9  ;;  %v5974_v2 = vadd.f32 1.0, %v8527_v19  ;;  %v6309_v57 = vadd.f32 1.0, %v6277_v41  ;;  %v8180_v48 = vpop.f32.mrf.mxu0 }
 0x3c8   : > { %v6246_v63 = vadd.f32 %v12122_v33, %v6165_v51  ;;  %8540 = vpow2.f32 %v7209_v14  ;;  %v12219_v26 = vadd.f32 %v8179_v23, %v5396_v11  ;;  %v12221_v29 = vpop.f32.mrf.mxu1  ;;  %v5398_v51 = vadd.f32 %v8073_v21, %v11940_v38 }
 0x3c9   : > { %v8529_v15 = vpop.eup %8528  ;;  %8542 = vrcp.f32 %v5974_v2  ;;  %6342 = vst.msk [vmem:[%s12135_s14 + $0x48] sm:$0xff] %vm6332_vm10, %v6309_v57  ;;  %v8181_v32 = vpop.f32.mrf.mxu0  ;;  %v5399_v38 = vadd.f32 %v8076_v36, %v11952_v22 }
 0x3ca   : > { %v6278_v17 = vmul.f32 %v6246_v63, %v6246_v63  ;;  %v8531_v55 = vpop.eup %8530  ;;  %v6069_v43 = vsel %vm5871_vm11, %v8529_v15, %v12145_v20  ;;  %v7210_v46 = vmul.f32 -1.442695, %v12219_v26  ;;  %v8182_v5 = vadd.f32 %v8181_v32, %v8180_v48  ;;  %v8081_v54 = vpop.f32.mrf.mxu1 }
 0x3cb   : > { %v6168_v0 = vpop.xlane.xlu1 %6167  ;;  %6101 = vst [vmem:[%s12204_s17 + $0x8] sm:$0xff] %v6069_v43  ;;  %v5975_v41 = vadd.f32 1.0, %v8531_v55  ;;  %v8183_v3 = vpop.f32.mrf.mxu0 }
 0x3cc   : > { %v6310_v45 = vadd.f32 1.0, %v6278_v17  ;;  %v6247_v8 = vadd.f32 %v12122_v33, %v6168_v0  ;;  %8544 = vpow2.f32 %v7210_v46  ;;  %v12233_v19 = vadd.f32 %v8182_v5, %v5397_v28  ;;  %v12235_v9 = vpop.f32.mrf.mxu1 }
 0x3cd   : > { %v8533_v20 = vpop.eup %8532  ;;  %8546 = vrcp.f32 %v5975_v41  ;;  %v8184_v11 = vpop.f32.mrf.mxu0  ;;  %v8079_v5 = vadd.f32 %v8078_v56, %v12208_v27  ;;  %v8082_v27 = vadd.f32 %v8081_v54, %v12221_v29 }
 0x3ce   : > { %6343 = vst.msk [vmem:[%s12135_s14 + $0x50] sm:$0xff] %vm6332_vm10, %v6310_v45  ;;  %v6279_v13 = vmul.f32 %v6247_v8, %v6247_v8  ;;  %v8535_v14 = vpop.eup %8534  ;;  %v6070_v23 = vsel %vm5871_vm11, %v8533_v20, %v12152_v59  ;;  %v7211_v2 = vmul.f32 -1.442695, %v12233_v19  ;;  %v8185_v57 = vadd.f32 %v8184_v11, %v8183_v3  ;;  %v8084_v63 = vpop.f32.mrf.mxu1 }
 0x3cf   : > { %v6171_v48 = vpop.xlane.xlu0 %6170  ;;  %6102 = vst [vmem:[%s12204_s17 + $0x10] sm:$0xff] %v6070_v23  ;;  %v5976_v15 = vadd.f32 1.0, %v8535_v14  ;;  %v8186_v28 = vpop.f32.mrf.mxu0 }
 0x3d0   : > { %v6311_v52 = vadd.f32 1.0, %v6279_v13  ;;  %v6248_v25 = vadd.f32 %v12122_v33, %v6171_v48  ;;  %8548 = vpow2.f32 %v7211_v2  ;;  %v12247_v17 = vadd.f32 %v8185_v57, %v5398_v51  ;;  %v12249_v32 = vpop.f32.mrf.mxu1 }
 0x3d1   : > { %v8537_v59 = vpop.eup %8536  ;;  %8550 = vrcp.f32 %v5976_v15  ;;  %v8187_v43 = vpop.f32.mrf.mxu0  ;;  %v5400_v2 = vadd.f32 %v8079_v5, %v11963_v49  ;;  %v8085_v5 = vadd.f32 %v8084_v63, %v12235_v9 }
 0x3d2   : > { %6344 = vst.msk [vmem:[%s12135_s14 + $0x58] sm:$0xff] %vm6332_vm10, %v6311_v52  ;;  %v6280_v55 = vmul.f32 %v6248_v25, %v6248_v25  ;;  %v8539_v21 = vpop.eup %8538  ;;  %v6071_v46 = vsel %vm5871_vm11, %v8537_v59, %v12159_v62  ;;  %v7212_v0 = vmul.f32 -1.442695, %v12247_v17  ;;  %v8188_v41 = vadd.f32 %v8187_v43, %v8186_v28  ;;  %v8087_v45 = vpop.f32.mrf.mxu1 }
 0x3d3   : > { %v6174_v8 = vpop.xlane.xlu1 %6173  ;;  %6103 = vst [vmem:[%s12204_s17 + $0x18] sm:$0xff] %v6071_v46  ;;  %v5977_v3 = vadd.f32 1.0, %v8539_v21  ;;  %v8189_v36 = vpop.f32.mrf.mxu0  ;;  %v8088_v63 = vadd.f32 %v8087_v45, %v12249_v32 }
 0x3d4   : > { %v6312_v22 = vadd.f32 1.0, %v6280_v55  ;;  %v6249_v20 = vadd.f32 %v12122_v33, %v6174_v8  ;;  %8552 = vpow2.f32 %v7212_v0  ;;  %v12261_v13 = vadd.f32 %v8188_v41, %v5399_v38  ;;  %v12263_v11 = vpop.f32.mrf.mxu1 }
 0x3d5   : > { %v8541_v62 = vpop.eup %8540  ;;  %8554 = vrcp.f32 %v5977_v3  ;;  %v8190_v14 = vpop.f32.mrf.mxu0  ;;  %v5401_v55 = vadd.f32 %v8082_v27, %v11974_v44 }
 0x3d6   : > { %6345 = vst.msk [vmem:[%s12135_s14 + $0x60] sm:$0xff] %vm6332_vm10, %v6312_v22  ;;  %v6281_v56 = vmul.f32 %v6249_v20, %v6249_v20  ;;  %v8543_v23 = vpop.eup %8542  ;;  %v5978_v51 = vadd.f32 1.0, %v8541_v62  ;;  %v7213_v57 = vmul.f32 -1.442695, %v12261_v13  ;;  %v8191_v48 = vadd.f32 %v8190_v14, %v8189_v36  ;;  %v8090_v15 = vpop.f32.mrf.mxu1 }
 0x3d7   : > { %v6177_v52 = vpop.xlane.xlu0 %6176  ;;  %v6072_v25 = vsel %vm5871_vm11, %v8543_v23, %v12166_v24  ;;  %v8192_v54 = vpop.f32.mrf.mxu0 }
 0x3d8   : > { %v6313_v28 = vadd.f32 1.0, %v6281_v56  ;;  %v6250_v29 = vadd.f32 %v12122_v33, %v6177_v52  ;;  %6104 = vst [vmem:[%s12204_s17 + $0x20] sm:$0xff] %v6072_v25  ;;  %8556 = vrcp.f32 %v5978_v51  ;;  %v12275_v59 = vadd.f32 %v8191_v48, %v5400_v2  ;;  %v12277_v38 = vpop.f32.mrf.mxu1 }
 0x3d9   : > { %v8545_v49 = vpop.eup %8544  ;;  %8558 = vpow2.f32 %v7213_v57  ;;  %v8193_v21 = vpop.f32.mrf.mxu0  ;;  %v5402_v51 = vadd.f32 %v8085_v5, %v11985_v53 }
 0x3da   : > { %6346 = vst.msk [vmem:[%s12135_s14 + $0x68] sm:$0xff] %vm6332_vm10, %v6313_v28  ;;  %v6282_v43 = vmul.f32 %v6250_v29, %v6250_v29  ;;  %v8547_v24 = vpop.eup %8546  ;;  %v5979_v46 = vadd.f32 1.0, %v8545_v49  ;;  %v7214_v0 = vmul.f32 -1.442695, %v12275_v59  ;;  %v8194_v41 = vadd.f32 %v8193_v21, %v8192_v54  ;;  %v8093_v8 = vpop.f32.mrf.mxu1 }
 0x3db   : > { %v6180_v3 = vpop.xlane.xlu1 %6179  ;;  %v6073_v44 = vsel %vm5871_vm11, %v8547_v24, %v12173_v10  ;;  %v8195_v36 = vpop.f32.mrf.mxu0  ;;  %v5403_v49 = vadd.f32 %v8088_v63, %v11996_v47  ;;  %v8091_v24 = vadd.f32 %v8090_v15, %v12263_v11 }
 0x3dc   : > { %v6314_v22 = vadd.f32 1.0, %v6282_v43  ;;  %v6251_v20 = vadd.f32 %v12122_v33, %v6180_v3  ;;  %6105 = vst [vmem:[%s12204_s17 + $0x28] sm:$0xff] %v6073_v44  ;;  %8560 = vrcp.f32 %v5979_v46  ;;  %v12289_v62 = vadd.f32 %v8194_v41, %v5401_v55  ;;  %v12291_v27 = vpop.f32.mrf.mxu1 }
 0x3dd   : > { %v8549_v9 = vpop.eup %8548  ;;  %8562 = vpow2.f32 %v7214_v0  ;;  %v8196_v14 = vpop.f32.mrf.mxu0 }
 0x3de   : > { %6347 = vst.msk [vmem:[%s12135_s14 + $0x70] sm:$0xff] %vm6332_vm10, %v6314_v22  ;;  %v6283_v56 = vmul.f32 %v6251_v20, %v6251_v20  ;;  %v8551_v10 = vpop.eup %8550  ;;  %v5980_v23 = vadd.f32 1.0, %v8549_v9  ;;  %v7215_v2 = vmul.f32 -1.442695, %v12289_v62  ;;  %v8197_v57 = vadd.f32 %v8196_v14, %v8195_v36  ;;  %v8096_v48 = vpop.f32.mrf.mxu1 }
 0x3df   : > { %v6183_v52 = vpop.xlane.xlu0 %6182  ;;  %v6074_v32 = vsel %vm5871_vm11, %v8551_v10, %v12180_v7  ;;  %v8198_v28 = vpop.f32.mrf.mxu0  ;;  %v8094_v36 = vadd.f32 %v8093_v8, %v12277_v38  ;;  %v5404_v14 = vadd.f32 %v8091_v24, %v12007_v60 }
 0x3e0   : > { %v6315_v45 = vadd.f32 1.0, %v6283_v56  ;;  %v6252_v25 = vadd.f32 %v12122_v33, %v6183_v52  ;;  %6106 = vst [vmem:[%s12204_s17 + $0x30] sm:$0xff] %v6074_v32  ;;  %8564 = vrcp.f32 %v5980_v23  ;;  %v12303_v29 = vadd.f32 %v8197_v57, %v5402_v51  ;;  %v12305_v54 = vpop.f32.mrf.mxu1 }
 0x3e1   : > { %v8553_v53 = vpop.eup %8552  ;;  %8566 = vpow2.f32 %v7215_v2  ;;  %v8199_v43 = vpop.f32.mrf.mxu0  ;;  %v5405_v60 = vadd.f32 %v8094_v36, %v12018_v34 }
 0x3e2   : > { %6348 = vst.msk [vmem:[%s12135_s14 + $0x78] sm:$0xff] %vm6332_vm10, %v6315_v45  ;;  %v6284_v55 = vmul.f32 %v6252_v25, %v6252_v25  ;;  %v8555_v7 = vpop.eup %8554  ;;  %v5981_v21 = vadd.f32 1.0, %v8553_v53  ;;  %v7216_v46 = vmul.f32 -1.442695, %v12303_v29  ;;  %v8200_v5 = vadd.f32 %v8199_v43, %v8198_v28  ;;  %v8099_v0 = vpop.f32.mrf.mxu1 }
 0x3e3   : > { %v6186_v41 = vpop.xlane.xlu1 %6185  ;;  %v6075_v47 = vsel %vm5871_vm11, %v8555_v7, %v12189_v50  ;;  %v8201_v22 = vpop.f32.mrf.mxu0 }
 0x3e4   : > { %v6316_v3 = vadd.f32 1.0, %v6284_v55  ;;  %v6253_v44 = vadd.f32 %v12122_v33, %v6186_v41  ;;  %6107 = vst [vmem:[%s12204_s17 + $0x38] sm:$0xff] %v6075_v47  ;;  %8568 = vrcp.f32 %v5981_v21  ;;  %v12317_v20 = vadd.f32 %v8200_v5, %v5403_v49  ;;  %v12319_v11 = vpop.f32.mrf.mxu1 }
 0x3e5   : > { %v8557_v15 = vpop.eup %8556  ;;  %8570 = vpow2.f32 %v7216_v46  ;;  %v8202_v63 = vpop.f32.mrf.mxu0  ;;  %v8097_v55 = vadd.f32 %v8096_v48, %v12291_v27  ;;  %v8100_v27 = vadd.f32 %v8099_v0, %v12305_v54 }
 0x3e6   : > { %6349 = vst.msk [vmem:[%s12135_s14 + $0x80] sm:$0xff] %vm6332_vm10, %v6316_v3  ;;  %v6285_v9 = vmul.f32 %v6253_v44, %v6253_v44  ;;  %v8559_v50 = vpop.eup %8558  ;;  %v6076_v56 = vsel %vm5871_vm11, %v8557_v15, %v12206_v16  ;;  %v7217_v10 = vmul.f32 -1.442695, %v12317_v20  ;;  %v8203_v23 = vadd.f32 %v8202_v63, %v8201_v22  ;;  %v8102_v51 = vpop.f32.mrf.mxu1 }
 0x3e7   : > { %v6189_v2 = vpop.xlane.xlu0 %6188  ;;  %6108 = vst [vmem:[%s12204_s17 + $0x40] sm:$0xff] %v6076_v56  ;;  %v5982_v38 = vadd.f32 1.0, %v8559_v50  ;;  %v8204_v52 = vpop.f32.mrf.mxu0  ;;  %v5406_v36 = vadd.f32 %v8097_v55, %v12029_v40  ;;  %v5407_v40 = vadd.f32 %v8100_v27, %v12040_v1 }
 0x3e8   : > { %v6317_v8 = vadd.f32 1.0, %v6285_v9  ;;  %v6254_v57 = vadd.f32 %v12122_v33, %v6189_v2  ;;  %8572 = vpow2.f32 %v7217_v10  ;;  %v12331_v32 = vadd.f32 %v8203_v23, %v5404_v14  ;;  %v12333_v45 = vpop.f32.mrf.mxu1 }
 0x3e9   : > { %v8561_v16 = vpop.eup %8560  ;;  %8574 = vrcp.f32 %v5982_v38  ;;  %v8205_v28 = vpop.f32.mrf.mxu0 }
 0x3ea   : > { %6350 = vst.msk [vmem:[%s12135_s14 + $0x88] sm:$0xff] %vm6332_vm10, %v6317_v8  ;;  %v6286_v25 = vmul.f32 %v6254_v57, %v6254_v57  ;;  %v8563_v53 = vpop.eup %8562  ;;  %v6077_v49 = vsel %vm5871_vm11, %v8561_v16, %v12219_v26  ;;  %v7218_v43 = vmul.f32 -1.442695, %v12331_v32  ;;  %v8206_v7 = vadd.f32 %v8205_v28, %v8204_v52  ;;  %v8105_v21 = vpop.f32.mrf.mxu1 }
 0x3eb   : > { %v6192_v24 = vpop.xlane.xlu1 %6191  ;;  %6109 = vst [vmem:[%s12204_s17 + $0x48] sm:$0xff] %v6077_v49  ;;  %v5983_v46 = vadd.f32 1.0, %v8563_v53  ;;  %v8207_v41 = vpop.f32.mrf.mxu0  ;;  %v8103_v16 = vadd.f32 %v8102_v51, %v12319_v11  ;;  %v8106_v11 = vadd.f32 %v8105_v21, %v12333_v45 }
 0x3ec   : > { %v6318_v34 = vadd.f32 1.0, %v6286_v25  ;;  %v6255_v5 = vadd.f32 %v12122_v33, %v6192_v24  ;;  %8576 = vpow2.f32 %v7218_v43  ;;  %v12345_v47 = vadd.f32 %v8206_v7, %v5405_v60  ;;  %v12347_v3 = vpop.f32.mrf.mxu1 }
 0x3ed   : > { %v8565_v26 = vpop.eup %8564  ;;  %8578 = vrcp.f32 %v5983_v46  ;;  %v8208_v44 = vpop.f32.mrf.mxu0 }
 0x3ee   : > { %6351 = vst.msk [vmem:[%s12135_s14 + $0x90] sm:$0xff] %vm6332_vm10, %v6318_v34  ;;  %v6287_v48 = vmul.f32 %v6255_v5, %v6255_v5  ;;  %v8567_v22 = vpop.eup %8566  ;;  %v6078_v15 = vsel %vm5871_vm11, %v8565_v26, %v12233_v19  ;;  %v7219_v9 = vmul.f32 -1.442695, %v12345_v47  ;;  %v8209_v63 = vadd.f32 %v8208_v44, %v8207_v41  ;;  %v8108_v50 = vpop.f32.mrf.mxu1 }
 0x3ef   : > { %v6195_v56 = vpop.xlane.xlu0 %6194  ;;  %6110 = vst [vmem:[%s12204_s17 + $0x50] sm:$0xff] %v6078_v15  ;;  %v5984_v14 = vadd.f32 1.0, %v8567_v22  ;;  %v8210_v10 = vpop.f32.mrf.mxu0  ;;  %v5408_v41 = vadd.f32 %v8103_v16, %v12051_v4 }
 0x3f0   : > { %v6319_v54 = vadd.f32 1.0, %v6287_v48  ;;  %v6256_v0 = vadd.f32 %v12122_v33, %v6195_v56  ;;  %8580 = vpow2.f32 %v7219_v9  ;;  %v12359_v23 = vadd.f32 %v8209_v63, %v5406_v36  ;;  %v12361_v2 = vpop.f32.mrf.mxu1 }
 0x3f1   : > { %v8569_v19 = vpop.eup %8568  ;;  %8582 = vrcp.f32 %v5984_v14  ;;  %v8211_v8 = vpop.f32.mrf.mxu0  ;;  %v5409_v63 = vadd.f32 %v8106_v11, %v12062_v58 }
 0x3f2   : > { %6352 = vst.msk [vmem:[%s12135_s14 + $0x98] sm:$0xff] %vm6332_vm10, %v6319_v54  ;;  %v6288_v38 = vmul.f32 %v6256_v0, %v6256_v0  ;;  %v8571_v57 = vpop.eup %8570  ;;  %v6079_v52 = vsel %vm5871_vm11, %v8569_v19, %v12247_v17  ;;  %v7220_v60 = vmul.f32 -1.442695, %v12359_v23  ;;  %v8212_v25 = vadd.f32 %v8211_v8, %v8210_v10  ;;  %v8111_v28 = vpop.f32.mrf.mxu1 }
 0x3f3   : > { %v6198_v53 = vpop.xlane.xlu1 %6197  ;;  %6111 = vst [vmem:[%s12204_s17 + $0x58] sm:$0xff] %v6079_v52  ;;  %v5985_v49 = vadd.f32 1.0, %v8571_v57  ;;  %v8213_v43 = vpop.f32.mrf.mxu0  ;;  %v8109_v0 = vadd.f32 %v8108_v50, %v12347_v3  ;;  %v8112_v50 = vadd.f32 %v8111_v28, %v12361_v2 }
 0x3f4   : > { %v6320_v1 = vadd.f32 1.0, %v6288_v38  ;;  %v6257_v55 = vadd.f32 %v12122_v33, %v6198_v53  ;;  %8584 = vpow2.f32 %v7220_v60  ;;  %v12373_v7 = vadd.f32 %v8212_v25, %v5407_v40  ;;  %v12375_v24 = vpop.f32.mrf.mxu1 }
 0x3f5   : > { %v8573_v17 = vpop.eup %8572  ;;  %8586 = vrcp.f32 %v5985_v49  ;;  %v8214_v46 = vpop.f32.mrf.mxu0 }
 0x3f6   : > { %6353 = vst.msk [vmem:[%s12135_s14 + $0xa0] sm:$0xff] %vm6332_vm10, %v6320_v1  ;;  %v6289_v51 = vmul.f32 %v6257_v55, %v6257_v55  ;;  %v8575_v34 = vpop.eup %8574  ;;  %v5986_v5 = vadd.f32 1.0, %v8573_v17  ;;  %v7221_v26 = vmul.f32 -1.442695, %v12373_v7  ;;  %v8215_v27 = vadd.f32 %v8214_v46, %v8213_v43  ;;  %v8114_v48 = vpop.f32.mrf.mxu1 }
 0x3f7   : > { %v6201_v44 = vpop.xlane.xlu0 %6200  ;;  %v6080_v22 = vsel %vm5871_vm11, %v8575_v34, %v12261_v13  ;;  %v8216_v21 = vpop.f32.mrf.mxu0  ;;  %v5410_v1 = vadd.f32 %v8109_v0, %v12073_v12 }
 0x3f8   : > { %v6321_v15 = vadd.f32 1.0, %v6289_v51  ;;  %v6258_v45 = vadd.f32 %v12122_v33, %v6201_v44  ;;  %6112 = vst [vmem:[%s12204_s17 + $0x60] sm:$0xff] %v6080_v22  ;;  %8588 = vrcp.f32 %v5986_v5  ;;  %v12387_v36 = vadd.f32 %v8215_v27, %v5408_v41  ;;  %v12389_v9 = vpop.f32.mrf.mxu1 }
 0x3f9   : > { %v8577_v4 = vpop.eup %8576  ;;  %8590 = vpow2.f32 %v7221_v26  ;;  %v8217_v14 = vpop.f32.mrf.mxu0  ;;  %v5411_v41 = vadd.f32 %v8112_v50, %v12084_v30  ;;  %v8115_v22 = vadd.f32 %v8114_v48, %v12375_v24 }
 0x3fa   : > { %6354 = vst.msk [vmem:[%s12135_s14 + $0xa8] sm:$0xff] %vm6332_vm10, %v6321_v15  ;;  %v6290_v56 = vmul.f32 %v6258_v45, %v6258_v45  ;;  %v8579_v13 = vpop.eup %8578  ;;  %v5987_v54 = vadd.f32 1.0, %v8577_v4  ;;  %v7222_v10 = vmul.f32 -1.442695, %v12387_v36  ;;  %v8218_v19 = vadd.f32 %v8217_v14, %v8216_v21  ;;  %v8117_v40 = vpop.f32.mrf.mxu1 }
 0x3fb   : > { %v6204_v38 = vpop.xlane.xlu1 %6203  ;;  %v6081_v58 = vsel %vm5871_vm11, %v8579_v13, %v12275_v59  ;;  %v8219_v52 = vpop.f32.mrf.mxu0 }
 0x3fc   : > { %v6322_v8 = vadd.f32 1.0, %v6290_v56  ;;  %v6259_v57 = vadd.f32 %v12122_v33, %v6204_v38  ;;  %6113 = vst [vmem:[%s12204_s17 + $0x68] sm:$0xff] %v6081_v58  ;;  %8592 = vrcp.f32 %v5987_v54  ;;  %v12401_v16 = vadd.f32 %v8218_v19, %v5409_v63  ;;  %v12403_v60 = vpop.f32.mrf.mxu1 }
 0x3fd   : > { %v8581_v3 = vpop.eup %8580  ;;  %8594 = vpow2.f32 %v7222_v10  ;;  %v8220_v53 = vpop.f32.mrf.mxu0  ;;  %v8118_v54 = vadd.f32 %v8117_v40, %v12389_v9  ;;  %v5412_v38 = vadd.f32 %v8115_v22, %v12095_v42 }
 0x3fe   : > { %6355 = vst.msk [vmem:[%s12135_s14 + $0xb0] sm:$0xff] %vm6332_vm10, %v6322_v8  ;;  %v6291_v25 = vmul.f32 %v6259_v57, %v6259_v57  ;;  %v8583_v59 = vpop.eup %8582  ;;  %v5988_v49 = vadd.f32 1.0, %v8581_v3  ;;  %v7223_v55 = vmul.f32 -1.442695, %v12401_v16  ;;  %v8221_v43 = vadd.f32 %v8220_v53, %v8219_v52  ;;  %v8120_v17 = vpop.f32.mrf.mxu1 }
 0x3ff   : > { %v6207_v11 = vpop.xlane.xlu0 %6206  ;;  %v6082_v2 = vsel %vm5871_vm11, %v8583_v59, %v12289_v62  ;;  %v8222_v46 = vpop.f32.mrf.mxu0  ;;  %v5413_v42 = vadd.f32 %v8118_v54, %v12104_v37 }
 0x400   : > { %v6323_v28 = vadd.f32 1.0, %v6291_v25  ;;  %v6260_v51 = vadd.f32 %v12122_v33, %v6207_v11  ;;  %6114 = vst [vmem:[%s12204_s17 + $0x70] sm:$0xff] %v6082_v2  ;;  %8596 = vrcp.f32 %v5988_v49  ;;  %v12415_v34 = vadd.f32 %v8221_v43, %v5410_v1  ;;  %v8122_v5 = vpop.f32.mrf.mxu1 }
 0x401   : > { %v8585_v12 = vpop.eup %8584  ;;  %8598 = vpow2.f32 %v7223_v55  ;;  %v8223_v27 = vpop.f32.mrf.mxu0 }
 0x402   : > { %6356 = vst.msk [vmem:[%s12135_s14 + $0xb8] sm:$0xff] %vm6332_vm10, %v6323_v28  ;;  %v6292_v26 = vmul.f32 %v6260_v51, %v6260_v51  ;;  %v8587_v44 = vpop.eup %8586  ;;  %v5989_v62 = vadd.f32 1.0, %v8585_v12  ;;  %v7224_v15 = vmul.f32 -1.442695, %v12415_v34  ;;  %v8224_v45 = vadd.f32 %v8223_v27, %v8222_v46  ;;  %v8123_v21 = vpop.f32.mrf.mxu1  ;;  %v12452_v46 = vld [vmem:[#allocation2] ss:$0 sm:$0xff] }
 0x403   : > { %v6210_v4 = vpop.xlane.xlu1 %6209  ;;  %v6083_v30 = vsel %vm5871_vm11, %v8587_v44, %v12303_v29  ;;  %v8225_v14 = vpop.f32.mrf.mxu0 }
 0x404   : > { %v6324_v63 = vadd.f32 1.0, %v6292_v26  ;;  %v6261_v56 = vadd.f32 %v12122_v33, %v6210_v4  ;;  %6115 = vst [vmem:[%s12204_s17 + $0x78] sm:$0xff] %v6083_v30  ;;  %8600 = vrcp.f32 %v5989_v62  ;;  %v12427_v13 = vadd.f32 %v8224_v45, %v5411_v41  ;;  %v12429_v24 = vpop.f32.mrf.mxu1 }
 0x405   : > { %v8589_v48 = vpop.eup %8588  ;;  %8602 = vpow2.f32 %v7224_v15  ;;  %v8226_v10 = vpop.f32.mrf.mxu0  ;;  %v8124_v26 = vadd.f32 %v8123_v21, %v8122_v5 }
 0x406   : > { %6357 = vst.msk [vmem:[%s12135_s14 + $0xc0] sm:$0xff] %vm6332_vm10, %v6324_v63  ;;  %v6293_v0 = vmul.f32 %v6261_v56, %v6261_v56  ;;  %v8591_v29 = vpop.eup %8590  ;;  %v6084_v19 = vsel %vm5871_vm11, %v8589_v48, %v12317_v20  ;;  %v7225_v58 = vmul.f32 -1.442695, %v12427_v13  ;;  %v8227_v8 = vadd.f32 %v8226_v10, %v8225_v14  ;;  %v8126_v57 = vpop.f32.mrf.mxu1 }
 0x407   : > { %v6213_v52 = vpop.xlane.xlu0 %6212  ;;  %6116 = vst [vmem:[%s12204_s17 + $0x80] sm:$0xff] %v6084_v19  ;;  %v5990_v9 = vadd.f32 1.0, %v8591_v29  ;;  %v8228_v50 = vpop.f32.mrf.mxu0  ;;  %v5415_v54 = vadd.f32 %v8124_v26, %v12114_v6  ;;  %v8127_v10 = vadd.f32 %v8126_v57, %v12429_v24 }
 0x408   : > { %v6325_v40 = vadd.f32 1.0, %v6293_v0  ;;  %v6262_v3 = vadd.f32 %v12122_v33, %v6213_v52  ;;  %8604 = vpow2.f32 %v7225_v58  ;;  %v12441_v25 = vadd.f32 %v8227_v8, %v5412_v38  ;;  %v8128_v53 = vpop.f32.mrf.mxu1 }
 0x409   : > { %v8593_v20 = vpop.eup %8592  ;;  %8606 = vrcp.f32 %v5990_v9  ;;  %v8229_v49 = vpop.f32.mrf.mxu0  ;;  %v8121_v33 = vadd.f32 %v8120_v17, %v12403_v60 }
 0x40a   : > { %6358 = vst.msk [vmem:[%s12135_s14 + $0xc8] sm:$0xff] %vm6332_vm10, %v6325_v40  ;;  %v6294_v59 = vmul.f32 %v6262_v3, %v6262_v3  ;;  %v8595_v1 = vpop.eup %8594  ;;  %v6085_v55 = vsel %vm5871_vm11, %v8593_v20, %v12331_v32  ;;  %v7226_v43 = vmul.f32 -1.442695, %v12441_v25  ;;  %v8230_v11 = vadd.f32 %v8229_v49, %v8228_v50  ;;  %v8129_v2 = vpop.f32.mrf.mxu1 }
 0x40b   : > { %v6216_v28 = vpop.xlane.xlu1 %6215  ;;  %6117 = vst [vmem:[%s12204_s17 + $0x88] sm:$0xff] %v6085_v55  ;;  %v5991_v51 = vadd.f32 1.0, %v8595_v1  ;;  %v8231_v41 = vpop.f32.mrf.mxu0  ;;  %v8130_v27 = vadd.f32 %v8129_v2, %v8128_v53  ;;  %v5414_v45 = vadd.f32 %v8121_v33, %v12110_v31 }
 0x40c   : > { %v6326_v37 = vadd.f32 1.0, %v6294_v59  ;;  %v6263_v12 = vadd.f32 %v12452_v46, %v6216_v28  ;;  %8608 = vpow2.f32 %v7226_v43  ;;  %v12455_v32 = vadd.f32 %v8230_v11, %v5413_v42  ;;  %v8131_v60 = vpop.f32.mrf.mxu1 }
 0x40d   : > { %v8597_v17 = vpop.eup %8596  ;;  %8610 = vrcp.f32 %v5991_v51  ;;  %v8232_v62 = vpop.f32.mrf.mxu0  ;;  %v5417_v29 = vadd.f32 %v8130_v27, %v12120_v61 }
 0x40e   : > { %6359 = vst.msk [vmem:[%s12135_s14 + $0xd0] sm:$0xff] %vm6332_vm10, %v6326_v37  ;;  %v6295_v44 = vmul.f32 %v6263_v12, %v6263_v12  ;;  %v8599_v22 = vpop.eup %8598  ;;  %v6086_v15 = vsel %vm5871_vm11, %v8597_v17, %v12345_v47  ;;  %v7227_v5 = vmul.f32 -1.442695, %v12455_v32  ;;  %v8233_v21 = vadd.f32 %v8232_v62, %v8231_v41  ;;  %v8132_v4 = vpop.f32.mrf.mxu1 }
 0x40f   : > { %v6219_v30 = vpop.xlane.xlu0 %6218  ;;  %6118 = vst [vmem:[%s12204_s17 + $0x90] sm:$0xff] %v6086_v15  ;;  %v5992_v63 = vadd.f32 1.0, %v8599_v22  ;;  %v8234_v48 = vpop.f32.mrf.mxu0  ;;  %v8133_v52 = vadd.f32 %v8132_v4, %v8131_v60 }
 0x410   : > { %v6327_v56 = vadd.f32 1.0, %v6295_v44  ;;  %v6264_v14 = vadd.f32 %v12452_v46, %v6219_v30  ;;  %8612 = vpow2.f32 %v7227_v5  ;;  %v12467_v0 = vadd.f32 %v8233_v21, %v5414_v45  ;;  %v8240_v47 = vpop.f32.mrf.mxu1 }
 0x411   : > { %v8601_v31 = vpop.eup %8600  ;;  %8614 = vrcp.f32 %v5992_v63  ;;  %v8235_v38 = vpop.f32.mrf.mxu0  ;;  %v5418_v11 = vadd.f32 %v8133_v52, %v12125_v18 }
 0x412   : > { %6360 = vst.msk [vmem:[%s12135_s14 + $0xd8] sm:$0xff] %vm6332_vm10, %v6327_v56  ;;  %v6296_v19 = vmul.f32 %v6264_v14, %v6264_v14  ;;  %v8603_v58 = vpop.eup %8602  ;;  %v6087_v6 = vsel %vm5871_vm11, %v8601_v31, %v12359_v23  ;;  %v7228_v8 = vmul.f32 -1.442695, %v12467_v0  ;;  %v8236_v9 = vadd.f32 %v8235_v38, %v8234_v48  ;;  %v8241_v40 = vpop.f32.mrf.mxu1 }
 0x413   : > { %v6222_v3 = vpop.xlane.xlu1 %6221  ;;  %6119 = vst [vmem:[%s12204_s17 + $0x98] sm:$0xff] %v6087_v6  ;;  %v5993_v24 = vadd.f32 1.0, %v8603_v58  ;;  %v8242_v61 = vadd.f32 %v8241_v40, %v8240_v47  ;;  %v8237_v53 = vpop.f32.mrf.mxu0  ;;  %v5416_v23 = vadd.f32 %v8127_v10, %v12117_v35 }
 0x414   : > { %v6328_v57 = vadd.f32 1.0, %v6296_v19  ;;  %v6265_v50 = vadd.f32 %v12452_v46, %v6222_v3  ;;  %8616 = vpow2.f32 %v7228_v8  ;;  %v12479_v20 = vadd.f32 %v8236_v9, %v5415_v54  ;;  %v8243_v42 = vpop.f32.mrf.mxu1 }
 0x415   : > { %v8605_v59 = vpop.eup %8604  ;;  %8618 = vrcp.f32 %v5993_v24  ;;  %v12484_v49 = vadd.f32 %v8242_v61, %v5417_v29  ;;  %v8238_v55 = vpop.f32.mrf.mxu0 }
 0x416   : > { %6361 = vst.msk [vmem:[%s12135_s14 + $0xe0] sm:$0xff] %vm6332_vm10, %v6328_v57  ;;  %v6297_v1 = vmul.f32 %v6265_v50, %v6265_v50  ;;  %v8607_v33 = vpop.eup %8606  ;;  %v5994_v43 = vadd.f32 1.0, %v8605_v59  ;;  %v7229_v2 = vmul.f32 -1.442695, %v12479_v20  ;;  %v8239_v28 = vadd.f32 %v8238_v55, %v8237_v53  ;;  %v8244_v51 = vpop.f32.mrf.mxu1 }
 0x417   : > { %v6225_v37 = vpop.xlane.xlu0 %6224  ;;  %v6088_v35 = vsel %vm5871_vm11, %v8607_v33, %v12373_v7  ;;  %v7231_v12 = vmul.f32 -1.442695, %v12484_v49  ;;  %v8245_v26 = vadd.f32 %v8244_v51, %v8243_v42 }
 0x418   : > { %v6329_v41 = vadd.f32 1.0, %v6297_v1  ;;  %6120 = vst [vmem:[%s12204_s17 + $0xa0] sm:$0xff] %v6088_v35  ;;  %8620 = vrcp.f32 %v5994_v43  ;;  %v12493_v60 = vadd.f32 %v8239_v28, %v5416_v23  ;;  %v6266_v18 = vadd.f32 %v12452_v46, %v6225_v37 }
 0x419   : > { %v8609_v17 = vpop.eup %8608  ;;  %8622 = vpow2.f32 %v7229_v2  ;;  %v12498_v27 = vadd.f32 %v8245_v26, %v5418_v11 }
 0x41a   : > { %6362 = vst.msk [vmem:[%s12135_s14 + $0xe8] sm:$0xff] %vm6332_vm10, %v6329_v41  ;;  %v8611_v44 = vpop.eup %8610  ;;  %v5995_v62 = vadd.f32 1.0, %v8609_v17  ;;  %8624 = vpow2.f32 %v7231_v12  ;;  %v7230_v7 = vmul.f32 -1.442695, %v12493_v60  ;;  %v6298_v22 = vmul.f32 %v6266_v18, %v6266_v18  ;;  %v6228_v15 = vpop.xlane.xlu1 %6227 }
 0x41b   : > { %v6089_v45 = vsel %vm5871_vm11, %v8611_v44, %v12387_v36  ;;  %v7232_v5 = vmul.f32 -1.442695, %v12498_v27  ;;  %v6267_v21 = vadd.f32 %v12452_v46, %v6228_v15 }
 0x41c   : > { %6121 = vst [vmem:[%s12204_s17 + $0xa8] sm:$0xff] %v6089_v45  ;;  %8626 = vrcp.f32 %v5995_v62  ;;  %v6330_v4 = vadd.f32 1.0, %v6298_v22 }
 0x41d   : > { %v8613_v30 = vpop.eup %8612  ;;  %8628 = vpow2.f32 %v7230_v7  ;;  %v6299_v63 = vmul.f32 %v6267_v21, %v6267_v21 }
 0x41e   : > { %v8615_v56 = vpop.eup %8614  ;;  %v5996_v14 = vadd.f32 1.0, %v8613_v30  ;;  %8630 = vpow2.f32 %v7232_v5  ;;  %6363 = vst.msk [vmem:[%s12135_s14 + $0xf0] sm:$0xff] %vm6332_vm10, %v6330_v4 }
 0x41f   : > { %v6090_v36 = vsel %vm5871_vm11, %v8615_v56, %v12401_v16  ;;  %v6331_v48 = vadd.f32 1.0, %v6299_v63 }
 0x420   : > { %6122 = vst [vmem:[%s12204_s17 + $0xb0] sm:$0xff] %v6090_v36  ;;  %8632 = vrcp.f32 %v5996_v14 }
 0x421   : > { %v8617_v46 = vpop.eup %8616  ;;  %6364 = vst.msk [vmem:[%s12135_s14 + $0xf8] sm:$0xff] %vm6332_vm10, %v6331_v48 }
 0x422   : > { %v8619_v54 = vpop.eup %8618  ;;  %v5997_v47 = vadd.f32 1.0, %v8617_v46 }
 0x423   : > { %v6091_v31 = vsel %vm5871_vm11, %v8619_v54, %v12415_v34 }
 0x424   : > { %6123 = vst [vmem:[%s12204_s17 + $0xb8] sm:$0xff] %v6091_v31  ;;  %8634 = vrcp.f32 %v5997_v47 }
 0x425   : > { %v8621_v10 = vpop.eup %8620 }
 0x426   : > { %v8623_v29 = vpop.eup %8622  ;;  %v6092_v16 = vsel %vm5871_vm11, %v8621_v10, %v12427_v13 }
 0x427   : > { %v8625_v19 = vpop.eup %8624  ;;  %6124 = vst [vmem:[%s12204_s17 + $0xc0] sm:$0xff] %v6092_v16  ;;  %v5998_v38 = vadd.f32 1.0, %v8623_v29 }
 0x428   : > { %v6000_v58 = vadd.f32 1.0, %v8625_v19 }
 0x429   : > { %v8627_v6 = vpop.eup %8626  ;;  %8636 = vrcp.f32 %v5998_v38 }
 0x42a   : > { %v8629_v8 = vpop.eup %8628  ;;  %v6093_v34 = vsel %vm5871_vm11, %v8627_v6, %v12441_v25  ;;  %8638 = vrcp.f32 %v6000_v58 }
 0x42b   : > { %v8631_v52 = vpop.eup %8630  ;;  %6125 = vst [vmem:[%s12204_s17 + $0xc8] sm:$0xff] %v6093_v34  ;;  %v5999_v9 = vadd.f32 1.0, %v8629_v8 }
 0x42c   : > { %v6001_v13 = vadd.f32 1.0, %v8631_v52 }
 0x42d   : > { %v8633_v40 = vpop.eup %8632  ;;  %8640 = vrcp.f32 %v5999_v9 }
 0x42e   : > { %v6094_v3 = vsel %vm5871_vm11, %v8633_v40, %v12455_v32  ;;  %8642 = vrcp.f32 %v6001_v13 }
 0x42f   : > { %6126 = vst [vmem:[%s12204_s17 + $0xd0] sm:$0xff] %v6094_v3 }
 0x431   : > { %v8635_v24 = vpop.eup %8634 }
 0x432   : > { %v6095_v25 = vsel %vm5871_vm11, %v8635_v24, %v12467_v0 }
 0x433   : > { %6127 = vst [vmem:[%s12204_s17 + $0xd8] sm:$0xff] %v6095_v25 }
 0x436   : > { %v8637_v57 = vpop.eup %8636 }
 0x437   : > { %v8639_v61 = vpop.eup %8638  ;;  %v6096_v50 = vsel %vm5871_vm11, %v8637_v57, %v12479_v20 }
 0x438   : > { %6128 = vst [vmem:[%s12204_s17 + $0xe0] sm:$0xff] %v6096_v50  ;;  %v6098_v32 = vsel %vm5871_vm11, %v8639_v61, %v12484_v49 }
 0x439   : > { %6130 = vst [vmem:[%s12204_s17 + $0xf0] sm:$0xff] %v6098_v32 }
 0x43a   : > { %v8641_v53 = vpop.eup %8640 }
 0x43b   : > { %v8643_v42 = vpop.eup %8642  ;;  %v6097_v59 = vsel %vm5871_vm11, %v8641_v53, %v12493_v60 }
 0x43c   : > { %6129 = vst [vmem:[%s12204_s17 + $0xe8] sm:$0xff] %v6097_v59  ;;  %v6099_v0 = vsel %vm5871_vm11, %v8643_v42, %v12498_v27 }
 0x43d   : > { %6131 = vst [vmem:[%s12204_s17 + $0xf8] sm:$0xff] %v6099_v0 }
 0x43e PF: > { %s19_s25 = sadd.s32 1, %s8758_s25   ;;  %s12939_s23 = smov %s8754_s24 }
 0x43f   : > { %p16_p5 = scmp.ge.s32.totalorder %s19_s25, 4   ;;  %s12940_s24 = smov %s12942_s4 }
 0x441   :  { %18 = sbr.rel (!%p16_p5) target bundleno = 3 (0x3), region = 99 }

</bundles_post_ra>
